<compile_context>
chip_gen: v6e
topology: v6e:2x2x1
jax: 0.10.0
libtpu: 0.0.40
codegen_flags: <defaults>
</compile_context>

<pallas_src>
import functools
import math

import jax
import jax.numpy as jnp
from jax.experimental import pallas as pl
from jax.experimental.pallas import tpu as pltpu


# ----------------------------------------------------------------------------
# small in-kernel helpers
# ----------------------------------------------------------------------------

def _ln2d(x, g, b):
    """LayerNorm over the last dim (f32 statistics, eps=1e-5)."""
    mu = jnp.mean(x, axis=-1, keepdims=True)
    xc = x - mu
    var = jnp.mean(xc * xc, axis=-1, keepdims=True)
    return xc * jax.lax.rsqrt(var + 1e-5) * g + b


def _gelu(x):
    # exact (erf-based) GELU, matching torch.nn.GELU default, in f32
    return 0.5 * x * (1.0 + jax.lax.erf(x * (1.0 / math.sqrt(2.0))))


# ----------------------------------------------------------------------------
# Kernel A: text prologue (runs once; text is batch-invariant)
# ----------------------------------------------------------------------------

def _text_prologue_kernel(text_ref, tproj_ref, kw_ref, kb_ref,
                          lng_ref, lnb_ref, tw_ref, tb_ref,
                          temb_ref, keys_ref, x0_ref):
    t = text_ref[...]                                                  # (Kp, Dt)
    temb = jnp.dot(t, tproj_ref[...], preferred_element_type=jnp.float32)
    temb_ref[...] = temb
    keys_ref[...] = (jnp.dot(t, kw_ref[...],
                             preferred_element_type=jnp.float32) + kb_ref[...])
    y = _ln2d(temb, lng_ref[...], lnb_ref[...])
    x0_ref[...] = (jnp.dot(y, tw_ref[...],
                           preferred_element_type=jnp.float32) + tb_ref[...])


# ----------------------------------------------------------------------------
# Kernel B: visual prologue (rows = B * M)
# ----------------------------------------------------------------------------

def _visual_prologue_kernel(v_ref, vp_ref, g1_ref, b1_ref,
                            mw_ref, mb_ref, g2_ref, b2_ref, mem_ref):
    v = v_ref[...]                                                     # (B*M, Dv)
    ve = jnp.dot(v, vp_ref[...], preferred_element_type=jnp.float32)   # (B*M, Dt)
    h = _ln2d(ve, g1_ref[...], b1_ref[...])
    h = jnp.dot(h, mw_ref[...], preferred_element_type=jnp.float32) + mb_ref[...]
    mem_ref[...] = _ln2d(h, g2_ref[...], b2_ref[...])


# ----------------------------------------------------------------------------
# Kernel C: fused 9-layer transformer decoder stack (grid over layers)
# ----------------------------------------------------------------------------
# vec_ref rows: 0 n1_g, 1 n1_b, 2 n2_g, 3 n2_b, 4 n3_g, 5 n3_b,
#               6 self_proj_b, 7 cross_proj_b, 8 mlp_b2

def _decoder_stack_kernel(x0_ref, mem_ref, vec_ref, b1_ref,
                          saqkv_ref, saproj_ref, caq_ref, cakv_ref, caproj_ref,
                          w1_ref, w2_ref, o_ref, x_scr,
                          *, heads, batch, kp, k_real, m):
    C = o_ref.shape[-1]
    d = C // heads
    scale = d ** -0.5
    l = pl.program_id(0)
    n_layers = pl.num_programs(0)

    @pl.when(l == 0)
    def _init():
        x0 = x0_ref[...]                                               # (kp, C)
        for bi in range(batch):
            x_scr[bi * kp:(bi + 1) * kp, :] = x0

    x = x_scr[...]                                                     # (B*kp, C) f32
    mem = mem_ref[...]                                                 # (B*m,  C) f32

    def ln(z, gi, bi_):
        return _ln2d(z, vec_ref[0, gi:gi + 1, :], vec_ref[0, bi_:bi_ + 1, :])

    def mm(a, w):
        # bf16 MXU inputs, f32 accumulation
        return jnp.dot(a.astype(jnp.bfloat16), w.astype(jnp.bfloat16),
                       preferred_element_type=jnp.float32)

    rq = batch * kp

    def make_mask(rk, kstride, kvalid):
        qi = jax.lax.broadcasted_iota(jnp.int32, (rq, rk), 0)
        kj = jax.lax.broadcasted_iota(jnp.int32, (rq, rk), 1)
        valid = None
        for bi in range(batch):
            q_in = (qi >= bi * kp) & (qi < (bi + 1) * kp)
            k_in = (kj >= bi * kstride) & (kj < bi * kstride + kvalid)
            term = q_in & k_in
            valid = term if valid is None else (valid | term)
        return jnp.where(valid, 0.0, -1e30).astype(jnp.float32)

    mask_self = make_mask(rq, kp, k_real)          # block-diag + pad-key mask
    mask_cross = make_mask(batch * m, m, m)        # block-diag over memory

    def attn(q, k, v, mask):
        outs = []
        for h in range(heads):
            qh = q[:, h * d:(h + 1) * d]
            kh = k[:, h * d:(h + 1) * d]
            vh = v[:, h * d:(h + 1) * d]
            s = jax.lax.dot_general(qh, kh, (((1,), (1,)), ((), ())),
                                    preferred_element_type=jnp.float32) * scale
            s = s + mask
            s = s - jnp.max(s, axis=-1, keepdims=True)
            p = jnp.exp(s)
            p = p * pl.reciprocal(jnp.sum(p, axis=-1, keepdims=True), approx=True)
            outs.append(jnp.dot(p, vh, preferred_element_type=jnp.float32))
        return jnp.concatenate(outs, axis=-1)

    # ---- self attention (pre-norm, residual) ----
    y = ln(x, 0, 1)
    qkv = mm(y, saqkv_ref[0])                                          # (R, 3C)
    a = attn(qkv[:, :C], qkv[:, C:2 * C], qkv[:, 2 * C:], mask_self)
    x = x + mm(a, saproj_ref[0]) + vec_ref[0, 6:7, :]

    # ---- cross attention over visual memory ----
    y = ln(x, 2, 3)
    qc = mm(y, caq_ref[0])                                             # (R, C)
    kvm = mm(mem, cakv_ref[0])                                         # (Rm, 2C)
    a = attn(qc, kvm[:, :C], kvm[:, C:], mask_cross)
    x = x + mm(a, caproj_ref[0]) + vec_ref[0, 7:8, :]

    # ---- MLP (GELU), f32 elementwise ----
    y = ln(x, 4, 5)
    h = mm(y, w1_ref[0]) + b1_ref[0]                                   # (R, 4C)
    h = _gelu(h)
    x = x + mm(h, w2_ref[0]) + vec_ref[0, 8:9, :]

    x_scr[...] = x

    @pl.when(l == n_layers - 1)
    def _finalize():
        o_ref[...] = x


# ----------------------------------------------------------------------------
# Kernel D: epilogue (out LN/proj, gamma residual, queries projection)
# ----------------------------------------------------------------------------

def _epilogue_kernel(x_ref, lng_ref, lnb_ref, ow_ref, ob_ref,
                     g_ref, temb_ref, qw_ref, qb_ref, q_ref, *, batch):
    x = x_ref[...]                                                     # (B*Kp, W)
    h = _ln2d(x, lng_ref[...], lnb_ref[...])
    delta = (jnp.dot(h, ow_ref[...], preferred_element_type=jnp.float32)
             + ob_ref[...])                                            # (B*Kp, Dt)
    te = temb_ref[...]                                                 # (Kp, Dt)
    ctx = jnp.concatenate([te] * batch, axis=0) + g_ref[...] * delta
    q_ref[...] = (jnp.dot(ctx, qw_ref[...],
                          preferred_element_type=jnp.float32) + qb_ref[...])


# ----------------------------------------------------------------------------
# Forward composition
# ----------------------------------------------------------------------------

def text_decoder_forward(params, text, visual, num_heads=4):
    """TextDecoder.forward with classes=None (== forward_)."""
    c = params["ctx"]
    B, M, Dv = visual.shape
    K, Dt = text.shape[1], text.shape[2]
    L, W = c["sa_qkv_w"].shape[0], c["sa_qkv_w"].shape[1]
    Do = params["keys_w"].shape[1]
    Kp = ((K + 7) // 8) * 8                     # pad text tokens to multiple of 8

    text2d = jnp.pad(text[0], ((0, Kp - K), (0, 0)))

    # --- A: text prologue (once, batch-invariant) ---
    temb, keys_pad, x0 = pl.pallas_call(
        _text_prologue_kernel,
        out_shape=(jax.ShapeDtypeStruct((Kp, Dt), jnp.float32),
                   jax.ShapeDtypeStruct((Kp, Do), jnp.float32),
                   jax.ShapeDtypeStruct((Kp, W), jnp.float32)),
    )(text2d, params["text_proj"],
      params["keys_w"], params["keys_b"].reshape(1, Do),
      c["txt_ln_g"].reshape(1, Dt), c["txt_ln_b"].reshape(1, Dt),
      c["txt_w"], c["txt_b"].reshape(1, W))

    # --- B: visual prologue ---
    mem = pl.pallas_call(
        _visual_prologue_kernel,
        out_shape=jax.ShapeDtypeStruct((B * M, W), jnp.float32),
    )(visual.reshape(B * M, Dv), params["visual_proj"],
      c["mem_ln1_g"].reshape(1, Dt), c["mem_ln1_b"].reshape(1, Dt),
      c["mem_w"], c["mem_b"].reshape(1, W),
      c["mem_ln2_g"].reshape(1, W), c["mem_ln2_b"].reshape(1, W))

    # --- C: fused 9-layer decoder stack (grid over layers, weights streamed) ---
    wmap = lambda l: (l, 0, 0)
    cmap2 = lambda l: (0, 0)
    x = pl.pallas_call(
        functools.partial(_decoder_stack_kernel, heads=num_heads, batch=B,
                          kp=Kp, k_real=K, m=M),
        out_shape=jax.ShapeDtypeStruct((B * Kp, W), jnp.float32),
        grid=(L,),
        in_specs=[
            pl.BlockSpec((Kp, W), cmap2),                  # x0 (resident)
            pl.BlockSpec((B * M, W), cmap2),               # mem (resident)
            pl.BlockSpec((1, 9, W), wmap),                 # LN params + biases
            pl.BlockSpec((1, 1, 4 * W), wmap),             # mlp_b1
            pl.BlockSpec((1, W, 3 * W), wmap),             # self qkv  (bf16)
            pl.BlockSpec((1, W, W), wmap),                 # self proj (bf16)
            pl.BlockSpec((1, W, W), wmap),                 # cross q   (bf16)
            pl.BlockSpec((1, W, 2 * W), wmap),             # cross kv  (bf16)
            pl.BlockSpec((1, W, W), wmap),                 # cross proj(bf16)
            pl.BlockSpec((1, W, 4 * W), wmap),             # mlp w1    (bf16)
            pl.BlockSpec((1, 4 * W, W), wmap),             # mlp w2    (bf16)
        ],
        out_specs=pl.BlockSpec((B * Kp, W), cmap2),
        scratch_shapes=[pltpu.VMEM((B * Kp, W), jnp.float32)],
        compiler_params=pltpu.CompilerParams(
            dimension_semantics=("arbitrary",)),
    )(x0, mem, c["vec"], c["mlp_b1"],
      c["sa_qkv_w"], c["sa_proj_w"], c["ca_q_w"], c["ca_kv_w"], c["ca_proj_w"],
      c["mlp_w1"], c["mlp_w2"])

    # --- D: epilogue ---
    queries_pad = pl.pallas_call(
        functools.partial(_epilogue_kernel, batch=B),
        out_shape=jax.ShapeDtypeStruct((B * Kp, Do), jnp.float32),
    )(x, c["out_ln_g"].reshape(1, W), c["out_ln_b"].reshape(1, W),
      c["out_w"], c["out_b"].reshape(1, Dt), c["gamma"].reshape(1, Dt),
      temb, params["queries_w"], params["queries_b"].reshape(1, Do))

    loss = 0.0
    keys = jnp.broadcast_to(keys_pad[:K][None, :, :], (B, K, Do))
    queries = queries_pad.reshape(B, Kp, Do)[:, :K, :]
    return loss, keys, queries


# ----------------------------------------------------------------------------
# Deterministic parameter initialization (synthetic weights, stacked per layer)
# ----------------------------------------------------------------------------

class _KeyGen:
    def __init__(self, key):
        self._key = key

    def __call__(self):
        self._key, sub = jax.random.split(self._key)
        return sub


def init_params(key, visual_dim, text_dim, out_dim, width=256, heads=4, layers=9):
    kg = _KeyGen(key)

    def nrm(shape, std=0.02):
        return (std * jax.random.normal(kg(), shape)).astype(jnp.float32)

    ones = lambda s: jnp.ones(s, jnp.float32)
    zeros = lambda s: jnp.zeros(s, jnp.float32)
    L, W = layers, width
    bf16 = jnp.bfloat16

    # stacked per-layer weights (bf16 for MXU / halved DMA; biases/LN in f32)
    sa_qkv_w = jnp.concatenate([nrm((L, W, W)), nrm((L, W, W)), nrm((L, W, W))],
                               axis=-1).astype(bf16)
    sa_proj_w = nrm((L, W, W)).astype(bf16)
    ca_q_w = nrm((L, W, W)).astype(bf16)
    ca_kv_w = jnp.concatenate([nrm((L, W, W)), nrm((L, W, W))], axis=-1).astype(bf16)
    ca_proj_w = nrm((L, W, W)).astype(bf16)
    mlp_w1 = nrm((L, W, 4 * W)).astype(bf16)
    mlp_w2 = nrm((L, 4 * W, W)).astype(bf16)

    # vec rows: n1_g,n1_b,n2_g,n2_b,n3_g,n3_b,self_proj_b,cross_proj_b,mlp_b2
    vec = jnp.stack([ones((L, W)), zeros((L, W)),
                     ones((L, W)), zeros((L, W)),
                     ones((L, W)), zeros((L, W)),
                     zeros((L, W)), zeros((L, W)), zeros((L, W))], axis=1)
    mlp_b1 = zeros((L, 1, 4 * W))

    ctx = dict(
        mem_ln1_g=ones((text_dim,)), mem_ln1_b=zeros((text_dim,)),
        mem_w=nrm((text_dim, W)), mem_b=zeros((W,)),
        mem_ln2_g=ones((W,)), mem_ln2_b=zeros((W,)),
        txt_ln_g=ones((text_dim,)), txt_ln_b=zeros((text_dim,)),
        txt_w=nrm((text_dim, W)), txt_b=zeros((W,)),
        vec=vec, mlp_b1=mlp_b1,
        sa_qkv_w=sa_qkv_w, sa_proj_w=sa_proj_w,
        ca_q_w=ca_q_w, ca_kv_w=ca_kv_w, ca_proj_w=ca_proj_w,
        mlp_w1=mlp_w1, mlp_w2=mlp_w2,
        out_ln_g=ones((W,)), out_ln_b=zeros((W,)),
        out_w=nrm((W, text_dim)), out_b=zeros((text_dim,)),
        gamma=nrm((text_dim,), std=0.02),
    )

    return dict(
        missing_emb=nrm((19, text_dim), std=1.0),     # unused in forward_
        text_proj=nrm((text_dim, text_dim), std=1.0),
        visual_proj=nrm((visual_dim, text_dim), std=visual_dim ** (-0.5)),
        ctx=ctx,
        keys_w=nrm((text_dim, out_dim)), keys_b=zeros((out_dim,)),
        queries_w=nrm((text_dim, out_dim)), queries_b=zeros((out_dim,)),
    )


# ----------------------------------------------------------------------------
# Main
# ----------------------------------------------------------------------------

if __name__ == "__main__":
    B, N_VIS, K_TXT = 2, 16, 19          # batch, visual tokens, text tokens
    VISUAL_DIM, TEXT_DIM, OUT_DIM = 64, 128, 64
    HEADS = 4

    root = jax.random.PRNGKey(0)
    k_param, k_text, k_vis = jax.random.split(root, 3)

    params = init_params(k_param, VISUAL_DIM, TEXT_DIM, OUT_DIM, heads=HEADS)
    text = jax.random.normal(k_text, (1, K_TXT, TEXT_DIM), jnp.float32)
    visual = jax.random.normal(k_vis, (B, N_VIS, VISUAL_DIM), jnp.float32)

    fwd = jax.jit(functools.partial(text_decoder_forward, num_heads=HEADS))
    loss, keys_out, queries_out = fwd(params, text, visual)
    jax.block_until_ready((keys_out, queries_out))

    assert keys_out.shape == (B, K_TXT, OUT_DIM), keys_out.shape
    assert queries_out.shape == (B, K_TXT, OUT_DIM), queries_out.shape
    assert bool(jnp.all(jnp.isfinite(keys_out)))
    assert bool(jnp.all(jnp.isfinite(queries_out)))
    print("KERNEL_OK")
</pallas_src>

<mosaic_0001>
module attributes {stable_mosaic.version = 11 : i64} {
  func.func @_text_prologue_kernel(%arg0: memref<24x128xf32, #tpu.memory_space<vmem>>, %arg1: memref<128x128xf32, #tpu.memory_space<vmem>>, %arg2: memref<128x64xf32, #tpu.memory_space<vmem>>, %arg3: memref<1x64xf32, #tpu.memory_space<vmem>>, %arg4: memref<1x128xf32, #tpu.memory_space<vmem>>, %arg5: memref<1x128xf32, #tpu.memory_space<vmem>>, %arg6: memref<128x256xf32, #tpu.memory_space<vmem>>, %arg7: memref<1x256xf32, #tpu.memory_space<vmem>>, %arg8: memref<24x128xf32, #tpu.memory_space<vmem>>, %arg9: memref<24x64xf32, #tpu.memory_space<vmem>>, %arg10: memref<24x256xf32, #tpu.memory_space<vmem>>) attributes {dimension_semantics = [], scalar_prefetch = 0 : i64, scratch_operands = 0 : i64, tpu.core_type = #tpu.core_type<tc>} {
    %c0 = arith.constant 0 : index
    %c0_0 = arith.constant 0 : index
    %0 = vector.load %arg0[%c0, %c0_0] : memref<24x128xf32, #tpu.memory_space<vmem>>, vector<24x128xf32>
    %c0_1 = arith.constant 0 : index
    %c0_2 = arith.constant 0 : index
    %1 = vector.load %arg1[%c0_1, %c0_2] : memref<128x128xf32, #tpu.memory_space<vmem>>, vector<128x128xf32>
    %cst = arith.constant dense<0.000000e+00> : vector<24x128xf32>
    %2 = tpu.matmul %0, %1, %cst {dimension_numbers = #tpu.dot_dimension_numbers<[1], [0], [0], [1], [0, 0, 1, 1], [], []>} : vector<24x128xf32>, vector<128x128xf32>, vector<24x128xf32> -> vector<24x128xf32>
    %c0_3 = arith.constant 0 : index
    %c0_4 = arith.constant 0 : index
    %3 = vector.load %arg8[%c0_3, %c0_4] : memref<24x128xf32, #tpu.memory_space<vmem>>, vector<24x128xf32>
    tpu.vector_store %arg8[%c0_3, %c0_4], %2 {strides = array<i32>} : memref<24x128xf32, #tpu.memory_space<vmem>>, vector<24x128xf32>,
    %c0_5 = arith.constant 0 : index
    %c0_6 = arith.constant 0 : index
    %4 = vector.load %arg2[%c0_5, %c0_6] : memref<128x64xf32, #tpu.memory_space<vmem>>, vector<128x64xf32>
    %cst_7 = arith.constant dense<0.000000e+00> : vector<24x64xf32>
    %5 = tpu.matmul %0, %4, %cst_7 {dimension_numbers = #tpu.dot_dimension_numbers<[1], [0], [0], [1], [0, 0, 1, 1], [], []>} : vector<24x128xf32>, vector<128x64xf32>, vector<24x64xf32> -> vector<24x64xf32>
    %c0_8 = arith.constant 0 : index
    %c0_9 = arith.constant 0 : index
    %6 = vector.load %arg3[%c0_8, %c0_9] : memref<1x64xf32, #tpu.memory_space<vmem>>, vector<1x64xf32>
    %7 = vector.broadcast %6 : vector<1x64xf32> to vector<24x64xf32>
    %8 = arith.addf %5, %7 : vector<24x64xf32>
    %c0_10 = arith.constant 0 : index
    %c0_11 = arith.constant 0 : index
    %9 = vector.load %arg9[%c0_10, %c0_11] : memref<24x64xf32, #tpu.memory_space<vmem>>, vector<24x64xf32>
    tpu.vector_store %arg9[%c0_10, %c0_11], %8 {strides = array<i32>} : memref<24x64xf32, #tpu.memory_space<vmem>>, vector<24x64xf32>,
    %c0_12 = arith.constant 0 : index
    %c0_13 = arith.constant 0 : index
    %10 = vector.load %arg4[%c0_12, %c0_13] : memref<1x128xf32, #tpu.memory_space<vmem>>, vector<1x128xf32>
    %c0_14 = arith.constant 0 : index
    %c0_15 = arith.constant 0 : index
    %11 = vector.load %arg5[%c0_14, %c0_15] : memref<1x128xf32, #tpu.memory_space<vmem>>, vector<1x128xf32>
    %cst_16 = arith.constant dense<0.000000e+00> : vector<24xf32>
    %12 = vector.multi_reduction <add>, %2, %cst_16 [1] : vector<24x128xf32> to vector<24xf32>
    %13 = vector.shape_cast %12 : vector<24xf32> to vector<24x1xf32>
    %cst_17 = arith.constant 1.280000e+02 : f32
    %14 = vector.broadcast %cst_17 : f32 to vector<24x1xf32>
    %15 = arith.divf %13, %14 : vector<24x1xf32>
    %16 = vector.broadcast %15 : vector<24x1xf32> to vector<24x128xf32>
    %17 = arith.subf %2, %16 : vector<24x128xf32>
    %18 = arith.mulf %17, %17 : vector<24x128xf32>
    %cst_18 = arith.constant dense<0.000000e+00> : vector<24xf32>
    %19 = vector.multi_reduction <add>, %18, %cst_18 [1] : vector<24x128xf32> to vector<24xf32>
    %20 = vector.shape_cast %19 : vector<24xf32> to vector<24x1xf32>
    %cst_19 = arith.constant 1.280000e+02 : f32
    %21 = vector.broadcast %cst_19 : f32 to vector<24x1xf32>
    %22 = arith.divf %20, %21 : vector<24x1xf32>
    %cst_20 = arith.constant 9.99999974E-6 : f32
    %23 = vector.broadcast %cst_20 : f32 to vector<24x1xf32>
    %24 = arith.addf %22, %23 : vector<24x1xf32>
    %25 = math.rsqrt %24 : vector<24x1xf32>
    %26 = vector.broadcast %25 : vector<24x1xf32> to vector<24x128xf32>
    %27 = arith.mulf %17, %26 : vector<24x128xf32>
    %28 = vector.broadcast %10 : vector<1x128xf32> to vector<24x128xf32>
    %29 = arith.mulf %27, %28 : vector<24x128xf32>
    %30 = vector.broadcast %11 : vector<1x128xf32> to vector<24x128xf32>
    %31 = arith.addf %29, %30 : vector<24x128xf32>
    %c0_21 = arith.constant 0 : index
    %c0_22 = arith.constant 0 : index
    %32 = vector.load %arg6[%c0_21, %c0_22] : memref<128x256xf32, #tpu.memory_space<vmem>>, vector<128x256xf32>
    %cst_23 = arith.constant dense<0.000000e+00> : vector<24x256xf32>
    %33 = tpu.matmul %31, %32, %cst_23 {dimension_numbers = #tpu.dot_dimension_numbers<[1], [0], [0], [1], [0, 0, 1, 1], [], []>} : vector<24x128xf32>, vector<128x256xf32>, vector<24x256xf32> -> vector<24x256xf32>
    %c0_24 = arith.constant 0 : index
    %c0_25 = arith.constant 0 : index
    %34 = vector.load %arg7[%c0_24, %c0_25] : memref<1x256xf32, #tpu.memory_space<vmem>>, vector<1x256xf32>
    %35 = vector.broadcast %34 : vector<1x256xf32> to vector<24x256xf32>
    %36 = arith.addf %33, %35 : vector<24x256xf32>
    %c0_26 = arith.constant 0 : index
    %c0_27 = arith.constant 0 : index
    %37 = vector.load %arg10[%c0_26, %c0_27] : memref<24x256xf32, #tpu.memory_space<vmem>>, vector<24x256xf32>
    tpu.vector_store %arg10[%c0_26, %c0_27], %36 {strides = array<i32>} : memref<24x256xf32, #tpu.memory_space<vmem>>, vector<24x256xf32>,
    return
  }
}

module attributes {stable_mosaic.version = 11 : i64} {
  func.func @_visual_prologue_kernel(%arg0: memref<32x64xf32, #tpu.memory_space<vmem>>, %arg1: memref<64x128xf32, #tpu.memory_space<vmem>>, %arg2: memref<1x128xf32, #tpu.memory_space<vmem>>, %arg3: memref<1x128xf32, #tpu.memory_space<vmem>>, %arg4: memref<128x256xf32, #tpu.memory_space<vmem>>, %arg5: memref<1x256xf32, #tpu.memory_space<vmem>>, %arg6: memref<1x256xf32, #tpu.memory_space<vmem>>, %arg7: memref<1x256xf32, #tpu.memory_space<vmem>>, %arg8: memref<32x256xf32, #tpu.memory_space<vmem>>) attributes {dimension_semantics = [], scalar_prefetch = 0 : i64, scratch_operands = 0 : i64, tpu.core_type = #tpu.core_type<tc>} {
    %c0 = arith.constant 0 : index
    %c0_0 = arith.constant 0 : index
    %0 = vector.load %arg0[%c0, %c0_0] : memref<32x64xf32, #tpu.memory_space<vmem>>, vector<32x64xf32>
    %c0_1 = arith.constant 0 : index
    %c0_2 = arith.constant 0 : index
    %1 = vector.load %arg1[%c0_1, %c0_2] : memref<64x128xf32, #tpu.memory_space<vmem>>, vector<64x128xf32>
    %cst = arith.constant dense<0.000000e+00> : vector<32x128xf32>
    %2 = tpu.matmul %0, %1, %cst {dimension_numbers = #tpu.dot_dimension_numbers<[1], [0], [0], [1], [0, 0, 1, 1], [], []>} : vector<32x64xf32>, vector<64x128xf32>, vector<32x128xf32> -> vector<32x128xf32>
    %c0_3 = arith.constant 0 : index
    %c0_4 = arith.constant 0 : index
    %3 = vector.load %arg2[%c0_3, %c0_4] : memref<1x128xf32, #tpu.memory_space<vmem>>, vector<1x128xf32>
    %c0_5 = arith.constant 0 : index
    %c0_6 = arith.constant 0 : index
    %4 = vector.load %arg3[%c0_5, %c0_6] : memref<1x128xf32, #tpu.memory_space<vmem>>, vector<1x128xf32>
    %cst_7 = arith.constant dense<0.000000e+00> : vector<32xf32>
    %5 = vector.multi_reduction <add>, %2, %cst_7 [1] : vector<32x128xf32> to vector<32xf32>
    %6 = vector.shape_cast %5 : vector<32xf32> to vector<32x1xf32>
    %cst_8 = arith.constant 1.280000e+02 : f32
    %7 = vector.broadcast %cst_8 : f32 to vector<32x1xf32>
    %8 = arith.divf %6, %7 : vector<32x1xf32>
    %9 = vector.broadcast %8 : vector<32x1xf32> to vector<32x128xf32>
    %10 = arith.subf %2, %9 : vector<32x128xf32>
    %11 = arith.mulf %10, %10 : vector<32x128xf32>
    %cst_9 = arith.constant dense<0.000000e+00> : vector<32xf32>
    %12 = vector.multi_reduction <add>, %11, %cst_9 [1] : vector<32x128xf32> to vector<32xf32>
    %13 = vector.shape_cast %12 : vector<32xf32> to vector<32x1xf32>
    %cst_10 = arith.constant 1.280000e+02 : f32
    %14 = vector.broadcast %cst_10 : f32 to vector<32x1xf32>
    %15 = arith.divf %13, %14 : vector<32x1xf32>
    %cst_11 = arith.constant 9.99999974E-6 : f32
    %16 = vector.broadcast %cst_11 : f32 to vector<32x1xf32>
    %17 = arith.addf %15, %16 : vector<32x1xf32>
    %18 = math.rsqrt %17 : vector<32x1xf32>
    %19 = vector.broadcast %18 : vector<32x1xf32> to vector<32x128xf32>
    %20 = arith.mulf %10, %19 : vector<32x128xf32>
    %21 = vector.broadcast %3 : vector<1x128xf32> to vector<32x128xf32>
    %22 = arith.mulf %20, %21 : vector<32x128xf32>
    %23 = vector.broadcast %4 : vector<1x128xf32> to vector<32x128xf32>
    %24 = arith.addf %22, %23 : vector<32x128xf32>
    %c0_12 = arith.constant 0 : index
    %c0_13 = arith.constant 0 : index
    %25 = vector.load %arg4[%c0_12, %c0_13] : memref<128x256xf32, #tpu.memory_space<vmem>>, vector<128x256xf32>
    %cst_14 = arith.constant dense<0.000000e+00> : vector<32x256xf32>
    %26 = tpu.matmul %24, %25, %cst_14 {dimension_numbers = #tpu.dot_dimension_numbers<[1], [0], [0], [1], [0, 0, 1, 1], [], []>} : vector<32x128xf32>, vector<128x256xf32>, vector<32x256xf32> -> vector<32x256xf32>
    %c0_15 = arith.constant 0 : index
    %c0_16 = arith.constant 0 : index
    %27 = vector.load %arg5[%c0_15, %c0_16] : memref<1x256xf32, #tpu.memory_space<vmem>>, vector<1x256xf32>
    %28 = vector.broadcast %27 : vector<1x256xf32> to vector<32x256xf32>
    %29 = arith.addf %26, %28 : vector<32x256xf32>
    %c0_17 = arith.constant 0 : index
    %c0_18 = arith.constant 0 : index
    %30 = vector.load %arg6[%c0_17, %c0_18] : memref<1x256xf32, #tpu.memory_space<vmem>>, vector<1x256xf32>
    %c0_19 = arith.constant 0 : index
    %c0_20 = arith.constant 0 : index
    %31 = vector.load %arg7[%c0_19, %c0_20] : memref<1x256xf32, #tpu.memory_space<vmem>>, vector<1x256xf32>
    %cst_21 = arith.constant dense<0.000000e+00> : vector<32xf32>
    %32 = vector.multi_reduction <add>, %29, %cst_21 [1] : vector<32x256xf32> to vector<32xf32>
    %33 = vector.shape_cast %32 : vector<32xf32> to vector<32x1xf32>
    %cst_22 = arith.constant 2.560000e+02 : f32
    %34 = vector.broadcast %cst_22 : f32 to vector<32x1xf32>
    %35 = arith.divf %33, %34 : vector<32x1xf32>
    %36 = vector.broadcast %35 : vector<32x1xf32> to vector<32x256xf32>
    %37 = arith.subf %29, %36 : vector<32x256xf32>
    %38 = arith.mulf %37, %37 : vector<32x256xf32>
    %cst_23 = arith.constant dense<0.000000e+00> : vector<32xf32>
    %39 = vector.multi_reduction <add>, %38, %cst_23 [1] : vector<32x256xf32> to vector<32xf32>
    %40 = vector.shape_cast %39 : vector<32xf32> to vector<32x1xf32>
    %cst_24 = arith.constant 2.560000e+02 : f32
    %41 = vector.broadcast %cst_24 : f32 to vector<32x1xf32>
    %42 = arith.divf %40, %41 : vector<32x1xf32>
    %cst_25 = arith.constant 9.99999974E-6 : f32
    %43 = vector.broadcast %cst_25 : f32 to vector<32x1xf32>
    %44 = arith.addf %42, %43 : vector<32x1xf32>
    %45 = math.rsqrt %44 : vector<32x1xf32>
    %46 = vector.broadcast %45 : vector<32x1xf32> to vector<32x256xf32>
    %47 = arith.mulf %37, %46 : vector<32x256xf32>
    %48 = vector.broadcast %30 : vector<1x256xf32> to vector<32x256xf32>
    %49 = arith.mulf %47, %48 : vector<32x256xf32>
    %50 = vector.broadcast %31 : vector<1x256xf32> to vector<32x256xf32>
    %51 = arith.addf %49, %50 : vector<32x256xf32>
    %c0_26 = arith.constant 0 : index
    %c0_27 = arith.constant 0 : index
    %52 = vector.load %arg8[%c0_26, %c0_27] : memref<32x256xf32, #tpu.memory_space<vmem>>, vector<32x256xf32>
    tpu.vector_store %arg8[%c0_26, %c0_27], %51 {strides = array<i32>} : memref<32x256xf32, #tpu.memory_space<vmem>>, vector<32x256xf32>,
    return
  }
}

module attributes {stable_mosaic.version = 11 : i64} {
  func.func @_decoder_stack_kernel(%arg0: i32, %arg1: memref<24x256xf32, #tpu.memory_space<vmem>>, %arg2: memref<32x256xf32, #tpu.memory_space<vmem>>, %arg3: memref<1x9x256xf32, #tpu.memory_space<vmem>>, %arg4: memref<1x1x1024xf32, #tpu.memory_space<vmem>>, %arg5: memref<1x256x768xbf16, #tpu.memory_space<vmem>>, %arg6: memref<1x256x256xbf16, #tpu.memory_space<vmem>>, %arg7: memref<1x256x256xbf16, #tpu.memory_space<vmem>>, %arg8: memref<1x256x512xbf16, #tpu.memory_space<vmem>>, %arg9: memref<1x256x256xbf16, #tpu.memory_space<vmem>>, %arg10: memref<1x256x1024xbf16, #tpu.memory_space<vmem>>, %arg11: memref<1x1024x256xbf16, #tpu.memory_space<vmem>>, %arg12: memref<48x256xf32, #tpu.memory_space<vmem>>, %arg13: memref<48x256xf32, #tpu.memory_space<vmem>>) attributes {dimension_semantics = [#tpu.dimension_semantics<arbitrary>], iteration_bounds = array<i64: 9>, scalar_prefetch = 0 : i64, scratch_operands = 1 : i64, tpu.core_type = #tpu.core_type<tc>, window_params = [{pipeline_mode = #tpu.pipeline_mode<synchronous>, transform_indices = @transform_0, window_bounds = array<i64: 24, 256>}, {pipeline_mode = #tpu.pipeline_mode<synchronous>, transform_indices = @transform_1, window_bounds = array<i64: 32, 256>}, {transform_indices = @transform_2, window_bounds = array<i64: 1, 9, 256>}, {transform_indices = @transform_3, window_bounds = array<i64: 1, 1, 1024>}, {transform_indices = @transform_4, window_bounds = array<i64: 1, 256, 768>}, {transform_indices = @transform_5, window_bounds = array<i64: 1, 256, 256>}, {transform_indices = @transform_6, window_bounds = array<i64: 1, 256, 256>}, {transform_indices = @transform_7, window_bounds = array<i64: 1, 256, 512>}, {transform_indices = @transform_8, window_bounds = array<i64: 1, 256, 256>}, {transform_indices = @transform_9, window_bounds = array<i64: 1, 256, 1024>}, {transform_indices = @transform_10, window_bounds = array<i64: 1, 1024, 256>}, {pipeline_mode = #tpu.pipeline_mode<synchronous>, transform_indices = @transform_11, window_bounds = array<i64: 48, 256>}]} {
    %c0_i32 = arith.constant 0 : i32
    %0 = arith.cmpi eq, %arg0, %c0_i32 : i32
    %1 = arith.extui %0 : i1 to i32
    %c0_i32_0 = arith.constant 0 : i32
    %2 = arith.cmpi ne, %1, %c0_i32_0 : i32
    scf.if %2 {
      %c0_128 = arith.constant 0 : index
      %c0_129 = arith.constant 0 : index
      %343 = vector.load %arg1[%c0_128, %c0_129] : memref<24x256xf32, #tpu.memory_space<vmem>>, vector<24x256xf32>
      %c0_130 = arith.constant 0 : index
      %c0_131 = arith.constant 0 : index
      %344 = vector.load %arg13[%c0_130, %c0_131] : memref<48x256xf32, #tpu.memory_space<vmem>>, vector<24x256xf32>
      tpu.vector_store %arg13[%c0_130, %c0_131], %343 {strides = array<i32>} : memref<48x256xf32, #tpu.memory_space<vmem>>, vector<24x256xf32>,
      %c24 = arith.constant 24 : index
      %c0_132 = arith.constant 0 : index
      %345 = vector.load %arg13[%c24, %c0_132] : memref<48x256xf32, #tpu.memory_space<vmem>>, vector<24x256xf32>
      tpu.vector_store %arg13[%c24, %c0_132], %343 {strides = array<i32>} : memref<48x256xf32, #tpu.memory_space<vmem>>, vector<24x256xf32>,
    } else {
    }
    %c0 = arith.constant 0 : index
    %c0_1 = arith.constant 0 : index
    %3 = vector.load %arg13[%c0, %c0_1] : memref<48x256xf32, #tpu.memory_space<vmem>>, vector<48x256xf32>
    %c0_2 = arith.constant 0 : index
    %c0_3 = arith.constant 0 : index
    %4 = vector.load %arg2[%c0_2, %c0_3] : memref<32x256xf32, #tpu.memory_space<vmem>>, vector<32x256xf32>
    %5 = tpu.iota {dimensions = array<i32: 0>} : vector<48x48xi32>
    %6 = tpu.iota {dimensions = array<i32: 1>} : vector<48x48xi32>
    %c0_i32_4 = arith.constant 0 : i32
    %7 = vector.broadcast %c0_i32_4 : i32 to vector<48x48xi32>
    %8 = arith.cmpi sge, %5, %7 : vector<48x48xi32>
    %c24_i32 = arith.constant 24 : i32
    %9 = vector.broadcast %c24_i32 : i32 to vector<48x48xi32>
    %10 = arith.cmpi slt, %5, %9 : vector<48x48xi32>
    %11 = arith.andi %8, %10 : vector<48x48xi1>
    %c0_i32_5 = arith.constant 0 : i32
    %12 = vector.broadcast %c0_i32_5 : i32 to vector<48x48xi32>
    %13 = arith.cmpi sge, %6, %12 : vector<48x48xi32>
    %c19_i32 = arith.constant 19 : i32
    %14 = vector.broadcast %c19_i32 : i32 to vector<48x48xi32>
    %15 = arith.cmpi slt, %6, %14 : vector<48x48xi32>
    %16 = arith.andi %13, %15 : vector<48x48xi1>
    %17 = arith.andi %11, %16 : vector<48x48xi1>
    %c24_i32_6 = arith.constant 24 : i32
    %18 = vector.broadcast %c24_i32_6 : i32 to vector<48x48xi32>
    %19 = arith.cmpi sge, %5, %18 : vector<48x48xi32>
    %c48_i32 = arith.constant 48 : i32
    %20 = vector.broadcast %c48_i32 : i32 to vector<48x48xi32>
    %21 = arith.cmpi slt, %5, %20 : vector<48x48xi32>
    %22 = arith.andi %19, %21 : vector<48x48xi1>
    %c24_i32_7 = arith.constant 24 : i32
    %23 = vector.broadcast %c24_i32_7 : i32 to vector<48x48xi32>
    %24 = arith.cmpi sge, %6, %23 : vector<48x48xi32>
    %c43_i32 = arith.constant 43 : i32
    %25 = vector.broadcast %c43_i32 : i32 to vector<48x48xi32>
    %26 = arith.cmpi slt, %6, %25 : vector<48x48xi32>
    %27 = arith.andi %24, %26 : vector<48x48xi1>
    %28 = arith.andi %22, %27 : vector<48x48xi1>
    %29 = arith.ori %17, %28 : vector<48x48xi1>
    %cst = arith.constant 0.000000e+00 : f32
    %cst_8 = arith.constant -1.000000e+30 : f32
    %30 = vector.broadcast %cst : f32 to vector<48x48xf32>
    %31 = vector.broadcast %cst_8 : f32 to vector<48x48xf32>
    %32 = arith.select %29, %30, %31 : vector<48x48xi1>, vector<48x48xf32>
    %33 = tpu.iota {dimensions = array<i32: 0>} : vector<48x32xi32>
    %34 = tpu.iota {dimensions = array<i32: 1>} : vector<48x32xi32>
    %c0_i32_9 = arith.constant 0 : i32
    %35 = vector.broadcast %c0_i32_9 : i32 to vector<48x32xi32>
    %36 = arith.cmpi sge, %33, %35 : vector<48x32xi32>
    %c24_i32_10 = arith.constant 24 : i32
    %37 = vector.broadcast %c24_i32_10 : i32 to vector<48x32xi32>
    %38 = arith.cmpi slt, %33, %37 : vector<48x32xi32>
    %39 = arith.andi %36, %38 : vector<48x32xi1>
    %c0_i32_11 = arith.constant 0 : i32
    %40 = vector.broadcast %c0_i32_11 : i32 to vector<48x32xi32>
    %41 = arith.cmpi sge, %34, %40 : vector<48x32xi32>
    %c16_i32 = arith.constant 16 : i32
    %42 = vector.broadcast %c16_i32 : i32 to vector<48x32xi32>
    %43 = arith.cmpi slt, %34, %42 : vector<48x32xi32>
    %44 = arith.andi %41, %43 : vector<48x32xi1>
    %45 = arith.andi %39, %44 : vector<48x32xi1>
    %c24_i32_12 = arith.constant 24 : i32
    %46 = vector.broadcast %c24_i32_12 : i32 to vector<48x32xi32>
    %47 = arith.cmpi sge, %33, %46 : vector<48x32xi32>
    %c48_i32_13 = arith.constant 48 : i32
    %48 = vector.broadcast %c48_i32_13 : i32 to vector<48x32xi32>
    %49 = arith.cmpi slt, %33, %48 : vector<48x32xi32>
    %50 = arith.andi %47, %49 : vector<48x32xi1>
    %c16_i32_14 = arith.constant 16 : i32
    %51 = vector.broadcast %c16_i32_14 : i32 to vector<48x32xi32>
    %52 = arith.cmpi sge, %34, %51 : vector<48x32xi32>
    %c32_i32 = arith.constant 32 : i32
    %53 = vector.broadcast %c32_i32 : i32 to vector<48x32xi32>
    %54 = arith.cmpi slt, %34, %53 : vector<48x32xi32>
    %55 = arith.andi %52, %54 : vector<48x32xi1>
    %56 = arith.andi %50, %55 : vector<48x32xi1>
    %57 = arith.ori %45, %56 : vector<48x32xi1>
    %cst_15 = arith.constant 0.000000e+00 : f32
    %cst_16 = arith.constant -1.000000e+30 : f32
    %58 = vector.broadcast %cst_15 : f32 to vector<48x32xf32>
    %59 = vector.broadcast %cst_16 : f32 to vector<48x32xf32>
    %60 = arith.select %57, %58, %59 : vector<48x32xi1>, vector<48x32xf32>
    %c0_17 = arith.constant 0 : index
    %c0_18 = arith.constant 0 : index
    %c0_19 = arith.constant 0 : index
    %61 = vector.load %arg3[%c0_17, %c0_18, %c0_19] : memref<1x9x256xf32, #tpu.memory_space<vmem>>, vector<1x1x256xf32>
    %62 = vector.shape_cast %61 : vector<1x1x256xf32> to vector<1x256xf32>
    %c0_20 = arith.constant 0 : index
    %c1 = arith.constant 1 : index
    %c0_21 = arith.constant 0 : index
    %63 = vector.load %arg3[%c0_20, %c1, %c0_21] : memref<1x9x256xf32, #tpu.memory_space<vmem>>, vector<1x1x256xf32>
    %64 = vector.shape_cast %63 : vector<1x1x256xf32> to vector<1x256xf32>
    %cst_22 = arith.constant dense<0.000000e+00> : vector<48xf32>
    %65 = vector.multi_reduction <add>, %3, %cst_22 [1] : vector<48x256xf32> to vector<48xf32>
    %66 = vector.shape_cast %65 : vector<48xf32> to vector<48x1xf32>
    %cst_23 = arith.constant 2.560000e+02 : f32
    %67 = vector.broadcast %cst_23 : f32 to vector<48x1xf32>
    %68 = arith.divf %66, %67 : vector<48x1xf32>
    %69 = vector.broadcast %68 : vector<48x1xf32> to vector<48x256xf32>
    %70 = arith.subf %3, %69 : vector<48x256xf32>
    %71 = arith.mulf %70, %70 : vector<48x256xf32>
    %cst_24 = arith.constant dense<0.000000e+00> : vector<48xf32>
    %72 = vector.multi_reduction <add>, %71, %cst_24 [1] : vector<48x256xf32> to vector<48xf32>
    %73 = vector.shape_cast %72 : vector<48xf32> to vector<48x1xf32>
    %cst_25 = arith.constant 2.560000e+02 : f32
    %74 = vector.broadcast %cst_25 : f32 to vector<48x1xf32>
    %75 = arith.divf %73, %74 : vector<48x1xf32>
    %cst_26 = arith.constant 9.99999974E-6 : f32
    %76 = vector.broadcast %cst_26 : f32 to vector<48x1xf32>
    %77 = arith.addf %75, %76 : vector<48x1xf32>
    %78 = math.rsqrt %77 : vector<48x1xf32>
    %79 = vector.broadcast %78 : vector<48x1xf32> to vector<48x256xf32>
    %80 = arith.mulf %70, %79 : vector<48x256xf32>
    %81 = vector.broadcast %62 : vector<1x256xf32> to vector<48x256xf32>
    %82 = arith.mulf %80, %81 : vector<48x256xf32>
    %83 = vector.broadcast %64 : vector<1x256xf32> to vector<48x256xf32>
    %84 = arith.addf %82, %83 : vector<48x256xf32>
    %c0_27 = arith.constant 0 : index
    %c0_28 = arith.constant 0 : index
    %c0_29 = arith.constant 0 : index
    %85 = vector.load %arg5[%c0_27, %c0_28, %c0_29] : memref<1x256x768xbf16, #tpu.memory_space<vmem>>, vector<1x256x768xbf16>
    %86 = vector.shape_cast %85 : vector<1x256x768xbf16> to vector<256x768xbf16>
    %87 = arith.truncf %84 : vector<48x256xf32> to vector<48x256xbf16>
    %cst_30 = arith.constant dense<0.000000e+00> : vector<48x768xf32>
    %88 = tpu.matmul %87, %86, %cst_30 {dimension_numbers = #tpu.dot_dimension_numbers<[1], [0], [0], [1], [0, 0, 1, 1], [], []>} : vector<48x256xbf16>, vector<256x768xbf16>, vector<48x768xf32> -> vector<48x768xf32>
    %89 = vector.extract_strided_slice %88 {offsets = [0, 0], sizes = [48, 256], strides = [1, 1]} : vector<48x768xf32> to vector<48x256xf32>
    %90 = vector.extract_strided_slice %88 {offsets = [0, 256], sizes = [48, 256], strides = [1, 1]} : vector<48x768xf32> to vector<48x256xf32>
    %91 = vector.extract_strided_slice %88 {offsets = [0, 512], sizes = [48, 256], strides = [1, 1]} : vector<48x768xf32> to vector<48x256xf32>
    %92 = vector.extract_strided_slice %89 {offsets = [0, 0], sizes = [48, 64], strides = [1, 1]} : vector<48x256xf32> to vector<48x64xf32>
    %93 = vector.extract_strided_slice %90 {offsets = [0, 0], sizes = [48, 64], strides = [1, 1]} : vector<48x256xf32> to vector<48x64xf32>
    %94 = vector.extract_strided_slice %91 {offsets = [0, 0], sizes = [48, 64], strides = [1, 1]} : vector<48x256xf32> to vector<48x64xf32>
    %cst_31 = arith.constant dense<0.000000e+00> : vector<48x48xf32>
    %95 = tpu.matmul %92, %93, %cst_31 {dimension_numbers = #tpu.dot_dimension_numbers<[1], [1], [0], [0], [0, 0, 1, 0], [], []>} : vector<48x64xf32>, vector<48x64xf32>, vector<48x48xf32> -> vector<48x48xf32>
    %cst_32 = arith.constant 1.250000e-01 : f32
    %96 = vector.broadcast %cst_32 : f32 to vector<48x48xf32>
    %97 = arith.mulf %95, %96 : vector<48x48xf32>
    %98 = arith.addf %97, %32 : vector<48x48xf32>
    %cst_33 = arith.constant dense<0xFF800000> : vector<48xf32>
    %99 = vector.multi_reduction <maximumf>, %98, %cst_33 [1] : vector<48x48xf32> to vector<48xf32>
    %100 = vector.shape_cast %99 : vector<48xf32> to vector<48x1xf32>
    %101 = vector.broadcast %100 : vector<48x1xf32> to vector<48x48xf32>
    %102 = arith.subf %98, %101 : vector<48x48xf32>
    %103 = math.exp %102 : vector<48x48xf32>
    %cst_34 = arith.constant dense<0.000000e+00> : vector<48xf32>
    %104 = vector.multi_reduction <add>, %103, %cst_34 [1] : vector<48x48xf32> to vector<48xf32>
    %105 = vector.shape_cast %104 : vector<48xf32> to vector<48x1xf32>
    %106 = tpu.reciprocal %105 {approx = true} : vector<48x1xf32> -> vector<48x1xf32>
    %107 = vector.broadcast %106 : vector<48x1xf32> to vector<48x48xf32>
    %108 = arith.mulf %103, %107 : vector<48x48xf32>
    %cst_35 = arith.constant dense<0.000000e+00> : vector<48x64xf32>
    %109 = tpu.matmul %108, %94, %cst_35 {dimension_numbers = #tpu.dot_dimension_numbers<[1], [0], [0], [1], [0, 0, 1, 1], [], []>} : vector<48x48xf32>, vector<48x64xf32>, vector<48x64xf32> -> vector<48x64xf32>
    %110 = vector.extract_strided_slice %89 {offsets = [0, 64], sizes = [48, 64], strides = [1, 1]} : vector<48x256xf32> to vector<48x64xf32>
    %111 = vector.extract_strided_slice %90 {offsets = [0, 64], sizes = [48, 64], strides = [1, 1]} : vector<48x256xf32> to vector<48x64xf32>
    %112 = vector.extract_strided_slice %91 {offsets = [0, 64], sizes = [48, 64], strides = [1, 1]} : vector<48x256xf32> to vector<48x64xf32>
    %cst_36 = arith.constant dense<0.000000e+00> : vector<48x48xf32>
    %113 = tpu.matmul %110, %111, %cst_36 {dimension_numbers = #tpu.dot_dimension_numbers<[1], [1], [0], [0], [0, 0, 1, 0], [], []>} : vector<48x64xf32>, vector<48x64xf32>, vector<48x48xf32> -> vector<48x48xf32>
    %cst_37 = arith.constant 1.250000e-01 : f32
    %114 = vector.broadcast %cst_37 : f32 to vector<48x48xf32>
    %115 = arith.mulf %113, %114 : vector<48x48xf32>
    %116 = arith.addf %115, %32 : vector<48x48xf32>
    %cst_38 = arith.constant dense<0xFF800000> : vector<48xf32>
    %117 = vector.multi_reduction <maximumf>, %116, %cst_38 [1] : vector<48x48xf32> to vector<48xf32>
    %118 = vector.shape_cast %117 : vector<48xf32> to vector<48x1xf32>
    %119 = vector.broadcast %118 : vector<48x1xf32> to vector<48x48xf32>
    %120 = arith.subf %116, %119 : vector<48x48xf32>
    %121 = math.exp %120 : vector<48x48xf32>
    %cst_39 = arith.constant dense<0.000000e+00> : vector<48xf32>
    %122 = vector.multi_reduction <add>, %121, %cst_39 [1] : vector<48x48xf32> to vector<48xf32>
    %123 = vector.shape_cast %122 : vector<48xf32> to vector<48x1xf32>
    %124 = tpu.reciprocal %123 {approx = true} : vector<48x1xf32> -> vector<48x1xf32>
    %125 = vector.broadcast %124 : vector<48x1xf32> to vector<48x48xf32>
    %126 = arith.mulf %121, %125 : vector<48x48xf32>
    %cst_40 = arith.constant dense<0.000000e+00> : vector<48x64xf32>
    %127 = tpu.matmul %126, %112, %cst_40 {dimension_numbers = #tpu.dot_dimension_numbers<[1], [0], [0], [1], [0, 0, 1, 1], [], []>} : vector<48x48xf32>, vector<48x64xf32>, vector<48x64xf32> -> vector<48x64xf32>
    %128 = vector.extract_strided_slice %89 {offsets = [0, 128], sizes = [48, 64], strides = [1, 1]} : vector<48x256xf32> to vector<48x64xf32>
    %129 = vector.extract_strided_slice %90 {offsets = [0, 128], sizes = [48, 64], strides = [1, 1]} : vector<48x256xf32> to vector<48x64xf32>
    %130 = vector.extract_strided_slice %91 {offsets = [0, 128], sizes = [48, 64], strides = [1, 1]} : vector<48x256xf32> to vector<48x64xf32>
    %cst_41 = arith.constant dense<0.000000e+00> : vector<48x48xf32>
    %131 = tpu.matmul %128, %129, %cst_41 {dimension_numbers = #tpu.dot_dimension_numbers<[1], [1], [0], [0], [0, 0, 1, 0], [], []>} : vector<48x64xf32>, vector<48x64xf32>, vector<48x48xf32> -> vector<48x48xf32>
    %cst_42 = arith.constant 1.250000e-01 : f32
    %132 = vector.broadcast %cst_42 : f32 to vector<48x48xf32>
    %133 = arith.mulf %131, %132 : vector<48x48xf32>
    %134 = arith.addf %133, %32 : vector<48x48xf32>
    %cst_43 = arith.constant dense<0xFF800000> : vector<48xf32>
    %135 = vector.multi_reduction <maximumf>, %134, %cst_43 [1] : vector<48x48xf32> to vector<48xf32>
    %136 = vector.shape_cast %135 : vector<48xf32> to vector<48x1xf32>
    %137 = vector.broadcast %136 : vector<48x1xf32> to vector<48x48xf32>
    %138 = arith.subf %134, %137 : vector<48x48xf32>
    %139 = math.exp %138 : vector<48x48xf32>
    %cst_44 = arith.constant dense<0.000000e+00> : vector<48xf32>
    %140 = vector.multi_reduction <add>, %139, %cst_44 [1] : vector<48x48xf32> to vector<48xf32>
    %141 = vector.shape_cast %140 : vector<48xf32> to vector<48x1xf32>
    %142 = tpu.reciprocal %141 {approx = true} : vector<48x1xf32> -> vector<48x1xf32>
    %143 = vector.broadcast %142 : vector<48x1xf32> to vector<48x48xf32>
    %144 = arith.mulf %139, %143 : vector<48x48xf32>
    %cst_45 = arith.constant dense<0.000000e+00> : vector<48x64xf32>
    %145 = tpu.matmul %144, %130, %cst_45 {dimension_numbers = #tpu.dot_dimension_numbers<[1], [0], [0], [1], [0, 0, 1, 1], [], []>} : vector<48x48xf32>, vector<48x64xf32>, vector<48x64xf32> -> vector<48x64xf32>
    %146 = vector.extract_strided_slice %89 {offsets = [0, 192], sizes = [48, 64], strides = [1, 1]} : vector<48x256xf32> to vector<48x64xf32>
    %147 = vector.extract_strided_slice %90 {offsets = [0, 192], sizes = [48, 64], strides = [1, 1]} : vector<48x256xf32> to vector<48x64xf32>
    %148 = vector.extract_strided_slice %91 {offsets = [0, 192], sizes = [48, 64], strides = [1, 1]} : vector<48x256xf32> to vector<48x64xf32>
    %cst_46 = arith.constant dense<0.000000e+00> : vector<48x48xf32>
    %149 = tpu.matmul %146, %147, %cst_46 {dimension_numbers = #tpu.dot_dimension_numbers<[1], [1], [0], [0], [0, 0, 1, 0], [], []>} : vector<48x64xf32>, vector<48x64xf32>, vector<48x48xf32> -> vector<48x48xf32>
    %cst_47 = arith.constant 1.250000e-01 : f32
    %150 = vector.broadcast %cst_47 : f32 to vector<48x48xf32>
    %151 = arith.mulf %149, %150 : vector<48x48xf32>
    %152 = arith.addf %151, %32 : vector<48x48xf32>
    %cst_48 = arith.constant dense<0xFF800000> : vector<48xf32>
    %153 = vector.multi_reduction <maximumf>, %152, %cst_48 [1] : vector<48x48xf32> to vector<48xf32>
    %154 = vector.shape_cast %153 : vector<48xf32> to vector<48x1xf32>
    %155 = vector.broadcast %154 : vector<48x1xf32> to vector<48x48xf32>
    %156 = arith.subf %152, %155 : vector<48x48xf32>
    %157 = math.exp %156 : vector<48x48xf32>
    %cst_49 = arith.constant dense<0.000000e+00> : vector<48xf32>
    %158 = vector.multi_reduction <add>, %157, %cst_49 [1] : vector<48x48xf32> to vector<48xf32>
    %159 = vector.shape_cast %158 : vector<48xf32> to vector<48x1xf32>
    %160 = tpu.reciprocal %159 {approx = true} : vector<48x1xf32> -> vector<48x1xf32>
    %161 = vector.broadcast %160 : vector<48x1xf32> to vector<48x48xf32>
    %162 = arith.mulf %157, %161 : vector<48x48xf32>
    %cst_50 = arith.constant dense<0.000000e+00> : vector<48x64xf32>
    %163 = tpu.matmul %162, %148, %cst_50 {dimension_numbers = #tpu.dot_dimension_numbers<[1], [0], [0], [1], [0, 0, 1, 1], [], []>} : vector<48x48xf32>, vector<48x64xf32>, vector<48x64xf32> -> vector<48x64xf32>
    %164 = tpu.concatenate %109, %127, %145, %163 in 1 : vector<48x64xf32>, vector<48x64xf32>, vector<48x64xf32>, vector<48x64xf32> -> vector<48x256xf32>
    %c0_51 = arith.constant 0 : index
    %c0_52 = arith.constant 0 : index
    %c0_53 = arith.constant 0 : index
    %165 = vector.load %arg6[%c0_51, %c0_52, %c0_53] : memref<1x256x256xbf16, #tpu.memory_space<vmem>>, vector<1x256x256xbf16>
    %166 = vector.shape_cast %165 : vector<1x256x256xbf16> to vector<256x256xbf16>
    %167 = arith.truncf %164 : vector<48x256xf32> to vector<48x256xbf16>
    %cst_54 = arith.constant dense<0.000000e+00> : vector<48x256xf32>
    %168 = tpu.matmul %167, %166, %cst_54 {dimension_numbers = #tpu.dot_dimension_numbers<[1], [0], [0], [1], [0, 0, 1, 1], [], []>} : vector<48x256xbf16>, vector<256x256xbf16>, vector<48x256xf32> -> vector<48x256xf32>
    %169 = arith.addf %3, %168 : vector<48x256xf32>
    %c0_55 = arith.constant 0 : index
    %c6 = arith.constant 6 : index
    %c0_56 = arith.constant 0 : index
    %170 = vector.load %arg3[%c0_55, %c6, %c0_56] : memref<1x9x256xf32, #tpu.memory_space<vmem>>, vector<1x1x256xf32>
    %171 = vector.shape_cast %170 : vector<1x1x256xf32> to vector<1x256xf32>
    %172 = vector.broadcast %171 : vector<1x256xf32> to vector<48x256xf32>
    %173 = arith.addf %169, %172 : vector<48x256xf32>
    %c0_57 = arith.constant 0 : index
    %c2 = arith.constant 2 : index
    %c0_58 = arith.constant 0 : index
    %174 = vector.load %arg3[%c0_57, %c2, %c0_58] : memref<1x9x256xf32, #tpu.memory_space<vmem>>, vector<1x1x256xf32>
    %175 = vector.shape_cast %174 : vector<1x1x256xf32> to vector<1x256xf32>
    %c0_59 = arith.constant 0 : index
    %c3 = arith.constant 3 : index
    %c0_60 = arith.constant 0 : index
    %176 = vector.load %arg3[%c0_59, %c3, %c0_60] : memref<1x9x256xf32, #tpu.memory_space<vmem>>, vector<1x1x256xf32>
    %177 = vector.shape_cast %176 : vector<1x1x256xf32> to vector<1x256xf32>
    %cst_61 = arith.constant dense<0.000000e+00> : vector<48xf32>
    %178 = vector.multi_reduction <add>, %173, %cst_61 [1] : vector<48x256xf32> to vector<48xf32>
    %179 = vector.shape_cast %178 : vector<48xf32> to vector<48x1xf32>
    %cst_62 = arith.constant 2.560000e+02 : f32
    %180 = vector.broadcast %cst_62 : f32 to vector<48x1xf32>
    %181 = arith.divf %179, %180 : vector<48x1xf32>
    %182 = vector.broadcast %181 : vector<48x1xf32> to vector<48x256xf32>
    %183 = arith.subf %173, %182 : vector<48x256xf32>
    %184 = arith.mulf %183, %183 : vector<48x256xf32>
    %cst_63 = arith.constant dense<0.000000e+00> : vector<48xf32>
    %185 = vector.multi_reduction <add>, %184, %cst_63 [1] : vector<48x256xf32> to vector<48xf32>
    %186 = vector.shape_cast %185 : vector<48xf32> to vector<48x1xf32>
    %cst_64 = arith.constant 2.560000e+02 : f32
    %187 = vector.broadcast %cst_64 : f32 to vector<48x1xf32>
    %188 = arith.divf %186, %187 : vector<48x1xf32>
    %cst_65 = arith.constant 9.99999974E-6 : f32
    %189 = vector.broadcast %cst_65 : f32 to vector<48x1xf32>
    %190 = arith.addf %188, %189 : vector<48x1xf32>
    %191 = math.rsqrt %190 : vector<48x1xf32>
    %192 = vector.broadcast %191 : vector<48x1xf32> to vector<48x256xf32>
    %193 = arith.mulf %183, %192 : vector<48x256xf32>
    %194 = vector.broadcast %175 : vector<1x256xf32> to vector<48x256xf32>
    %195 = arith.mulf %193, %194 : vector<48x256xf32>
    %196 = vector.broadcast %177 : vector<1x256xf32> to vector<48x256xf32>
    %197 = arith.addf %195, %196 : vector<48x256xf32>
    %c0_66 = arith.constant 0 : index
    %c0_67 = arith.constant 0 : index
    %c0_68 = arith.constant 0 : index
    %198 = vector.load %arg7[%c0_66, %c0_67, %c0_68] : memref<1x256x256xbf16, #tpu.memory_space<vmem>>, vector<1x256x256xbf16>
    %199 = vector.shape_cast %198 : vector<1x256x256xbf16> to vector<256x256xbf16>
    %200 = arith.truncf %197 : vector<48x256xf32> to vector<48x256xbf16>
    %cst_69 = arith.constant dense<0.000000e+00> : vector<48x256xf32>
    %201 = tpu.matmul %200, %199, %cst_69 {dimension_numbers = #tpu.dot_dimension_numbers<[1], [0], [0], [1], [0, 0, 1, 1], [], []>} : vector<48x256xbf16>, vector<256x256xbf16>, vector<48x256xf32> -> vector<48x256xf32>
    %c0_70 = arith.constant 0 : index
    %c0_71 = arith.constant 0 : index
    %c0_72 = arith.constant 0 : index
    %202 = vector.load %arg8[%c0_70, %c0_71, %c0_72] : memref<1x256x512xbf16, #tpu.memory_space<vmem>>, vector<1x256x512xbf16>
    %203 = vector.shape_cast %202 : vector<1x256x512xbf16> to vector<256x512xbf16>
    %204 = arith.truncf %4 : vector<32x256xf32> to vector<32x256xbf16>
    %cst_73 = arith.constant dense<0.000000e+00> : vector<32x512xf32>
    %205 = tpu.matmul %204, %203, %cst_73 {dimension_numbers = #tpu.dot_dimension_numbers<[1], [0], [0], [1], [0, 0, 1, 1], [], []>} : vector<32x256xbf16>, vector<256x512xbf16>, vector<32x512xf32> -> vector<32x512xf32>
    %206 = vector.extract_strided_slice %205 {offsets = [0, 0], sizes = [32, 256], strides = [1, 1]} : vector<32x512xf32> to vector<32x256xf32>
    %207 = vector.extract_strided_slice %205 {offsets = [0, 256], sizes = [32, 256], strides = [1, 1]} : vector<32x512xf32> to vector<32x256xf32>
    %208 = vector.extract_strided_slice %201 {offsets = [0, 0], sizes = [48, 64], strides = [1, 1]} : vector<48x256xf32> to vector<48x64xf32>
    %209 = vector.extract_strided_slice %206 {offsets = [0, 0], sizes = [32, 64], strides = [1, 1]} : vector<32x256xf32> to vector<32x64xf32>
    %210 = vector.extract_strided_slice %207 {offsets = [0, 0], sizes = [32, 64], strides = [1, 1]} : vector<32x256xf32> to vector<32x64xf32>
    %cst_74 = arith.constant dense<0.000000e+00> : vector<48x32xf32>
    %211 = tpu.matmul %208, %209, %cst_74 {dimension_numbers = #tpu.dot_dimension_numbers<[1], [1], [0], [0], [0, 0, 1, 0], [], []>} : vector<48x64xf32>, vector<32x64xf32>, vector<48x32xf32> -> vector<48x32xf32>
    %cst_75 = arith.constant 1.250000e-01 : f32
    %212 = vector.broadcast %cst_75 : f32 to vector<48x32xf32>
    %213 = arith.mulf %211, %212 : vector<48x32xf32>
    %214 = arith.addf %213, %60 : vector<48x32xf32>
    %cst_76 = arith.constant dense<0xFF800000> : vector<48xf32>
    %215 = vector.multi_reduction <maximumf>, %214, %cst_76 [1] : vector<48x32xf32> to vector<48xf32>
    %216 = vector.shape_cast %215 : vector<48xf32> to vector<48x1xf32>
    %217 = vector.broadcast %216 : vector<48x1xf32> to vector<48x32xf32>
    %218 = arith.subf %214, %217 : vector<48x32xf32>
    %219 = math.exp %218 : vector<48x32xf32>
    %cst_77 = arith.constant dense<0.000000e+00> : vector<48xf32>
    %220 = vector.multi_reduction <add>, %219, %cst_77 [1] : vector<48x32xf32> to vector<48xf32>
    %221 = vector.shape_cast %220 : vector<48xf32> to vector<48x1xf32>
    %222 = tpu.reciprocal %221 {approx = true} : vector<48x1xf32> -> vector<48x1xf32>
    %223 = vector.broadcast %222 : vector<48x1xf32> to vector<48x32xf32>
    %224 = arith.mulf %219, %223 : vector<48x32xf32>
    %cst_78 = arith.constant dense<0.000000e+00> : vector<48x64xf32>
    %225 = tpu.matmul %224, %210, %cst_78 {dimension_numbers = #tpu.dot_dimension_numbers<[1], [0], [0], [1], [0, 0, 1, 1], [], []>} : vector<48x32xf32>, vector<32x64xf32>, vector<48x64xf32> -> vector<48x64xf32>
    %226 = vector.extract_strided_slice %201 {offsets = [0, 64], sizes = [48, 64], strides = [1, 1]} : vector<48x256xf32> to vector<48x64xf32>
    %227 = vector.extract_strided_slice %206 {offsets = [0, 64], sizes = [32, 64], strides = [1, 1]} : vector<32x256xf32> to vector<32x64xf32>
    %228 = vector.extract_strided_slice %207 {offsets = [0, 64], sizes = [32, 64], strides = [1, 1]} : vector<32x256xf32> to vector<32x64xf32>
    %cst_79 = arith.constant dense<0.000000e+00> : vector<48x32xf32>
    %229 = tpu.matmul %226, %227, %cst_79 {dimension_numbers = #tpu.dot_dimension_numbers<[1], [1], [0], [0], [0, 0, 1, 0], [], []>} : vector<48x64xf32>, vector<32x64xf32>, vector<48x32xf32> -> vector<48x32xf32>
    %cst_80 = arith.constant 1.250000e-01 : f32
    %230 = vector.broadcast %cst_80 : f32 to vector<48x32xf32>
    %231 = arith.mulf %229, %230 : vector<48x32xf32>
    %232 = arith.addf %231, %60 : vector<48x32xf32>
    %cst_81 = arith.constant dense<0xFF800000> : vector<48xf32>
    %233 = vector.multi_reduction <maximumf>, %232, %cst_81 [1] : vector<48x32xf32> to vector<48xf32>
    %234 = vector.shape_cast %233 : vector<48xf32> to vector<48x1xf32>
    %235 = vector.broadcast %234 : vector<48x1xf32> to vector<48x32xf32>
    %236 = arith.subf %232, %235 : vector<48x32xf32>
    %237 = math.exp %236 : vector<48x32xf32>
    %cst_82 = arith.constant dense<0.000000e+00> : vector<48xf32>
    %238 = vector.multi_reduction <add>, %237, %cst_82 [1] : vector<48x32xf32> to vector<48xf32>
    %239 = vector.shape_cast %238 : vector<48xf32> to vector<48x1xf32>
    %240 = tpu.reciprocal %239 {approx = true} : vector<48x1xf32> -> vector<48x1xf32>
    %241 = vector.broadcast %240 : vector<48x1xf32> to vector<48x32xf32>
    %242 = arith.mulf %237, %241 : vector<48x32xf32>
    %cst_83 = arith.constant dense<0.000000e+00> : vector<48x64xf32>
    %243 = tpu.matmul %242, %228, %cst_83 {dimension_numbers = #tpu.dot_dimension_numbers<[1], [0], [0], [1], [0, 0, 1, 1], [], []>} : vector<48x32xf32>, vector<32x64xf32>, vector<48x64xf32> -> vector<48x64xf32>
    %244 = vector.extract_strided_slice %201 {offsets = [0, 128], sizes = [48, 64], strides = [1, 1]} : vector<48x256xf32> to vector<48x64xf32>
    %245 = vector.extract_strided_slice %206 {offsets = [0, 128], sizes = [32, 64], strides = [1, 1]} : vector<32x256xf32> to vector<32x64xf32>
    %246 = vector.extract_strided_slice %207 {offsets = [0, 128], sizes = [32, 64], strides = [1, 1]} : vector<32x256xf32> to vector<32x64xf32>
    %cst_84 = arith.constant dense<0.000000e+00> : vector<48x32xf32>
    %247 = tpu.matmul %244, %245, %cst_84 {dimension_numbers = #tpu.dot_dimension_numbers<[1], [1], [0], [0], [0, 0, 1, 0], [], []>} : vector<48x64xf32>, vector<32x64xf32>, vector<48x32xf32> -> vector<48x32xf32>
    %cst_85 = arith.constant 1.250000e-01 : f32
    %248 = vector.broadcast %cst_85 : f32 to vector<48x32xf32>
    %249 = arith.mulf %247, %248 : vector<48x32xf32>
    %250 = arith.addf %249, %60 : vector<48x32xf32>
    %cst_86 = arith.constant dense<0xFF800000> : vector<48xf32>
    %251 = vector.multi_reduction <maximumf>, %250, %cst_86 [1] : vector<48x32xf32> to vector<48xf32>
    %252 = vector.shape_cast %251 : vector<48xf32> to vector<48x1xf32>
    %253 = vector.broadcast %252 : vector<48x1xf32> to vector<48x32xf32>
    %254 = arith.subf %250, %253 : vector<48x32xf32>
    %255 = math.exp %254 : vector<48x32xf32>
    %cst_87 = arith.constant dense<0.000000e+00> : vector<48xf32>
    %256 = vector.multi_reduction <add>, %255, %cst_87 [1] : vector<48x32xf32> to vector<48xf32>
    %257 = vector.shape_cast %256 : vector<48xf32> to vector<48x1xf32>
    %258 = tpu.reciprocal %257 {approx = true} : vector<48x1xf32> -> vector<48x1xf32>
    %259 = vector.broadcast %258 : vector<48x1xf32> to vector<48x32xf32>
    %260 = arith.mulf %255, %259 : vector<48x32xf32>
    %cst_88 = arith.constant dense<0.000000e+00> : vector<48x64xf32>
    %261 = tpu.matmul %260, %246, %cst_88 {dimension_numbers = #tpu.dot_dimension_numbers<[1], [0], [0], [1], [0, 0, 1, 1], [], []>} : vector<48x32xf32>, vector<32x64xf32>, vector<48x64xf32> -> vector<48x64xf32>
    %262 = vector.extract_strided_slice %201 {offsets = [0, 192], sizes = [48, 64], strides = [1, 1]} : vector<48x256xf32> to vector<48x64xf32>
    %263 = vector.extract_strided_slice %206 {offsets = [0, 192], sizes = [32, 64], strides = [1, 1]} : vector<32x256xf32> to vector<32x64xf32>
    %264 = vector.extract_strided_slice %207 {offsets = [0, 192], sizes = [32, 64], strides = [1, 1]} : vector<32x256xf32> to vector<32x64xf32>
    %cst_89 = arith.constant dense<0.000000e+00> : vector<48x32xf32>
    %265 = tpu.matmul %262, %263, %cst_89 {dimension_numbers = #tpu.dot_dimension_numbers<[1], [1], [0], [0], [0, 0, 1, 0], [], []>} : vector<48x64xf32>, vector<32x64xf32>, vector<48x32xf32> -> vector<48x32xf32>
    %cst_90 = arith.constant 1.250000e-01 : f32
    %266 = vector.broadcast %cst_90 : f32 to vector<48x32xf32>
    %267 = arith.mulf %265, %266 : vector<48x32xf32>
    %268 = arith.addf %267, %60 : vector<48x32xf32>
    %cst_91 = arith.constant dense<0xFF800000> : vector<48xf32>
    %269 = vector.multi_reduction <maximumf>, %268, %cst_91 [1] : vector<48x32xf32> to vector<48xf32>
    %270 = vector.shape_cast %269 : vector<48xf32> to vector<48x1xf32>
    %271 = vector.broadcast %270 : vector<48x1xf32> to vector<48x32xf32>
    %272 = arith.subf %268, %271 : vector<48x32xf32>
    %273 = math.exp %272 : vector<48x32xf32>
    %cst_92 = arith.constant dense<0.000000e+00> : vector<48xf32>
    %274 = vector.multi_reduction <add>, %273, %cst_92 [1] : vector<48x32xf32> to vector<48xf32>
    %275 = vector.shape_cast %274 : vector<48xf32> to vector<48x1xf32>
    %276 = tpu.reciprocal %275 {approx = true} : vector<48x1xf32> -> vector<48x1xf32>
    %277 = vector.broadcast %276 : vector<48x1xf32> to vector<48x32xf32>
    %278 = arith.mulf %273, %277 : vector<48x32xf32>
    %cst_93 = arith.constant dense<0.000000e+00> : vector<48x64xf32>
    %279 = tpu.matmul %278, %264, %cst_93 {dimension_numbers = #tpu.dot_dimension_numbers<[1], [0], [0], [1], [0, 0, 1, 1], [], []>} : vector<48x32xf32>, vector<32x64xf32>, vector<48x64xf32> -> vector<48x64xf32>
    %280 = tpu.concatenate %225, %243, %261, %279 in 1 : vector<48x64xf32>, vector<48x64xf32>, vector<48x64xf32>, vector<48x64xf32> -> vector<48x256xf32>
    %c0_94 = arith.constant 0 : index
    %c0_95 = arith.constant 0 : index
    %c0_96 = arith.constant 0 : index
    %281 = vector.load %arg9[%c0_94, %c0_95, %c0_96] : memref<1x256x256xbf16, #tpu.memory_space<vmem>>, vector<1x256x256xbf16>
    %282 = vector.shape_cast %281 : vector<1x256x256xbf16> to vector<256x256xbf16>
    %283 = arith.truncf %280 : vector<48x256xf32> to vector<48x256xbf16>
    %cst_97 = arith.constant dense<0.000000e+00> : vector<48x256xf32>
    %284 = tpu.matmul %283, %282, %cst_97 {dimension_numbers = #tpu.dot_dimension_numbers<[1], [0], [0], [1], [0, 0, 1, 1], [], []>} : vector<48x256xbf16>, vector<256x256xbf16>, vector<48x256xf32> -> vector<48x256xf32>
    %285 = arith.addf %173, %284 : vector<48x256xf32>
    %c0_98 = arith.constant 0 : index
    %c7 = arith.constant 7 : index
    %c0_99 = arith.constant 0 : index
    %286 = vector.load %arg3[%c0_98, %c7, %c0_99] : memref<1x9x256xf32, #tpu.memory_space<vmem>>, vector<1x1x256xf32>
    %287 = vector.shape_cast %286 : vector<1x1x256xf32> to vector<1x256xf32>
    %288 = vector.broadcast %287 : vector<1x256xf32> to vector<48x256xf32>
    %289 = arith.addf %285, %288 : vector<48x256xf32>
    %c0_100 = arith.constant 0 : index
    %c4 = arith.constant 4 : index
    %c0_101 = arith.constant 0 : index
    %290 = vector.load %arg3[%c0_100, %c4, %c0_101] : memref<1x9x256xf32, #tpu.memory_space<vmem>>, vector<1x1x256xf32>
    %291 = vector.shape_cast %290 : vector<1x1x256xf32> to vector<1x256xf32>
    %c0_102 = arith.constant 0 : index
    %c5 = arith.constant 5 : index
    %c0_103 = arith.constant 0 : index
    %292 = vector.load %arg3[%c0_102, %c5, %c0_103] : memref<1x9x256xf32, #tpu.memory_space<vmem>>, vector<1x1x256xf32>
    %293 = vector.shape_cast %292 : vector<1x1x256xf32> to vector<1x256xf32>
    %cst_104 = arith.constant dense<0.000000e+00> : vector<48xf32>
    %294 = vector.multi_reduction <add>, %289, %cst_104 [1] : vector<48x256xf32> to vector<48xf32>
    %295 = vector.shape_cast %294 : vector<48xf32> to vector<48x1xf32>
    %cst_105 = arith.constant 2.560000e+02 : f32
    %296 = vector.broadcast %cst_105 : f32 to vector<48x1xf32>
    %297 = arith.divf %295, %296 : vector<48x1xf32>
    %298 = vector.broadcast %297 : vector<48x1xf32> to vector<48x256xf32>
    %299 = arith.subf %289, %298 : vector<48x256xf32>
    %300 = arith.mulf %299, %299 : vector<48x256xf32>
    %cst_106 = arith.constant dense<0.000000e+00> : vector<48xf32>
    %301 = vector.multi_reduction <add>, %300, %cst_106 [1] : vector<48x256xf32> to vector<48xf32>
    %302 = vector.shape_cast %301 : vector<48xf32> to vector<48x1xf32>
    %cst_107 = arith.constant 2.560000e+02 : f32
    %303 = vector.broadcast %cst_107 : f32 to vector<48x1xf32>
    %304 = arith.divf %302, %303 : vector<48x1xf32>
    %cst_108 = arith.constant 9.99999974E-6 : f32
    %305 = vector.broadcast %cst_108 : f32 to vector<48x1xf32>
    %306 = arith.addf %304, %305 : vector<48x1xf32>
    %307 = math.rsqrt %306 : vector<48x1xf32>
    %308 = vector.broadcast %307 : vector<48x1xf32> to vector<48x256xf32>
    %309 = arith.mulf %299, %308 : vector<48x256xf32>
    %310 = vector.broadcast %291 : vector<1x256xf32> to vector<48x256xf32>
    %311 = arith.mulf %309, %310 : vector<48x256xf32>
    %312 = vector.broadcast %293 : vector<1x256xf32> to vector<48x256xf32>
    %313 = arith.addf %311, %312 : vector<48x256xf32>
    %c0_109 = arith.constant 0 : index
    %c0_110 = arith.constant 0 : index
    %c0_111 = arith.constant 0 : index
    %314 = vector.load %arg10[%c0_109, %c0_110, %c0_111] : memref<1x256x1024xbf16, #tpu.memory_space<vmem>>, vector<1x256x1024xbf16>
    %315 = vector.shape_cast %314 : vector<1x256x1024xbf16> to vector<256x1024xbf16>
    %316 = arith.truncf %313 : vector<48x256xf32> to vector<48x256xbf16>
    %cst_112 = arith.constant dense<0.000000e+00> : vector<48x1024xf32>
    %317 = tpu.matmul %316, %315, %cst_112 {dimension_numbers = #tpu.dot_dimension_numbers<[1], [0], [0], [1], [0, 0, 1, 1], [], []>} : vector<48x256xbf16>, vector<256x1024xbf16>, vector<48x1024xf32> -> vector<48x1024xf32>
    %c0_113 = arith.constant 0 : index
    %c0_114 = arith.constant 0 : index
    %c0_115 = arith.constant 0 : index
    %318 = vector.load %arg4[%c0_113, %c0_114, %c0_115] : memref<1x1x1024xf32, #tpu.memory_space<vmem>>, vector<1x1x1024xf32>
    %319 = vector.shape_cast %318 : vector<1x1x1024xf32> to vector<1x1024xf32>
    %320 = vector.broadcast %319 : vector<1x1024xf32> to vector<48x1024xf32>
    %321 = arith.addf %317, %320 : vector<48x1024xf32>
    %cst_116 = arith.constant 5.000000e-01 : f32
    %322 = vector.broadcast %cst_116 : f32 to vector<48x1024xf32>
    %323 = arith.mulf %322, %321 : vector<48x1024xf32>
    %cst_117 = arith.constant 0.707106769 : f32
    %324 = vector.broadcast %cst_117 : f32 to vector<48x1024xf32>
    %325 = arith.mulf %321, %324 : vector<48x1024xf32>
    %326 = math.erf %325 : vector<48x1024xf32>
    %cst_118 = arith.constant 1.000000e+00 : f32
    %327 = vector.broadcast %cst_118 : f32 to vector<48x1024xf32>
    %328 = arith.addf %327, %326 : vector<48x1024xf32>
    %329 = arith.mulf %323, %328 : vector<48x1024xf32>
    %c0_119 = arith.constant 0 : index
    %c0_120 = arith.constant 0 : index
    %c0_121 = arith.constant 0 : index
    %330 = vector.load %arg11[%c0_119, %c0_120, %c0_121] : memref<1x1024x256xbf16, #tpu.memory_space<vmem>>, vector<1x1024x256xbf16>
    %331 = vector.shape_cast %330 : vector<1x1024x256xbf16> to vector<1024x256xbf16>
    %332 = arith.truncf %329 : vector<48x1024xf32> to vector<48x1024xbf16>
    %cst_122 = arith.constant dense<0.000000e+00> : vector<48x256xf32>
    %333 = tpu.matmul %332, %331, %cst_122 {dimension_numbers = #tpu.dot_dimension_numbers<[1], [0], [0], [1], [0, 0, 1, 1], [], []>} : vector<48x1024xbf16>, vector<1024x256xbf16>, vector<48x256xf32> -> vector<48x256xf32>
    %334 = arith.addf %289, %333 : vector<48x256xf32>
    %c0_123 = arith.constant 0 : index
    %c8 = arith.constant 8 : index
    %c0_124 = arith.constant 0 : index
    %335 = vector.load %arg3[%c0_123, %c8, %c0_124] : memref<1x9x256xf32, #tpu.memory_space<vmem>>, vector<1x1x256xf32>
    %336 = vector.shape_cast %335 : vector<1x1x256xf32> to vector<1x256xf32>
    %337 = vector.broadcast %336 : vector<1x256xf32> to vector<48x256xf32>
    %338 = arith.addf %334, %337 : vector<48x256xf32>
    %c0_125 = arith.constant 0 : index
    %c0_126 = arith.constant 0 : index
    %339 = vector.load %arg13[%c0_125, %c0_126] : memref<48x256xf32, #tpu.memory_space<vmem>>, vector<48x256xf32>
    tpu.vector_store %arg13[%c0_125, %c0_126], %338 {strides = array<i32>} : memref<48x256xf32, #tpu.memory_space<vmem>>, vector<48x256xf32>,
    %c8_i32 = arith.constant 8 : i32
    %340 = arith.cmpi eq, %arg0, %c8_i32 : i32
    %341 = arith.extui %340 : i1 to i32
    %c0_i32_127 = arith.constant 0 : i32
    %342 = arith.cmpi ne, %341, %c0_i32_127 : i32
    scf.if %342 {
      %c0_128 = arith.constant 0 : index
      %c0_129 = arith.constant 0 : index
      %343 = vector.load %arg12[%c0_128, %c0_129] : memref<48x256xf32, #tpu.memory_space<vmem>>, vector<48x256xf32>
      tpu.vector_store %arg12[%c0_128, %c0_129], %338 {strides = array<i32>} : memref<48x256xf32, #tpu.memory_space<vmem>>, vector<48x256xf32>,
    } else {
    }
    return
  }
  func.func @transform_0(%arg0: i32) -> (i32, i32) {
    %c0_i32 = arith.constant 0 : i32
    %c0_i32_0 = arith.constant 0 : i32
    %c0_i32_1 = arith.constant 0 : i32
    return %c0_i32, %c0_i32_0 : i32, i32
  }
  func.func @transform_1(%arg0: i32) -> (i32, i32) {
    %c0_i32 = arith.constant 0 : i32
    %c0_i32_0 = arith.constant 0 : i32
    %c0_i32_1 = arith.constant 0 : i32
    return %c0_i32, %c0_i32_0 : i32, i32
  }
  func.func @transform_2(%arg0: i32) -> (i32, i32, i32) {
    %c0_i32 = arith.constant 0 : i32
    %c0_i32_0 = arith.constant 0 : i32
    %c0_i32_1 = arith.constant 0 : i32
    return %arg0, %c0_i32, %c0_i32_0 : i32, i32, i32
  }
  func.func @transform_3(%arg0: i32) -> (i32, i32, i32) {
    %c0_i32 = arith.constant 0 : i32
    %c0_i32_0 = arith.constant 0 : i32
    %c0_i32_1 = arith.constant 0 : i32
    return %arg0, %c0_i32, %c0_i32_0 : i32, i32, i32
  }
  func.func @transform_4(%arg0: i32) -> (i32, i32, i32) {
    %c0_i32 = arith.constant 0 : i32
    %c0_i32_0 = arith.constant 0 : i32
    %c0_i32_1 = arith.constant 0 : i32
    return %arg0, %c0_i32, %c0_i32_0 : i32, i32, i32
  }
  func.func @transform_5(%arg0: i32) -> (i32, i32, i32) {
    %c0_i32 = arith.constant 0 : i32
    %c0_i32_0 = arith.constant 0 : i32
    %c0_i32_1 = arith.constant 0 : i32
    return %arg0, %c0_i32, %c0_i32_0 : i32, i32, i32
  }
  func.func @transform_6(%arg0: i32) -> (i32, i32, i32) {
    %c0_i32 = arith.constant 0 : i32
    %c0_i32_0 = arith.constant 0 : i32
    %c0_i32_1 = arith.constant 0 : i32
    return %arg0, %c0_i32, %c0_i32_0 : i32, i32, i32
  }
  func.func @transform_7(%arg0: i32) -> (i32, i32, i32) {
    %c0_i32 = arith.constant 0 : i32
    %c0_i32_0 = arith.constant 0 : i32
    %c0_i32_1 = arith.constant 0 : i32
    return %arg0, %c0_i32, %c0_i32_0 : i32, i32, i32
  }
  func.func @transform_8(%arg0: i32) -> (i32, i32, i32) {
    %c0_i32 = arith.constant 0 : i32
    %c0_i32_0 = arith.constant 0 : i32
    %c0_i32_1 = arith.constant 0 : i32
    return %arg0, %c0_i32, %c0_i32_0 : i32, i32, i32
  }
  func.func @transform_9(%arg0: i32) -> (i32, i32, i32) {
    %c0_i32 = arith.constant 0 : i32
    %c0_i32_0 = arith.constant 0 : i32
    %c0_i32_1 = arith.constant 0 : i32
    return %arg0, %c0_i32, %c0_i32_0 : i32, i32, i32
  }
  func.func @transform_10(%arg0: i32) -> (i32, i32, i32) {
    %c0_i32 = arith.constant 0 : i32
    %c0_i32_0 = arith.constant 0 : i32
    %c0_i32_1 = arith.constant 0 : i32
    return %arg0, %c0_i32, %c0_i32_0 : i32, i32, i32
  }
  func.func @transform_11(%arg0: i32) -> (i32, i32) {
    %c0_i32 = arith.constant 0 : i32
    %c0_i32_0 = arith.constant 0 : i32
    %c0_i32_1 = arith.constant 0 : i32
    return %c0_i32, %c0_i32_0 : i32, i32
  }
}

module attributes {stable_mosaic.version = 11 : i64} {
  func.func @_epilogue_kernel(%arg0: memref<48x256xf32, #tpu.memory_space<vmem>>, %arg1: memref<1x256xf32, #tpu.memory_space<vmem>>, %arg2: memref<1x256xf32, #tpu.memory_space<vmem>>, %arg3: memref<256x128xf32, #tpu.memory_space<vmem>>, %arg4: memref<1x128xf32, #tpu.memory_space<vmem>>, %arg5: memref<1x128xf32, #tpu.memory_space<vmem>>, %arg6: memref<24x128xf32, #tpu.memory_space<vmem>>, %arg7: memref<128x64xf32, #tpu.memory_space<vmem>>, %arg8: memref<1x64xf32, #tpu.memory_space<vmem>>, %arg9: memref<48x64xf32, #tpu.memory_space<vmem>>) attributes {dimension_semantics = [], scalar_prefetch = 0 : i64, scratch_operands = 0 : i64, tpu.core_type = #tpu.core_type<tc>} {
    %c0 = arith.constant 0 : index
    %c0_0 = arith.constant 0 : index
    %0 = vector.load %arg0[%c0, %c0_0] : memref<48x256xf32, #tpu.memory_space<vmem>>, vector<48x256xf32>
    %c0_1 = arith.constant 0 : index
    %c0_2 = arith.constant 0 : index
    %1 = vector.load %arg1[%c0_1, %c0_2] : memref<1x256xf32, #tpu.memory_space<vmem>>, vector<1x256xf32>
    %c0_3 = arith.constant 0 : index
    %c0_4 = arith.constant 0 : index
    %2 = vector.load %arg2[%c0_3, %c0_4] : memref<1x256xf32, #tpu.memory_space<vmem>>, vector<1x256xf32>
    %cst = arith.constant dense<0.000000e+00> : vector<48xf32>
    %3 = vector.multi_reduction <add>, %0, %cst [1] : vector<48x256xf32> to vector<48xf32>
    %4 = vector.shape_cast %3 : vector<48xf32> to vector<48x1xf32>
    %cst_5 = arith.constant 2.560000e+02 : f32
    %5 = vector.broadcast %cst_5 : f32 to vector<48x1xf32>
    %6 = arith.divf %4, %5 : vector<48x1xf32>
    %7 = vector.broadcast %6 : vector<48x1xf32> to vector<48x256xf32>
    %8 = arith.subf %0, %7 : vector<48x256xf32>
    %9 = arith.mulf %8, %8 : vector<48x256xf32>
    %cst_6 = arith.constant dense<0.000000e+00> : vector<48xf32>
    %10 = vector.multi_reduction <add>, %9, %cst_6 [1] : vector<48x256xf32> to vector<48xf32>
    %11 = vector.shape_cast %10 : vector<48xf32> to vector<48x1xf32>
    %cst_7 = arith.constant 2.560000e+02 : f32
    %12 = vector.broadcast %cst_7 : f32 to vector<48x1xf32>
    %13 = arith.divf %11, %12 : vector<48x1xf32>
    %cst_8 = arith.constant 9.99999974E-6 : f32
    %14 = vector.broadcast %cst_8 : f32 to vector<48x1xf32>
    %15 = arith.addf %13, %14 : vector<48x1xf32>
    %16 = math.rsqrt %15 : vector<48x1xf32>
    %17 = vector.broadcast %16 : vector<48x1xf32> to vector<48x256xf32>
    %18 = arith.mulf %8, %17 : vector<48x256xf32>
    %19 = vector.broadcast %1 : vector<1x256xf32> to vector<48x256xf32>
    %20 = arith.mulf %18, %19 : vector<48x256xf32>
    %21 = vector.broadcast %2 : vector<1x256xf32> to vector<48x256xf32>
    %22 = arith.addf %20, %21 : vector<48x256xf32>
    %c0_9 = arith.constant 0 : index
    %c0_10 = arith.constant 0 : index
    %23 = vector.load %arg3[%c0_9, %c0_10] : memref<256x128xf32, #tpu.memory_space<vmem>>, vector<256x128xf32>
    %cst_11 = arith.constant dense<0.000000e+00> : vector<48x128xf32>
    %24 = tpu.matmul %22, %23, %cst_11 {dimension_numbers = #tpu.dot_dimension_numbers<[1], [0], [0], [1], [0, 0, 1, 1], [], []>} : vector<48x256xf32>, vector<256x128xf32>, vector<48x128xf32> -> vector<48x128xf32>
    %c0_12 = arith.constant 0 : index
    %c0_13 = arith.constant 0 : index
    %25 = vector.load %arg4[%c0_12, %c0_13] : memref<1x128xf32, #tpu.memory_space<vmem>>, vector<1x128xf32>
    %26 = vector.broadcast %25 : vector<1x128xf32> to vector<48x128xf32>
    %27 = arith.addf %24, %26 : vector<48x128xf32>
    %c0_14 = arith.constant 0 : index
    %c0_15 = arith.constant 0 : index
    %28 = vector.load %arg6[%c0_14, %c0_15] : memref<24x128xf32, #tpu.memory_space<vmem>>, vector<24x128xf32>
    %29 = tpu.concatenate %28, %28 in 0 : vector<24x128xf32>, vector<24x128xf32> -> vector<48x128xf32>
    %c0_16 = arith.constant 0 : index
    %c0_17 = arith.constant 0 : index
    %30 = vector.load %arg5[%c0_16, %c0_17] : memref<1x128xf32, #tpu.memory_space<vmem>>, vector<1x128xf32>
    %31 = vector.broadcast %30 : vector<1x128xf32> to vector<48x128xf32>
    %32 = arith.mulf %31, %27 : vector<48x128xf32>
    %33 = arith.addf %29, %32 : vector<48x128xf32>
    %c0_18 = arith.constant 0 : index
    %c0_19 = arith.constant 0 : index
    %34 = vector.load %arg7[%c0_18, %c0_19] : memref<128x64xf32, #tpu.memory_space<vmem>>, vector<128x64xf32>
    %cst_20 = arith.constant dense<0.000000e+00> : vector<48x64xf32>
    %35 = tpu.matmul %33, %34, %cst_20 {dimension_numbers = #tpu.dot_dimension_numbers<[1], [0], [0], [1], [0, 0, 1, 1], [], []>} : vector<48x128xf32>, vector<128x64xf32>, vector<48x64xf32> -> vector<48x64xf32>
    %c0_21 = arith.constant 0 : index
    %c0_22 = arith.constant 0 : index
    %36 = vector.load %arg8[%c0_21, %c0_22] : memref<1x64xf32, #tpu.memory_space<vmem>>, vector<1x64xf32>
    %37 = vector.broadcast %36 : vector<1x64xf32> to vector<48x64xf32>
    %38 = arith.addf %35, %37 : vector<48x64xf32>
    %c0_23 = arith.constant 0 : index
    %c0_24 = arith.constant 0 : index
    %39 = vector.load %arg9[%c0_23, %c0_24] : memref<48x64xf32, #tpu.memory_space<vmem>>, vector<48x64xf32>
    tpu.vector_store %arg9[%c0_23, %c0_24], %38 {strides = array<i32>} : memref<48x64xf32, #tpu.memory_space<vmem>>, vector<48x64xf32>,
    return
  }
}

</mosaic_0001>

<bundles_post_ra>
// kernel: text_decoder_forward.4
= control target key start
LH: loop header
LB: loop body
LE: loop exit
PB: predicated region body
PF: predicated region fallthrough
CT: control target
= control target key end

     0   :  { %16 = vsyncpa [#allocation3], 0  ;;  %s1086_s0 = inlined_call_operand.vmem [shape: f32[24,128], index: 0, kind: input, shape index: {}]   ;;  %s1087_s1 = inlined_call_operand.hbm [shape: f32[128,128], index: 1, kind: input, shape index: {}]   ;;  %s1088_s2 = inlined_call_operand.vmem [shape: f32[128,64], index: 2, kind: input, shape index: {}]   ;;  %s1089_s3 = inlined_call_operand.hbm [shape: f32[1,64], index: 3, kind: input, shape index: {}]   ;;  %s1090_s4 = inlined_call_operand.hbm [shape: f32[1,128], index: 4, kind: input, shape index: {}]   ;;  %s1091_s5 = inlined_call_operand.hbm [shape: f32[1,128], index: 5, kind: input, shape index: {}]   ;;  %s1092_s6 = inlined_call_operand.hbm [shape: f32[128,256], index: 6, kind: input, shape index: {}]   ;;  %s1093_s7 = inlined_call_operand.hbm [shape: f32[1,256], index: 7, kind: input, shape index: {}]   ;;  %s1094_s8 = inlined_call_operand.vmem [shape: f32[24,128], index: 8, kind: output, shape index: {0}]   ;;  %s1095_s9 = inlined_call_operand.vmem [shape: f32[24,64], index: 9, kind: output, shape index: {1}]   ;;  %s1096_s10 = inlined_call_operand.vmem [shape: f32[24,256], index: 10, kind: output, shape index: {2}]  }
   0x1   :  { %17 = vsyncpa [#allocation5], 0 }
   0x2   :  { %18 = vsyncpa [#allocation8], 0 }
   0x3   :  { %19 = vsyncpa [#allocation11], 0  ;;  %s819_s13 = smov [#allocation4]   ;;  %s820_s15 = smov [#allocation7]  }
   0x4   :  { %s42_s14 = sshll.u32 %s819_s13, 4  ;;  %s62_s16 = sshll.u32 %s820_s15, 4  ;;  %s43_s14 = int_to_ptr.vmem [resolvable:$true] %s42_s14  ;;  %s63_s16 = int_to_ptr.vmem [resolvable:$true] %s62_s16 }
   0x5   :  { %s699_s17 = scalar_lea.vmem %s43_s14, 16  ;;  %s703_s18 = scalar_lea.vmem %s43_s14, 32 }
   0x6   :  { %p700_p0 = scmp.ne.s32.totalorder %s43_s14, %s699_s17  ;;  %p704_p1 = scmp.lt.s32.totalorder %s43_s14, %s43_s14 }
   0x7   :  { %p705_p2 = scmp.lt.s32.totalorder %s703_s18, %s699_s17 }
   0x9   :  { %p706_p3 = por %p705_p2, %p704_p1 }
   0xb   :  { %p707_p4 = pnand %p706_p3, %p700_p0 }
   0xd   :  { %710 = shalt.err (!%p707_p4)
}
   0xe   :  { %45 = dma.hbm_to_vmem [thread:$0]  %s1089_s3, 16, %s43_s14, [#allocation5]  }
   0xf   :  { %s719_s21 = scalar_lea.vmem %s63_s16, 16  ;;  %s723_s22 = scalar_lea.vmem %s63_s16, 32 }
  0x10   :  { %p720_p5 = scmp.ne.s32.totalorder %s63_s16, %s719_s21  ;;  %p724_p6 = scmp.lt.s32.totalorder %s63_s16, %s63_s16 }
  0x11   :  { %p725_p7 = scmp.lt.s32.totalorder %s723_s22, %s719_s21 }
  0x13   :  { %p726_p8 = por %p725_p7, %p724_p6 }
  0x15   :  { %p727_p9 = pnand %p726_p8, %p720_p5 }
  0x17   :  { %730 = shalt.err (!%p727_p9)
}
  0x18   :  { %65 = dma.hbm_to_vmem [thread:$0]  %s1091_s5, 16, %s63_s16, [#allocation8]  }
  0x19   :  { %s821_s25 = smov [#allocation2]  }
  0x1a   :  { %s27_s26 = sshll.u32 %s821_s25, 4  ;;  %s28_s26 = int_to_ptr.vmem [resolvable:$true] %s27_s26 }
  0x1b   :  { %s739_s27 = scalar_lea.vmem %s28_s26, 2048  ;;  %p744_p11 = scmp.lt.s32.totalorder %s28_s26, %s28_s26 }
  0x1c   :  { %p740_p10 = scmp.ne.s32.totalorder %s28_s26, %s739_s27  ;;  %p745_p12 = scmp.lt.s32.totalorder %s739_s27, %s739_s27 }
  0x1e   :  { %p746_p13 = por %p745_p12, %p744_p11 }
  0x20   :  { %p747_p0 = pnand %p746_p13, %p740_p10 }
  0x22   :  { %750 = shalt.err (!%p747_p0)
}
  0x23   :  { %s822_s3 = smov 128   ;;  %s823_s28 = smov 8  }
  0x24   :  { %33 = dma.hbm_to_vmem [thread:$0]  %s1087_s1, 2048, %s28_s26, [#allocation3], %s822_s3, %s822_s3, %s823_s28  }
  0x25   :  { %s824_s11 = smov [#allocation6]   ;;  %s825_s5 = smov [#allocation9]  }
  0x26   :  { %s52_s12 = sshll.u32 %s824_s11, 4  ;;  %s71_s13 = sshll.u32 %s825_s5, 4  ;;  %s53_s12 = int_to_ptr.vmem [resolvable:$true] %s52_s12  ;;  %s72_s13 = int_to_ptr.vmem [resolvable:$true] %s71_s13 }
  0x27   :  { %s759_s14 = scalar_lea.vmem %s53_s12, 16  ;;  %s763_s15 = scalar_lea.vmem %s53_s12, 32 }
  0x28   :  { %p760_p1 = scmp.ne.s32.totalorder %s53_s12, %s759_s14  ;;  %p764_p2 = scmp.lt.s32.totalorder %s53_s12, %s53_s12 }
  0x29   :  { %p765_p3 = scmp.lt.s32.totalorder %s763_s15, %s759_s14 }
  0x2b   :  { %p766_p4 = por %p765_p3, %p764_p2 }
  0x2d   :  { %p767_p5 = pnand %p766_p4, %p760_p1 }
  0x2f   :  { %770 = shalt.err (!%p767_p5)
}
  0x30   :  { %55 = dma.hbm_to_vmem [thread:$0]  %s1090_s4, 16, %s53_s12, [#allocation5]  }
  0x31   :  { %s779_s18 = scalar_lea.vmem %s72_s13, 4096  ;;  %p784_p7 = scmp.lt.s32.totalorder %s72_s13, %s72_s13 }
  0x32   :  { %p780_p6 = scmp.ne.s32.totalorder %s72_s13, %s779_s18  ;;  %p785_p8 = scmp.lt.s32.totalorder %s779_s18, %s779_s18 }
  0x34   :  { %p786_p9 = por %p785_p8, %p784_p7 }
  0x36   :  { %p787_p10 = pnand %p786_p9, %p780_p6 }
  0x38   :  { %790 = shalt.err (!%p787_p10)
}
  0x39   :  { %s826_s1 = smov 256   ;;  %s827_s19 = smov 16  }
  0x3a   :  { %77 = dma.hbm_to_vmem [thread:$0]  %s1092_s6, 4096, %s72_s13, [#allocation8], %s826_s1, %s826_s1, %s827_s19  }
  0x3b   :  { %s828_s22 = smov [#allocation10]  }
  0x3c   :  { %s84_s23 = sshll.u32 %s828_s22, 4  ;;  %s85_s23 = int_to_ptr.vmem [resolvable:$true] %s84_s23 }
  0x3d   :  { %s799_s24 = scalar_lea.vmem %s85_s23, 32  ;;  %p804_p12 = scmp.lt.s32.totalorder %s85_s23, %s85_s23 }
  0x3e   :  { %p800_p11 = scmp.ne.s32.totalorder %s85_s23, %s799_s24  ;;  %p805_p13 = scmp.lt.s32.totalorder %s799_s24, %s799_s24 }
  0x40   :  { %p806_p0 = por %p805_p13, %p804_p12 }
  0x42   :  { %p807_p1 = pnand %p806_p0, %p800_p11 }
  0x44   :  { %810 = shalt.err (!%p807_p1)
}
  0x45   :  { %87 = dma.hbm_to_vmem [thread:$0]  %s1093_s7, 32, %s85_s23, [#allocation11]  }
  0x46   :  { %811 = dma.done.wait [#allocation3], 2048  }
  0x47   :  { %812 = vsyncadd [#allocation3], 4294965248 }
  0x48   :  { %813 = dma.done.wait [#allocation5], 32  }
  0x49   :  { %814 = vsyncadd [#allocation5], 4294967264 }
  0x4a   :  { %815 = dma.done.wait [#allocation8], 4112  }
  0x4b   :  { %816 = vsyncadd [#allocation8], 4294963184 }
  0x4c   :  { %817 = dma.done.wait [#allocation11], 32  }
  0x4d   :  { %818 = vsyncadd [#allocation11], 4294967264  ;;  %v829_v0 = vmov 0.0   ;;  %vm830_vm0 = vmmov 0   ;;  %v124_v1 = vld [vmem:[#allocation2 + $0x78] sm:$0xff]  ;;  %v123_v2 = vld [vmem:[#allocation2 + $0x70] sm:$0xff] }
  0x4e   :  { %559 = vmatprep.subr.mxu0 %v829_v0  ;;  %591 = vmatprep.mubr.msk.f32.mxu0 %vm830_vm0, %v829_v0  ;;  %v122_v3 = vld [vmem:[#allocation2 + $0x68] sm:$0xff]  ;;  %v121_v4 = vld [vmem:[#allocation2 + $0x60] sm:$0xff]  ;;  %v120_v5 = vld [vmem:[#allocation2 + $0x58] sm:$0xff]  ;;  %vm311_vm1 = vcmask 523264  }
  0x4f   :  { %600 = vmatprep.subr.mxu1 %v829_v0  ;;  %632 = vmatprep.mubr.msk.f32.mxu1 %vm830_vm0, %v829_v0  ;;  %v119_v6 = vld [vmem:[#allocation2 + $0x50] sm:$0xff]  ;;  %v118_v7 = vld [vmem:[#allocation2 + $0x48] sm:$0xff]  ;;  %v117_v8 = vld [vmem:[#allocation2 + $0x40] sm:$0xff] }
  0x50   :  { %560 = vmatpush3.msra.mxu0 %v124_v1  ;;  %v116_v9 = vld [vmem:[#allocation2 + $0x38] sm:$0xff]  ;;  %v115_v10 = vld [vmem:[#allocation2 + $0x30] sm:$0xff]  ;;  %v114_v11 = vld [vmem:[#allocation2 + $0x28] sm:$0xff] }
  0x51   :  { %561 = vmatprep.subr.mxu0 %v829_v0  ;;  %v113_v12 = vld [vmem:[#allocation2 + $0x20] sm:$0xff]  ;;  %v112_v13 = vld [vmem:[#allocation2 + $0x18] sm:$0xff]  ;;  %v111_v14 = vld [vmem:[#allocation2 + $0x10] sm:$0xff] }
  0x52   :  { %562 = vmatpush3.msra.mxu0 %v123_v2  ;;  %v110_v15 = vld [vmem:[#allocation2 + $0x8] sm:$0xff]  ;;  %v109_v16 = vld [vmem:[#allocation2] sm:$0xff]  ;;  %v944_v19 = vld [vmem:[%s1086_s0 + $0x10] sm:$0xff] }
  0x53   :  { %563 = vmatprep.subr.mxu0 %v829_v0  ;;  %v927_v17 = vld [vmem:[%s1086_s0] sm:$0xff]  ;;  %v936_v18 = vld [vmem:[%s1086_s0 + $0x8] sm:$0xff]  ;;  %v223_v26 = vld [vmem:[%s1088_s2 + $0x78] sm:$0xff] }
  0x54   :  { %564 = vmatpush3.msra.mxu0 %v122_v3  ;;  %v222_v27 = vld [vmem:[%s1088_s2 + $0x70] sm:$0xff]  ;;  %601 = vmatpush3.msra.mxu1 %v223_v26  ;;  %v221_v28 = vld [vmem:[%s1088_s2 + $0x68] sm:$0xff]  ;;  %v220_v29 = vld [vmem:[%s1088_s2 + $0x60] sm:$0xff] }
  0x55   :  { %565 = vmatprep.subr.mxu0 %v829_v0  ;;  %602 = vmatprep.subr.mxu1 %v829_v0  ;;  %v400_v30 = vld [vmem:[#allocation9 + $0xf8] sm:$0xff]  ;;  %v399_v32 = vld [vmem:[#allocation9 + $0xf0] sm:$0xff]  ;;  %v398_v33 = vld [vmem:[#allocation9 + $0xe8] sm:$0xff] }
  0x56   :  { %566 = vmatpush3.msra.mxu0 %v121_v4  ;;  %603 = vmatpush3.msra.mxu1 %v222_v27  ;;  %v219_v31 = vld [vmem:[%s1088_s2 + $0x58] sm:$0xff]  ;;  %v218_v34 = vld [vmem:[%s1088_s2 + $0x50] sm:$0xff]  ;;  %v397_v35 = vld [vmem:[#allocation9 + $0xe0] sm:$0xff] }
  0x57   :  { %567 = vmatprep.subr.mxu0 %v829_v0  ;;  %604 = vmatprep.subr.mxu1 %v829_v0  ;;  %v396_v36 = vld [vmem:[#allocation9 + $0xd8] sm:$0xff]  ;;  %v217_v37 = vld [vmem:[%s1088_s2 + $0x48] sm:$0xff]  ;;  %v395_v38 = vld [vmem:[#allocation9 + $0xd0] sm:$0xff] }
  0x58   :  { %568 = vmatpush3.msra.mxu0 %v120_v5  ;;  %605 = vmatpush3.msra.mxu1 %v221_v28  ;;  %v394_v39 = vld [vmem:[#allocation9 + $0xc8] sm:$0xff]  ;;  %v216_v40 = vld [vmem:[%s1088_s2 + $0x40] sm:$0xff]  ;;  %v215_v42 = vld [vmem:[%s1088_s2 + $0x38] sm:$0xff] }
  0x59   :  { %569 = vmatprep.subr.mxu0 %v829_v0  ;;  %606 = vmatprep.subr.mxu1 %v829_v0  ;;  %v393_v41 = vld [vmem:[#allocation9 + $0xc0] sm:$0xff]  ;;  %v214_v43 = vld [vmem:[%s1088_s2 + $0x30] sm:$0xff]  ;;  %v211_v46 = vld [vmem:[%s1088_s2 + $0x18] sm:$0xff] }
  0x5a   :  { %570 = vmatpush3.msra.mxu0 %v119_v6  ;;  %607 = vmatpush3.msra.mxu1 %v220_v29  ;;  %v213_v44 = vld [vmem:[%s1088_s2 + $0x28] sm:$0xff]  ;;  %v212_v45 = vld [vmem:[%s1088_s2 + $0x20] sm:$0xff]  ;;  %v210_v47 = vld [vmem:[%s1088_s2 + $0x10] sm:$0xff] }
  0x5b   :  { %571 = vmatprep.subr.mxu0 %v829_v0  ;;  %608 = vmatprep.subr.mxu1 %v829_v0  ;;  %v209_v48 = vld [vmem:[%s1088_s2 + $0x8] sm:$0xff]  ;;  %v208_v49 = vld [vmem:[%s1088_s2] sm:$0xff]  ;;  %v391_v63 = vld [vmem:[#allocation9 + $0xb0] sm:$0xff] }
  0x5c   :  { %572 = vmatpush3.msra.mxu0 %v118_v7  ;;  %609 = vmatpush3.msra.mxu1 %v219_v31  ;;  %v392_v62 = vld [vmem:[#allocation9 + $0xb8] sm:$0xff]  ;;  %v390_v1 = vld [vmem:[#allocation9 + $0xa8] sm:$0xff]  ;;  %v389_v2 = vld [vmem:[#allocation9 + $0xa0] sm:$0xff] }
  0x5d   :  { %573 = vmatprep.subr.mxu0 %v829_v0  ;;  %610 = vmatprep.subr.mxu1 %v829_v0  ;;  %v388_v3 = vld [vmem:[#allocation9 + $0x98] sm:$0xff]  ;;  %v387_v4 = vld [vmem:[#allocation9 + $0x90] sm:$0xff]  ;;  %v386_v5 = vld [vmem:[#allocation9 + $0x88] sm:$0xff] }
  0x5e   :  { %574 = vmatpush3.msra.mxu0 %v117_v8  ;;  %611 = vmatpush3.msra.mxu1 %v218_v34  ;;  %v385_v6 = vld [vmem:[#allocation9 + $0x80] sm:$0xff]  ;;  %v384_v7 = vld [vmem:[#allocation9 + $0x78] sm:$0xff]  ;;  %v383_v8 = vld [vmem:[#allocation9 + $0x70] sm:$0xff] }
  0x5f   :  { %575 = vmatprep.subr.mxu0 %v829_v0  ;;  %612 = vmatprep.subr.mxu1 %v829_v0 }
  0x60   :  { %576 = vmatpush3.msra.mxu0 %v116_v9  ;;  %613 = vmatpush3.msra.mxu1 %v217_v37  ;;  %v382_v9 = vld [vmem:[#allocation9 + $0x68] sm:$0xff] }
  0x61   :  { %577 = vmatprep.subr.mxu0 %v829_v0  ;;  %614 = vmatprep.subr.mxu1 %v829_v0 }
  0x62   :  { %578 = vmatpush3.msra.mxu0 %v115_v10  ;;  %615 = vmatpush3.msra.mxu1 %v216_v40  ;;  %v381_v10 = vld [vmem:[#allocation9 + $0x60] sm:$0xff] }
  0x63   :  { %579 = vmatprep.subr.mxu0 %v829_v0  ;;  %616 = vmatprep.subr.mxu1 %v829_v0 }
  0x64   :  { %580 = vmatpush3.msra.mxu0 %v114_v11  ;;  %617 = vmatpush3.msra.mxu1 %v215_v42  ;;  %v380_v11 = vld [vmem:[#allocation9 + $0x58] sm:$0xff] }
  0x65   :  { %581 = vmatprep.subr.mxu0 %v829_v0  ;;  %618 = vmatprep.subr.mxu1 %v829_v0 }
  0x66   :  { %582 = vmatpush3.msra.mxu0 %v113_v12  ;;  %619 = vmatpush3.msra.mxu1 %v214_v43  ;;  %v379_v12 = vld [vmem:[#allocation9 + $0x50] sm:$0xff]  ;;  %v519_v43 = vld [vmem:[#allocation6] ss:$0 sm:$0xff] }
  0x67   :  { %583 = vmatprep.subr.mxu0 %v829_v0  ;;  %620 = vmatprep.subr.mxu1 %v829_v0 }
  0x68   :  { %584 = vmatpush3.msra.mxu0 %v112_v13  ;;  %621 = vmatpush3.msra.mxu1 %v213_v44  ;;  %v378_v13 = vld [vmem:[#allocation9 + $0x48] sm:$0xff] }
  0x69   :  { %585 = vmatprep.subr.mxu0 %v829_v0  ;;  %622 = vmatprep.subr.mxu1 %v829_v0 }
  0x6a   :  { %586 = vmatpush3.msra.mxu0 %v111_v14  ;;  %623 = vmatpush3.msra.mxu1 %v212_v45  ;;  %v377_v14 = vld [vmem:[#allocation9 + $0x40] sm:$0xff]  ;;  %v520_v45 = vld [vmem:[#allocation7] ss:$0 sm:$0xff] }
  0x6b   :  { %587 = vmatprep.subr.mxu0 %v829_v0  ;;  %624 = vmatprep.subr.mxu1 %v829_v0 }
  0x6c   :  { %588 = vmatpush3.msra.mxu0 %v110_v15  ;;  %625 = vmatpush3.msra.mxu1 %v211_v46  ;;  %v376_v15 = vld [vmem:[#allocation9 + $0x38] sm:$0xff] }
  0x6d   :  { %589 = vmatprep.subr.mxu0 %v829_v0  ;;  %626 = vmatprep.subr.mxu1 %v829_v0 }
  0x6e   :  { %590 = vmatpush3.msra.mxu0 %v109_v16  ;;  %627 = vmatpush3.msra.mxu1 %v210_v47  ;;  %v375_v16 = vld [vmem:[#allocation9 + $0x30] sm:$0xff] }
  0x6f   :  { %592 = vmatmul.mubr.f32.vlgmr.msra.gmra.mxu0 %v927_v17  ;;  %413 = vmatprep.subr.mxu0 %v400_v30 }
  0x70   :  { %594 = vmatprep.mubr.msk.f32.mxu0 %vm830_vm0, %v829_v0  ;;  %414 = vmatpush1.msra.mxu0 %v399_v32 }
  0x71   :  { %415 = vmatprep.subr.mxu0 %v398_v33  ;;  %628 = vmatprep.subr.mxu1 %v829_v0 }
  0x72   :  { %416 = vmatpush1.msra.mxu0 %v397_v35  ;;  %629 = vmatpush3.msra.mxu1 %v209_v48 }
  0x73   :  { %595 = vmatmul.mubr.f32.gmra.mxu0 %v936_v18  ;;  %417 = vmatprep.subr.mxu0 %v396_v36 }
  0x74   :  { %597 = vmatprep.mubr.msk.f32.mxu0 %vm830_vm0, %v829_v0  ;;  %418 = vmatpush1.msra.mxu0 %v395_v38 }
  0x75   :  { %419 = vmatprep.subr.mxu0 %v394_v39  ;;  %630 = vmatprep.subr.mxu1 %v829_v0 }
  0x76   :  { %420 = vmatpush1.msra.mxu0 %v393_v41  ;;  %631 = vmatpush3.msra.mxu1 %v208_v49 }
  0x77   :  { %598 = vmatmul.mubr.f32.gmra.mxu0 %v944_v19  ;;  %633 = vmatmul.mubr.f32.vlgmr.msra.gmra.mxu1 %v927_v17  ;;  %v374_v17 = vld [vmem:[#allocation9 + $0x28] sm:$0xff] }
  0x78   :  { %477 = vmatprep.mubr.f32.mxu0 %v829_v0  ;;  %641 = vmatprep.subr.mxu1 %v400_v30 }
  0x79   :  { %657 = vmatpush1.msra.mxu1 %v399_v32  ;;  %635 = vmatprep.mubr.msk.f32.mxu1 %vm830_vm0, %v829_v0 }
  0x7a   :  { %642 = vmatprep.subr.mxu1 %v398_v33  ;;  %421 = vmatprep.subr.mxu0 %v392_v62 }
  0x7b   :  { %658 = vmatpush1.msra.mxu1 %v397_v35  ;;  %422 = vmatpush1.msra.mxu0 %v391_v63 }
  0x7c   :  { %643 = vmatprep.subr.mxu1 %v396_v36  ;;  %636 = vmatmul.mubr.f32.gmra.mxu1 %v936_v18  ;;  %v373_v18 = vld [vmem:[#allocation9 + $0x20] sm:$0xff] }
  0x7d   :  { %659 = vmatpush1.msra.mxu1 %v395_v38  ;;  %638 = vmatprep.mubr.msk.f32.mxu1 %vm830_vm0, %v829_v0 }
  0x7e   :  { %644 = vmatprep.subr.mxu1 %v394_v39  ;;  %423 = vmatprep.subr.mxu0 %v390_v1 }
  0x7f   :  { %660 = vmatpush1.msra.mxu1 %v393_v41  ;;  %424 = vmatpush1.msra.mxu0 %v389_v2 }
  0x80   :  { %639 = vmatmul.mubr.f32.gmra.mxu1 %v944_v19  ;;  %645 = vmatprep.subr.mxu1 %v392_v62  ;;  %v372_v19 = vld [vmem:[#allocation9 + $0x18] sm:$0xff] }
  0x81   :  { %483 = vmatprep.mubr.f32.mxu1 %v829_v0  ;;  %661 = vmatpush1.msra.mxu1 %v391_v63 }
  0x82   :  { %646 = vmatprep.subr.mxu1 %v390_v1  ;;  %425 = vmatprep.subr.mxu0 %v388_v3 }
  0x83   :  { %662 = vmatpush1.msra.mxu1 %v389_v2  ;;  %426 = vmatpush1.msra.mxu0 %v387_v4 }
  0x84   :  { %647 = vmatprep.subr.mxu1 %v388_v3  ;;  %427 = vmatprep.subr.mxu0 %v386_v5 }
  0x85   :  { %663 = vmatpush1.msra.mxu1 %v387_v4  ;;  %428 = vmatpush1.msra.mxu0 %v385_v6 }
  0x86   :  { %648 = vmatprep.subr.mxu1 %v386_v5  ;;  %429 = vmatprep.subr.mxu0 %v384_v7 }
  0x87   :  { %664 = vmatpush1.msra.mxu1 %v385_v6  ;;  %430 = vmatpush1.msra.mxu0 %v383_v8 }
  0x88   :  { %649 = vmatprep.subr.mxu1 %v384_v7  ;;  %431 = vmatprep.subr.mxu0 %v382_v9 }
  0x89   :  { %665 = vmatpush1.msra.mxu1 %v383_v8  ;;  %432 = vmatpush1.msra.mxu0 %v381_v10 }
  0x8a   :  { %650 = vmatprep.subr.mxu1 %v382_v9  ;;  %433 = vmatprep.subr.mxu0 %v380_v11 }
  0x8b   :  { %666 = vmatpush1.msra.mxu1 %v381_v10  ;;  %434 = vmatpush1.msra.mxu0 %v379_v12 }
  0x8c   :  { %651 = vmatprep.subr.mxu1 %v380_v11  ;;  %435 = vmatprep.subr.mxu0 %v378_v13 }
  0x8d   :  { %667 = vmatpush1.msra.mxu1 %v379_v12  ;;  %436 = vmatpush1.msra.mxu0 %v377_v14 }
  0x8e   :  { %652 = vmatprep.subr.mxu1 %v378_v13  ;;  %437 = vmatprep.subr.mxu0 %v376_v15 }
  0x8f   :  { %668 = vmatpush1.msra.mxu1 %v377_v14  ;;  %438 = vmatpush1.msra.mxu0 %v375_v16 }
  0x90   :  { %653 = vmatprep.subr.mxu1 %v376_v15  ;;  %439 = vmatprep.subr.mxu0 %v374_v17 }
  0x91   :  { %669 = vmatpush1.msra.mxu1 %v375_v16  ;;  %440 = vmatpush1.msra.mxu0 %v373_v18 }
  0x92   :  { %654 = vmatprep.subr.mxu1 %v374_v17  ;;  %441 = vmatprep.subr.mxu0 %v372_v19 }
  0x93   :  { %670 = vmatpush1.msra.mxu1 %v373_v18 }
  0x94   :  { %655 = vmatprep.subr.mxu1 %v372_v19 }
 0x12f   :  { %v948_v20 = vpop.f32.mrf.mxu0 }
 0x130   :  { %205 = vst [vmem:[%s1094_s8] sm:$0xff] %v948_v20 }
 0x131   :  { %v593_v21 = vpop.f32.mrf.mxu0 }
 0x132   :  { %v370_v21 = vld [vmem:[#allocation9 + $0x8] sm:$0xff] }
 0x133   :  { %v954_v22 = vpop.f32.mrf.mxu0 }
 0x134   :  { %206 = vst [vmem:[%s1094_s8 + $0x8] sm:$0xff] %v954_v22  ;;  %319 = vadd.xlane.f32.xlu0 %v954_v22 }
 0x135   :  { %v596_v23 = vpop.f32.mrf.mxu0 }
 0x136   :  { %v518_v23 = vld [vmem:[#allocation4] ss:$0 sm:$0xff] }
 0x137   :  { %v961_v24 = vpop.f32.mrf.mxu0 }
 0x138   :  { %207 = vst [vmem:[%s1094_s8 + $0x10] sm:$0xff] %v961_v24  ;;  %317 = vadd.xlane.f32.xlu0 %v948_v20  ;;  %321 = vadd.xlane.f32.xlu1 %v961_v24 }
 0x139   :  { %v599_v25 = vpop.f32.mrf.mxu0 }
 0x1bd   :  { %v320_v50 = vpop.xlane.xlu0 %319 }
 0x1be   :  { %v325_v51 = vmul.f32 0.0078125, %v320_v50 }
 0x1c0   :  { %v1041_v52 = vsub.f32 %v954_v22, %v325_v51  ;;  %v369_v22 = vld [vmem:[#allocation9] sm:$0xff] }
 0x1c1   :  { %v318_v53 = vpop.xlane.xlu0 %317  ;;  %v322_v54 = vpop.xlane.xlu1 %321 }
 0x1c2   :  { %v324_v55 = vmul.f32 0.0078125, %v318_v53  ;;  %v326_v56 = vmul.f32 0.0078125, %v322_v54  ;;  %v331_v57 = vmul.f32 %v1041_v52, %v1041_v52 }
 0x1c4   :  { %v1046_v58 = vsub.f32 %v948_v20, %v324_v55  ;;  %v1049_v59 = vsub.f32 %v961_v24, %v326_v56  ;;  %335 = vadd.xlane.f32.xlu1 %v331_v57  ;;  %v371_v20 = vld [vmem:[#allocation9 + $0x10] sm:$0xff]  ;;  %v297_v24 = vpop.f32.mrf.mxu1  ;;  %v403_v57 = vlaneseq }
 0x1c5   :  { %671 = vmatpush1.msra.mxu1 %v371_v20  ;;  %442 = vmatpush1.msra.mxu0 %v371_v20  ;;  %v298_v25 = vadd.f32 %v518_v23, %v297_v24 }
 0x1c6   :  { %v330_v60 = vmul.f32 %v1046_v58, %v1046_v58  ;;  %v332_v61 = vmul.f32 %v1049_v59, %v1049_v59  ;;  %656 = vmatprep.subr.mxu1 %v370_v21  ;;  %443 = vmatprep.subr.mxu0 %v370_v21  ;;  %v634_v26 = vpop.f32.mrf.mxu1 }
 0x1c7   :  { %672 = vmatpush1.msra.mxu1 %v369_v22  ;;  %444 = vmatpush1.msra.mxu0 %v369_v22  ;;  %312 = vst.msk [vmem:[%s1095_s9] sm:$0xff] %vm311_vm1, %v298_v25 }
 0x1c8   :  { %333 = vadd.xlane.f32.xlu0 %v330_v60  ;;  %337 = vadd.xlane.f32.xlu1 %v332_v61  ;;  %v302_v27 = vpop.f32.mrf.mxu1  ;;  %v401_v61 = vld [vmem:[#allocation10] sm:$0x3] }
 0x1c9   :  { %v303_v28 = vadd.f32 %v518_v23, %v302_v27 }
 0x1ca   :  { %v637_v29 = vpop.f32.mrf.mxu1 }
 0x1cb   :  { %313 = vst.msk [vmem:[%s1095_s9 + $0x8] sm:$0xff] %vm311_vm1, %v303_v28 }
 0x1cc   :  { %v307_v30 = vpop.f32.mrf.mxu1 }
 0x1cd   :  { %v308_v31 = vadd.f32 %v518_v23, %v307_v30 }
 0x1ce   :  { %v640_v32 = vpop.f32.mrf.mxu1 }
 0x1cf   :  { %314 = vst.msk [vmem:[%s1095_s9 + $0x10] sm:$0xff] %vm311_vm1, %v308_v31 }
 0x24d   :  { %v336_v33 = vpop.xlane.xlu1 %335 }
 0x24e   :  { %v340_v34 = vmul.f32 0.0078125, %v336_v33 }
 0x250   :  { %v343_v35 = vadd.f32 1e-05, %v340_v34 }
 0x251   :  { %v334_v36 = vpop.xlane.xlu0 %333  ;;  %v338_v37 = vpop.xlane.xlu1 %337 }
 0x252   :  { %685 = vrsqrt.f32 %v343_v35  ;;  %v339_v38 = vmul.f32 0.0078125, %v334_v36  ;;  %v341_v39 = vmul.f32 0.0078125, %v338_v37 }
 0x254   :  { %v342_v40 = vadd.f32 1e-05, %v339_v38  ;;  %v344_v41 = vadd.f32 1e-05, %v341_v39 }
 0x256   :  { %687 = vrsqrt.f32 %v342_v40 }
 0x257   :  { %689 = vrsqrt.f32 %v344_v41 }
 0x25f   :  { %v686_v42 = vpop.eup %685 }
 0x260   :  { %v349_v44 = vmul.f32 %v686_v42, %v1041_v52  ;;  %v404_v52 = vshrl.u32 %v403_v57, 7 }
 0x262   :  { %v358_v46 = vmul.f32 %v519_v43, %v349_v44  ;;  %v405_v60 = vsub.s32 0, %v404_v52  ;;  %v409_v62 = vsub.s32 1, %v404_v52 }
 0x263   :  { %v688_v47 = vpop.eup %687 }
 0x264   :  { %v690_v48 = vpop.eup %689  ;;  %v348_v49 = vmul.f32 %v688_v47, %v1046_v58  ;;  %v367_v50 = vadd.f32 %v520_v45, %v358_v46  ;;  %v406_v63 = vrot.slane %v401_v61, %v405_v60  ;;  %v410_v1 = vrot.slane %v401_v61, %v409_v62 }
 0x265   :  { %v350_v51 = vmul.f32 %v690_v48, %v1049_v59 }
 0x266   :  { %484 = vmatmul.mubr.f32.vlgmr.msra.gmra.mxu1 %v367_v50  ;;  %v357_v53 = vmul.f32 %v519_v43, %v348_v49 }
 0x267   :  { %489 = vmatprep.mubr.f32.mxu1 %v829_v0  ;;  %v359_v54 = vmul.f32 %v519_v43, %v350_v51 }
 0x268   :  { %v366_v55 = vadd.f32 %v520_v45, %v357_v53 }
 0x269   :  { %v368_v56 = vadd.f32 %v520_v45, %v359_v54 }
 0x26a   :  { %478 = vmatmul.mubr.f32.vlgmr.msra.gmra.mxu0 %v366_v55 }
 0x26b   :  { %490 = vmatmul.mubr.f32.gmra.mxu1 %v368_v56 }
 0x326   :  { %v485_v58 = vpop.f32.mrf.mxu1 }
 0x327   :  { %v486_v2 = vadd.f32 %v485_v58, %v406_v63 }
 0x328   :  { %v487_v3 = vpop.f32.mrf.mxu1 }
 0x329   :  { %498 = vst [vmem:[%s1096_s10 + $0x10] sm:$0xff] %v486_v2  ;;  %v488_v0 = vadd.f32 %v487_v3, %v410_v1 }
 0x32a   :  { %v479_v59 = vpop.f32.mrf.mxu0 }
 0x32b   :  { %499 = vst [vmem:[%s1096_s10 + $0x18] sm:$0xff] %v488_v0  ;;  %v480_v4 = vadd.f32 %v479_v59, %v406_v63  ;;  %v491_v5 = vpop.f32.mrf.mxu1 }
 0x32c   :  { %v492_v6 = vadd.f32 %v491_v5, %v406_v63  ;;  %v481_v7 = vpop.f32.mrf.mxu0 }
 0x32d   :  { %496 = vst [vmem:[%s1096_s10] sm:$0xff] %v480_v4  ;;  %v482_v8 = vadd.f32 %v481_v7, %v410_v1  ;;  %v493_v9 = vpop.f32.mrf.mxu1 }
 0x32e   :  { %500 = vst [vmem:[%s1096_s10 + $0x20] sm:$0xff] %v492_v6  ;;  %v494_v10 = vadd.f32 %v493_v9, %v410_v1 }
 0x32f   :  { %497 = vst [vmem:[%s1096_s10 + $0x8] sm:$0xff] %v482_v8 }
 0x330   :  { %501 = vst [vmem:[%s1096_s10 + $0x28] sm:$0xff] %v494_v10 }
 0x331   :  { %514 = vsyncpa [#allocation3], 1 }
 0x332   :  { %515 = vsyncpa [#allocation5], 1 }
 0x333   :  { %516 = vsyncpa [#allocation8], 1 }
 0x334   :  { %517 = vsyncpa [#allocation11], 1 }

// kernel: text_decoder_forward.5
= control target key start
LH: loop header
LB: loop body
LE: loop exit
PB: predicated region body
PF: predicated region fallthrough
CT: control target
= control target key end

     0   :  { %13 = vsyncpa [#allocation3], 0  ;;  %s945_s0 = inlined_call_operand.hbm [shape: f32[32,64], index: 0, kind: input, shape index: {}]   ;;  %s946_s1 = inlined_call_operand.hbm [shape: f32[64,128], index: 1, kind: input, shape index: {}]   ;;  %s947_s2 = inlined_call_operand.hbm [shape: f32[1,128], index: 2, kind: input, shape index: {}]   ;;  %s948_s3 = inlined_call_operand.hbm [shape: f32[1,128], index: 3, kind: input, shape index: {}]   ;;  %s949_s4 = inlined_call_operand.hbm [shape: f32[128,256], index: 4, kind: input, shape index: {}]   ;;  %s950_s5 = inlined_call_operand.hbm [shape: f32[1,256], index: 5, kind: input, shape index: {}]   ;;  %s951_s6 = inlined_call_operand.hbm [shape: f32[1,256], index: 6, kind: input, shape index: {}]   ;;  %s952_s7 = inlined_call_operand.hbm [shape: f32[1,256], index: 7, kind: input, shape index: {}]   ;;  %s953_s8 = inlined_call_operand.vmem [shape: f32[32,256], index: 8, kind: output, shape index: {}]  }
   0x1   :  { %14 = vsyncpa [#allocation5], 0 }
   0x2   :  { %15 = vsyncpa [#allocation8], 0 }
   0x3   :  { %16 = vsyncpa [#allocation11], 0 }
   0x4   :  { %17 = vsyncpa [#allocation14], 0  ;;  %s799_s27 = smov [#allocation4]   ;;  %s800_s29 = smov [#allocation7]  }
   0x5   :  { %s35_s28 = sshll.u32 %s799_s27, 4  ;;  %s58_s30 = sshll.u32 %s800_s29, 4  ;;  %s36_s28 = int_to_ptr.vmem [resolvable:$true] %s35_s28  ;;  %s59_s30 = int_to_ptr.vmem [resolvable:$true] %s58_s30 }
   0x6   :  { %s637_s9 = scalar_lea.vmem %s36_s28, 1024  ;;  %p642_p1 = scmp.lt.s32.totalorder %s36_s28, %s36_s28 }
   0x7   :  { %p638_p0 = scmp.ne.s32.totalorder %s36_s28, %s637_s9  ;;  %p643_p2 = scmp.lt.s32.totalorder %s637_s9, %s637_s9 }
   0x9   :  { %p644_p3 = por %p643_p2, %p642_p1 }
   0xb   :  { %p645_p4 = pnand %p644_p3, %p638_p0 }
   0xd   :  { %648 = shalt.err (!%p645_p4)
}
   0xe   :  { %s801_s10 = smov 128   ;;  %s802_s11 = smov 8  }
   0xf   :  { %41 = dma.hbm_to_vmem [thread:$0]  %s946_s1, 1024, %s36_s28, [#allocation5], %s801_s10, %s801_s10, %s802_s11  }
  0x10   :  { %s657_s14 = scalar_lea.vmem %s59_s30, 16  ;;  %s661_s15 = scalar_lea.vmem %s59_s30, 32 }
  0x11   :  { %p658_p5 = scmp.ne.s32.totalorder %s59_s30, %s657_s14  ;;  %p662_p6 = scmp.lt.s32.totalorder %s59_s30, %s59_s30 }
  0x12   :  { %p663_p7 = scmp.lt.s32.totalorder %s661_s15, %s657_s14 }
  0x14   :  { %p664_p8 = por %p663_p7, %p662_p6 }
  0x16   :  { %p665_p9 = pnand %p664_p8, %p658_p5 }
  0x18   :  { %668 = shalt.err (!%p665_p9)
}
  0x19   :  { %61 = dma.hbm_to_vmem [thread:$0]  %s948_s3, 16, %s59_s30, [#allocation8]  }
  0x1a   :  { %s803_s18 = smov [#allocation10]   ;;  %s804_s20 = smov [#allocation2]  }
  0x1b   :  { %s80_s19 = sshll.u32 %s803_s18, 4  ;;  %s23_s21 = sshll.u32 %s804_s20, 4  ;;  %s81_s19 = int_to_ptr.vmem [resolvable:$true] %s80_s19  ;;  %s24_s21 = int_to_ptr.vmem [resolvable:$true] %s23_s21 }
  0x1c   :  { %s677_s22 = scalar_lea.vmem %s81_s19, 32  ;;  %p682_p11 = scmp.lt.s32.totalorder %s81_s19, %s81_s19 }
  0x1d   :  { %p678_p10 = scmp.ne.s32.totalorder %s81_s19, %s677_s22  ;;  %p683_p12 = scmp.lt.s32.totalorder %s677_s22, %s677_s22 }
  0x1f   :  { %p684_p13 = por %p683_p12, %p682_p11 }
  0x21   :  { %p685_p0 = pnand %p684_p13, %p678_p10 }
  0x23   :  { %688 = shalt.err (!%p685_p0)
}
  0x24   :  { %83 = dma.hbm_to_vmem [thread:$0]  %s950_s5, 32, %s81_s19, [#allocation11]  }
  0x25   :  { %s697_s24 = scalar_lea.vmem %s24_s21, 512  ;;  %p702_p2 = scmp.lt.s32.totalorder %s24_s21, %s24_s21 }
  0x26   :  { %p698_p1 = scmp.ne.s32.totalorder %s24_s21, %s697_s24  ;;  %p703_p3 = scmp.lt.s32.totalorder %s697_s24, %s697_s24 }
  0x28   :  { %p704_p4 = por %p703_p3, %p702_p2 }
  0x2a   :  { %p705_p5 = pnand %p704_p4, %p698_p1 }
  0x2c   :  { %708 = shalt.err (!%p705_p5)
}
  0x2d   :  { %29 = dma.hbm_to_vmem [thread:$0]  %s945_s0, 512, %s24_s21, [#allocation3], %s801_s10, %s801_s10, %s802_s11  }
  0x2e   :  { %s805_s26 = smov [#allocation6]   ;;  %s806_s28 = smov [#allocation9]  }
  0x2f   :  { %s48_s27 = sshll.u32 %s805_s26, 4  ;;  %s67_s29 = sshll.u32 %s806_s28, 4  ;;  %s49_s27 = int_to_ptr.vmem [resolvable:$true] %s48_s27  ;;  %s68_s29 = int_to_ptr.vmem [resolvable:$true] %s67_s29 }
  0x30   :  { %s717_s5 = scalar_lea.vmem %s49_s27, 16  ;;  %s721_s30 = scalar_lea.vmem %s49_s27, 32 }
  0x31   :  { %p718_p6 = scmp.ne.s32.totalorder %s49_s27, %s717_s5  ;;  %p722_p7 = scmp.lt.s32.totalorder %s49_s27, %s49_s27 }
  0x32   :  { %p723_p8 = scmp.lt.s32.totalorder %s721_s30, %s717_s5 }
  0x34   :  { %p724_p9 = por %p723_p8, %p722_p7 }
  0x36   :  { %p725_p10 = pnand %p724_p9, %p718_p6 }
  0x38   :  { %728 = shalt.err (!%p725_p10)
}
  0x39   :  { %51 = dma.hbm_to_vmem [thread:$0]  %s947_s2, 16, %s49_s27, [#allocation5]  }
  0x3a   :  { %s737_s13 = scalar_lea.vmem %s68_s29, 4096  ;;  %p742_p12 = scmp.lt.s32.totalorder %s68_s29, %s68_s29 }
  0x3b   :  { %p738_p11 = scmp.ne.s32.totalorder %s68_s29, %s737_s13  ;;  %p743_p13 = scmp.lt.s32.totalorder %s737_s13, %s737_s13 }
  0x3d   :  { %p744_p0 = por %p743_p13, %p742_p12 }
  0x3f   :  { %p745_p1 = pnand %p744_p0, %p738_p11 }
  0x41   :  { %748 = shalt.err (!%p745_p1)
}
  0x42   :  { %s807_s0 = smov 256   ;;  %s808_s10 = smov 16  }
  0x43   :  { %73 = dma.hbm_to_vmem [thread:$0]  %s949_s4, 4096, %s68_s29, [#allocation8], %s807_s0, %s807_s0, %s808_s10  }
  0x44   :  { %s809_s15 = smov [#allocation12]   ;;  %s810_s17 = smov [#allocation13]  }
  0x45   :  { %s90_s16 = sshll.u32 %s809_s15, 4  ;;  %s100_s18 = sshll.u32 %s810_s17, 4  ;;  %s91_s16 = int_to_ptr.vmem [resolvable:$true] %s90_s16  ;;  %s101_s18 = int_to_ptr.vmem [resolvable:$true] %s100_s18 }
  0x46   :  { %s757_s2 = scalar_lea.vmem %s91_s16, 32  ;;  %p762_p3 = scmp.lt.s32.totalorder %s91_s16, %s91_s16 }
  0x47   :  { %p758_p2 = scmp.ne.s32.totalorder %s91_s16, %s757_s2  ;;  %p763_p4 = scmp.lt.s32.totalorder %s757_s2, %s757_s2 }
  0x49   :  { %p764_p5 = por %p763_p4, %p762_p3 }
  0x4b   :  { %p765_p6 = pnand %p764_p5, %p758_p2 }
  0x4d   :  { %768 = shalt.err (!%p765_p6)
}
  0x4e   :  { %93 = dma.hbm_to_vmem [thread:$0]  %s951_s6, 32, %s91_s16, [#allocation11]  }
  0x4f   :  { %s777_s21 = scalar_lea.vmem %s101_s18, 32  ;;  %p782_p8 = scmp.lt.s32.totalorder %s101_s18, %s101_s18 }
  0x50   :  { %p778_p7 = scmp.ne.s32.totalorder %s101_s18, %s777_s21  ;;  %p783_p9 = scmp.lt.s32.totalorder %s777_s21, %s777_s21 }
  0x52   :  { %p784_p10 = por %p783_p9, %p782_p8 }
  0x54   :  { %p785_p11 = pnand %p784_p10, %p778_p7 }
  0x56   :  { %788 = shalt.err (!%p785_p11)
}
  0x57   :  { %103 = dma.hbm_to_vmem [thread:$0]  %s952_s7, 32, %s101_s18, [#allocation14]  }
  0x58   :  { %789 = dma.done.wait [#allocation3], 512  }
  0x59   :  { %790 = vsyncadd [#allocation3], 4294966784 }
  0x5a   :  { %791 = dma.done.wait [#allocation5], 1040  }
  0x5b   :  { %792 = vsyncadd [#allocation5], 4294966256 }
  0x5c   :  { %793 = dma.done.wait [#allocation8], 4112  }
  0x5d   :  { %794 = vsyncadd [#allocation8], 4294963184 }
  0x5e   :  { %795 = dma.done.wait [#allocation11], 64  }
  0x5f   :  { %796 = vsyncadd [#allocation11], 4294967232 }
  0x60   :  { %797 = dma.done.wait [#allocation14], 32  }
  0x61   :  { %798 = vsyncadd [#allocation14], 4294967264  ;;  %v139_v0 = vld [vmem:[#allocation4 + $0x38] sm:$0xff]  ;;  %v138_v1 = vld [vmem:[#allocation4 + $0x30] sm:$0xff]  ;;  %vm140_vm0 = vcmask 523264   ;;  %v811_v56 = vmov 0.0  }
  0x62   :  { %578 = vmatprep.subr.mxu0 %v139_v0  ;;  %v137_v2 = vld [vmem:[#allocation4 + $0x28] sm:$0xff]  ;;  %v128_v3 = vld [vmem:[#allocation2] sm:$0xff]  ;;  %v135_v5 = vld [vmem:[#allocation4 + $0x18] sm:$0xff]  ;;  %413 = vmatprep.mubr.f32.mxu1 %v811_v56 }
  0x63   :  { %579 = vmatpush3.msra.mxu0 %v139_v0  ;;  %594 = vmatprep.mubr.msk.f32.mxu0 %vm140_vm0, %v128_v3  ;;  %v136_v4 = vld [vmem:[#allocation4 + $0x20] sm:$0xff]  ;;  %v134_v6 = vld [vmem:[#allocation4 + $0x10] sm:$0xff]  ;;  %v133_v7 = vld [vmem:[#allocation4 + $0x8] sm:$0xff] }
  0x64   :  { %580 = vmatprep.subr.mxu0 %v138_v1  ;;  %v132_v8 = vld [vmem:[#allocation4] sm:$0xff]  ;;  %v129_v9 = vld [vmem:[#allocation2 + $0x8] sm:$0xff]  ;;  %v130_v10 = vld [vmem:[#allocation2 + $0x10] sm:$0xff] }
  0x65   :  { %581 = vmatpush3.msra.mxu0 %v138_v1  ;;  %v131_v11 = vld [vmem:[#allocation2 + $0x18] sm:$0xff]  ;;  %v334_v18 = vld [vmem:[#allocation9 + $0xe8] sm:$0xff]  ;;  %v333_v19 = vld [vmem:[#allocation9 + $0xe0] sm:$0xff] }
  0x66   :  { %582 = vmatprep.subr.mxu0 %v137_v2  ;;  %v336_v16 = vld [vmem:[#allocation9 + $0xf8] sm:$0xff]  ;;  %v335_v17 = vld [vmem:[#allocation9 + $0xf0] sm:$0xff]  ;;  %v330_v22 = vld [vmem:[#allocation9 + $0xc8] sm:$0xff] }
  0x67   :  { %583 = vmatpush3.msra.mxu0 %v137_v2  ;;  %349 = vmatprep.subr.mxu1 %v336_v16  ;;  %v332_v20 = vld [vmem:[#allocation9 + $0xd8] sm:$0xff]  ;;  %v331_v21 = vld [vmem:[#allocation9 + $0xd0] sm:$0xff]  ;;  %v329_v23 = vld [vmem:[#allocation9 + $0xc0] sm:$0xff] }
  0x68   :  { %584 = vmatprep.subr.mxu0 %v136_v4  ;;  %350 = vmatpush1.msra.mxu1 %v335_v17  ;;  %v328_v40 = vld [vmem:[#allocation9 + $0xb8] sm:$0xff]  ;;  %v327_v41 = vld [vmem:[#allocation9 + $0xb0] sm:$0xff]  ;;  %v326_v42 = vld [vmem:[#allocation9 + $0xa8] sm:$0xff] }
  0x69   :  { %585 = vmatpush3.msra.mxu0 %v136_v4  ;;  %351 = vmatprep.subr.mxu1 %v334_v18  ;;  %v325_v43 = vld [vmem:[#allocation9 + $0xa0] sm:$0xff]  ;;  %v324_v44 = vld [vmem:[#allocation9 + $0x98] sm:$0xff]  ;;  %v323_v45 = vld [vmem:[#allocation9 + $0x90] sm:$0xff] }
  0x6a   :  { %586 = vmatprep.subr.mxu0 %v135_v5  ;;  %352 = vmatpush1.msra.mxu1 %v333_v19  ;;  %v322_v46 = vld [vmem:[#allocation9 + $0x88] sm:$0xff]  ;;  %v321_v47 = vld [vmem:[#allocation9 + $0x80] sm:$0xff]  ;;  %v320_v48 = vld [vmem:[#allocation9 + $0x78] sm:$0xff] }
  0x6b   :  { %587 = vmatpush3.msra.mxu0 %v135_v5  ;;  %353 = vmatprep.subr.mxu1 %v332_v20  ;;  %v319_v49 = vld [vmem:[#allocation9 + $0x70] sm:$0xff]  ;;  %v318_v50 = vld [vmem:[#allocation9 + $0x68] sm:$0xff]  ;;  %v317_v51 = vld [vmem:[#allocation9 + $0x60] sm:$0xff] }
  0x6c   :  { %588 = vmatprep.subr.mxu0 %v134_v6  ;;  %354 = vmatpush1.msra.mxu1 %v331_v21  ;;  %v316_v52 = vld [vmem:[#allocation9 + $0x58] sm:$0xff]  ;;  %v315_v53 = vld [vmem:[#allocation9 + $0x50] sm:$0xff]  ;;  %v314_v54 = vld [vmem:[#allocation9 + $0x48] sm:$0xff] }
  0x6d   :  { %589 = vmatpush3.msra.mxu0 %v134_v6  ;;  %355 = vmatprep.subr.mxu1 %v330_v22  ;;  %v313_v55 = vld [vmem:[#allocation9 + $0x40] sm:$0xff]  ;;  %v312_v57 = vld [vmem:[#allocation9 + $0x38] sm:$0xff]  ;;  %v311_v58 = vld [vmem:[#allocation9 + $0x30] sm:$0xff] }
  0x6e   :  { %590 = vmatprep.subr.mxu0 %v133_v7  ;;  %356 = vmatpush1.msra.mxu1 %v329_v23  ;;  %v310_v59 = vld [vmem:[#allocation9 + $0x28] sm:$0xff]  ;;  %v309_v60 = vld [vmem:[#allocation9 + $0x20] sm:$0xff]  ;;  %v308_v61 = vld [vmem:[#allocation9 + $0x18] sm:$0xff] }
  0x6f   :  { %591 = vmatpush3.msra.mxu0 %v133_v7  ;;  %357 = vmatprep.subr.mxu1 %v328_v40  ;;  %v307_v62 = vld [vmem:[#allocation9 + $0x10] sm:$0xff]  ;;  %v306_v63 = vld [vmem:[#allocation9 + $0x8] sm:$0xff]  ;;  %v305_v0 = vld [vmem:[#allocation9] sm:$0xff] }
  0x70   :  { %592 = vmatprep.subr.mxu0 %v132_v8  ;;  %358 = vmatpush1.msra.mxu1 %v327_v41  ;;  %v565_v16 = vld [vmem:[#allocation7] ss:$0 sm:$0xff] }
  0x71   :  { %593 = vmatpush3.msra.mxu0 %v132_v8  ;;  %359 = vmatprep.subr.mxu1 %v326_v42 }
  0x72   :  { %595 = vmatmul.mubr.msk.f32.vlgmr.msra.gmra.mxu0 %vm140_vm0, %v129_v9  ;;  %360 = vmatpush1.msra.mxu1 %v325_v43 }
  0x73   :  { %597 = vmatprep.mubr.msk.f32.mxu0 %vm140_vm0, %v130_v10  ;;  %361 = vmatprep.subr.mxu1 %v324_v44 }
  0x74   :  { %362 = vmatpush1.msra.mxu1 %v323_v45 }
  0x75   :  { %363 = vmatprep.subr.mxu1 %v322_v46 }
  0x76   :  { %598 = vmatmul.mubr.msk.f32.gmra.mxu0 %vm140_vm0, %v131_v11  ;;  %364 = vmatpush1.msra.mxu1 %v321_v47 }
  0x77   :  { %365 = vmatprep.subr.mxu1 %v320_v48 }
  0x78   :  { %366 = vmatpush1.msra.mxu1 %v319_v49 }
  0x79   :  { %367 = vmatprep.subr.mxu1 %v318_v50 }
  0x7a   :  { %368 = vmatpush1.msra.mxu1 %v317_v51 }
  0x7b   :  { %369 = vmatprep.subr.mxu1 %v316_v52 }
  0x7c   :  { %370 = vmatpush1.msra.mxu1 %v315_v53 }
  0x7d   :  { %371 = vmatprep.subr.mxu1 %v314_v54 }
  0x7e   :  { %372 = vmatpush1.msra.mxu1 %v313_v55 }
  0x7f   :  { %373 = vmatprep.subr.mxu1 %v312_v57 }
  0x80   :  { %374 = vmatpush1.msra.mxu1 %v311_v58 }
  0x81   :  { %375 = vmatprep.subr.mxu1 %v310_v59 }
  0x82   :  { %376 = vmatpush1.msra.mxu1 %v309_v60 }
  0x83   :  { %377 = vmatprep.subr.mxu1 %v308_v61 }
  0x84   :  { %378 = vmatpush1.msra.mxu1 %v307_v62 }
  0x85   :  { %379 = vmatprep.subr.mxu1 %v306_v63 }
  0x86   :  { %380 = vmatpush1.msra.mxu1 %v305_v0 }
 0x132   :  { %v596_v12 = vpop.f32.mrf.mxu0 }
 0x134   :  { %v219_v13 = vpop.f32.mrf.mxu0 }
 0x135   :  { %240 = vadd.xlane.f32.xlu0 %v219_v13 }
 0x136   :  { %v599_v14 = vpop.f32.mrf.mxu0 }
 0x138   :  { %v229_v15 = vpop.f32.mrf.mxu0 }
 0x139   :  { %242 = vadd.xlane.f32.xlu0 %v596_v12  ;;  %244 = vadd.xlane.f32.xlu1 %v229_v15 }
 0x13d   :  { %246 = vadd.xlane.f32.xlu1 %v599_v14 }
 0x1be   :  { %v241_v24 = vpop.xlane.xlu0 %240 }
 0x1bf   :  { %v249_v25 = vmul.f32 0.0078125, %v241_v24 }
 0x1c1   :  { %v891_v26 = vsub.f32 %v219_v13, %v249_v25 }
 0x1c2   :  { %v243_v27 = vpop.xlane.xlu0 %242  ;;  %v245_v28 = vpop.xlane.xlu1 %244 }
 0x1c3   :  { %v250_v29 = vmul.f32 0.0078125, %v243_v27  ;;  %v251_v30 = vmul.f32 0.0078125, %v245_v28  ;;  %v257_v31 = vmul.f32 %v891_v26, %v891_v26 }
 0x1c5   :  { %v895_v32 = vsub.f32 %v596_v12, %v250_v29  ;;  %v897_v33 = vsub.f32 %v229_v15, %v251_v30  ;;  %261 = vadd.xlane.f32.xlu0 %v257_v31  ;;  %v339_v31 = vlaneseq }
 0x1c6   :  { %v247_v34 = vpop.xlane.xlu1 %246 }
 0x1c7   :  { %v252_v35 = vmul.f32 0.0078125, %v247_v34  ;;  %v258_v36 = vmul.f32 %v895_v32, %v895_v32  ;;  %v259_v37 = vmul.f32 %v897_v33, %v897_v33 }
 0x1c9   :  { %v903_v38 = vsub.f32 %v599_v14, %v252_v35  ;;  %263 = vadd.xlane.f32.xlu1 %v258_v36  ;;  %265 = vadd.xlane.f32.xlu0 %v259_v37  ;;  %v564_v14 = vld [vmem:[#allocation6] ss:$0 sm:$0xff]  ;;  %v337_v35 = vld [vmem:[#allocation10] sm:$0x3] }
 0x1cb   :  { %v260_v39 = vmul.f32 %v903_v38, %v903_v38 }
 0x1cd   :  { %267 = vadd.xlane.f32.xlu1 %v260_v39 }
 0x24e   :  { %v262_v1 = vpop.xlane.xlu0 %261 }
 0x24f   :  { %v269_v2 = vmul.f32 0.0078125, %v262_v1 }
 0x251   :  { %v273_v3 = vadd.f32 1e-05, %v269_v2 }
 0x252   :  { %v266_v4 = vpop.xlane.xlu0 %265  ;;  %v264_v5 = vpop.xlane.xlu1 %263 }
 0x253   :  { %613 = vrsqrt.f32 %v273_v3  ;;  %v271_v6 = vmul.f32 0.0078125, %v266_v4  ;;  %v270_v7 = vmul.f32 0.0078125, %v264_v5 }
 0x255   :  { %v275_v8 = vadd.f32 1e-05, %v271_v6  ;;  %v274_v9 = vadd.f32 1e-05, %v270_v7 }
 0x256   :  { %v268_v10 = vpop.xlane.xlu1 %267 }
 0x257   :  { %615 = vrsqrt.f32 %v275_v8  ;;  %v272_v11 = vmul.f32 0.0078125, %v268_v10 }
 0x258   :  { %617 = vrsqrt.f32 %v274_v9 }
 0x259   :  { %v276_v12 = vadd.f32 1e-05, %v272_v11 }
 0x25b   :  { %619 = vrsqrt.f32 %v276_v12 }
 0x260   :  { %v614_v13 = vpop.eup %613 }
 0x261   :  { %v281_v15 = vmul.f32 %v614_v13, %v891_v26 }
 0x263   :  { %v291_v17 = vmul.f32 %v564_v14, %v281_v15 }
 0x264   :  { %v616_v18 = vpop.eup %615 }
 0x265   :  { %v618_v19 = vpop.eup %617  ;;  %v301_v20 = vadd.f32 %v565_v16, %v291_v17  ;;  %v283_v22 = vmul.f32 %v616_v18, %v897_v33 }
 0x266   :  { %v282_v21 = vmul.f32 %v618_v19, %v895_v32  ;;  %v340_v32 = vshrl.u32 %v339_v31, 7 }
 0x267   :  { %414 = vmatmul.mubr.f32.vlgmr.msra.gmra.mxu1 %v301_v20  ;;  %v293_v27 = vmul.f32 %v564_v14, %v283_v22 }
 0x268   :  { %v620_v23 = vpop.eup %619  ;;  %419 = vmatprep.mubr.f32.mxu1 %v811_v56  ;;  %v292_v24 = vmul.f32 %v564_v14, %v282_v21  ;;  %v911_v34 = vsub.s32 0, %v340_v32  ;;  %v913_v33 = vsub.s32 1, %v340_v32  ;;  %v438_v32 = vld [vmem:[#allocation12] sm:$0x3] }
 0x269   :  { %v284_v28 = vmul.f32 %v620_v23, %v903_v38  ;;  %v303_v26 = vadd.f32 %v565_v16, %v293_v27 }
 0x26a   :  { %v302_v25 = vadd.f32 %v565_v16, %v292_v24  ;;  %v342_v36 = vrot.slane %v337_v35, %v911_v34  ;;  %v346_v37 = vrot.slane %v337_v35, %v913_v33 }
 0x26b   :  { %v294_v29 = vmul.f32 %v564_v14, %v284_v28 }
 0x26c   :  { %420 = vmatmul.mubr.f32.gmra.mxu1 %v302_v25 }
 0x26d   :  { %425 = vmatprep.mubr.f32.mxu1 %v811_v56  ;;  %v304_v30 = vadd.f32 %v565_v16, %v294_v29 }
 0x270   :  { %426 = vmatmul.mubr.f32.gmra.mxu1 %v303_v26 }
 0x271   :  { %431 = vmatprep.mubr.f32.mxu1 %v811_v56 }
 0x274   :  { %432 = vmatmul.mubr.f32.gmra.mxu1 %v304_v30 }
 0x327   :  { %v415_v38 = vpop.f32.mrf.mxu1 }
 0x328   :  { %v416_v40 = vadd.f32 %v415_v38, %v342_v36  ;;  %v509_v38 = vrot.slane %v438_v32, %v911_v34 }
 0x329   :  { %v417_v39 = vpop.f32.mrf.mxu1 }
 0x32a   :  { %v418_v41 = vadd.f32 %v417_v39, %v346_v37  ;;  %v513_v39 = vrot.slane %v438_v32, %v913_v33 }
 0x32c   :  { %v421_v42 = vpop.f32.mrf.mxu1  ;;  %v440_v43 = vadd.f32 %v418_v41, %v416_v40 }
 0x32d   :  { %v422_v45 = vadd.f32 %v421_v42, %v342_v36 }
 0x32e   :  { %v423_v44 = vpop.f32.mrf.mxu1  ;;  %441 = vadd.xlane.f32.xlu0 %v440_v43 }
 0x32f   :  { %v424_v46 = vadd.f32 %v423_v44, %v346_v37 }
 0x330   :  { %v427_v47 = vpop.f32.mrf.mxu1 }
 0x331   :  { %v443_v48 = vadd.f32 %v424_v46, %v422_v45  ;;  %v428_v50 = vadd.f32 %v427_v47, %v342_v36 }
 0x332   :  { %v429_v49 = vpop.f32.mrf.mxu1 }
 0x333   :  { %v430_v51 = vadd.f32 %v429_v49, %v346_v37  ;;  %444 = vadd.xlane.f32.xlu1 %v443_v48 }
 0x334   :  { %v433_v52 = vpop.f32.mrf.mxu1 }
 0x335   :  { %v446_v53 = vadd.f32 %v430_v51, %v428_v50  ;;  %v434_v55 = vadd.f32 %v433_v52, %v342_v36  ;;  %v439_v36 = vld [vmem:[#allocation13] sm:$0x3] }
 0x336   :  { %v435_v54 = vpop.f32.mrf.mxu1  ;;  %v532_v42 = vrot.slane %v439_v36, %v913_v33 }
 0x337   :  { %v436_v56 = vadd.f32 %v435_v54, %v346_v37  ;;  %447 = vadd.xlane.f32.xlu0 %v446_v53 }
 0x339   :  { %v449_v57 = vadd.f32 %v436_v56, %v434_v55 }
 0x33b   :  { %450 = vadd.xlane.f32.xlu1 %v449_v57 }
 0x3b7   :  { %v442_v58 = vpop.xlane.xlu0 %441 }
 0x3b8   :  { %v453_v59 = vmul.f32 0.00390625, %v442_v58 }
 0x3ba   :  { %v457_v60 = vsub.f32 %v416_v40, %v453_v59  ;;  %v458_v61 = vsub.f32 %v418_v41, %v453_v59  ;;  %v528_v41 = vrot.slane %v439_v36, %v911_v34 }
 0x3bc   :  { %v445_v62 = vpop.xlane.xlu1 %444  ;;  %v465_v63 = vmul.f32 %v457_v60, %v457_v60  ;;  %v466_v0 = vmul.f32 %v458_v61, %v458_v61 }
 0x3bd   :  { %v454_v1 = vmul.f32 0.00390625, %v445_v62 }
 0x3be   :  { %v473_v2 = vadd.f32 %v466_v0, %v465_v63 }
 0x3bf   :  { %v459_v3 = vsub.f32 %v422_v45, %v454_v1  ;;  %v460_v4 = vsub.f32 %v424_v46, %v454_v1 }
 0x3c0   :  { %v448_v5 = vpop.xlane.xlu0 %447  ;;  %474 = vadd.xlane.f32.xlu0 %v473_v2 }
 0x3c1   :  { %v455_v6 = vmul.f32 0.00390625, %v448_v5  ;;  %v467_v7 = vmul.f32 %v459_v3, %v459_v3  ;;  %v468_v8 = vmul.f32 %v460_v4, %v460_v4 }
 0x3c3   :  { %v461_v9 = vsub.f32 %v428_v50, %v455_v6  ;;  %v462_v10 = vsub.f32 %v430_v51, %v455_v6  ;;  %v476_v11 = vadd.f32 %v468_v8, %v467_v7 }
 0x3c4   :  { %v451_v12 = vpop.xlane.xlu1 %450 }
 0x3c5   :  { %v456_v13 = vmul.f32 0.00390625, %v451_v12  ;;  %477 = vadd.xlane.f32.xlu1 %v476_v11  ;;  %v469_v14 = vmul.f32 %v461_v9, %v461_v9  ;;  %v470_v15 = vmul.f32 %v462_v10, %v462_v10 }
 0x3c7   :  { %v463_v16 = vsub.f32 %v434_v55, %v456_v13  ;;  %v464_v17 = vsub.f32 %v436_v56, %v456_v13  ;;  %v479_v18 = vadd.f32 %v470_v15, %v469_v14 }
 0x3c9   :  { %480 = vadd.xlane.f32.xlu0 %v479_v18  ;;  %v471_v19 = vmul.f32 %v463_v16, %v463_v16  ;;  %v472_v20 = vmul.f32 %v464_v17, %v464_v17 }
 0x3cb   :  { %v482_v21 = vadd.f32 %v472_v20, %v471_v19 }
 0x3cd   :  { %483 = vadd.xlane.f32.xlu1 %v482_v21 }
 0x449   :  { %v475_v22 = vpop.xlane.xlu0 %474 }
 0x44a   :  { %v485_v23 = vmul.f32 0.00390625, %v475_v22 }
 0x44c   :  { %v489_v24 = vadd.f32 1e-05, %v485_v23 }
 0x44e   :  { %621 = vrsqrt.f32 %v489_v24  ;;  %v478_v25 = vpop.xlane.xlu1 %477 }
 0x44f   :  { %v486_v27 = vmul.f32 0.00390625, %v478_v25 }
 0x451   :  { %v490_v28 = vadd.f32 1e-05, %v486_v27 }
 0x452   :  { %v481_v26 = vpop.xlane.xlu0 %480 }
 0x453   :  { %623 = vrsqrt.f32 %v490_v28  ;;  %v487_v29 = vmul.f32 0.00390625, %v481_v26 }
 0x455   :  { %v491_v30 = vadd.f32 1e-05, %v487_v29 }
 0x456   :  { %v484_v31 = vpop.xlane.xlu1 %483 }
 0x457   :  { %625 = vrsqrt.f32 %v491_v30  ;;  %v488_v35 = vmul.f32 0.00390625, %v484_v31 }
 0x459   :  { %v492_v37 = vadd.f32 1e-05, %v488_v35 }
 0x45b   :  { %v622_v40 = vpop.eup %621  ;;  %627 = vrsqrt.f32 %v492_v37 }
 0x45c   :  { %v497_v43 = vmul.f32 %v622_v40, %v457_v60  ;;  %v498_v44 = vmul.f32 %v622_v40, %v458_v61 }
 0x45e   :  { %v516_v45 = vmul.f32 %v509_v38, %v497_v43  ;;  %v517_v46 = vmul.f32 %v513_v39, %v498_v44 }
 0x460   :  { %v624_v47 = vpop.eup %623  ;;  %v535_v48 = vadd.f32 %v528_v41, %v516_v45  ;;  %v536_v49 = vadd.f32 %v532_v42, %v517_v46 }
 0x461   :  { %v499_v50 = vmul.f32 %v624_v47, %v459_v3  ;;  %v500_v51 = vmul.f32 %v624_v47, %v460_v4 }
 0x462   :  { %543 = vst [vmem:[%s953_s8] sm:$0xff] %v535_v48  ;;  %544 = vst [vmem:[%s953_s8 + $0x8] sm:$0xff] %v536_v49 }
 0x463   :  { %v518_v34 = vmul.f32 %v509_v38, %v499_v50  ;;  %v519_v52 = vmul.f32 %v513_v39, %v500_v51 }
 0x464   :  { %v626_v33 = vpop.eup %625 }
 0x465   :  { %v537_v53 = vadd.f32 %v528_v41, %v518_v34  ;;  %v538_v54 = vadd.f32 %v532_v42, %v519_v52  ;;  %v501_v55 = vmul.f32 %v626_v33, %v461_v9  ;;  %v502_v56 = vmul.f32 %v626_v33, %v462_v10 }
 0x467   :  { %545 = vst [vmem:[%s953_s8 + $0x10] sm:$0xff] %v537_v53  ;;  %546 = vst [vmem:[%s953_s8 + $0x18] sm:$0xff] %v538_v54  ;;  %v520_v57 = vmul.f32 %v509_v38, %v501_v55  ;;  %v521_v58 = vmul.f32 %v513_v39, %v502_v56 }
 0x468   :  { %v628_v59 = vpop.eup %627 }
 0x469   :  { %v539_v60 = vadd.f32 %v528_v41, %v520_v57  ;;  %v540_v61 = vadd.f32 %v532_v42, %v521_v58  ;;  %v503_v62 = vmul.f32 %v628_v59, %v463_v16  ;;  %v504_v63 = vmul.f32 %v628_v59, %v464_v17 }
 0x46b   :  { %547 = vst [vmem:[%s953_s8 + $0x20] sm:$0xff] %v539_v60  ;;  %548 = vst [vmem:[%s953_s8 + $0x28] sm:$0xff] %v540_v61  ;;  %v522_v0 = vmul.f32 %v509_v38, %v503_v62  ;;  %v523_v1 = vmul.f32 %v513_v39, %v504_v63 }
 0x46d   :  { %v541_v2 = vadd.f32 %v528_v41, %v522_v0  ;;  %v542_v3 = vadd.f32 %v532_v42, %v523_v1 }
 0x46f   :  { %549 = vst [vmem:[%s953_s8 + $0x30] sm:$0xff] %v541_v2  ;;  %550 = vst [vmem:[%s953_s8 + $0x38] sm:$0xff] %v542_v3 }
 0x470   :  { %555 = vsyncpa [#allocation3], 1 }
 0x471   :  { %556 = vsyncpa [#allocation5], 1 }
 0x472   :  { %557 = vsyncpa [#allocation8], 1 }
 0x473   :  { %558 = vsyncpa [#allocation11], 1 }
 0x474   :  { %559 = vsyncpa [#allocation14], 1 }

// kernel: text_decoder_forward.7
= control target key start
LH: loop header
LB: loop body
LE: loop exit
PB: predicated region body
PF: predicated region fallthrough
CT: control target
= control target key end

     0   :  { %vm463_vm0 = vcmask 523264   ;;  %s940_s0 = inlined_call_operand.vmem [shape: f32[48,256], index: 0, kind: input, shape index: {}]   ;;  %s941_s3 = inlined_call_operand.vmem [shape: f32[256,128], index: 3, kind: input, shape index: {}]   ;;  %s942_s7 = inlined_call_operand.vmem [shape: f32[128,64], index: 7, kind: input, shape index: {}]   ;;  %s943_s1 = inlined_call_operand.vmem [shape: f32[1,256], index: 1, kind: input, shape index: {}]   ;;  %s944_s2 = inlined_call_operand.vmem [shape: f32[1,256], index: 2, kind: input, shape index: {}]   ;;  %s945_s4 = inlined_call_operand.vmem [shape: f32[1,128], index: 4, kind: input, shape index: {}]   ;;  %s946_s5 = inlined_call_operand.vmem [shape: f32[1,128], index: 5, kind: input, shape index: {}]   ;;  %s947_s6 = inlined_call_operand.vmem [shape: f32[24,128], index: 6, kind: input, shape index: {}]   ;;  %s948_s8 = inlined_call_operand.vmem [shape: f32[1,64], index: 8, kind: input, shape index: {}]   ;;  %s949_s9 = inlined_call_operand.vmem [shape: f32[48,64], index: 9, kind: output, shape index: {}]  }
   0x1   :  { %v32_v0 = vld [vmem:[%s940_s0] sm:$0xff]  ;;  %v33_v1 = vld [vmem:[%s940_s0 + $0x8] sm:$0xff]  ;;  %v34_v5 = vld [vmem:[%s940_s0 + $0x10] sm:$0xff] }
   0x2   :  { %v36_v2 = vld [vmem:[%s940_s0 + $0x20] sm:$0xff]  ;;  %v46_v3 = vadd.f32 %v33_v1, %v32_v0  ;;  %v37_v4 = vld [vmem:[%s940_s0 + $0x28] sm:$0xff]  ;;  %v35_v6 = vld [vmem:[%s940_s0 + $0x18] sm:$0xff] }
   0x3   :  { %v52_v7 = vadd.f32 %v37_v4, %v36_v2  ;;  %v38_v8 = vld [vmem:[%s940_s0 + $0x30] sm:$0xff]  ;;  %v39_v9 = vld [vmem:[%s940_s0 + $0x38] sm:$0xff]  ;;  %v49_v10 = vadd.f32 %v35_v6, %v34_v5  ;;  %v40_v12 = vld [vmem:[%s940_s0 + $0x40] sm:$0xff] }
   0x4   :  { %47 = vadd.xlane.f32.xlu0 %v46_v3  ;;  %v55_v11 = vadd.f32 %v39_v9, %v38_v8  ;;  %v41_v13 = vld [vmem:[%s940_s0 + $0x48] sm:$0xff]  ;;  %v42_v14 = vld [vmem:[%s940_s0 + $0x50] sm:$0xff]  ;;  %v43_v15 = vld [vmem:[%s940_s0 + $0x58] sm:$0xff] }
   0x5   :  { %53 = vadd.xlane.f32.xlu1 %v52_v7  ;;  %v58_v16 = vadd.f32 %v41_v13, %v40_v12  ;;  %v61_v17 = vadd.f32 %v43_v15, %v42_v14  ;;  %v220_v18 = vld [vmem:[%s941_s3 + $0xf8] sm:$0xff]  ;;  %v219_v20 = vld [vmem:[%s941_s3 + $0xf0] sm:$0xff]  ;;  %v218_v22 = vld [vmem:[%s941_s3 + $0xe8] sm:$0xff] }
   0x6   :  { %v204_v19 = vld [vmem:[%s941_s3 + $0x78] sm:$0xff]  ;;  %477 = vmatprep.subr.mxu0 %v220_v18  ;;  %v203_v21 = vld [vmem:[%s941_s3 + $0x70] sm:$0xff]  ;;  %v202_v23 = vld [vmem:[%s941_s3 + $0x68] sm:$0xff] }
   0x7   :  { %478 = vmatpush3.msra.mxu0 %v204_v19  ;;  %v217_v24 = vld [vmem:[%s941_s3 + $0xe0] sm:$0xff]  ;;  %v199_v7 = vld [vmem:[%s941_s3 + $0x50] sm:$0xff] }
   0x8   :  { %50 = vadd.xlane.f32.xlu0 %v49_v10  ;;  %479 = vmatprep.subr.mxu0 %v219_v20  ;;  %v201_v3 = vld [vmem:[%s941_s3 + $0x60] sm:$0xff]  ;;  %v208_v20 = vld [vmem:[%s941_s3 + $0x98] sm:$0xff] }
   0x9   :  { %56 = vadd.xlane.f32.xlu1 %v55_v11  ;;  %480 = vmatpush3.msra.mxu0 %v203_v21  ;;  %v213_v10 = vld [vmem:[%s941_s3 + $0xc0] sm:$0xff]  ;;  %v192_v21 = vld [vmem:[%s941_s3 + $0x18] sm:$0xff] }
   0xa   :  { %481 = vmatprep.subr.mxu0 %v218_v22  ;;  %v197_v11 = vld [vmem:[%s941_s3 + $0x40] sm:$0xff]  ;;  %v207_v22 = vld [vmem:[%s941_s3 + $0x90] sm:$0xff] }
   0xb   :  { %482 = vmatpush3.msra.mxu0 %v202_v23  ;;  %v209_v18 = vld [vmem:[%s941_s3 + $0xa0] sm:$0xff]  ;;  %v191_v23 = vld [vmem:[%s941_s3 + $0x10] sm:$0xff] }
   0xc   :  { %59 = vadd.xlane.f32.xlu0 %v58_v16  ;;  %483 = vmatprep.subr.mxu0 %v217_v24  ;;  %v210_v16 = vld [vmem:[%s941_s3 + $0xa8] sm:$0xff]  ;;  %v193_v19 = vld [vmem:[%s941_s3 + $0x20] sm:$0xff] }
   0xd   :  { %62 = vadd.xlane.f32.xlu1 %v61_v17  ;;  %484 = vmatpush3.msra.mxu0 %v201_v3  ;;  %v194_v17 = vld [vmem:[%s941_s3 + $0x28] sm:$0xff] }
   0xe   :  { %v206_v24 = vld [vmem:[%s941_s3 + $0x88] sm:$0xff] }
  0x8d   :  { %v48_v25 = vpop.xlane.xlu0 %47 }
  0x8e   :  { %v65_v26 = vmul.f32 0.00390625, %v48_v25  ;;  %v54_v27 = vpop.xlane.xlu1 %53  ;;  %v190_v25 = vld [vmem:[%s941_s3 + $0x8] sm:$0xff] }
  0x8f   :  { %v67_v28 = vmul.f32 0.00390625, %v54_v27  ;;  %v189_v27 = vld [vmem:[%s941_s3] sm:$0xff] }
  0x90   :  { %v709_v29 = vsub.f32 %v32_v0, %v65_v26  ;;  %v711_v30 = vsub.f32 %v33_v1, %v65_v26  ;;  %v205_v26 = vld [vmem:[%s941_s3 + $0x80] sm:$0xff] }
  0x91   :  { %v713_v31 = vsub.f32 %v36_v2, %v67_v28  ;;  %v715_v32 = vsub.f32 %v37_v4, %v67_v28  ;;  %v51_v33 = vpop.xlane.xlu0 %50  ;;  %v216_v4 = vld [vmem:[%s941_s3 + $0xd8] sm:$0xff] }
  0x92   :  { %v66_v34 = vmul.f32 0.00390625, %v51_v33  ;;  %v57_v35 = vpop.xlane.xlu1 %56  ;;  %v83_v36 = vmul.f32 %v709_v29, %v709_v29  ;;  %v84_v37 = vmul.f32 %v711_v30, %v711_v30  ;;  %485 = vmatprep.subr.mxu0 %v216_v4  ;;  %v360_v28 = vld [vmem:[%s942_s7 + $0x78] sm:$0xff]  ;;  %v359_v33 = vld [vmem:[%s942_s7 + $0x70] sm:$0xff] }
  0x93   :  { %v68_v38 = vmul.f32 0.00390625, %v57_v35  ;;  %v87_v39 = vmul.f32 %v713_v31, %v713_v31  ;;  %v88_v40 = vmul.f32 %v715_v32, %v715_v32  ;;  %549 = vmatprep.subr.mxu1 %v360_v28  ;;  %v357_v35 = vld [vmem:[%s942_s7 + $0x60] sm:$0xff] }
  0x94   :  { %v725_v41 = vsub.f32 %v34_v5, %v66_v34  ;;  %v727_v42 = vsub.f32 %v35_v6, %v66_v34  ;;  %v95_v43 = vadd.f32 %v84_v37, %v83_v36  ;;  %v200_v5 = vld [vmem:[%s941_s3 + $0x58] sm:$0xff]  ;;  %v215_v6 = vld [vmem:[%s941_s3 + $0xd0] sm:$0xff]  ;;  %550 = vmatpush3.msra.mxu1 %v360_v28  ;;  %v358_v34 = vld [vmem:[%s942_s7 + $0x68] sm:$0xff] }
  0x95   :  { %v729_v44 = vsub.f32 %v38_v8, %v68_v38  ;;  %v731_v45 = vsub.f32 %v39_v9, %v68_v38  ;;  %v60_v46 = vpop.xlane.xlu0 %59  ;;  %v101_v49 = vadd.f32 %v88_v40, %v87_v39  ;;  %486 = vmatpush3.msra.mxu0 %v200_v5  ;;  %v214_v8 = vld [vmem:[%s941_s3 + $0xc8] sm:$0xff]  ;;  %551 = vmatprep.subr.mxu1 %v359_v33  ;;  %v356_v36 = vld [vmem:[%s942_s7 + $0x58] sm:$0xff]  ;;  %v355_v37 = vld [vmem:[%s942_s7 + $0x50] sm:$0xff] }
  0x96   :  { %v69_v47 = vmul.f32 0.00390625, %v60_v46  ;;  %96 = vadd.xlane.f32.xlu0 %v95_v43  ;;  %v63_v48 = vpop.xlane.xlu1 %62  ;;  %v85_v50 = vmul.f32 %v725_v41, %v725_v41  ;;  %v86_v51 = vmul.f32 %v727_v42, %v727_v42  ;;  %487 = vmatprep.subr.mxu0 %v215_v6  ;;  %v198_v9 = vld [vmem:[%s941_s3 + $0x48] sm:$0xff]  ;;  %v353_v39 = vld [vmem:[%s942_s7 + $0x40] sm:$0xff]  ;;  %v352_v40 = vld [vmem:[%s942_s7 + $0x38] sm:$0xff] }
  0x97   :  { %v70_v52 = vmul.f32 0.00390625, %v63_v48  ;;  %v89_v53 = vmul.f32 %v729_v44, %v729_v44  ;;  %v90_v54 = vmul.f32 %v731_v45, %v731_v45  ;;  %488 = vmatpush3.msra.mxu0 %v199_v7  ;;  %552 = vmatpush3.msra.mxu1 %v359_v33  ;;  %v354_v38 = vld [vmem:[%s942_s7 + $0x48] sm:$0xff]  ;;  %v44_v6 = vld [vmem:[%s943_s1] sm:$0x3] }
  0x98   :  { %v741_v55 = vsub.f32 %v40_v12, %v69_v47  ;;  %v743_v56 = vsub.f32 %v41_v13, %v69_v47  ;;  %v98_v57 = vadd.f32 %v86_v51, %v85_v50  ;;  %489 = vmatprep.subr.mxu0 %v214_v8  ;;  %v212_v12 = vld [vmem:[%s941_s3 + $0xb8] sm:$0xff]  ;;  %553 = vmatprep.subr.mxu1 %v358_v34  ;;  %v45_v8 = vld [vmem:[%s944_s2] sm:$0x3] }
  0x99   :  { %v745_v58 = vsub.f32 %v42_v14, %v70_v52  ;;  %v747_v59 = vsub.f32 %v43_v15, %v70_v52  ;;  %v104_v60 = vadd.f32 %v90_v54, %v89_v53  ;;  %490 = vmatpush3.msra.mxu0 %v198_v9  ;;  %v196_v13 = vld [vmem:[%s941_s3 + $0x38] sm:$0xff]  ;;  %v211_v14 = vld [vmem:[%s941_s3 + $0xb0] sm:$0xff]  ;;  %554 = vmatpush3.msra.mxu1 %v358_v34  ;;  %v144_v52 = vlaneseq }
  0x9a   :  { %102 = vadd.xlane.f32.xlu0 %v101_v49  ;;  %99 = vadd.xlane.f32.xlu1 %v98_v57  ;;  %v91_v61 = vmul.f32 %v741_v55, %v741_v55  ;;  %v92_v62 = vmul.f32 %v743_v56, %v743_v56  ;;  %v195_v15 = vld [vmem:[%s941_s3 + $0x30] sm:$0xff] }
  0x9b   :  { %v93_v63 = vmul.f32 %v745_v58, %v745_v58  ;;  %v94_v0 = vmul.f32 %v747_v59, %v747_v59  ;;  %491 = vmatprep.subr.mxu0 %v213_v10  ;;  %555 = vmatprep.subr.mxu1 %v357_v35 }
  0x9c   :  { %v107_v1 = vadd.f32 %v92_v62, %v91_v61  ;;  %492 = vmatpush3.msra.mxu0 %v197_v11  ;;  %556 = vmatpush3.msra.mxu1 %v357_v35 }
  0x9d   :  { %v110_v2 = vadd.f32 %v94_v0, %v93_v63  ;;  %493 = vmatprep.subr.mxu0 %v212_v12  ;;  %557 = vmatprep.subr.mxu1 %v356_v36  ;;  %v145_v63 = vshrl.u32 %v144_v52, 7 }
  0x9e   :  { %105 = vadd.xlane.f32.xlu1 %v104_v60  ;;  %108 = vadd.xlane.f32.xlu0 %v107_v1 }
  0x9f   :  { %494 = vmatpush3.msra.mxu0 %v196_v13  ;;  %558 = vmatpush3.msra.mxu1 %v356_v36  ;;  %v146_v4 = vsub.s32 0, %v145_v63  ;;  %v150_v5 = vsub.s32 1, %v145_v63  ;;  %v474_v63 = vld [vmem:[%s945_s4] ss:$0 sm:$0xff] }
  0xa0   :  { %495 = vmatprep.subr.mxu0 %v211_v14  ;;  %559 = vmatprep.subr.mxu1 %v355_v37 }
  0xa1   :  { %496 = vmatpush3.msra.mxu0 %v195_v15  ;;  %560 = vmatpush3.msra.mxu1 %v355_v37  ;;  %v147_v9 = vrot.slane %v44_v6, %v146_v4  ;;  %v151_v10 = vrot.slane %v44_v6, %v150_v5  ;;  %v170_v13 = vrot.slane %v45_v8, %v146_v4  ;;  %v323_v6 = vld [vmem:[%s947_s6] sm:$0xff] }
  0xa2   :  { %111 = vadd.xlane.f32.xlu1 %v110_v2  ;;  %497 = vmatprep.subr.mxu0 %v210_v16  ;;  %v174_v14 = vrot.slane %v45_v8, %v150_v5 }
  0xa3   :  { %498 = vmatpush3.msra.mxu0 %v194_v17  ;;  %561 = vmatprep.subr.mxu1 %v354_v38 }
  0xa4   :  { %499 = vmatprep.subr.mxu0 %v209_v18  ;;  %562 = vmatpush3.msra.mxu1 %v354_v38 }
  0xa5   :  { %500 = vmatpush3.msra.mxu0 %v193_v19  ;;  %563 = vmatprep.subr.mxu1 %v353_v39 }
  0xa6   :  { %501 = vmatprep.subr.mxu0 %v208_v20  ;;  %564 = vmatpush3.msra.mxu1 %v353_v39 }
  0xa7   :  { %502 = vmatpush3.msra.mxu0 %v192_v21  ;;  %565 = vmatprep.subr.mxu1 %v352_v40 }
  0xa8   :  { %503 = vmatprep.subr.mxu0 %v207_v22  ;;  %566 = vmatpush3.msra.mxu1 %v352_v40 }
  0xa9   :  { %504 = vmatpush3.msra.mxu0 %v191_v23 }
  0xaa   :  { %505 = vmatprep.subr.mxu0 %v206_v24 }
  0xab   :  { %506 = vmatpush3.msra.mxu0 %v190_v25 }
  0xac   :  { %507 = vmatprep.subr.mxu0 %v205_v26 }
  0xad   :  { %508 = vmatpush3.msra.mxu0 %v189_v27 }
 0x11f   :  { %v97_v43 = vpop.xlane.xlu0 %96 }
 0x120   :  { %v113_v46 = vmul.f32 0.00390625, %v97_v43 }
 0x122   :  { %v119_v47 = vadd.f32 1e-05, %v113_v46 }
 0x123   :  { %v100_v48 = vpop.xlane.xlu1 %99  ;;  %v103_v49 = vpop.xlane.xlu0 %102 }
 0x124   :  { %590 = vrsqrt.f32 %v119_v47  ;;  %v114_v50 = vmul.f32 0.00390625, %v100_v48  ;;  %v115_v51 = vmul.f32 0.00390625, %v103_v49 }
 0x126   :  { %v120_v53 = vadd.f32 1e-05, %v114_v50  ;;  %v121_v54 = vadd.f32 1e-05, %v115_v51 }
 0x127   :  { %v106_v57 = vpop.xlane.xlu1 %105  ;;  %v109_v60 = vpop.xlane.xlu0 %108 }
 0x128   :  { %592 = vrsqrt.f32 %v120_v53  ;;  %v116_v61 = vmul.f32 0.00390625, %v106_v57  ;;  %v117_v62 = vmul.f32 0.00390625, %v109_v60  ;;  %v349_v53 = vld [vmem:[%s942_s7 + $0x20] sm:$0xff]  ;;  %v347_v57 = vld [vmem:[%s942_s7 + $0x10] sm:$0xff]  ;;  %v346_v60 = vld [vmem:[%s942_s7 + $0x8] sm:$0xff] }
 0x129   :  { %594 = vrsqrt.f32 %v121_v54  ;;  %v348_v54 = vld [vmem:[%s942_s7 + $0x18] sm:$0xff] }
 0x12a   :  { %v122_v0 = vadd.f32 1e-05, %v116_v61  ;;  %v123_v1 = vadd.f32 1e-05, %v117_v62  ;;  %v345_v61 = vld [vmem:[%s942_s7] sm:$0xff] }
 0x12b   :  { %v112_v2 = vpop.xlane.xlu1 %111 }
 0x12c   :  { %596 = vrsqrt.f32 %v122_v0  ;;  %v118_v3 = vmul.f32 0.00390625, %v112_v2 }
 0x12d   :  { %598 = vrsqrt.f32 %v123_v1 }
 0x12e   :  { %v124_v7 = vadd.f32 1e-05, %v118_v3  ;;  %v475_v3 = vld [vmem:[%s946_s5] ss:$0 sm:$0xff] }
 0x130   :  { %600 = vrsqrt.f32 %v124_v7 }
 0x131   :  { %v591_v11 = vpop.eup %590 }
 0x132   :  { %v132_v12 = vmul.f32 %v591_v11, %v711_v30  ;;  %v131_v15 = vmul.f32 %v591_v11, %v709_v29 }
 0x134   :  { %v155_v16 = vmul.f32 %v151_v10, %v132_v12  ;;  %v154_v17 = vmul.f32 %v147_v9, %v131_v15 }
 0x135   :  { %v593_v18 = vpop.eup %592 }
 0x136   :  { %v595_v19 = vpop.eup %594  ;;  %v178_v20 = vadd.f32 %v174_v14, %v155_v16  ;;  %v177_v21 = vadd.f32 %v170_v13, %v154_v17  ;;  %v134_v22 = vmul.f32 %v593_v18, %v727_v42  ;;  %v133_v23 = vmul.f32 %v593_v18, %v725_v41 }
 0x137   :  { %v136_v24 = vmul.f32 %v595_v19, %v715_v32  ;;  %v135_v25 = vmul.f32 %v595_v19, %v713_v31 }
 0x138   :  { %292 = vmatprep.mubr.f32.mxu0 %v178_v20  ;;  %v157_v30 = vmul.f32 %v151_v10, %v134_v22  ;;  %v156_v26 = vmul.f32 %v147_v9, %v133_v23  ;;  %v325_v20 = vld [vmem:[%s947_s6 + $0x10] sm:$0xff] }
 0x139   :  { %v597_v27 = vpop.eup %596  ;;  %293 = vmatmul.mubr.f32.vlgmr.msra.gmra.mxu0 %v177_v21  ;;  %v159_v29 = vmul.f32 %v151_v10, %v136_v24  ;;  %v158_v36 = vmul.f32 %v147_v9, %v135_v25 }
 0x13a   :  { %v599_v28 = vpop.eup %598  ;;  %v180_v33 = vadd.f32 %v174_v14, %v157_v30  ;;  %v179_v34 = vadd.f32 %v170_v13, %v156_v26  ;;  %v138_v35 = vmul.f32 %v597_v27, %v731_v45  ;;  %v137_v42 = vmul.f32 %v597_v27, %v729_v44 }
 0x13b   :  { %v182_v41 = vadd.f32 %v174_v14, %v159_v29  ;;  %v140_v32 = vmul.f32 %v599_v28, %v743_v56  ;;  %v181_v38 = vadd.f32 %v170_v13, %v158_v36  ;;  %v139_v40 = vmul.f32 %v599_v28, %v741_v55 }
 0x13c   :  { %297 = vmatprep.mubr.f32.mxu0 %v180_v33  ;;  %v161_v37 = vmul.f32 %v151_v10, %v138_v35  ;;  %v160_v39 = vmul.f32 %v147_v9, %v137_v42 }
 0x13d   :  { %v601_v31 = vpop.eup %600  ;;  %298 = vmatmul.mubr.f32.gmra.mxu0 %v179_v34  ;;  %v163_v46 = vmul.f32 %v151_v10, %v140_v32  ;;  %v162_v44 = vmul.f32 %v147_v9, %v139_v40 }
 0x13e   :  { %302 = vmatprep.mubr.f32.mxu0 %v182_v41  ;;  %v184_v43 = vadd.f32 %v174_v14, %v161_v37  ;;  %v142_v47 = vmul.f32 %v601_v31, %v747_v59  ;;  %v183_v45 = vadd.f32 %v170_v13, %v160_v39  ;;  %v141_v48 = vmul.f32 %v601_v31, %v745_v58  ;;  %v351_v59 = vld [vmem:[%s942_s7 + $0x30] sm:$0xff]  ;;  %v350_v58 = vld [vmem:[%s942_s7 + $0x28] sm:$0xff]  ;;  %v476_v31 = vld [vmem:[%s948_s8] ss:$0 sm:$0xff] }
 0x13f   :  { %v186_v49 = vadd.f32 %v174_v14, %v163_v46  ;;  %v185_v56 = vadd.f32 %v170_v13, %v162_v44  ;;  %567 = vmatprep.subr.mxu1 %v351_v59 }
 0x140   :  { %v165_v50 = vmul.f32 %v151_v10, %v142_v47  ;;  %v164_v51 = vmul.f32 %v147_v9, %v141_v48  ;;  %568 = vmatpush3.msra.mxu1 %v351_v59 }
 0x141   :  { %303 = vmatmul.mubr.f32.gmra.mxu0 %v181_v38  ;;  %569 = vmatprep.subr.mxu1 %v350_v58 }
 0x142   :  { %307 = vmatprep.mubr.f32.mxu0 %v184_v43  ;;  %v188_v52 = vadd.f32 %v174_v14, %v165_v50  ;;  %v187_v55 = vadd.f32 %v170_v13, %v164_v51  ;;  %570 = vmatpush3.msra.mxu1 %v350_v58  ;;  %v324_v13 = vld [vmem:[%s947_s6 + $0x8] sm:$0xff] }
 0x143   :  { %571 = vmatprep.subr.mxu1 %v349_v53 }
 0x144   :  { %572 = vmatpush3.msra.mxu1 %v349_v53 }
 0x145   :  { %308 = vmatmul.mubr.f32.gmra.mxu0 %v183_v45  ;;  %573 = vmatprep.subr.mxu1 %v348_v54 }
 0x146   :  { %312 = vmatprep.mubr.f32.mxu0 %v186_v49  ;;  %574 = vmatpush3.msra.mxu1 %v348_v54 }
 0x147   :  { %575 = vmatprep.subr.mxu1 %v347_v57 }
 0x148   :  { %576 = vmatpush3.msra.mxu1 %v347_v57 }
 0x149   :  { %313 = vmatmul.mubr.f32.gmra.mxu0 %v185_v56  ;;  %577 = vmatprep.subr.mxu1 %v346_v60 }
 0x14a   :  { %317 = vmatprep.mubr.f32.mxu0 %v188_v52  ;;  %578 = vmatpush3.msra.mxu1 %v346_v60 }
 0x14b   :  { %579 = vmatprep.subr.mxu1 %v345_v61 }
 0x14c   :  { %580 = vmatpush3.msra.mxu1 %v345_v61 }
 0x14d   :  { %318 = vmatmul.mubr.f32.gmra.mxu0 %v187_v55 }
 0x1f9   :  { %v509_v62 = vpop.f32.mrf.mxu0 }
 0x1fb   :  { %v510_v0 = vpop.f32.mrf.mxu0 }
 0x1fc   :  { %v511_v1 = vadd.f32 %v510_v0, %v509_v62 }
 0x1fd   :  { %v512_v2 = vpop.f32.mrf.mxu0 }
 0x1fe   :  { %v295_v4 = vadd.f32 %v511_v1, %v474_v63 }
 0x1ff   :  { %v513_v5 = vpop.f32.mrf.mxu0 }
 0x200   :  { %v514_v7 = vadd.f32 %v513_v5, %v512_v2  ;;  %v333_v8 = vmul.f32 %v475_v3, %v295_v4 }
 0x201   :  { %v515_v9 = vpop.f32.mrf.mxu0 }
 0x202   :  { %v300_v10 = vadd.f32 %v514_v7, %v474_v63  ;;  %v339_v11 = vadd.f32 %v333_v8, %v323_v6 }
 0x203   :  { %v516_v12 = vpop.f32.mrf.mxu0 }
 0x204   :  { %v334_v14 = vmul.f32 %v475_v3, %v300_v10  ;;  %v517_v15 = vadd.f32 %v516_v12, %v515_v9  ;;  %581 = vmatprep.mubr.f32.mxu1 %v339_v11 }
 0x205   :  { %v518_v16 = vpop.f32.mrf.mxu0 }
 0x206   :  { %v305_v17 = vadd.f32 %v517_v15, %v474_v63  ;;  %v340_v18 = vadd.f32 %v334_v14, %v324_v13 }
 0x207   :  { %v519_v19 = vpop.f32.mrf.mxu0 }
 0x208   :  { %v335_v21 = vmul.f32 %v475_v3, %v305_v17  ;;  %v520_v22 = vadd.f32 %v519_v19, %v518_v16  ;;  %582 = vmatmul.mubr.f32.vlgmr.msra.gmra.mxu1 %v340_v18 }
 0x209   :  { %v521_v23 = vpop.f32.mrf.mxu0 }
 0x20a   :  { %v310_v24 = vadd.f32 %v520_v22, %v474_v63  ;;  %v341_v25 = vadd.f32 %v335_v21, %v325_v20 }
 0x20b   :  { %v522_v30 = vpop.f32.mrf.mxu0 }
 0x20c   :  { %v336_v26 = vmul.f32 %v475_v3, %v310_v24  ;;  %v523_v27 = vadd.f32 %v522_v30, %v521_v23  ;;  %584 = vmatprep.mubr.f32.mxu1 %v341_v25 }
 0x20d   :  { %v524_v29 = vpop.f32.mrf.mxu0 }
 0x20e   :  { %v315_v28 = vadd.f32 %v523_v27, %v474_v63  ;;  %v342_v33 = vadd.f32 %v336_v26, %v323_v6 }
 0x20f   :  { %v525_v34 = vpop.f32.mrf.mxu0 }
 0x210   :  { %v337_v35 = vmul.f32 %v475_v3, %v315_v28  ;;  %v526_v36 = vadd.f32 %v525_v34, %v524_v29  ;;  %585 = vmatmul.mubr.f32.gmra.mxu1 %v342_v33 }
 0x212   :  { %v320_v42 = vadd.f32 %v526_v36, %v474_v63  ;;  %v343_v41 = vadd.f32 %v337_v35, %v324_v13 }
 0x214   :  { %v338_v37 = vmul.f32 %v475_v3, %v320_v42  ;;  %587 = vmatprep.mubr.f32.mxu1 %v343_v41 }
 0x216   :  { %v344_v32 = vadd.f32 %v338_v37, %v325_v20 }
 0x218   :  { %588 = vmatmul.mubr.f32.gmra.mxu1 %v344_v32 }
 0x2c8   :  { %v583_v38 = vpop.f32.mrf.mxu1 }
 0x2c9   :  { %v440_v39 = vadd.f32 %v583_v38, %v476_v31 }
 0x2ca   :  { %v434_v40 = vpop.f32.mrf.mxu1 }
 0x2cb   :  { %465 = vst.msk [vmem:[%s949_s9 + $0x8] sm:$0xff] %vm463_vm0, %v440_v39  ;;  %v435_v43 = vadd.f32 %v476_v31, %v434_v40 }
 0x2cd   :  { %464 = vst.msk [vmem:[%s949_s9] sm:$0xff] %vm463_vm0, %v435_v43 }
 0x2d0   :  { %v586_v46 = vpop.f32.mrf.mxu1 }
 0x2d1   :  { %v450_v47 = vadd.f32 %v586_v46, %v476_v31 }
 0x2d2   :  { %v444_v45 = vpop.f32.mrf.mxu1 }
 0x2d3   :  { %467 = vst.msk [vmem:[%s949_s9 + $0x18] sm:$0xff] %vm463_vm0, %v450_v47  ;;  %v445_v44 = vadd.f32 %v476_v31, %v444_v45 }
 0x2d5   :  { %466 = vst.msk [vmem:[%s949_s9 + $0x10] sm:$0xff] %vm463_vm0, %v445_v44 }
 0x2d8   :  { %v589_v48 = vpop.f32.mrf.mxu1 }
 0x2d9   :  { %v460_v49 = vadd.f32 %v589_v48, %v476_v31 }
 0x2da   :  { %v454_v50 = vpop.f32.mrf.mxu1 }
 0x2db   :  { %469 = vst.msk [vmem:[%s949_s9 + $0x28] sm:$0xff] %vm463_vm0, %v460_v49  ;;  %v455_v56 = vadd.f32 %v476_v31, %v454_v50 }
 0x2dd   :  { %468 = vst.msk [vmem:[%s949_s9 + $0x20] sm:$0xff] %vm463_vm0, %v455_v56 }

// kernel: text_decoder_forward.6
= control target key start
LH: loop header
LB: loop body
LE: loop exit
PB: predicated region body
PF: predicated region fallthrough
CT: control target
= control target key end

     0   :  { %s14449_s0 = inlined_call_operand.vmem [shape: f32[24,256], index: 0, kind: input, shape index: {}]   ;;  %s14450_s1 = inlined_call_operand.vmem [shape: f32[32,256], index: 1, kind: input, shape index: {}]   ;;  %s14451_s2 = inlined_call_operand.hbm [shape: f32[9,9,256], index: 2, kind: input, shape index: {}]   ;;  %s14452_s3 = inlined_call_operand.hbm [shape: f32[9,1,1024], index: 3, kind: input, shape index: {}]   ;;  %s14453_s4 = inlined_call_operand.hbm [shape: bf16[9,256,768], index: 4, kind: input, shape index: {}]   ;;  %s14454_s5 = inlined_call_operand.hbm [shape: bf16[9,256,256], index: 5, kind: input, shape index: {}]   ;;  %s14455_s6 = inlined_call_operand.hbm [shape: bf16[9,256,256], index: 6, kind: input, shape index: {}]   ;;  %s14456_s7 = inlined_call_operand.hbm [shape: bf16[9,256,512], index: 7, kind: input, shape index: {}]   ;;  %s14457_s8 = inlined_call_operand.hbm [shape: bf16[9,256,256], index: 8, kind: input, shape index: {}]   ;;  %s14458_s9 = inlined_call_operand.hbm [shape: bf16[9,256,1024], index: 9, kind: input, shape index: {}]   ;;  %s14459_s10 = inlined_call_operand.hbm [shape: bf16[9,1024,256], index: 10, kind: input, shape index: {}]   ;;  %s14460_s11 = inlined_call_operand.vmem [shape: f32[48,256], index: 11, kind: output, shape index: {}]  }
   0x1   :  { %14488 = sst [smem:[#allocation35_spill]] %s14449_s0 }
   0x2   :  { %14489 = sst [smem:[#allocation36_spill]] %s14450_s1 }
   0x3   :  { %14490 = sst [smem:[#allocation37_spill]] %s14452_s3 }
   0x4   :  { %14491 = sst [smem:[#allocation38_spill]] %s14454_s5 }
   0x5   :  { %14492 = sst [smem:[#allocation39_spill]] %s14456_s7 }
   0x6   :  { %14493 = sst [smem:[#allocation40_spill]] %s14458_s9 }
   0x7   :  { %14494 = sst [smem:[#allocation41_spill]] %s14460_s11 }
   0x8   :  { %16 = vsyncpa [#allocation4], 0 }
   0x9   :  { %18 = vsyncpa [#allocation4 + $0x1], 0 }
   0xa   :  { %19 = vsyncpa [#allocation6], 0 }
   0xb   :  { %21 = vsyncpa [#allocation6 + $0x1], 0 }
   0xc   :  { %22 = vsyncpa [#allocation9], 0 }
   0xd   :  { %24 = vsyncpa [#allocation9 + $0x1], 0 }
   0xe   :  { %25 = vsyncpa [#allocation12], 0 }
   0xf   :  { %27 = vsyncpa [#allocation12 + $0x1], 0 }
  0x10   :  { %28 = vsyncpa [#allocation15], 0 }
  0x11   :  { %30 = vsyncpa [#allocation15 + $0x1], 0  ;;  %s11463_s17 = smov 0   ;;  %s11465_s18 = smov 0  }
  0x12   :  { %s11467_s19 = smov 0   ;;  %s11469_s20 = smov 0  }
  0x13 LB: > { %14495 = sst [smem:[#allocation22_spill]] %s11378_s19  ;;  %s11482_s21 = sadd.s32 4294967295, %s11382_s20   ;;  %s11382_s20 = sphi %s11469_s20, %s14541_s20   ;;  %s11378_s19 = sphi %s11467_s19, %s14543_s19   ;;  %s11374_s18 = sphi %s11465_s18, %s14545_s18   ;;  %s11370_s17 = sphi %s11463_s17, %s14544_s17  }
  0x14   : > { %14496 = sst [smem:[#allocation23_spill]] %s11482_s21  ;;  %s11485_s22 = sadd.s32 1, %s11382_s20  }
  0x15   : > { %14497 = sst [smem:[#allocation24_spill]] %s11485_s22  ;;  %s82_s23 = ssub.s32 %s11382_s20, %s11485_s22 }
  0x16   : > { %s85_s24 = sadd.s32 1, %s11378_s19  ;;  %p83_p0 = scmp.eq.s32.totalorder %s82_s23, 0 }
  0x17   : > { %p92_p1 = scmp.ne.s32.totalorder %s11378_s19, %s11374_s18  ;;  %p93_p2 = scmp.eq.s32.totalorder %s11382_s20, 0 }
  0x18   : > { %p98_p3 = scmp.ne.s32.totalorder %s11374_s18, %s11370_s17  ;;  %p99_p5 = scmp.eq.s32.totalorder %s11482_s21, 0 }
  0x19   : > { %s11495_s25 = scalar_select %p83_p0, %s11378_s19, %s85_s24  }
  0x1a   : > { %p94_p4 = por %p93_p2, %p92_p1  ;;  %p10065_p6 = scmp.lt.s32.totalorder %s11382_s20, 9 }
  0x1b   : > { %14498 = sst [smem:[#allocation25_spill]] %s11495_s25  ;;  %p11499_p7 = por %p99_p5, %p98_p3 }
  0x1c   : > { %s11504_s27 = sand.u32 1, %s11378_s19   ;;  %p11506_p8 = pnand %p10065_p6, %p94_p4 }
  0x1d   : > { %s14499_s26 = scalar_select %p11499_p7, 1, 0 }
  0x1e   : > { %s11511_s29 = sand.u32 1, %s11382_s20   ;;  %s8837_s30 = sshll.u32 %s11504_s27, 3 }
  0x1f   : > { %14500 = sst [smem:[#allocation26_spill]] %s14499_s26  ;;  %s9529_s12 = sshll.u32 %s11382_s20, 7 }
  0x20   : > { %s382_s13 = scalar_lea.vmem [#allocation5], %s8837_s30  ;;  %s14502_s3 = sld [smem:[#allocation37_spill]] }
  0x21   : > { %s390_s14 = sshll.u32 %s382_s13, 4  ;;  %p11521_p10 = pneg %p11506_p8  ;;  %s391_s14 = int_to_ptr.vmem [resolvable:$true] %s390_s14 }
  0x26   : > { %s388_s17 = scalar_lea.hbm %s14502_s3, %s9529_s12  ;;  %s11085_s13 = scalar_lea.hbm %s14502_s3, 1152 }
  0x27   : > { %s11080_s24 = scalar_lea.hbm %s388_s17, 128  ;;  %p11086_p13 = scmp.lt.s32.totalorder %s388_s17, %s14502_s3 }
  0x28   : > { %p11081_p9 = scmp.ne.s32.totalorder %s388_s17, %s11080_s24  ;;  %p11087_p0 = scmp.lt.s32.totalorder %s11085_s13, %s11080_s24 }
  0x2a   : > { %p11083_p11 = pnand %p11521_p10, %p11081_p9  ;;  %p11088_p1 = por %p11087_p0, %p11086_p13 }
  0x2c   : > { %p11084_p12 = pneg %p11083_p11 }
  0x2e   : > { %p11089_p2 = pnand %p11088_p1, %p11084_p12 }
  0x30   : > { %11092 = shalt.err (!%p11089_p2)
}
  0x31   : > { %s11093_s12 = scalar_lea.vmem %s391_s14, 128  ;;  %s11384_s16 = smov [#allocation5]  }
  0x32   : > { %p11094_p3 = scmp.ne.s32.totalorder %s391_s14, %s11093_s12  ;;  %s11098_s23 = sshll.u32 %s11384_s16, 4  ;;  %s11099_s23 = int_to_ptr.vmem [resolvable:$false] %s11098_s23 }
  0x33   : > { %s11100_s11 = scalar_lea.vmem %s11099_s23, 256  ;;  %p11101_p6 = scmp.lt.s32.totalorder %s391_s14, %s11099_s23 }
  0x34   : > { %p11096_p4 = pnand %p11094_p3, %p11521_p10  ;;  %p11102_p9 = scmp.lt.s32.totalorder %s11100_s11, %s11093_s12 }
  0x36   : > { %p11097_p5 = pneg %p11096_p4  ;;  %p11103_p11 = por %p11102_p9, %p11101_p6 }
  0x38   : > { %p11104_p7 = pnand %p11103_p11, %p11097_p5 }
  0x3a   : > { %11107 = shalt.err (!%p11104_p7)
}
  0x3b   : > { %s14504_s19 = scalar_lea.sflag [#allocation6], %s11511_s29  ;;  %p8859_p12 = scmp.ge.s32.totalorder %s11382_s20, 1 }
  0x3c   : > { %10043 = dma.hbm_to_vmem [thread:$0]  (!%p11506_p8), %s388_s17, 128, %s391_s14, %s14504_s19  }
  0x3d   : > { %p542_p13 = scmp.lt.s32.totalorder %s11382_s20, 10  ;;  %s11542_s22 = sshll.u32 %s11504_s27, 8 }
  0x3e   : > { %s11549_s23 = sshll.u32 %s11382_s20, 12  ;;  %s422_s24 = scalar_lea.vmem [#allocation8], %s11542_s22 }
  0x3f   : > { %p11544_p0 = pnand %p8859_p12, %p542_p13  ;;  %s429_s30 = sshll.u32 %s422_s24, 4  ;;  %s11558_s30 = int_to_ptr.vmem [resolvable:$true] %s429_s30 }
  0x40   : > { %s14506_s5 = sld [smem:[#allocation38_spill]]  ;;  %s14470_s14 = scalar_lea.sflag [#allocation9], %s11511_s29 }
  0x41   : > { %s14505_s11 = scalar_select %p11544_p0, 1, 0 }
  0x46   : > { %s11556_s12 = scalar_lea.hbm %s14506_s5, %s11549_s23  ;;  %s11113_s24 = scalar_lea.hbm %s14506_s5, 36864 }
  0x47   : > { %s11108_s17 = scalar_lea.hbm %s11556_s12, 4096  ;;  %p11114_p3 = scmp.lt.s32.totalorder %s11556_s12, %s14506_s5 }
  0x48   : > { %p11109_p7 = scmp.ne.s32.totalorder %s11556_s12, %s11108_s17  ;;  %p11115_p4 = scmp.lt.s32.totalorder %s11113_s24, %s11108_s17 }
  0x4a   : > { %p11111_p1 = pnand %p11109_p7, %p11521_p10  ;;  %p11116_p5 = por %p11115_p4, %p11114_p3 }
  0x4c   : > { %p11112_p2 = pneg %p11111_p1 }
  0x4e   : > { %p11117_p6 = pnand %p11116_p5, %p11112_p2 }
  0x50   : > { %11120 = shalt.err (!%p11117_p6)
}
  0x51   : > { %s11121_s13 = scalar_lea.vmem %s11558_s30, 4096  ;;  %s11385_s15 = smov [#allocation8]  }
  0x52   : > { %p11122_p9 = scmp.ne.s32.totalorder %s11558_s30, %s11121_s13  ;;  %s11126_s16 = sshll.u32 %s11385_s15, 4  ;;  %s11127_s16 = int_to_ptr.vmem [resolvable:$false] %s11126_s16 }
  0x53   : > { %s11128_s19 = scalar_lea.vmem %s11127_s16, 8192  ;;  %p11129_p13 = scmp.lt.s32.totalorder %s11558_s30, %s11127_s16 }
  0x54   : > { %p11124_p11 = pnand %p11122_p9, %p11521_p10  ;;  %p11130_p7 = scmp.lt.s32.totalorder %s11128_s19, %s11121_s13 }
  0x56   : > { %p11125_p12 = pneg %p11124_p11  ;;  %p11131_p1 = por %p11130_p7, %p11129_p13 }
  0x58   : > { %p11132_p0 = pnand %p11131_p1, %p11125_p12 }
  0x5a   : > { %11135 = shalt.err (!%p11132_p0)
}
  0x5b   : > { %s14471_s1 = smov 128   ;;  %s14473_s3 = smov 8  }
  0x5c   : > { %10049 = dma.hbm_to_vmem [thread:$0]  (!%p11506_p8), %s11556_s12, 4096, %s11558_s30, %s14470_s14, %s14471_s1, %s14471_s1, %s14473_s3  }
  0x5d   : > { %s8847_s17 = sshll.u32 %s11504_s27, 9  ;;  %s9532_s24 = sshll.u32 %s11382_s20, 13 }
  0x5e   : > { %s14507_s7 = sld [smem:[#allocation39_spill]]  ;;  %s464_s19 = scalar_lea.vmem [#allocation11], %s8847_s17 }
  0x5f   : > { %s471_s5 = sshll.u32 %s464_s19, 4  ;;  %s14475_s0 = scalar_lea.sflag [#allocation12], %s11511_s29  ;;  %s11593_s5 = int_to_ptr.vmem [resolvable:$true] %s471_s5 }
  0x64   : > { %s11591_s16 = scalar_lea.hbm %s14507_s7, %s9532_s24  ;;  %s11141_s14 = scalar_lea.hbm %s14507_s7, 73728 }
  0x65   : > { %s11136_s21 = scalar_lea.hbm %s11591_s16, 8192  ;;  %p11142_p4 = scmp.lt.s32.totalorder %s11591_s16, %s14507_s7 }
  0x66   : > { %p11137_p0 = scmp.ne.s32.totalorder %s11591_s16, %s11136_s21  ;;  %p11143_p5 = scmp.lt.s32.totalorder %s11141_s14, %s11136_s21 }
  0x68   : > { %p11139_p2 = pnand %p11137_p0, %p11521_p10  ;;  %p11144_p6 = por %p11143_p5, %p11142_p4 }
  0x6a   : > { %p11140_p3 = pneg %p11139_p2 }
  0x6c   : > { %p11145_p9 = pnand %p11144_p6, %p11140_p3 }
  0x6e   : > { %11148 = shalt.err (!%p11145_p9)
}
  0x6f   : > { %s11149_s17 = scalar_lea.vmem %s11593_s5, 8192  ;;  %s11388_s15 = smov [#allocation11]  }
  0x70   : > { %p11150_p11 = scmp.ne.s32.totalorder %s11593_s5, %s11149_s17  ;;  %s11154_s19 = sshll.u32 %s11388_s15, 4  ;;  %s11155_s19 = int_to_ptr.vmem [resolvable:$false] %s11154_s19 }
  0x71   : > { %s11156_s30 = scalar_lea.vmem %s11155_s19, 16384  ;;  %p11157_p7 = scmp.lt.s32.totalorder %s11593_s5, %s11155_s19 }
  0x72   : > { %p11152_p12 = pnand %p11150_p11, %p11521_p10  ;;  %p11158_p1 = scmp.lt.s32.totalorder %s11156_s30, %s11149_s17 }
  0x74   : > { %p11153_p13 = pneg %p11152_p12  ;;  %p11159_p0 = por %p11158_p1, %p11157_p7 }
  0x76   : > { %p11160_p2 = pnand %p11159_p0, %p11153_p13 }
  0x78   : > { %11163 = shalt.err (!%p11160_p2)
}
  0x79   : > { %s14476_s21 = smov 256   ;;  %s14477_s14 = smov 16  }
  0x7a   : > { %10055 = dma.hbm_to_vmem [thread:$0]  (!%p11506_p8), %s11591_s16, 8192, %s11593_s5, %s14475_s0, %s14476_s21, %s14476_s21, %s14477_s14  }
  0x7b   : > { %s8853_s12 = sshll.u32 %s11504_s27, 10  ;;  %s9534_s13 = sshll.u32 %s11382_s20, 14 }
  0x7c   : > { %s14508_s9 = sld [smem:[#allocation40_spill]]  ;;  %s506_s19 = scalar_lea.vmem [#allocation14], %s8853_s12 }
  0x7d   : > { %s513_s30 = sshll.u32 %s506_s19, 4  ;;  %s503_s1 = scalar_lea.sflag [#allocation15], %s11511_s29  ;;  %s11632_s30 = int_to_ptr.vmem [resolvable:$true] %s513_s30 }
  0x82   : > { %s11628_s15 = scalar_lea.hbm %s14508_s9, %s9534_s13  ;;  %s11169_s24 = scalar_lea.hbm %s14508_s9, 147456 }
  0x83   : > { %s11164_s3 = scalar_lea.hbm %s11628_s15, 16384  ;;  %p11170_p6 = scmp.lt.s32.totalorder %s11628_s15, %s14508_s9 }
  0x84   : > { %p11165_p3 = scmp.ne.s32.totalorder %s11628_s15, %s11164_s3  ;;  %p11171_p9 = scmp.lt.s32.totalorder %s11169_s24, %s11164_s3 }
  0x86   : > { %p11167_p4 = pnand %p11165_p3, %p11521_p10  ;;  %p11172_p11 = por %p11171_p9, %p11170_p6 }
  0x88   : > { %p11168_p5 = pneg %p11167_p4 }
  0x8a   : > { %p11173_p12 = pnand %p11172_p11, %p11168_p5 }
  0x8c   : > { %11176 = shalt.err (!%p11173_p12)
}
  0x8d   : > { %s11177_s19 = scalar_lea.vmem %s11632_s30, 16384  ;;  %s11391_s21 = smov [#allocation14]  }
  0x8e   : > { %p11178_p13 = scmp.ne.s32.totalorder %s11632_s30, %s11177_s19  ;;  %s11182_s5 = sshll.u32 %s11391_s21, 4  ;;  %s11183_s5 = int_to_ptr.vmem [resolvable:$false] %s11182_s5 }
  0x8f   : > { %s11184_s16 = scalar_lea.vmem %s11183_s5, 32768  ;;  %p11185_p0 = scmp.lt.s32.totalorder %s11632_s30, %s11183_s5 }
  0x90   : > { %p11180_p7 = pnand %p11178_p13, %p11521_p10  ;;  %p11186_p2 = scmp.lt.s32.totalorder %s11184_s16, %s11177_s19 }
  0x92   : > { %p11181_p1 = pneg %p11180_p7  ;;  %p11187_p3 = por %p11186_p2, %p11185_p0 }
  0x94   : > { %p11188_p4 = pnand %p11187_p3, %p11181_p1 }
  0x96   : > { %11191 = shalt.err (!%p11188_p4)
}
  0x97   : > { %s11392_s0 = smov 512   ;;  %s11393_s3 = smov 32  }
  0x98   : > { %10061 = dma.hbm_to_vmem [thread:$0]  (!%p11506_p8), %s11628_s15, 16384, %s11632_s30, %s503_s1, %s11392_s0, %s11392_s0, %s11393_s3  }
  0x99   : > { %s11662_s17 = scalar_lea.hbm %s14459_s10, %s9534_s13  ;;  %s527_s19 = scalar_lea.vmem [#allocation16], %s8853_s12 }
  0x9a   : > { %s534_s5 = sshll.u32 %s527_s19, 4  ;;  %s8834_s16 = sshll.u32 %s11504_s27, 5  ;;  %s11666_s5 = int_to_ptr.vmem [resolvable:$true] %s534_s5 }
  0x9b   : > { %s9528_s14 = sshll.u32 %s11382_s20, 9  ;;  %s361_s15 = scalar_lea.vmem [#allocation3], %s8834_s16 }
  0x9c   : > { %s11673_s26 = scalar_lea.hbm %s14451_s2, %s9528_s14  ;;  %s368_s30 = sshll.u32 %s361_s15, 4  ;;  %s11675_s30 = int_to_ptr.vmem [resolvable:$true] %s368_s30 }
  0x9d   : > { %s10016_s13 = smul.u32 768, %s11504_s27  ;;  %s358_s0 = scalar_lea.sflag [#allocation4], %s11504_s27 }
  0x9e   : > { %s11192_s12 = scalar_lea.hbm %s11673_s26, 512  ;;  %s11197_s7 = scalar_lea.hbm %s14451_s2, 4608 }
  0x9f   : > { %p11193_p5 = scmp.ne.s32.totalorder %s11673_s26, %s11192_s12  ;;  %p11198_p11 = scmp.lt.s32.totalorder %s11673_s26, %s14451_s2 }
  0xa0   : > { %p11199_p12 = scmp.lt.s32.totalorder %s11197_s7, %s11192_s12 }
  0xa1   : > { %p11195_p6 = pnand %p11193_p5, %p11521_p10 }
  0xa2   : > { %p11200_p13 = por %p11199_p12, %p11198_p11 }
  0xa3   : > { %p11196_p9 = pneg %p11195_p6 }
  0xa5   : > { %p11201_p7 = pnand %p11200_p13, %p11196_p9 }
  0xa7   : > { %11204 = shalt.err (!%p11201_p7)
}
  0xa8   : > { %s11205_s24 = scalar_lea.vmem %s11675_s30, 512  ;;  %s11394_s19 = smov [#allocation3]  }
  0xa9   : > { %p11206_p1 = scmp.ne.s32.totalorder %s11675_s30, %s11205_s24  ;;  %s11210_s16 = sshll.u32 %s11394_s19, 4  ;;  %s11211_s16 = int_to_ptr.vmem [resolvable:$false] %s11210_s16 }
  0xaa   : > { %s11212_s15 = scalar_lea.vmem %s11211_s16, 1024  ;;  %p11213_p3 = scmp.lt.s32.totalorder %s11675_s30, %s11211_s16 }
  0xab   : > { %p11208_p0 = pnand %p11206_p1, %p11521_p10  ;;  %p11214_p4 = scmp.lt.s32.totalorder %s11212_s15, %s11205_s24 }
  0xad   : > { %p11209_p2 = pneg %p11208_p0  ;;  %p11215_p5 = por %p11214_p4, %p11213_p3 }
  0xaf   : > { %p11216_p6 = pnand %p11215_p5, %p11209_p2 }
  0xb1   : > { %11219 = shalt.err (!%p11216_p6)
}
  0xb2   : > { %s14509_s12 = smov 16   ;;  %s14510_s3 = smov 256  }
  0xb3   : > { %10040 = dma.hbm_to_vmem [thread:$0]  (!%p11506_p8), %s11673_s26, 512, %s11675_s30, %s358_s0, %s14510_s3, %s14510_s3, %s14509_s12  }
  0xb4   : > { %s10017_s21 = smul.u32 12288, %s11382_s20  ;;  %s401_s7 = scalar_lea.vmem [#allocation7], %s10016_s13 }
  0xb5   : > { %s408_s9 = sshll.u32 %s401_s7, 4  ;;  %s11225_s27 = scalar_lea.hbm %s14453_s4, 110592  ;;  %s11710_s9 = int_to_ptr.vmem [resolvable:$true] %s408_s9 }
  0xb6   : > { %s11708_s19 = scalar_lea.hbm %s14453_s4, %s10017_s21 }
  0xb7   : > { %s11220_s16 = scalar_lea.hbm %s11708_s19, 12288  ;;  %p11226_p13 = scmp.lt.s32.totalorder %s11708_s19, %s14453_s4 }
  0xb8   : > { %p11221_p9 = scmp.ne.s32.totalorder %s11708_s19, %s11220_s16  ;;  %p11227_p7 = scmp.lt.s32.totalorder %s11225_s27, %s11220_s16 }
  0xba   : > { %p11223_p11 = pnand %p11221_p9, %p11521_p10  ;;  %p11228_p1 = por %p11227_p7, %p11226_p13 }
  0xbc   : > { %p11224_p12 = pneg %p11223_p11 }
  0xbe   : > { %p11229_p0 = pnand %p11228_p1, %p11224_p12 }
  0xc0   : > { %11232 = shalt.err (!%p11229_p0)
}
  0xc1   : > { %s11233_s0 = scalar_lea.vmem %s11710_s9, 12288  ;;  %s11395_s15 = smov [#allocation7]  }
  0xc2   : > { %p11234_p2 = scmp.ne.s32.totalorder %s11710_s9, %s11233_s0  ;;  %s11238_s12 = sshll.u32 %s11395_s15, 4  ;;  %s11239_s12 = int_to_ptr.vmem [resolvable:$false] %s11238_s12 }
  0xc3   : > { %s11240_s3 = scalar_lea.vmem %s11239_s12, 24576  ;;  %p11241_p5 = scmp.lt.s32.totalorder %s11710_s9, %s11239_s12 }
  0xc4   : > { %p11236_p3 = pnand %p11234_p2, %p11521_p10  ;;  %p11242_p6 = scmp.lt.s32.totalorder %s11240_s3, %s11233_s0 }
  0xc6   : > { %p11237_p4 = pneg %p11236_p3  ;;  %p11243_p9 = por %p11242_p6, %p11241_p5 }
  0xc8   : > { %p11244_p11 = pnand %p11243_p9, %p11237_p4 }
  0xca   : > { %11247 = shalt.err (!%p11244_p11)
}
  0xcb   : > { %s11396_s21 = smov 384   ;;  %s11397_s7 = smov 24  }
  0xcc   : > { %s14511_s14 = scalar_lea.sflag [#allocation6], %s11511_s29  ;;  %s11738_s26 = scalar_lea.hbm %s14455_s6, %s11549_s23 }
  0xcd   : > { %10046 = dma.hbm_to_vmem [thread:$0]  (!%p11506_p8), %s11708_s19, 12288, %s11710_s9, %s14511_s14, %s11396_s21, %s11396_s21, %s11397_s7  }
  0xce   : > { %s443_s20 = scalar_lea.vmem [#allocation10], %s11542_s22  ;;  %s11248_s30 = scalar_lea.hbm %s11738_s26, 4096 }
  0xcf   : > { %s450_s27 = sshll.u32 %s443_s20, 4  ;;  %p11249_p12 = scmp.ne.s32.totalorder %s11738_s26, %s11248_s30  ;;  %s451_s27 = int_to_ptr.vmem [resolvable:$true] %s450_s27 }
  0xd0   : > { %s11253_s9 = scalar_lea.hbm %s14455_s6, 36864  ;;  %p11254_p1 = scmp.lt.s32.totalorder %s11738_s26, %s14455_s6 }
  0xd1   : > { %p11251_p13 = pnand %p11249_p12, %p11521_p10  ;;  %p11255_p0 = scmp.lt.s32.totalorder %s11253_s9, %s11248_s30 }
  0xd3   : > { %p11252_p7 = pneg %p11251_p13  ;;  %p11256_p2 = por %p11255_p0, %p11254_p1 }
  0xd5   : > { %p11257_p3 = pnand %p11256_p2, %p11252_p7 }
  0xd7   : > { %11260 = shalt.err (!%p11257_p3)
}
  0xd8   : > { %s11261_s12 = scalar_lea.vmem %s451_s27, 4096  ;;  %s11398_s3 = smov [#allocation10]  }
  0xd9   : > { %p11262_p4 = scmp.ne.s32.totalorder %s451_s27, %s11261_s12  ;;  %s11266_s21 = sshll.u32 %s11398_s3, 4  ;;  %s11267_s21 = int_to_ptr.vmem [resolvable:$false] %s11266_s21 }
  0xda   : > { %s11268_s7 = scalar_lea.vmem %s11267_s21, 8192  ;;  %p11269_p9 = scmp.lt.s32.totalorder %s451_s27, %s11267_s21 }
  0xdb   : > { %p11264_p5 = pnand %p11262_p4, %p11521_p10  ;;  %p11270_p11 = scmp.lt.s32.totalorder %s11268_s7, %s11261_s12 }
  0xdd   : > { %p11265_p6 = pneg %p11264_p5  ;;  %p11271_p12 = por %p11270_p11, %p11269_p9 }
  0xdf   : > { %p11272_p13 = pnand %p11271_p12, %p11265_p6 }
  0xe1   : > { %11275 = shalt.err (!%p11272_p13)
}
  0xe2   : > { %s14512_s14 = smov 8   ;;  %s14513_s24 = smov 128  }
  0xe3   : > { %s14514_s16 = scalar_lea.sflag [#allocation9], %s11511_s29  ;;  %s11766_s13 = scalar_lea.hbm %s14457_s8, %s11549_s23 }
  0xe4   : > { %10052 = dma.hbm_to_vmem [thread:$0]  (!%p11506_p8), %s11738_s26, 4096, %s451_s27, %s14514_s16, %s14513_s24, %s14513_s24, %s14512_s14  }
  0xe5   : > { %s485_s0 = scalar_lea.vmem [#allocation13], %s11542_s22  ;;  %s11276_s19 = scalar_lea.hbm %s11766_s13, 4096 }
  0xe6   : > { %s492_s9 = sshll.u32 %s485_s0, 4  ;;  %p11277_p7 = scmp.ne.s32.totalorder %s11766_s13, %s11276_s19  ;;  %s493_s9 = int_to_ptr.vmem [resolvable:$true] %s492_s9 }
  0xe7   : > { %s11281_s26 = scalar_lea.hbm %s14457_s8, 36864  ;;  %p11282_p2 = scmp.lt.s32.totalorder %s11766_s13, %s14457_s8 }
  0xe8   : > { %p11279_p1 = pnand %p11277_p7, %p11521_p10  ;;  %p11283_p3 = scmp.lt.s32.totalorder %s11281_s26, %s11276_s19 }
  0xea   : > { %p11280_p0 = pneg %p11279_p1  ;;  %p11284_p4 = por %p11283_p3, %p11282_p2 }
  0xec   : > { %p11285_p5 = pnand %p11284_p4, %p11280_p0 }
  0xee   : > { %11288 = shalt.err (!%p11285_p5)
}
  0xef   : > { %s11289_s22 = scalar_lea.vmem %s493_s9, 4096  ;;  %s11399_s23 = smov [#allocation13]  }
  0xf0   : > { %p11290_p6 = scmp.ne.s32.totalorder %s493_s9, %s11289_s22  ;;  %s11294_s21 = sshll.u32 %s11399_s23, 4  ;;  %s11295_s21 = int_to_ptr.vmem [resolvable:$false] %s11294_s21 }
  0xf1   : > { %s11296_s7 = scalar_lea.vmem %s11295_s21, 8192  ;;  %p11297_p12 = scmp.lt.s32.totalorder %s493_s9, %s11295_s21 }
  0xf2   : > { %p11292_p9 = pnand %p11290_p6, %p11521_p10  ;;  %p11298_p13 = scmp.lt.s32.totalorder %s11296_s7, %s11289_s22 }
  0xf4   : > { %p11293_p11 = pneg %p11292_p9  ;;  %p11299_p7 = por %p11298_p13, %p11297_p12 }
  0xf6   : > { %p11300_p1 = pnand %p11299_p7, %p11293_p11 }
  0xf8   : > { %11303 = shalt.err (!%p11300_p1)
}
  0xf9   : > { %s14515_s16 = scalar_lea.sflag [#allocation12], %s11511_s29  ;;  %s11304_s20 = scalar_lea.hbm %s11662_s17, 16384 }
  0xfa   : > { %10058 = dma.hbm_to_vmem [thread:$0]  (!%p11506_p8), %s11766_s13, 4096, %s493_s9, %s14515_s16, %s14513_s24, %s14513_s24, %s14512_s14  }
  0xfb   : > { %p11305_p0 = scmp.ne.s32.totalorder %s11662_s17, %s11304_s20  ;;  %s11309_s19 = scalar_lea.hbm %s14459_s10, 147456 }
  0xfc   : > { %p11310_p4 = scmp.lt.s32.totalorder %s11662_s17, %s14459_s10  ;;  %p11311_p5 = scmp.lt.s32.totalorder %s11309_s19, %s11304_s20 }
  0xfd   : > { %p11307_p2 = pnand %p11305_p0, %p11521_p10 }
  0xfe   : > { %p11312_p6 = por %p11311_p5, %p11310_p4 }
  0xff   : > { %p11308_p3 = pneg %p11307_p2 }
 0x101   : > { %p11313_p9 = pnand %p11312_p6, %p11308_p3 }
 0x103   : > { %11316 = shalt.err (!%p11313_p9)
}
 0x104   : > { %s11317_s13 = scalar_lea.vmem %s11666_s5, 16384  ;;  %s11400_s9 = smov [#allocation16]  }
 0x105   : > { %p11318_p11 = scmp.ne.s32.totalorder %s11666_s5, %s11317_s13  ;;  %s11322_s26 = sshll.u32 %s11400_s9, 4  ;;  %s11323_s26 = int_to_ptr.vmem [resolvable:$false] %s11322_s26 }
 0x106   : > { %s11324_s27 = scalar_lea.vmem %s11323_s26, 32768  ;;  %p11325_p7 = scmp.lt.s32.totalorder %s11666_s5, %s11323_s26 }
 0x107   : > { %p11320_p12 = pnand %p11318_p11, %p11521_p10  ;;  %p11326_p1 = scmp.lt.s32.totalorder %s11324_s27, %s11317_s13 }
 0x109   : > { %p11321_p13 = pneg %p11320_p12  ;;  %p11327_p0 = por %p11326_p1, %p11325_p7 }
 0x10b   : > { %p11328_p2 = pnand %p11327_p0, %p11321_p13 }
 0x10d   : > { %11331 = shalt.err (!%p11328_p2)
}
 0x10e   : > { %10064 = dma.hbm_to_vmem [thread:$0]  (!%p11506_p8), %s11662_s17, 16384, %s11666_s5, %s503_s1, %s14513_s24, %s14513_s24, %s14512_s14  }
 0x10f   : > { %p14516_p10 = scmp.ne.s32.totalorder %s14505_s11, 0 }
 0x111   : > { %546 = sbr.rel (%p14516_p10) target bundleno = 5224 (0x1468), region = 64 }
 0x116   : > { %s14517_s25 = sld [smem:[#allocation26_spill]]  ;;  %s11818_s3 = sand.u32 1, %s11374_s18  }
 0x117   : > { %s8860_s22 = sshll.u32 %s11818_s3, 5  ;;  %s549_s23 = scalar_lea.sflag [#allocation4], %s11818_s3 }
 0x118   : > { %s11822_s28 = scalar_lea.vmem [#allocation3], %s8860_s22 }
 0x11c   : > { %p14518_p3 = scmp.ne.s32.totalorder %s14517_s25, 0 }
 0x11e   : > { %11349 = dma.done.wait (%p14518_p3), %s549_s23, 512  }
 0x11f   : > { %11351 = vsyncadd (%p14518_p3), %s549_s23, 4294966784  ;;  %s14519_s29 = sld [smem:[#allocation23_spill]]  ;;  %s8861_s1 = sshll.u32 %s11818_s3, 3 }
 0x120   : > { %s11830_s5 = scalar_lea.vmem [#allocation5], %s8861_s1 }
 0x125   : > { %s557_s11 = sand.u32 1, %s14519_s29  }
 0x126   : > { %s558_s17 = scalar_lea.sflag [#allocation6], %s557_s11 }
 0x127   : > { %11353 = dma.done.wait (%p14518_p3), %s558_s17, 12416  }
 0x128   : > { %11355 = vsyncadd (%p14518_p3), %s558_s17, 4294954880  ;;  %s10018_s14 = smul.u32 768, %s11818_s3  ;;  %s8862_s24 = sshll.u32 %s11818_s3, 8 }
 0x129   : > { %s576_s7 = scalar_lea.sflag [#allocation9], %s557_s11  ;;  %s11840_s16 = scalar_lea.vmem [#allocation8], %s8862_s24 }
 0x12a   : > { %s11838_s21 = scalar_lea.vmem [#allocation7], %s10018_s14 }
 0x12b   : > { %11357 = dma.done.wait (%p14518_p3), %s576_s7, 8192  }
 0x12c   : > { %11359 = vsyncadd (%p14518_p3), %s576_s7, 4294959104  ;;  %s8864_s20 = sshll.u32 %s11818_s3, 9  ;;  %s11847_s30 = scalar_lea.vmem [#allocation10], %s8862_s24 }
 0x12d   : > { %s594_s0 = scalar_lea.sflag [#allocation12], %s557_s11  ;;  %s11849_s19 = scalar_lea.vmem [#allocation11], %s8864_s20 }
 0x12e   : > { %11361 = dma.done.wait (%p14518_p3), %s594_s0, 12288  }
 0x12f   : > { %11363 = vsyncadd (%p14518_p3), %s594_s0, 4294955008  ;;  %s8866_s15 = sshll.u32 %s11818_s3, 10  ;;  %s11856_s12 = scalar_lea.vmem [#allocation13], %s8862_s24 }
 0x130   : > { %s612_s13 = scalar_lea.sflag [#allocation15], %s557_s11  ;;  %s11858_s9 = scalar_lea.vmem [#allocation14], %s8866_s15 }
 0x131   : > { %11365 = dma.done.wait (%p14518_p3), %s612_s13, 32768  }
 0x132   : > { %11367 = vsyncadd (%p14518_p3), %s612_s13, 4294934528  ;;  %s11864_s26 = scalar_lea.vmem [#allocation16], %s8866_s15  ;;  %p8868_p8 = scmp.ne.s32.totalorder %s14519_s29, 0 }
 0x133   : > { %s14520_s23 = sld [smem:[#allocation35_spill]] (!%p8868_p8) }
 0x134   : > { %701 = sbr.rel (%p8868_p8) target bundleno = 320 (0x140), region = 104 }
 0x139   : > { %v702_v0 = vld [vmem:[%s14520_s23] sm:$0xff]  ;;  %v703_v1 = vld [vmem:[%s14520_s23 + $0x8] sm:$0xff]  ;;  %v704_v2 = vld [vmem:[%s14520_s23 + $0x10] sm:$0xff] }
 0x13a   : > { %708 = vst [vmem:[#allocation2 + $0x30] sm:$0xff] %v702_v0  ;;  %714 = vst [vmem:[#allocation2 + $0x8] sm:$0xff] %v702_v0  ;;  %v705_v3 = vld [vmem:[%s14520_s23 + $0x18] sm:$0xff]  ;;  %v706_v4 = vld [vmem:[%s14520_s23 + $0x20] sm:$0xff] }
 0x13b   : > { %709 = vst [vmem:[#allocation2] sm:$0xff] %v703_v1  ;;  %715 = vst [vmem:[#allocation2 + $0x38] sm:$0xff] %v703_v1  ;;  %v707_v5 = vld [vmem:[%s14520_s23 + $0x28] sm:$0xff] }
 0x13c   : > { %710 = vst [vmem:[#allocation2 + $0x58] sm:$0xff] %v704_v2  ;;  %716 = vst [vmem:[#allocation2 + $0x28] sm:$0xff] %v704_v2 }
 0x13d   : > { %711 = vst [vmem:[#allocation2 + $0x18] sm:$0xff] %v705_v3  ;;  %717 = vst [vmem:[#allocation2 + $0x48] sm:$0xff] %v705_v3 }
 0x13e   : > { %712 = vst [vmem:[#allocation2 + $0x50] sm:$0xff] %v706_v4  ;;  %718 = vst [vmem:[#allocation2 + $0x10] sm:$0xff] %v706_v4 }
 0x13f   : > { %713 = vst [vmem:[#allocation2 + $0x20] sm:$0xff] %v707_v5  ;;  %719 = vst [vmem:[#allocation2 + $0x40] sm:$0xff] %v707_v5 }
 0x140 PF: > { %v10168_v24 = vld [vmem:[%s11838_s21 + $0x154] ss:$24 sps:$4 sm:$0xff]   ;;  %v10170_v25 = vld [vmem:[%s11838_s21 + $0x150] ss:$24 sps:$4 sm:$0xff]   ;;  %v10174_v28 = vld [vmem:[%s11838_s21 + $0x124] ss:$24 sps:$4 sm:$0xff]  }
 0x141   : > { %v11885_v6 = vld [vmem:[#allocation2 + $0x30] sm:$0xff]  ;;  %v11901_v14 = vld [vmem:[#allocation2 + $0x8] sm:$0xff]  ;;  %1572 = vmatprep.subr.bf16.mxu0 %v10168_v24  ;;  %v10180_v32 = vld [vmem:[%s11838_s21 + $0xf4] ss:$24 sps:$4 sm:$0xff]   ;;  %vm1761_vm0 = vcmask 523264   ;;  %vm1905_vm5 = vcmask 392192  }
 0x142   : > { %v11887_v7 = vld [vmem:[#allocation2] sm:$0xff]  ;;  %v11903_v15 = vld [vmem:[#allocation2 + $0x38] sm:$0xff]  ;;  %1573 = vmatpush1.bf16.msra.mxu0 %v10170_v25  ;;  %v10176_v30 = vld [vmem:[%s11838_s21 + $0x120] ss:$24 sps:$4 sm:$0xff]   ;;  %s14521_s15 = sld [smem:[#allocation36_spill]]  ;;  %vm4519_vm7 = vcmask 261120  }
 0x143   : > { %v847_v9 = vadd.f32 %v11887_v7, %v11885_v6  ;;  %v11895_v11 = vld [vmem:[#allocation2 + $0x58] sm:$0xff]  ;;  %v11905_v16 = vld [vmem:[#allocation2 + $0x28] sm:$0xff]  ;;  %v856_v21 = vadd.f32 %v11903_v15, %v11901_v14  ;;  %1574 = vmatprep.subr.bf16.mxu0 %v10174_v28 }
 0x144   : > { %v11897_v12 = vld [vmem:[#allocation2 + $0x18] sm:$0xff]  ;;  %v11909_v18 = vld [vmem:[#allocation2 + $0x48] sm:$0xff] }
 0x145   : > { %v11889_v8 = vld [vmem:[#allocation2 + $0x50] sm:$0xff]  ;;  %848 = vadd.xlane.f32.xlu0 %v847_v9  ;;  %v850_v17 = vadd.f32 %v11897_v12, %v11895_v11  ;;  %v859_v22 = vadd.f32 %v11909_v18, %v11905_v16  ;;  %v10171_v26 = vld [vmem:[%s11838_s21 + $0x15c] ss:$24 sps:$4 sm:$0xff]   ;;  %v10173_v27 = vld [vmem:[%s11838_s21 + $0x158] ss:$24 sps:$4 sm:$0xff]  }
 0x146   : > { %v11893_v10 = vld [vmem:[#allocation2 + $0x20] sm:$0xff]  ;;  %v11911_v19 = vld [vmem:[#allocation2 + $0x10] sm:$0xff]  ;;  %1635 = vmatprep.subr.bf16.mxu1 %v10171_v26  ;;  %1575 = vmatpush1.bf16.msra.mxu0 %v10176_v30 }
 0x147   : > { %v853_v13 = vadd.f32 %v11893_v10, %v11889_v8  ;;  %v11913_v20 = vld [vmem:[#allocation2 + $0x40] sm:$0xff]  ;;  %v10177_v29 = vld [vmem:[%s11838_s21 + $0x12c] ss:$24 sps:$4 sm:$0xff]   ;;  %1636 = vmatpush1.bf16.msra.mxu1 %v10173_v27  ;;  %v10179_v31 = vld [vmem:[%s11838_s21 + $0x128] ss:$24 sps:$4 sm:$0xff]   ;;  %1576 = vmatprep.subr.bf16.mxu0 %v10180_v32 }
 0x148   : > { %v862_v23 = vadd.f32 %v11913_v20, %v11911_v19  ;;  %1637 = vmatprep.subr.bf16.mxu1 %v10177_v29  ;;  %v10183_v33 = vld [vmem:[%s11838_s21 + $0xfc] ss:$24 sps:$4 sm:$0xff]   ;;  %v10182_v34 = vld [vmem:[%s11838_s21 + $0xf0] ss:$24 sps:$4 sm:$0xff]   ;;  %v10189_v37 = vld [vmem:[%s11838_s21 + $0xcc] ss:$24 sps:$4 sm:$0xff]  }
 0x149   : > { %854 = vadd.xlane.f32.xlu1 %v853_v13  ;;  %851 = vadd.xlane.f32.xlu0 %v850_v17  ;;  %v10185_v35 = vld [vmem:[%s11838_s21 + $0xf8] ss:$24 sps:$4 sm:$0xff]   ;;  %v10186_v36 = vld [vmem:[%s11838_s21 + $0xc4] ss:$24 sps:$4 sm:$0xff]   ;;  %v10191_v39 = vld [vmem:[%s11838_s21 + $0xc8] ss:$24 sps:$4 sm:$0xff]  }
 0x14a   : > { %v10188_v38 = vld [vmem:[%s11838_s21 + $0xc0] ss:$24 sps:$4 sm:$0xff]   ;;  %1577 = vmatpush1.bf16.msra.mxu0 %v10182_v34  ;;  %v10192_v40 = vld [vmem:[%s11838_s21 + $0x94] ss:$24 sps:$4 sm:$0xff]   ;;  %v10194_v42 = vld [vmem:[%s11838_s21 + $0x90] ss:$24 sps:$4 sm:$0xff]  }
 0x14b   : > { %1638 = vmatpush1.bf16.msra.mxu1 %v10179_v31  ;;  %v10195_v41 = vld [vmem:[%s11838_s21 + $0x9c] ss:$24 sps:$4 sm:$0xff]   ;;  %1578 = vmatprep.subr.bf16.mxu0 %v10186_v36  ;;  %v10197_v43 = vld [vmem:[%s11838_s21 + $0x98] ss:$24 sps:$4 sm:$0xff]   ;;  %v10201_v45 = vld [vmem:[%s11838_s21 + $0x6c] ss:$24 sps:$4 sm:$0xff]  }
 0x14c   : > { %1639 = vmatprep.subr.bf16.mxu1 %v10183_v33  ;;  %v10198_v44 = vld [vmem:[%s11838_s21 + $0x64] ss:$24 sps:$4 sm:$0xff]   ;;  %v10200_v46 = vld [vmem:[%s11838_s21 + $0x60] ss:$24 sps:$4 sm:$0xff]   ;;  %v10204_v48 = vld [vmem:[%s11838_s21 + $0x34] ss:$24 sps:$4 sm:$0xff]  }
 0x14d   : > { %857 = vadd.xlane.f32.xlu1 %v856_v21  ;;  %860 = vadd.xlane.f32.xlu0 %v859_v22  ;;  %v10203_v47 = vld [vmem:[%s11838_s21 + $0x68] ss:$24 sps:$4 sm:$0xff]   ;;  %v10207_v49 = vld [vmem:[%s11838_s21 + $0x3c] ss:$24 sps:$4 sm:$0xff]   ;;  %v10209_v51 = vld [vmem:[%s11838_s21 + $0x38] ss:$24 sps:$4 sm:$0xff]  }
 0x14e   : > { %1579 = vmatpush1.bf16.msra.mxu0 %v10188_v38  ;;  %v10206_v50 = vld [vmem:[%s11838_s21 + $0x30] ss:$24 sps:$4 sm:$0xff]   ;;  %v10210_v52 = vld [vmem:[%s11838_s21 + $0x4] ss:$24 sps:$4 sm:$0xff]   ;;  %v10212_v54 = vld [vmem:[%s11838_s21] ss:$24 sps:$4 sm:$0xff]  }
 0x14f   : > { %1640 = vmatpush1.bf16.msra.mxu1 %v10185_v35  ;;  %1580 = vmatprep.subr.bf16.mxu0 %v10192_v40  ;;  %v10213_v53 = vld [vmem:[%s11838_s21 + $0xc] ss:$24 sps:$4 sm:$0xff]   ;;  %v10215_v55 = vld [vmem:[%s11838_s21 + $0x8] ss:$24 sps:$4 sm:$0xff]   ;;  %v10219_v57 = vld [vmem:[%s11838_s21 + $0x2dc] ss:$24 sps:$4 sm:$0xff]  }
 0x150   : > { %1641 = vmatprep.subr.bf16.mxu1 %v10189_v37  ;;  %v10216_v56 = vld [vmem:[%s11838_s21 + $0x2d4] ss:$24 sps:$4 sm:$0xff]   ;;  %v10218_v58 = vld [vmem:[%s11838_s21 + $0x2d0] ss:$24 sps:$4 sm:$0xff]   ;;  %v10222_v38 = vld [vmem:[%s11838_s21 + $0x2a4] ss:$24 sps:$4 sm:$0xff]  }
 0x151   : > { %863 = vadd.xlane.f32.xlu1 %v862_v23  ;;  %v10221_v37 = vld [vmem:[%s11838_s21 + $0x2d8] ss:$24 sps:$4 sm:$0xff]   ;;  %v10225_v40 = vld [vmem:[%s11838_s21 + $0x2ac] ss:$24 sps:$4 sm:$0xff]  }
 0x152   : > { %1581 = vmatpush1.bf16.msra.mxu0 %v10194_v42  ;;  %v10228_v42 = vld [vmem:[%s11838_s21 + $0x274] ss:$24 sps:$4 sm:$0xff]  }
 0x153   : > { %1642 = vmatpush1.bf16.msra.mxu1 %v10191_v39  ;;  %1582 = vmatprep.subr.bf16.mxu0 %v10198_v44  ;;  %v10224_v39 = vld [vmem:[%s11838_s21 + $0x2a0] ss:$24 sps:$4 sm:$0xff]   ;;  %v10231_v44 = vld [vmem:[%s11838_s21 + $0x27c] ss:$24 sps:$4 sm:$0xff]  }
 0x154   : > { %1643 = vmatprep.subr.bf16.mxu1 %v10195_v41  ;;  %v10227_v41 = vld [vmem:[%s11838_s21 + $0x2a8] ss:$24 sps:$4 sm:$0xff]  }
 0x156   : > { %1583 = vmatpush1.bf16.msra.mxu0 %v10200_v46  ;;  %v10234_v46 = vld [vmem:[%s11838_s21 + $0x244] ss:$24 sps:$4 sm:$0xff]  }
 0x157   : > { %1644 = vmatpush1.bf16.msra.mxu1 %v10197_v43  ;;  %1584 = vmatprep.subr.bf16.mxu0 %v10204_v48  ;;  %v10230_v43 = vld [vmem:[%s11838_s21 + $0x270] ss:$24 sps:$4 sm:$0xff]   ;;  %v10237_v48 = vld [vmem:[%s11838_s21 + $0x24c] ss:$24 sps:$4 sm:$0xff]  }
 0x158   : > { %1645 = vmatprep.subr.bf16.mxu1 %v10201_v45  ;;  %v10233_v45 = vld [vmem:[%s11838_s21 + $0x278] ss:$24 sps:$4 sm:$0xff]  }
 0x15a   : > { %1585 = vmatpush1.bf16.msra.mxu0 %v10206_v50  ;;  %v10240_v50 = vld [vmem:[%s11838_s21 + $0x214] ss:$24 sps:$4 sm:$0xff]  }
 0x15b   : > { %1646 = vmatpush1.bf16.msra.mxu1 %v10203_v47  ;;  %1586 = vmatprep.subr.bf16.mxu0 %v10210_v52  ;;  %v10236_v47 = vld [vmem:[%s11838_s21 + $0x240] ss:$24 sps:$4 sm:$0xff]   ;;  %v10243_v52 = vld [vmem:[%s11838_s21 + $0x21c] ss:$24 sps:$4 sm:$0xff]  }
 0x15c   : > { %1647 = vmatprep.subr.bf16.mxu1 %v10207_v49  ;;  %v10239_v49 = vld [vmem:[%s11838_s21 + $0x248] ss:$24 sps:$4 sm:$0xff]  }
 0x15e   : > { %1587 = vmatpush1.bf16.msra.mxu0 %v10212_v54  ;;  %v10246_v54 = vld [vmem:[%s11838_s21 + $0x1e4] ss:$24 sps:$4 sm:$0xff]  }
 0x15f   : > { %1648 = vmatpush1.bf16.msra.mxu1 %v10209_v51  ;;  %1588 = vmatprep.subr.bf16.mxu0 %v10216_v56  ;;  %v10242_v51 = vld [vmem:[%s11838_s21 + $0x210] ss:$24 sps:$4 sm:$0xff]   ;;  %v10249_v56 = vld [vmem:[%s11838_s21 + $0x1ec] ss:$24 sps:$4 sm:$0xff]  }
 0x160   : > { %1649 = vmatprep.subr.bf16.mxu1 %v10213_v53  ;;  %v10245_v53 = vld [vmem:[%s11838_s21 + $0x218] ss:$24 sps:$4 sm:$0xff]  }
 0x162   : > { %1589 = vmatpush2.bf16.msra.mxu0 %v10218_v58  ;;  %v10252_v58 = vld [vmem:[%s11838_s21 + $0x1b4] ss:$24 sps:$4 sm:$0xff]  }
 0x163   : > { %1650 = vmatpush1.bf16.msra.mxu1 %v10215_v55  ;;  %1590 = vmatprep.subr.bf16.mxu0 %v10222_v38  ;;  %v10248_v55 = vld [vmem:[%s11838_s21 + $0x1e0] ss:$24 sps:$4 sm:$0xff]  }
 0x164   : > { %1651 = vmatprep.subr.bf16.mxu1 %v10219_v57  ;;  %v10251_v57 = vld [vmem:[%s11838_s21 + $0x1e8] ss:$24 sps:$4 sm:$0xff]  }
 0x166   : > { %1591 = vmatpush2.bf16.msra.mxu0 %v10224_v39 }
 0x167   : > { %1652 = vmatpush2.bf16.msra.mxu1 %v10221_v37  ;;  %1592 = vmatprep.subr.bf16.mxu0 %v10228_v42  ;;  %v844_v37 = vld [vmem:[%s11822_s28] ss:$8 sm:$0x3] }
 0x168   : > { %1653 = vmatprep.subr.bf16.mxu1 %v10225_v40 }
 0x16a   : > { %1593 = vmatpush2.bf16.msra.mxu0 %v10230_v43 }
 0x16b   : > { %1654 = vmatpush2.bf16.msra.mxu1 %v10227_v41  ;;  %1594 = vmatprep.subr.bf16.mxu0 %v10234_v46  ;;  %v8869_v41 = vld [vmem:[%s11822_s28 + $0x1] ss:$8 sm:$0x3] }
 0x16c   : > { %1655 = vmatprep.subr.bf16.mxu1 %v10231_v44 }
 0x16e   : > { %1595 = vmatpush2.bf16.msra.mxu0 %v10236_v47 }
 0x16f   : > { %1656 = vmatpush2.bf16.msra.mxu1 %v10233_v45  ;;  %1596 = vmatprep.subr.bf16.mxu0 %v10240_v50 }
 0x170   : > { %1657 = vmatprep.subr.bf16.mxu1 %v10237_v48 }
 0x172   : > { %1597 = vmatpush2.bf16.msra.mxu0 %v10242_v51 }
 0x173   : > { %1658 = vmatpush2.bf16.msra.mxu1 %v10239_v49  ;;  %1598 = vmatprep.subr.bf16.mxu0 %v10246_v54 }
 0x174   : > { %1659 = vmatprep.subr.bf16.mxu1 %v10243_v52 }
 0x176   : > { %1599 = vmatpush2.bf16.msra.mxu0 %v10248_v55 }
 0x177   : > { %1660 = vmatpush2.bf16.msra.mxu1 %v10245_v53  ;;  %1600 = vmatprep.subr.bf16.mxu0 %v10252_v58 }
 0x178   : > { %1661 = vmatprep.subr.bf16.mxu1 %v10249_v56 }
 0x17b   : > { %1662 = vmatpush2.bf16.msra.mxu1 %v10251_v57 }
 0x1ce   : > { %v849_v59 = vpop.xlane.xlu0 %848 }
 0x1cf   : > { %v866_v60 = vmul.f32 0.00390625, %v849_v59  ;;  %v10255_v59 = vld [vmem:[%s11838_s21 + $0x1bc] ss:$24 sps:$4 sm:$0xff]  }
 0x1d0   : > { %1663 = vmatprep.subr.bf16.mxu1 %v10255_v59 }
 0x1d1   : > { %v11957_v63 = vsub.f32 %v11885_v6, %v866_v60  ;;  %v11960_v0 = vsub.f32 %v11887_v7, %v866_v60  ;;  %v10254_v60 = vld [vmem:[%s11838_s21 + $0x1b0] ss:$24 sps:$4 sm:$0xff]  }
 0x1d2   : > { %v855_v61 = vpop.xlane.xlu1 %854  ;;  %v852_v3 = vpop.xlane.xlu0 %851  ;;  %1601 = vmatpush2.bf16.msra.mxu0 %v10254_v60 }
 0x1d3   : > { %v868_v62 = vmul.f32 0.00390625, %v855_v61  ;;  %v867_v4 = vmul.f32 0.00390625, %v852_v3  ;;  %v884_v9 = vmul.f32 %v11957_v63, %v11957_v63  ;;  %v885_v13 = vmul.f32 %v11960_v0, %v11960_v0  ;;  %v10257_v61 = vld [vmem:[%s11838_s21 + $0x1b8] ss:$24 sps:$4 sm:$0xff]   ;;  %v10261_v3 = vld [vmem:[%s11838_s21 + $0x18c] ss:$24 sps:$4 sm:$0xff]  }
 0x1d4   : > { %1664 = vmatpush2.bf16.msra.mxu1 %v10257_v61  ;;  %v10264_v61 = vld [vmem:[%s11838_s21 + $0x160] ss:$24 sps:$4 sm:$0xff]  }
 0x1d5   : > { %v11963_v1 = vsub.f32 %v11889_v8, %v868_v62  ;;  %v11966_v2 = vsub.f32 %v11893_v10, %v868_v62  ;;  %v11977_v17 = vsub.f32 %v11895_v11, %v867_v4  ;;  %v11980_v10 = vsub.f32 %v11897_v12, %v867_v4  ;;  %v10258_v62 = vld [vmem:[%s11838_s21 + $0x184] ss:$24 sps:$4 sm:$0xff]   ;;  %v10260_v4 = vld [vmem:[%s11838_s21 + $0x180] ss:$24 sps:$4 sm:$0xff]   ;;  %1665 = vmatprep.subr.bf16.mxu1 %v10261_v3 }
 0x1d6   : > { %v858_v5 = vpop.xlane.xlu1 %857  ;;  %v896_v21 = vadd.f32 %v885_v13, %v884_v9  ;;  %v861_v24 = vpop.xlane.xlu0 %860  ;;  %1602 = vmatprep.subr.bf16.mxu0 %v10258_v62  ;;  %v10266_v9 = vld [vmem:[%s11838_s21 + $0x164] ss:$24 sps:$4 sm:$0xff]  }
 0x1d7   : > { %v869_v6 = vmul.f32 0.00390625, %v858_v5  ;;  %v888_v7 = vmul.f32 %v11963_v1, %v11963_v1  ;;  %v889_v8 = vmul.f32 %v11966_v2, %v11966_v2  ;;  %v870_v25 = vmul.f32 0.00390625, %v861_v24  ;;  %v10263_v5 = vld [vmem:[%s11838_s21 + $0x188] ss:$24 sps:$4 sm:$0xff]   ;;  %1603 = vmatpush2.bf16.msra.mxu0 %v10260_v4 }
 0x1d8   : > { %897 = vadd.xlane.f32.xlu0 %v896_v21  ;;  %v886_v28 = vmul.f32 %v11977_v17, %v11977_v17  ;;  %v887_v11 = vmul.f32 %v11980_v10, %v11980_v10  ;;  %1666 = vmatpush2.bf16.msra.mxu1 %v10263_v5 }
 0x1d9   : > { %v11983_v22 = vsub.f32 %v11901_v14, %v869_v6  ;;  %v11986_v23 = vsub.f32 %v11903_v15, %v869_v6  ;;  %v902_v27 = vadd.f32 %v889_v8, %v888_v7  ;;  %v11997_v15 = vsub.f32 %v11905_v16, %v870_v25  ;;  %1698 = vmatprep.subr.bf16.mxu0 %v10266_v9  ;;  %v10269_v9 = vld [vmem:[%s11838_s21 + $0x134] ss:$24 sps:$4 sm:$0xff]  }
 0x1da   : > { %v864_v26 = vpop.xlane.xlu1 %863  ;;  %v12000_v30 = vsub.f32 %v11909_v18, %v870_v25  ;;  %v899_v31 = vadd.f32 %v887_v11, %v886_v28 }
 0x1db   : > { %v871_v12 = vmul.f32 0.00390625, %v864_v26  ;;  %v890_v29 = vmul.f32 %v11983_v22, %v11983_v22  ;;  %v891_v14 = vmul.f32 %v11986_v23, %v11986_v23  ;;  %v892_v16 = vmul.f32 %v11997_v15, %v11997_v15 }
 0x1dc   : > { %903 = vadd.xlane.f32.xlu0 %v902_v27  ;;  %900 = vadd.xlane.f32.xlu1 %v899_v31  ;;  %v893_v18 = vmul.f32 %v12000_v30, %v12000_v30  ;;  %v747_v26 = vlaneseq }
 0x1dd   : > { %v12003_v32 = vsub.f32 %v11911_v19, %v871_v12  ;;  %v12006_v33 = vsub.f32 %v11913_v20, %v871_v12  ;;  %v905_v34 = vadd.f32 %v891_v14, %v890_v29 }
 0x1de   : > { %v908_v20 = vadd.f32 %v893_v18, %v892_v16  ;;  %v12047_v31 = vshrl.u32 %v747_v26, 7 }
 0x1df   : > { %v894_v35 = vmul.f32 %v12003_v32, %v12003_v32  ;;  %v895_v19 = vmul.f32 %v12006_v33, %v12006_v33 }
 0x1e0   : > { %906 = vadd.xlane.f32.xlu1 %v905_v34  ;;  %909 = vadd.xlane.f32.xlu0 %v908_v20  ;;  %v12053_v20 = vsub.s32 0, %v12047_v31 }
 0x1e1   : > { %v911_v36 = vadd.f32 %v895_v19, %v894_v35  ;;  %v12050_v19 = vsub.s32 1, %v12047_v31 }
 0x1e2   : > { %v12058_v40 = vrot.slane %v844_v37, %v12053_v20  ;;  %v12066_v48 = vrot.slane %v8869_v41, %v12053_v20 }
 0x1e3   : > { %v952_v39 = vrot.slane %v844_v37, %v12050_v19  ;;  %v975_v46 = vrot.slane %v8869_v41, %v12050_v19  ;;  %v10279_v41 = vld [vmem:[%s11838_s21 + $0x70] ss:$24 sps:$4 sm:$0xff]  }
 0x1e4   : > { %912 = vadd.xlane.f32.xlu1 %v911_v36 }
 0x261   : > { %v898_v13 = vpop.xlane.xlu0 %897 }
 0x262   : > { %v914_v6 = vmul.f32 0.00390625, %v898_v13 }
 0x264   : > { %v920_v7 = vadd.f32 1e-05, %v914_v6 }
 0x265   : > { %v901_v8 = vpop.xlane.xlu1 %900  ;;  %v904_v21 = vpop.xlane.xlu0 %903 }
 0x266   : > { %10744 = vrsqrt.f32 %v920_v7  ;;  %v915_v24 = vmul.f32 0.00390625, %v901_v8  ;;  %v916_v25 = vmul.f32 0.00390625, %v904_v21  ;;  %v10267_v7 = vld [vmem:[%s11838_s21 + $0x130] ss:$24 sps:$4 sm:$0xff]  }
 0x268   : > { %v921_v27 = vadd.f32 1e-05, %v915_v24  ;;  %v922_v28 = vadd.f32 1e-05, %v916_v25  ;;  %v10272_v24 = vld [vmem:[%s11838_s21 + $0x104] ss:$24 sps:$4 sm:$0xff]  }
 0x269   : > { %v907_v11 = vpop.xlane.xlu1 %906  ;;  %v910_v12 = vpop.xlane.xlu0 %909 }
 0x26a   : > { %10746 = vrsqrt.f32 %v921_v27  ;;  %v917_v29 = vmul.f32 0.00390625, %v907_v11  ;;  %v918_v14 = vmul.f32 0.00390625, %v910_v12  ;;  %v10270_v12 = vld [vmem:[%s11838_s21 + $0x100] ss:$24 sps:$4 sm:$0xff]  }
 0x26b   : > { %10748 = vrsqrt.f32 %v922_v28 }
 0x26c   : > { %v923_v34 = vadd.f32 1e-05, %v917_v29  ;;  %v924_v16 = vadd.f32 1e-05, %v918_v14 }
 0x26d   : > { %v913_v18 = vpop.xlane.xlu1 %912 }
 0x26e   : > { %10750 = vrsqrt.f32 %v923_v34  ;;  %v919_v35 = vmul.f32 0.00390625, %v913_v18  ;;  %v10275_v34 = vld [vmem:[%s11838_s21 + $0xd4] ss:$24 sps:$4 sm:$0xff]   ;;  %v10273_v18 = vld [vmem:[%s11838_s21 + $0xd0] ss:$24 sps:$4 sm:$0xff]  }
 0x26f   : > { %10752 = vrsqrt.f32 %v924_v16 }
 0x270   : > { %v925_v36 = vadd.f32 1e-05, %v919_v35  ;;  %v10278_v35 = vld [vmem:[%s11838_s21 + $0xa4] ss:$24 sps:$4 sm:$0xff]  }
 0x272   : > { %10754 = vrsqrt.f32 %v925_v36 }
 0x273   : > { %v10745_v38 = vpop.eup %10744 }
 0x274   : > { %v933_v42 = vmul.f32 %v10745_v38, %v11960_v0  ;;  %v932_v43 = vmul.f32 %v10745_v38, %v11957_v63  ;;  %v10276_v38 = vld [vmem:[%s11838_s21 + $0xa0] ss:$24 sps:$4 sm:$0xff]  }
 0x276   : > { %v956_v45 = vmul.f32 %v952_v39, %v933_v42  ;;  %v955_v47 = vmul.f32 %v12058_v40, %v932_v43  ;;  %v10284_v42 = vld [vmem:[%s11838_s21 + $0x44] ss:$24 sps:$4 sm:$0xff]   ;;  %v10282_v43 = vld [vmem:[%s11838_s21 + $0x40] ss:$24 sps:$4 sm:$0xff]  }
 0x277   : > { %v10747_v44 = vpop.eup %10746 }
 0x278   : > { %v10749_v49 = vpop.eup %10748  ;;  %v935_v50 = vmul.f32 %v10747_v44, %v11980_v10  ;;  %v934_v51 = vmul.f32 %v10747_v44, %v11977_v17  ;;  %v979_v54 = vadd.f32 %v975_v46, %v956_v45  ;;  %v978_v55 = vadd.f32 %v12066_v48, %v955_v47  ;;  %v10287_v44 = vld [vmem:[%s11838_s21 + $0x14] ss:$24 sps:$4 sm:$0xff]   ;;  %v10285_v45 = vld [vmem:[%s11838_s21 + $0x10] ss:$24 sps:$4 sm:$0xff]   ;;  %v10288_v47 = vld [vmem:[%s11838_s21 + $0x2e0] ss:$24 sps:$4 sm:$0xff]  }
 0x279   : > { %v937_v52 = vmul.f32 %v10749_v49, %v11966_v2  ;;  %v936_v17 = vmul.f32 %v10749_v49, %v11963_v1  ;;  %v10291_v49 = vld [vmem:[%s11838_s21 + $0x2b0] ss:$24 sps:$4 sm:$0xff]  }
 0x27a   : > { %v958_v0 = vmul.f32 %v952_v39, %v935_v50  ;;  %v957_v63 = vmul.f32 %v12058_v40, %v934_v51  ;;  %v10296_v50 = vld [vmem:[%s11838_s21 + $0x284] ss:$24 sps:$4 sm:$0xff]   ;;  %v10294_v51 = vld [vmem:[%s11838_s21 + $0x280] ss:$24 sps:$4 sm:$0xff]  }
 0x27b   : > { %v10751_v53 = vpop.eup %10750  ;;  %v960_v56 = vmul.f32 %v952_v39, %v937_v52  ;;  %v959_v1 = vmul.f32 %v12058_v40, %v936_v17  ;;  %v10299_v52 = vld [vmem:[%s11838_s21 + $0x254] ss:$24 sps:$4 sm:$0xff]  }
 0x27c   : > { %v10753_v57 = vpop.eup %10752  ;;  %v981_v58 = vadd.f32 %v975_v46, %v958_v0  ;;  %v980_v59 = vadd.f32 %v12066_v48, %v957_v63  ;;  %v939_v10 = vmul.f32 %v10751_v53, %v11986_v23  ;;  %v938_v60 = vmul.f32 %v10751_v53, %v11983_v22  ;;  %v10297_v0 = vld [vmem:[%s11838_s21 + $0x250] ss:$24 sps:$4 sm:$0xff]   ;;  %v10302_v63 = vld [vmem:[%s11838_s21 + $0x224] ss:$24 sps:$4 sm:$0xff]   ;;  %v10300_v53 = vld [vmem:[%s11838_s21 + $0x220] ss:$24 sps:$4 sm:$0xff]  }
 0x27d   : > { %v941_v4 = vmul.f32 %v10753_v57, %v12000_v30  ;;  %v983_v23 = vadd.f32 %v975_v46, %v960_v56  ;;  %v982_v28 = vadd.f32 %v12066_v48, %v959_v1  ;;  %v940_v11 = vmul.f32 %v10753_v57, %v11997_v15  ;;  %v10308_v56 = vld [vmem:[%s11838_s21 + $0x1c4] ss:$24 sps:$4 sm:$0xff]   ;;  %v10306_v57 = vld [vmem:[%s11838_s21 + $0x1c0] ss:$24 sps:$4 sm:$0xff]  }
 0x27e   : > { %v1087_v2 = vpack.c.bf16 %v981_v58, %v979_v54  ;;  %v12078_v62 = vpack.c.bf16 %v980_v59, %v978_v55  ;;  %v962_v3 = vmul.f32 %v952_v39, %v939_v10  ;;  %v961_v13 = vmul.f32 %v12058_v40, %v938_v60  ;;  %v10305_v54 = vld [vmem:[%s11838_s21 + $0x1f4] ss:$24 sps:$4 sm:$0xff]   ;;  %v10303_v55 = vld [vmem:[%s11838_s21 + $0x1f0] ss:$24 sps:$4 sm:$0xff]  }
 0x27f   : > { %v10755_v5 = vpop.eup %10754  ;;  %v964_v8 = vmul.f32 %v952_v39, %v941_v4  ;;  %v963_v15 = vmul.f32 %v12058_v40, %v940_v11  ;;  %v10311_v58 = vld [vmem:[%s11838_s21 + $0x194] ss:$24 sps:$4 sm:$0xff]   ;;  %v10309_v59 = vld [vmem:[%s11838_s21 + $0x190] ss:$24 sps:$4 sm:$0xff]  }
 0x280   : > { %1604 = vmatprep.mubr.bf16.mxu0 %v1087_v2  ;;  %1667 = vmatprep.mubr.bf16.mxu1 %v1087_v2  ;;  %v985_v6 = vadd.f32 %v975_v46, %v962_v3  ;;  %v943_v22 = vmul.f32 %v10755_v5, %v12006_v33  ;;  %v984_v25 = vadd.f32 %v12066_v48, %v961_v13 }
 0x281   : > { %1605 = vmatmul.mubr.bf16.vlgmr.msra.gmra.mxu0 %v12078_v62  ;;  %1668 = vmatmul.mubr.bf16.vlgmr.msra.gmra.mxu1 %v12078_v62  ;;  %v942_v33 = vmul.f32 %v10755_v5, %v12003_v32  ;;  %v987_v29 = vadd.f32 %v975_v46, %v964_v8  ;;  %v986_v37 = vadd.f32 %v12066_v48, %v963_v15 }
 0x282   : > { %1699 = vmatpush1.bf16.msra.mxu0 %v10264_v61  ;;  %v12087_v30 = vpack.c.bf16 %v985_v6, %v983_v23  ;;  %v966_v21 = vmul.f32 %v952_v39, %v943_v22  ;;  %v12098_v14 = vpack.c.bf16 %v984_v25, %v982_v28 }
 0x283   : > { %1700 = vmatprep.subr.bf16.mxu0 %v10269_v9  ;;  %v965_v32 = vmul.f32 %v12058_v40, %v942_v33  ;;  %v10281_v40 = vld [vmem:[%s11838_s21 + $0x74] ss:$24 sps:$4 sm:$0xff]  }
 0x284   : > { %1614 = vmatprep.mubr.bf16.mxu0 %v12087_v30  ;;  %1677 = vmatprep.mubr.bf16.mxu1 %v12087_v30  ;;  %v989_v27 = vadd.f32 %v975_v46, %v966_v21  ;;  %v10290_v46 = vld [vmem:[%s11838_s21 + $0x2e4] ss:$24 sps:$4 sm:$0xff]  }
 0x285   : > { %v988_v36 = vadd.f32 %v12066_v48, %v965_v32  ;;  %v10293_v48 = vld [vmem:[%s11838_s21 + $0x2b4] ss:$24 sps:$4 sm:$0xff]   ;;  %s11401_s21 = smov 64  }
 0x286   : > { %1701 = vmatpush1.bf16.msra.mxu0 %v10267_v7  ;;  %v12102_v16 = vpack.c.bf16 %v989_v27, %v987_v29 }
 0x287   : > { %1702 = vmatprep.subr.bf16.mxu0 %v10272_v24  ;;  %v1090_v39 = vpack.c.bf16 %v988_v36, %v986_v37 }
 0x289   : > { %1615 = vmatmul.mubr.bf16.gmra.mxu0 %v12098_v14  ;;  %1678 = vmatmul.mubr.bf16.gmra.mxu1 %v12098_v14 }
 0x28a   : > { %1703 = vmatpush1.bf16.msra.mxu0 %v10270_v12  ;;  %1624 = vmatprep.mubr.bf16.mxu0 %v12102_v16 }
 0x28b   : > { %1687 = vmatprep.mubr.bf16.mxu1 %v12102_v16  ;;  %1704 = vmatprep.subr.bf16.mxu0 %v10275_v34 }
 0x28e   : > { %1705 = vmatpush1.bf16.msra.mxu0 %v10273_v18 }
 0x28f   : > { %1706 = vmatprep.subr.bf16.mxu0 %v10278_v35 }
 0x291   : > { %1625 = vmatmul.mubr.bf16.gmra.mxu0 %v1090_v39  ;;  %1688 = vmatmul.mubr.bf16.gmra.mxu1 %v1090_v39 }
 0x292   : > { %1707 = vmatpush1.bf16.msra.mxu0 %v10276_v38  ;;  %1730 = vmatprep.mubr.bf16.mxu0 %v1087_v2 }
 0x293   : > { %1708 = vmatprep.subr.bf16.mxu0 %v10281_v40 }
 0x296   : > { %1709 = vmatpush1.bf16.msra.mxu0 %v10279_v41 }
 0x297   : > { %1710 = vmatprep.subr.bf16.mxu0 %v10284_v42 }
 0x29a   : > { %1711 = vmatpush1.bf16.msra.mxu0 %v10282_v43 }
 0x29b   : > { %1712 = vmatprep.subr.bf16.mxu0 %v10287_v44 }
 0x29e   : > { %1713 = vmatpush1.bf16.msra.mxu0 %v10285_v45 }
 0x29f   : > { %1714 = vmatprep.subr.bf16.mxu0 %v10290_v46 }
 0x2a2   : > { %1715 = vmatpush2.bf16.msra.mxu0 %v10288_v47 }
 0x2a3   : > { %1716 = vmatprep.subr.bf16.mxu0 %v10293_v48 }
 0x2a6   : > { %1717 = vmatpush2.bf16.msra.mxu0 %v10291_v49 }
 0x2a7   : > { %1718 = vmatprep.subr.bf16.mxu0 %v10296_v50  ;;  %v12274_v50 = vand.u32 127, %v747_v26 }
 0x2a9   : > { %vm768_vm1 = vcmp.lt.s32.totalorder %v12274_v50, 19  ;;  %vm794_vm2 = vcmp.ge.s32.totalorder %v12274_v50, 24  ;;  %vm795_vm3 = vcmp.lt.s32.totalorder %v12274_v50, 43  ;;  %vm815_vm6 = vcmp.lt.s32.totalorder %v12274_v50, 16 }
 0x2aa   : > { %1719 = vmatpush2.bf16.msra.mxu0 %v10294_v51  ;;  %vm796_vm4 = vmand %vm794_vm2, %vm795_vm3  ;;  %vm823_vm8 = vcmp.ge.s32.totalorder %v12274_v50, 16  ;;  %vm824_vm9 = vcmp.lt.s32.totalorder %v12274_v50, 32 }
 0x2ab   : > { %1720 = vmatprep.subr.bf16.mxu0 %v10299_v52  ;;  %v11402_v52 = vmov -1e+30   ;;  %vm825_vm10 = vmand %vm823_vm8, %vm824_vm9 }
 0x2ae   : > { %1721 = vmatpush2.bf16.msra.mxu0 %v10297_v0  ;;  %v12280_v0 = vsel %vm768_vm1, 0.0, %v11402_v52 }
 0x2af   : > { %1722 = vmatprep.subr.bf16.mxu0 %v10302_v63 }
 0x2b2   : > { %1723 = vmatpush2.bf16.msra.mxu0 %v10300_v53 }
 0x2b3   : > { %1724 = vmatprep.subr.bf16.mxu0 %v10305_v54 }
 0x2b6   : > { %1725 = vmatpush2.bf16.msra.mxu0 %v10303_v55 }
 0x2b7   : > { %1726 = vmatprep.subr.bf16.mxu0 %v10308_v56  ;;  %v12286_v56 = vsel %vm796_vm4, 0.0, %v11402_v52 }
 0x2ba   : > { %1727 = vmatpush2.bf16.msra.mxu0 %v10306_v57 }
 0x2bb   : > { %1728 = vmatprep.subr.bf16.mxu0 %v10311_v58 }
 0x2be   : > { %1729 = vmatpush2.bf16.msra.mxu0 %v10309_v59 }
 0x2c1   : > { %1731 = vmatmul.mubr.bf16.vlgmr.msra.gmra.mxu0 %v12078_v62 }
 0x2c2   : > { %1740 = vmatprep.mubr.bf16.mxu0 %v12087_v30 }
 0x2c9   : > { %1741 = vmatmul.mubr.bf16.gmra.mxu0 %v12098_v14 }
 0x2ca   : > { %1750 = vmatprep.mubr.bf16.mxu0 %v12102_v16 }
 0x2d1   : > { %1751 = vmatmul.mubr.bf16.gmra.mxu0 %v1090_v39 }
 0x341   : > { %v1606_v10 = vpop.f32.mrf.mxu0  ;;  %v1669_v60 = vpop.f32.mrf.mxu1 }
 0x342   : > { %9724 = vmatprep.mubr.msk.f32.mxu1 %vm1761_vm0, %v1606_v10 }
 0x343   : > { %v12141_v17 = vpop.f32.mrf.mxu1  ;;  %v12143_v2 = vpop.f32.mrf.mxu0 }
 0x345   : > { %v1673_v61 = vpop.f32.mrf.mxu1  ;;  %v1610_v62 = vpop.f32.mrf.mxu0 }
 0x347   : > { %v12145_v3 = vpop.f32.mrf.mxu1  ;;  %v12149_v9 = vpop.f32.mrf.mxu0 }
 0x349   : > { %v1679_v4 = vpop.f32.mrf.mxu1  ;;  %v1616_v6 = vpop.f32.mrf.mxu0 }
 0x34b   : > { %v12147_v5 = vpop.f32.mrf.mxu1  ;;  %v12156_v30 = vpop.f32.mrf.mxu0 }
 0x34d   : > { %v1683_v13 = vpop.f32.mrf.mxu1  ;;  %v1620_v8 = vpop.f32.mrf.mxu0 }
 0x34f   : > { %v12151_v23 = vpop.f32.mrf.mxu1  ;;  %v12166_v21 = vpop.f32.mrf.mxu0 }
 0x351   : > { %v1689_v22 = vpop.f32.mrf.mxu1  ;;  %v1626_v24 = vpop.f32.mrf.mxu0 }
 0x352   : > { %2105 = vrot.lane.b32.xlu1 %v1689_v22, %s11401_s21 }
 0x353   : > { %v12154_v1 = vpop.f32.mrf.mxu1  ;;  %v12176_v25 = vpop.f32.mrf.mxu0 }
 0x355   : > { %v1693_v7 = vpop.f32.mrf.mxu1  ;;  %v1630_v33 = vpop.f32.mrf.mxu0 }
 0x356   : > { %2103 = vrot.lane.b32.xlu1 %v1683_v13, %s11401_s21  ;;  %2107 = vrot.lane.b32.xlu0 %v1693_v7, %s11401_s21 }
 0x357   : > { %9712 = vmatprep.subr.msk.mxu1 %vm1761_vm0, %v1693_v7  ;;  %v12190_v27 = vpop.f32.mrf.mxu0  ;;  %v12226_v44 = vpop.f32.mrf.mxu1 }
 0x358   : > { %9713 = vmatpush3.xpose.msk.msra.mxu1 %vm1761_vm0, %v1693_v7 }
 0x359   : > { %9714 = vmatprep.subr.msk.mxu1 %vm1761_vm0, %v1689_v22 }
 0x35a   : > { %2101 = vrot.lane.b32.xlu1 %v1679_v4, %s11401_s21  ;;  %2099 = vrot.lane.b32.xlu0 %v1673_v61, %s11401_s21 }
 0x35c   : > { %9715 = vmatpush3.xpose.msk.msra.mxu1 %vm1761_vm0, %v1689_v22 }
 0x35d   : > { %9716 = vmatprep.subr.msk.mxu1 %vm1761_vm0, %v1683_v13 }
 0x35e   : > { %2097 = vrot.lane.b32.xlu1 %v1669_v60, %s11401_s21  ;;  %2085 = vrot.lane.b32.xlu0 %v1606_v10, %s11401_s21 }
 0x360   : > { %9717 = vmatpush3.xpose.msk.msra.mxu1 %vm1761_vm0, %v1683_v13 }
 0x361   : > { %9718 = vmatprep.subr.msk.mxu1 %vm1761_vm0, %v1679_v4 }
 0x362   : > { %2087 = vrot.lane.b32.xlu1 %v1610_v62, %s11401_s21  ;;  %2089 = vrot.lane.b32.xlu0 %v1616_v6, %s11401_s21 }
 0x364   : > { %9719 = vmatpush3.xpose.msk.msra.mxu1 %vm1761_vm0, %v1679_v4 }
 0x365   : > { %9720 = vmatprep.subr.msk.mxu1 %vm1761_vm0, %v1673_v61 }
 0x366   : > { %2091 = vrot.lane.b32.xlu1 %v1620_v8, %s11401_s21  ;;  %2093 = vrot.lane.b32.xlu0 %v1626_v24, %s11401_s21 }
 0x368   : > { %9721 = vmatpush3.xpose.msk.msra.mxu1 %vm1761_vm0, %v1673_v61 }
 0x369   : > { %9722 = vmatprep.subr.msk.mxu1 %vm1761_vm0, %v1669_v60 }
 0x36a   : > { %2095 = vrot.lane.b32.xlu1 %v1630_v33, %s11401_s21 }
 0x36c   : > { %9723 = vmatpush3.xpose.msk.msra.mxu1 %vm1761_vm0, %v1669_v60 }
 0x36f   : > { %9725 = vmatmul.mubr.msk.f32.vlgmr.msra.gmra.mxu1 %vm1761_vm0, %v1610_v62 }
 0x370   : > { %9727 = vmatprep.mubr.msk.f32.mxu1 %vm1761_vm0, %v1616_v6 }
 0x373   : > { %9728 = vmatmul.mubr.msk.f32.gmra.mxu1 %vm1761_vm0, %v1620_v8 }
 0x374   : > { %9730 = vmatprep.mubr.msk.f32.mxu1 %vm1761_vm0, %v1626_v24 }
 0x377   : > { %9731 = vmatmul.mubr.msk.f32.gmra.mxu1 %vm1761_vm0, %v1630_v33 }
 0x381   : > { %v12192_v28 = vpop.f32.mrf.mxu0 }
 0x383   : > { %v12194_v11 = vpop.f32.mrf.mxu0 }
 0x385   : > { %v12196_v12 = vpop.f32.mrf.mxu0 }
 0x387   : > { %v12198_v29 = vpop.f32.mrf.mxu0 }
 0x389   : > { %v1742_v14 = vpop.f32.mrf.mxu0 }
 0x38a   : > { %2316 = vrot.lane.b32.xlu1 %v1742_v14, %s11401_s21 }
 0x38b   : > { %v12201_v34 = vpop.f32.mrf.mxu0 }
 0x38d   : > { %v1746_v32 = vpop.f32.mrf.mxu0 }
 0x38e   : > { %2318 = vrot.lane.b32.xlu1 %v1746_v32, %s11401_s21 }
 0x38f   : > { %v12204_v16 = vpop.f32.mrf.mxu0 }
 0x391   : > { %v1752_v15 = vpop.f32.mrf.mxu0 }
 0x392   : > { %2320 = vrot.lane.b32.xlu1 %v1752_v15, %s11401_s21 }
 0x393   : > { %v12207_v18 = vpop.f32.mrf.mxu0 }
 0x395   : > { %v1756_v35 = vpop.f32.mrf.mxu0 }
 0x396   : > { %2322 = vrot.lane.b32.xlu0 %v1756_v35, %s11401_s21  ;;  %9733 = vmatprep.subr.mxu1 %v1756_v35 }
 0x397   : > { %9734 = vmatpush3.msra.mxu1 %v1756_v35  ;;  %v12315_v35 = vpop.f32.mrf.mxu0 }
 0x398   : > { %9735 = vmatprep.subr.mxu1 %v1752_v15 }
 0x399   : > { %9736 = vmatpush3.msra.mxu1 %v1752_v15 }
 0x39a   : > { %9737 = vmatprep.subr.mxu1 %v1746_v32 }
 0x39b   : > { %9738 = vmatpush3.msra.mxu1 %v1746_v32 }
 0x39c   : > { %9739 = vmatprep.subr.mxu1 %v1742_v14 }
 0x39d   : > { %9740 = vmatpush3.msra.mxu1 %v1742_v14 }
 0x39e   : > { %9741 = vmatprep.subr.mxu1 %v12196_v12 }
 0x39f   : > { %9742 = vmatpush3.msra.mxu1 %v12196_v12 }
 0x3a0   : > { %9743 = vmatprep.subr.mxu1 %v12192_v28 }
 0x3a1   : > { %9744 = vmatpush3.msra.mxu1 %v12192_v28 }
 0x3c4   : > { %v2106_v36 = vpop.permute.xlu1 %2105 }
 0x3c8   : > { %v2108_v37 = vpop.permute.xlu0 %2107  ;;  %v2104_v38 = vpop.permute.xlu1 %2103 }
 0x3c9   : > { %9754 = vmatprep.subr.msk.mxu0 %vm1761_vm0, %v2108_v37 }
 0x3ca   : > { %9755 = vmatpush3.xpose.msk.msra.mxu0 %vm1761_vm0, %v2108_v37 }
 0x3cb   : > { %9756 = vmatprep.subr.msk.mxu0 %vm1761_vm0, %v2106_v36 }
 0x3cc   : > { %v2100_v39 = vpop.permute.xlu0 %2099  ;;  %v2102_v40 = vpop.permute.xlu1 %2101 }
 0x3ce   : > { %9757 = vmatpush3.xpose.msk.msra.mxu0 %vm1761_vm0, %v2106_v36 }
 0x3cf   : > { %9758 = vmatprep.subr.msk.mxu0 %vm1761_vm0, %v2104_v38 }
 0x3d0   : > { %v2086_v41 = vpop.permute.xlu0 %2085  ;;  %v2098_v42 = vpop.permute.xlu1 %2097 }
 0x3d1   : > { %9766 = vmatprep.mubr.msk.f32.mxu0 %vm1761_vm0, %v2086_v41 }
 0x3d2   : > { %9759 = vmatpush3.xpose.msk.msra.mxu0 %vm1761_vm0, %v2104_v38 }
 0x3d3   : > { %9760 = vmatprep.subr.msk.mxu0 %vm1761_vm0, %v2102_v40 }
 0x3d4   : > { %v2088_v43 = vpop.permute.xlu1 %2087  ;;  %v2090_v45 = vpop.permute.xlu0 %2089 }
 0x3d6   : > { %9761 = vmatpush3.xpose.msk.msra.mxu0 %vm1761_vm0, %v2102_v40 }
 0x3d7   : > { %9762 = vmatprep.subr.msk.mxu0 %vm1761_vm0, %v2100_v39 }
 0x3d8   : > { %v2092_v46 = vpop.permute.xlu1 %2091  ;;  %v2094_v47 = vpop.permute.xlu0 %2093 }
 0x3da   : > { %9763 = vmatpush3.xpose.msk.msra.mxu0 %vm1761_vm0, %v2100_v39 }
 0x3db   : > { %9764 = vmatprep.subr.msk.mxu0 %vm1761_vm0, %v2098_v42 }
 0x3dc   : > { %v2096_v48 = vpop.permute.xlu1 %2095 }
 0x3de   : > { %9765 = vmatpush3.xpose.msk.msra.mxu0 %vm1761_vm0, %v2098_v42 }
 0x3df   : > { %9796 = vmatprep.subr.msk.mxu0 %vm1761_vm0, %v12226_v44 }
 0x3e1   : > { %9767 = vmatmul.mubr.msk.f32.vlgmr.msra.gmra.mxu0 %vm1761_vm0, %v2088_v43 }
 0x3e2   : > { %9769 = vmatprep.mubr.msk.f32.mxu0 %vm1761_vm0, %v2090_v45  ;;  %9797 = vmatpush3.xpose.msk.msra.mxu0 %vm1761_vm0, %v12226_v44 }
 0x3e3   : > { %9798 = vmatprep.subr.msk.mxu0 %vm1761_vm0, %v12154_v1 }
 0x3e5   : > { %9770 = vmatmul.mubr.msk.f32.gmra.mxu0 %vm1761_vm0, %v2092_v46 }
 0x3e6   : > { %9772 = vmatprep.mubr.msk.f32.mxu0 %vm1761_vm0, %v2094_v47  ;;  %9799 = vmatpush3.xpose.msk.msra.mxu0 %vm1761_vm0, %v12154_v1 }
 0x3e7   : > { %9800 = vmatprep.subr.msk.mxu0 %vm1761_vm0, %v12151_v23 }
 0x3e9   : > { %9773 = vmatmul.mubr.msk.f32.gmra.mxu0 %vm1761_vm0, %v2096_v48 }
 0x3ea   : > { %9801 = vmatpush3.xpose.msk.msra.mxu0 %vm1761_vm0, %v12151_v23  ;;  %9808 = vmatprep.mubr.msk.f32.mxu0 %vm1761_vm0, %v12143_v2 }
 0x3eb   : > { %9802 = vmatprep.subr.msk.mxu0 %vm1761_vm0, %v12147_v5 }
 0x3ee   : > { %9803 = vmatpush3.xpose.msk.msra.mxu0 %vm1761_vm0, %v12147_v5 }
 0x3ef   : > { %9804 = vmatprep.subr.msk.mxu0 %vm1761_vm0, %v12145_v3 }
 0x3f2   : > { %9805 = vmatpush3.xpose.msk.msra.mxu0 %vm1761_vm0, %v12145_v3 }
 0x3f3   : > { %9806 = vmatprep.subr.msk.mxu0 %vm1761_vm0, %v12141_v17 }
 0x3f6   : > { %9807 = vmatpush3.xpose.msk.msra.mxu0 %vm1761_vm0, %v12141_v17 }
 0x3f9   : > { %9809 = vmatmul.mubr.msk.f32.vlgmr.msra.gmra.mxu0 %vm1761_vm0, %v12149_v9 }
 0x3fa   : > { %9811 = vmatprep.mubr.msk.f32.mxu0 %vm1761_vm0, %v12156_v30 }
 0x3fd   : > { %9812 = vmatmul.mubr.msk.f32.gmra.mxu0 %vm1761_vm0, %v12166_v21 }
 0x3fe   : > { %9814 = vmatprep.mubr.msk.f32.mxu0 %vm1761_vm0, %v12176_v25 }
 0x401   : > { %9815 = vmatmul.mubr.msk.f32.gmra.mxu0 %vm1761_vm0, %v12190_v27 }
 0x408   : > { %v12270_v49 = vpop.permute.xlu0 %2322 }
 0x409   : > { %9775 = vmatprep.subr.mxu1 %v12270_v49 }
 0x42f   : > { %v9726_v51 = vpop.f32.mrf.mxu1 }
 0x430   : > { %v1894_v63 = vmul.f32 0.125, %v9726_v51 }
 0x431   : > { %v1864_v53 = vpop.f32.mrf.mxu1 }
 0x432   : > { %v1893_v54 = vmul.f32 0.125, %v1864_v53  ;;  %v12283_v55 = vadd.f32 %v1894_v63, %v12280_v0 }
 0x433   : > { %v9729_v26 = vpop.f32.mrf.mxu1 }
 0x434   : > { %v1896_v57 = vmul.f32 0.125, %v9729_v26  ;;  %v1909_v58 = vsel %vm1905_vm5, %v12283_v55, -inf  ;;  %v12291_v59 = vadd.f32 %v1893_v54, %v12280_v0 }
 0x435   : > { %v1874_v10 = vpop.f32.mrf.mxu1  ;;  %1910 = vmax.xlane.f32.xlu1 %v1909_v58 }
 0x436   : > { %v1895_v60 = vmul.f32 0.125, %v1874_v10  ;;  %v1906_v61 = vsel %vm1905_vm5, %v12291_v59, -inf  ;;  %v12296_v62 = vadd.f32 %v1896_v57, %v12286_v56 }
 0x437   : > { %v9732_v4 = vpop.f32.mrf.mxu1  ;;  %1907 = vmax.xlane.f32.xlu0 %v1906_v61 }
 0x438   : > { %v1898_v13 = vmul.f32 0.125, %v9732_v4  ;;  %v1915_v7 = vsel %vm1905_vm5, %v12296_v62, -inf  ;;  %v12304_v24 = vadd.f32 %v1895_v60, %v12280_v0 }
 0x439   : > { %v1884_v6 = vpop.f32.mrf.mxu1 }
 0x43a   : > { %v1897_v22 = vmul.f32 0.125, %v1884_v6  ;;  %v12301_v8 = vadd.f32 %v1898_v13, %v12286_v56  ;;  %v1912_v14 = vsel %vm1905_vm5, %v12304_v24, -inf }
 0x43b   : > { %1916 = vmax.xlane.f32.xlu0 %v1915_v7 }
 0x43c   : > { %v1921_v33 = vsel %vm1905_vm5, %v12301_v8, -inf  ;;  %v12311_v32 = vadd.f32 %v1897_v22, %v12286_v56 }
 0x43d   : > { %1922 = vmax.xlane.f32.xlu1 %v1921_v33 }
 0x43e   : > { %v1918_v15 = vsel %vm1905_vm5, %v12311_v32, -inf }
 0x43f   : > { %1913 = vmax.xlane.f32.xlu0 %v1912_v14 }
 0x443   : > { %1919 = vmax.xlane.f32.xlu0 %v1918_v15 }
 0x4a1   : > { %v9768_v36 = vpop.f32.mrf.mxu0 }
 0x4a2   : > { %v2229_v37 = vmul.f32 0.125, %v9768_v36 }
 0x4a3   : > { %v2199_v38 = vpop.f32.mrf.mxu0 }
 0x4a4   : > { %v2228_v39 = vmul.f32 0.125, %v2199_v38  ;;  %v12318_v40 = vadd.f32 %v2229_v37, %v12280_v0  ;;  %v12357_v38 = vpop.permute.xlu1 %2316 }
 0x4a5   : > { %v9771_v41 = vpop.f32.mrf.mxu0 }
 0x4a6   : > { %v2231_v42 = vmul.f32 0.125, %v9771_v41  ;;  %v2243_v43 = vsel %vm1905_vm5, %v12318_v40, -inf  ;;  %v12323_v45 = vadd.f32 %v2228_v39, %v12280_v0 }
 0x4a7   : > { %2244 = vmax.xlane.f32.xlu1 %v2243_v43  ;;  %v2209_v46 = vpop.f32.mrf.mxu0 }
 0x4a8   : > { %v2230_v47 = vmul.f32 0.125, %v2209_v46  ;;  %v2240_v48 = vsel %vm1905_vm5, %v12323_v45, -inf  ;;  %v12328_v51 = vadd.f32 %v2231_v42, %v12286_v56  ;;  %v12361_v39 = vpop.permute.xlu1 %2318 }
 0x4a9   : > { %2241 = vmax.xlane.f32.xlu0 %v2240_v48  ;;  %v9774_v63 = vpop.f32.mrf.mxu0 }
 0x4aa   : > { %v2233_v53 = vmul.f32 0.125, %v9774_v63  ;;  %v2249_v54 = vsel %vm1905_vm5, %v12328_v51, -inf  ;;  %v12333_v26 = vadd.f32 %v2230_v47, %v12280_v0 }
 0x4ab   : > { %2250 = vmax.xlane.f32.xlu1 %v2249_v54  ;;  %v2219_v57 = vpop.f32.mrf.mxu0 }
 0x4ac   : > { %v2232_v58 = vmul.f32 0.125, %v2219_v57  ;;  %v2246_v10 = vsel %vm1905_vm5, %v12333_v26, -inf  ;;  %v12338_v60 = vadd.f32 %v2233_v53, %v12286_v56  ;;  %v12365_v42 = vpop.permute.xlu1 %2320 }
 0x4ad   : > { %2247 = vmax.xlane.f32.xlu0 %v2246_v10 }
 0x4ae   : > { %v2255_v61 = vsel %vm1905_vm5, %v12338_v60, -inf  ;;  %v12343_v4 = vadd.f32 %v2232_v58, %v12286_v56 }
 0x4af   : > { %2256 = vmax.xlane.f32.xlu1 %v2255_v61 }
 0x4b0   : > { %v2252_v13 = vsel %vm1905_vm5, %v12343_v4, -inf }
 0x4b1   : > { %2253 = vmax.xlane.f32.xlu0 %v2252_v13 }
 0x4b9   : > { %v9810_v6 = vpop.f32.mrf.mxu0 }
 0x4ba   : > { %v2575_v22 = vmul.f32 0.125, %v9810_v6 }
 0x4bb   : > { %v2545_v7 = vpop.f32.mrf.mxu0 }
 0x4bc   : > { %v2574_v33 = vmul.f32 0.125, %v2545_v7  ;;  %v12348_v14 = vadd.f32 %v2575_v22, %v12280_v0 }
 0x4bd   : > { %v9813_v47 = vpop.f32.mrf.mxu0 }
 0x4be   : > { %v2589_v15 = vsel %vm1905_vm5, %v12348_v14, -inf  ;;  %v12353_v36 = vadd.f32 %v2574_v33, %v12280_v0  ;;  %v1911_v46 = vpop.xlane.xlu1 %1910  ;;  %v2577_v6 = vmul.f32 0.125, %v9813_v47 }
 0x4bf   : > { %2590 = vmax.xlane.f32.xlu1 %v2589_v15  ;;  %v1925_v48 = vsub.f32 %v12283_v55, %v1911_v46  ;;  %v2555_v54 = vpop.f32.mrf.mxu0 }
 0x4c0   : > { %v2586_v37 = vsel %vm1905_vm5, %v12353_v36, -inf  ;;  %v1908_v41 = vpop.xlane.xlu0 %1907  ;;  %v2576_v55 = vmul.f32 0.125, %v2555_v54 }
 0x4c1   : > { %2587 = vmax.xlane.f32.xlu0 %v2586_v37  ;;  %v1924_v53 = vsub.f32 %v12291_v59, %v1908_v41  ;;  %v1932_v57 = vmul.f32 1.442695, %v1925_v48  ;;  %v12374_v41 = vadd.f32 %v2577_v6, %v12286_v56 }
 0x4c2   : > { %v12377_v46 = vadd.f32 %v2576_v55, %v12280_v0 }
 0x4c3   : > { %v1930_v10 = vmul.f32 1.442695, %v1924_v53  ;;  %10756 = vpow2.f32 %v1932_v57 }
 0x4c4   : > { %v1917_v43 = vpop.xlane.xlu0 %1916 }
 0x4c5   : > { %10758 = vpow2.f32 %v1930_v10 }
 0x4c6   : > { %v1923_v58 = vpop.xlane.xlu1 %1922 }
 0x4c7   : > { %v1929_v7 = vsub.f32 %v12301_v8, %v1923_v58  ;;  %v2595_v8 = vsel %vm1905_vm5, %v12374_v41, -inf }
 0x4c8   : > { %v1914_v63 = vpop.xlane.xlu0 %1913 }
 0x4c9   : > { %v1926_v61 = vsub.f32 %v12304_v24, %v1914_v63 }
 0x4cb   : > { %v1934_v33 = vmul.f32 1.442695, %v1926_v61 }
 0x4cc   : > { %v1920_v13 = vpop.xlane.xlu0 %1919 }
 0x4cd   : > { %v1928_v59 = vsub.f32 %v12311_v32, %v1920_v13  ;;  %v2592_v32 = vsel %vm1905_vm5, %v12377_v46, -inf }
 0x4d0   : > { %2312 = vrot.lane.b32.xlu1 %v12192_v28, %s11401_s21  ;;  %v1927_v28 = vsub.f32 %v12296_v62, %v1917_v43  ;;  %v1940_v62 = vmul.f32 1.442695, %v1929_v7  ;;  %v1938_v43 = vmul.f32 1.442695, %v1928_v59  ;;  %v12391_v53 = vpop.eup %10756 }
 0x4d2   : > { %v1936_v22 = vmul.f32 1.442695, %v1927_v28  ;;  %v12395_v57 = vpop.eup %10758  ;;  %v1945_v28 = vsel %vm1905_vm5, %v12391_v53, 0.0 }
 0x4d3   : > { %v1942_v10 = vsel %vm1905_vm5, %v12395_v57, 0.0 }
 0x4d4   : > { %10760 = vpow2.f32 %v1936_v22 }
 0x4d5   : > { %10762 = vpow2.f32 %v1934_v33 }
 0x4d6   : > { %10764 = vpow2.f32 %v1940_v62 }
 0x4d7   : > { %2314 = vrot.lane.b32.xlu0 %v12196_v12, %s11401_s21  ;;  %v9816_v12 = vpop.f32.mrf.mxu0  ;;  %10766 = vpow2.f32 %v1938_v43 }
 0x4d8   : > { %v2579_v37 = vmul.f32 0.125, %v9816_v12 }
 0x4d9   : > { %v2565_v15 = vpop.f32.mrf.mxu0 }
 0x4da   : > { %v2578_v24 = vmul.f32 0.125, %v2565_v15  ;;  %v12382_v47 = vadd.f32 %v2579_v37, %v12286_v56 }
 0x4dc   : > { %v12387_v48 = vadd.f32 %v2578_v24, %v12286_v56  ;;  %v2601_v63 = vsel %vm1905_vm5, %v12382_v47, -inf }
 0x4de   : > { %v2598_v54 = vsel %vm1905_vm5, %v12387_v48, -inf }
 0x4e1   : > { %v12399_v58 = vpop.eup %10760 }
 0x4e2   : > { %v12403_v61 = vpop.eup %10762  ;;  %v1951_v12 = vsel %vm1905_vm5, %v12399_v58, 0.0 }
 0x4e3   : > { %v12407_v13 = vpop.eup %10764  ;;  %v1948_v6 = vsel %vm1905_vm5, %v12403_v61, 0.0 }
 0x4e4   : > { %v12411_v22 = vpop.eup %10766  ;;  %v1957_v7 = vsel %vm1905_vm5, %v12407_v13, 0.0 }
 0x4e5   : > { %v1954_v55 = vsel %vm1905_vm5, %v12411_v22, 0.0 }
 0x4f4   : > { %2596 = vmax.xlane.f32.xlu1 %v2595_v8 }
 0x4f6   : > { %2593 = vmax.xlane.f32.xlu0 %v2592_v32 }
 0x4f8   : > { %2602 = vmax.xlane.f32.xlu1 %v2601_v63 }
 0x4fa   : > { %2599 = vmax.xlane.f32.xlu0 %v2598_v54 }
 0x4fc   : > { %1946 = vadd.xlane.f32.xlu1 %v1945_v28 }
 0x4fe   : > { %1943 = vadd.xlane.f32.xlu0 %v1942_v10 }
 0x500   : > { %1952 = vadd.xlane.f32.xlu1 %v1951_v12 }
 0x502   : > { %1949 = vadd.xlane.f32.xlu0 %v1948_v6 }
 0x504   : > { %1958 = vadd.xlane.f32.xlu1 %v1957_v7 }
 0x506   : > { %1955 = vadd.xlane.f32.xlu0 %v1954_v55 }
 0x530   : > { %v2245_v33 = vpop.xlane.xlu1 %2244 }
 0x531   : > { %v2259_v59 = vsub.f32 %v12318_v40, %v2245_v33 }
 0x532   : > { %v2242_v15 = vpop.xlane.xlu0 %2241 }
 0x533   : > { %v2266_v37 = vmul.f32 1.442695, %v2259_v59  ;;  %v2258_v62 = vsub.f32 %v12323_v45, %v2242_v15 }
 0x534   : > { %v2251_v24 = vpop.xlane.xlu1 %2250 }
 0x535   : > { %10768 = vpow2.f32 %v2266_v37  ;;  %v2264_v43 = vmul.f32 1.442695, %v2258_v62  ;;  %v2261_v8 = vsub.f32 %v12328_v51, %v2251_v24 }
 0x536   : > { %v2248_v32 = vpop.xlane.xlu0 %2247 }
 0x537   : > { %10770 = vpow2.f32 %v2264_v43  ;;  %v2270_v63 = vmul.f32 1.442695, %v2261_v8  ;;  %v2260_v54 = vsub.f32 %v12333_v26, %v2248_v32 }
 0x538   : > { %v2257_v28 = vpop.xlane.xlu1 %2256 }
 0x539   : > { %10772 = vpow2.f32 %v2270_v63  ;;  %v2268_v10 = vmul.f32 1.442695, %v2260_v54  ;;  %v2263_v12 = vsub.f32 %v12338_v60, %v2257_v28 }
 0x53a   : > { %v2254_v40 = vpop.xlane.xlu0 %2253 }
 0x53b   : > { %10774 = vpow2.f32 %v2268_v10  ;;  %v2274_v6 = vmul.f32 1.442695, %v2263_v12  ;;  %v2262_v45 = vsub.f32 %v12343_v4, %v2254_v40 }
 0x53d   : > { %10776 = vpow2.f32 %v2274_v6  ;;  %v2272_v7 = vmul.f32 1.442695, %v2262_v45 }
 0x53f   : > { %10778 = vpow2.f32 %v2272_v7 }
 0x542   : > { %v12423_v55 = vpop.eup %10768 }
 0x543   : > { %v2279_v51 = vsel %vm1905_vm5, %v12423_v55, 0.0 }
 0x544   : > { %v12427_v33 = vpop.eup %10770  ;;  %2280 = vadd.xlane.f32.xlu1 %v2279_v51 }
 0x545   : > { %v2276_v26 = vsel %vm1905_vm5, %v12427_v33, 0.0 }
 0x546   : > { %v12431_v60 = vpop.eup %10772  ;;  %2277 = vadd.xlane.f32.xlu0 %v2276_v26 }
 0x547   : > { %v2285_v4 = vsel %vm1905_vm5, %v12431_v60, 0.0 }
 0x548   : > { %v12435_v59 = vpop.eup %10774  ;;  %v2591_v15 = vpop.xlane.xlu1 %2590  ;;  %2286 = vadd.xlane.f32.xlu1 %v2285_v4 }
 0x549   : > { %v2605_v37 = vsub.f32 %v12348_v14, %v2591_v15  ;;  %v2282_v62 = vsel %vm1905_vm5, %v12435_v59, 0.0 }
 0x54a   : > { %v12440_v24 = vpop.eup %10776  ;;  %2283 = vadd.xlane.f32.xlu0 %v2282_v62  ;;  %v2588_v43 = vpop.xlane.xlu0 %2587 }
 0x54b   : > { %v2612_v8 = vmul.f32 1.442695, %v2605_v37  ;;  %v2604_v32 = vsub.f32 %v12353_v36, %v2588_v43  ;;  %v2291_v63 = vsel %vm1905_vm5, %v12440_v24, 0.0 }
 0x54c   : > { %v12445_v54 = vpop.eup %10778  ;;  %2292 = vadd.xlane.f32.xlu1 %v2291_v63  ;;  %v12465_v6 = vpop.permute.xlu1 %2312 }
 0x54d   : > { %10780 = vpow2.f32 %v2612_v8  ;;  %v2610_v28 = vmul.f32 1.442695, %v2604_v32  ;;  %v2288_v14 = vsel %vm1905_vm5, %v12445_v54, 0.0 }
 0x54e   : > { %2289 = vadd.xlane.f32.xlu0 %v2288_v14  ;;  %v12467_v45 = vpop.permute.xlu0 %2314 }
 0x54f   : > { %10782 = vpow2.f32 %v2610_v28 }
 0x55a   : > { %v12449_v10 = vpop.eup %10780 }
 0x55b   : > { %v2625_v12 = vsel %vm1905_vm5, %v12449_v10, 0.0 }
 0x55c   : > { %v12453_v40 = vpop.eup %10782  ;;  %2626 = vadd.xlane.f32.xlu1 %v2625_v12 }
 0x55d   : > { %v2622_v36 = vsel %vm1905_vm5, %v12453_v40, 0.0 }
 0x55e   : > { %2623 = vadd.xlane.f32.xlu0 %v2622_v36 }
 0x56d   : > { %2785 = vrot.lane.b32.xlu1 %v12154_v1, %s11401_s21 }
 0x571   : > { %2783 = vrot.lane.b32.xlu1 %v12151_v23, %s11401_s21 }
 0x574   : > { %2787 = vrot.lane.b32.xlu0 %v12226_v44, %s11401_s21 }
 0x575   : > { %2781 = vrot.lane.b32.xlu1 %v12147_v5, %s11401_s21 }
 0x57d   : > { %v2597_v7 = vpop.xlane.xlu1 %2596 }
 0x57e   : > { %v2607_v51 = vsub.f32 %v12374_v41, %v2597_v7 }
 0x57f   : > { %v2594_v26 = vpop.xlane.xlu0 %2593 }
 0x580   : > { %v2606_v4 = vsub.f32 %v12377_v46, %v2594_v26  ;;  %v2616_v37 = vmul.f32 1.442695, %v2607_v51 }
 0x581   : > { %v2603_v1 = vpop.xlane.xlu1 %2602 }
 0x582   : > { %v2614_v15 = vmul.f32 1.442695, %v2606_v4  ;;  %v2609_v23 = vsub.f32 %v12382_v47, %v2603_v1 }
 0x583   : > { %v2600_v62 = vpop.xlane.xlu0 %2599 }
 0x584   : > { %10784 = vpow2.f32 %v2614_v15  ;;  %v2620_v44 = vmul.f32 1.442695, %v2609_v23  ;;  %v2608_v5 = vsub.f32 %v12387_v48, %v2600_v62 }
 0x585   : > { %v1947_v43 = vpop.xlane.xlu1 %1946 }
 0x586   : > { %10786 = vpow2.f32 %v2620_v44  ;;  %v2618_v8 = vmul.f32 1.442695, %v2608_v5 }
 0x587   : > { %10788 = vpow2.f32 %v2616_v37  ;;  %v1944_v32 = vpop.xlane.xlu0 %1943 }
 0x588   : > { %10790 = vrcp.f32 %v1947_v43 }
 0x589   : > { %10792 = vrcp.f32 %v1944_v32  ;;  %v1953_v41 = vpop.xlane.xlu1 %1952 }
 0x58a   : > { %10794 = vpow2.f32 %v2618_v8 }
 0x58b   : > { %10796 = vrcp.f32 %v1953_v41  ;;  %v1950_v46 = vpop.xlane.xlu0 %1949 }
 0x58c   : > { %10798 = vrcp.f32 %v1950_v46 }
 0x58d   : > { %v1959_v63 = vpop.xlane.xlu1 %1958 }
 0x58e   : > { %10800 = vrcp.f32 %v1959_v63 }
 0x58f   : > { %v1956_v47 = vpop.xlane.xlu0 %1955 }
 0x590   : > { %10802 = vrcp.f32 %v1956_v47 }
 0x591   : > { %v12473_v28 = vpop.eup %10784 }
 0x592   : > { %v2628_v48 = vsel %vm1905_vm5, %v12473_v28, 0.0 }
 0x593   : > { %v12477_v14 = vpop.eup %10786  ;;  %2629 = vadd.xlane.f32.xlu0 %v2628_v48 }
 0x594   : > { %v12479_v12 = vpop.eup %10788  ;;  %v2637_v51 = vsel %vm1905_vm5, %v12477_v14, 0.0 }
 0x595   : > { %v10791_v36 = vpop.eup %10790  ;;  %v2631_v23 = vsel %vm1905_vm5, %v12479_v12, 0.0 }
 0x596   : > { %v10793_v7 = vpop.eup %10792  ;;  %v1967_v15 = vmul.f32 %v10791_v36, %v12391_v53 }
 0x597   : > { %v12483_v26 = vpop.eup %10794  ;;  %2638 = vadd.xlane.f32.xlu0 %v2637_v51  ;;  %v1966_v4 = vmul.f32 %v10793_v7, %v12395_v57 }
 0x598   : > { %v10797_v1 = vpop.eup %10796  ;;  %v2634_v62 = vsel %vm1905_vm5, %v12483_v26, 0.0 }
 0x599   : > { %v10799_v37 = vpop.eup %10798  ;;  %9745 = vmatprep.mubr.msk.f32.mxu1 %vm1905_vm5, %v1966_v4  ;;  %2632 = vadd.xlane.f32.xlu1 %v2631_v23  ;;  %v1969_v53 = vmul.f32 %v10797_v1, %v12399_v58 }
 0x59a   : > { %9746 = vmatmul.mubr.msk.f32.vlgmr.msra.gmra.mxu1 %vm1905_vm5, %v1967_v15  ;;  %v1968_v44 = vmul.f32 %v10799_v37, %v12403_v61 }
 0x59b   : > { %9776 = vmatpush3.msra.mxu1 %v12270_v49  ;;  %2635 = vadd.xlane.f32.xlu0 %v2634_v62  ;;  %v10801_v57 = vpop.eup %10800 }
 0x59c   : > { %9777 = vmatprep.subr.mxu1 %v12365_v42  ;;  %9748 = vmatprep.mubr.msk.f32.mxu1 %vm1905_vm5, %v1968_v44  ;;  %v1971_v49 = vmul.f32 %v10801_v57, %v12407_v13 }
 0x59d   : > { %v10803_v5 = vpop.eup %10802  ;;  %9778 = vmatpush3.msra.mxu1 %v12365_v42 }
 0x59e   : > { %9779 = vmatprep.subr.mxu1 %v12361_v39  ;;  %9749 = vmatmul.mubr.msk.f32.gmra.mxu1 %vm1905_vm5, %v1969_v53  ;;  %v1970_v43 = vmul.f32 %v10803_v5, %v12411_v22 }
 0x59f   : > { %9780 = vmatpush3.msra.mxu1 %v12361_v39 }
 0x5a0   : > { %9781 = vmatprep.subr.mxu1 %v12357_v38  ;;  %9751 = vmatprep.mubr.msk.f32.mxu1 %vm1905_vm5, %v1970_v43 }
 0x5a1   : > { %9782 = vmatpush3.msra.mxu1 %v12357_v38 }
 0x5a2   : > { %9783 = vmatprep.subr.mxu1 %v12467_v45  ;;  %9752 = vmatmul.mubr.msk.f32.gmra.mxu1 %vm1905_vm5, %v1971_v49 }
 0x5a3   : > { %9784 = vmatpush3.msra.mxu1 %v12467_v45 }
 0x5a4   : > { %9785 = vmatprep.subr.mxu1 %v12465_v6 }
 0x5a5   : > { %9786 = vmatpush3.msra.mxu1 %v12465_v6 }
 0x5a6   : > { %9817 = vmatprep.subr.mxu1 %v12315_v35 }
 0x5aa   : > { %2777 = vrot.lane.b32.xlu1 %v12141_v17, %s11401_s21 }
 0x5ae   : > { %2767 = vrot.lane.b32.xlu1 %v12149_v9, %s11401_s21 }
 0x5b1   : > { %2779 = vrot.lane.b32.xlu0 %v12145_v3, %s11401_s21 }
 0x5b2   : > { %2771 = vrot.lane.b32.xlu1 %v12166_v21, %s11401_s21 }
 0x5b5   : > { %2765 = vrot.lane.b32.xlu0 %v12143_v2, %s11401_s21 }
 0x5b6   : > { %2775 = vrot.lane.b32.xlu1 %v12190_v27, %s11401_s21 }
 0x5b9   : > { %2769 = vrot.lane.b32.xlu0 %v12156_v30, %s11401_s21 }
 0x5bd   : > { %2773 = vrot.lane.b32.xlu0 %v12176_v25, %s11401_s21 }
 0x5cd   : > { %v2281_v17 = vpop.xlane.xlu1 %2280 }
 0x5ce   : > { %10804 = vrcp.f32 %v2281_v17 }
 0x5cf   : > { %v2278_v9 = vpop.xlane.xlu0 %2277 }
 0x5d0   : > { %10806 = vrcp.f32 %v2278_v9 }
 0x5d1   : > { %v2287_v3 = vpop.xlane.xlu1 %2286 }
 0x5d2   : > { %10808 = vrcp.f32 %v2287_v3 }
 0x5d3   : > { %v2284_v38 = vpop.xlane.xlu0 %2283 }
 0x5d4   : > { %10810 = vrcp.f32 %v2284_v38 }
 0x5d5   : > { %v2293_v21 = vpop.xlane.xlu1 %2292 }
 0x5d6   : > { %10812 = vrcp.f32 %v2293_v21 }
 0x5d7   : > { %v2290_v2 = vpop.xlane.xlu0 %2289 }
 0x5d8   : > { %10814 = vrcp.f32 %v2290_v2 }
 0x5db   : > { %v10805_v39 = vpop.eup %10804 }
 0x5dc   : > { %v2301_v30 = vmul.f32 %v10805_v39, %v12423_v55 }
 0x5dd   : > { %v10807_v27 = vpop.eup %10806 }
 0x5de   : > { %v2300_v42 = vmul.f32 %v10807_v27, %v12427_v33 }
 0x5df   : > { %v10809_v58 = vpop.eup %10808 }
 0x5e0   : > { %9787 = vmatprep.mubr.msk.f32.mxu1 %vm1905_vm5, %v2300_v42  ;;  %v2303_v13 = vmul.f32 %v10809_v58, %v12431_v60 }
 0x5e1   : > { %v10811_v25 = vpop.eup %10810  ;;  %9788 = vmatmul.mubr.msk.f32.vlgmr.msra.gmra.mxu1 %vm1905_vm5, %v2301_v30 }
 0x5e2   : > { %9818 = vmatpush3.msra.mxu1 %v12315_v35  ;;  %v2302_v61 = vmul.f32 %v10811_v25, %v12435_v59 }
 0x5e3   : > { %9819 = vmatprep.subr.mxu1 %v12207_v18  ;;  %v10813_v22 = vpop.eup %10812 }
 0x5e4   : > { %9820 = vmatpush3.msra.mxu1 %v12207_v18  ;;  %9790 = vmatprep.mubr.msk.f32.mxu1 %vm1905_vm5, %v2302_v61  ;;  %v2305_v60 = vmul.f32 %v10813_v22, %v12440_v24 }
 0x5e5   : > { %v10815_v55 = vpop.eup %10814  ;;  %9821 = vmatprep.subr.mxu1 %v12204_v16  ;;  %v2627_v33 = vpop.xlane.xlu1 %2626  ;;  %9791 = vmatmul.mubr.msk.f32.gmra.mxu1 %vm1905_vm5, %v2303_v13 }
 0x5e6   : > { %9822 = vmatpush3.msra.mxu1 %v12204_v16  ;;  %v2304_v6 = vmul.f32 %v10815_v55, %v12445_v54  ;;  %10816 = vrcp.f32 %v2627_v33 }
 0x5e7   : > { %9823 = vmatprep.subr.mxu1 %v12201_v34  ;;  %v2624_v59 = vpop.xlane.xlu0 %2623 }
 0x5e8   : > { %9824 = vmatpush3.msra.mxu1 %v12201_v34  ;;  %10818 = vrcp.f32 %v2624_v59  ;;  %9793 = vmatprep.mubr.msk.f32.mxu1 %vm1905_vm5, %v2304_v6 }
 0x5e9   : > { %9825 = vmatprep.subr.mxu1 %v12198_v29  ;;  %9794 = vmatmul.mubr.msk.f32.gmra.mxu1 %vm1905_vm5, %v2305_v60  ;;  %v2786_v8 = vpop.permute.xlu1 %2785 }
 0x5ea   : > { %9826 = vmatpush3.msra.mxu1 %v12198_v29 }
 0x5eb   : > { %9827 = vmatprep.subr.mxu1 %v12194_v11  ;;  %v2788_v54 = vpop.permute.xlu0 %2787 }
 0x5ec   : > { %9828 = vmatpush3.msra.mxu1 %v12194_v11 }
 0x5ed   : > { %9838 = vmatprep.subr.msk.mxu1 %vm1761_vm0, %v2788_v54  ;;  %v2784_v46 = vpop.permute.xlu1 %2783 }
 0x5f1   : > { %v2782_v63 = vpop.permute.xlu1 %2781 }
 0x5f3   : > { %v10817_v45 = vpop.eup %10816 }
 0x5f4   : > { %v2647_v41 = vmul.f32 %v10817_v45, %v12449_v10 }
 0x5f5   : > { %v10819_v24 = vpop.eup %10818 }
 0x5f6   : > { %v2646_v32 = vmul.f32 %v10819_v24, %v12453_v40 }
 0x5f8   : > { %9829 = vmatprep.mubr.msk.f32.mxu1 %vm1905_vm5, %v2646_v32 }
 0x5f9   : > { %9830 = vmatmul.mubr.msk.f32.vlgmr.msra.gmra.mxu1 %vm1905_vm5, %v2647_v41 }
 0x5fa   : > { %9839 = vmatpush3.xpose.msk.msra.mxu1 %vm1761_vm0, %v2788_v54 }
 0x5fb   : > { %9840 = vmatprep.subr.msk.mxu1 %vm1761_vm0, %v2786_v8 }
 0x5fe   : > { %9841 = vmatpush3.xpose.msk.msra.mxu1 %vm1761_vm0, %v2786_v8 }
 0x5ff   : > { %9842 = vmatprep.subr.msk.mxu1 %vm1761_vm0, %v2784_v46 }
 0x602   : > { %9843 = vmatpush3.xpose.msk.msra.mxu1 %vm1761_vm0, %v2784_v46 }
 0x603   : > { %9844 = vmatprep.subr.msk.mxu1 %vm1761_vm0, %v2782_v63 }
 0x606   : > { %9845 = vmatpush3.xpose.msk.msra.mxu1 %vm1761_vm0, %v2782_v63 }
 0x61c   : > { %v2630_v10 = vpop.xlane.xlu0 %2629 }
 0x61d   : > { %10820 = vrcp.f32 %v2630_v10 }
 0x620   : > { %v2639_v40 = vpop.xlane.xlu0 %2638 }
 0x622   : > { %v2633_v47 = vpop.xlane.xlu1 %2632 }
 0x623   : > { %10822 = vrcp.f32 %v2633_v47 }
 0x624   : > { %10824 = vrcp.f32 %v2639_v40  ;;  %v2636_v48 = vpop.xlane.xlu0 %2635 }
 0x625   : > { %10826 = vrcp.f32 %v2636_v48 }
 0x626   : > { %v2778_v51 = vpop.permute.xlu1 %2777 }
 0x628   : > { %v2780_v36 = vpop.permute.xlu0 %2779 }
 0x629   : > { %9846 = vmatprep.subr.msk.mxu1 %vm1761_vm0, %v2780_v36 }
 0x62a   : > { %v10821_v7 = vpop.eup %10820  ;;  %9847 = vmatpush3.xpose.msk.msra.mxu1 %vm1761_vm0, %v2780_v36  ;;  %v2768_v53 = vpop.permute.xlu1 %2767 }
 0x62b   : > { %9848 = vmatprep.subr.msk.mxu1 %vm1761_vm0, %v2778_v51  ;;  %v2648_v4 = vmul.f32 %v10821_v7, %v12473_v28 }
 0x62c   : > { %v2766_v62 = vpop.permute.xlu0 %2765 }
 0x62d   : > { %9832 = vmatprep.mubr.msk.f32.mxu1 %vm1905_vm5, %v2648_v4 }
 0x62e   : > { %9849 = vmatpush3.xpose.msk.msra.mxu1 %vm1761_vm0, %v2778_v51  ;;  %v2772_v5 = vpop.permute.xlu1 %2771 }
 0x630   : > { %v10823_v1 = vpop.eup %10822  ;;  %v2770_v28 = vpop.permute.xlu0 %2769 }
 0x631   : > { %v10825_v15 = vpop.eup %10824  ;;  %v2649_v23 = vmul.f32 %v10823_v1, %v12479_v12 }
 0x632   : > { %v10827_v37 = vpop.eup %10826  ;;  %v2651_v57 = vmul.f32 %v10825_v15, %v12477_v14 }
 0x633   : > { %9833 = vmatmul.mubr.msk.f32.gmra.mxu1 %vm1905_vm5, %v2649_v23  ;;  %v2650_v44 = vmul.f32 %v10827_v37, %v12483_v26  ;;  %v2776_v26 = vpop.permute.xlu1 %2775 }
 0x634   : > { %v2774_v12 = vpop.permute.xlu0 %2773 }
 0x635   : > { %9835 = vmatprep.mubr.msk.f32.mxu1 %vm1905_vm5, %v2650_v44 }
 0x637   : > { %9836 = vmatmul.mubr.msk.f32.gmra.mxu1 %vm1905_vm5, %v2651_v57 }
 0x638   : > { %9850 = vmatprep.mubr.msk.f32.mxu1 %vm1761_vm0, %v2766_v62 }
 0x63b   : > { %9851 = vmatmul.mubr.msk.f32.vlgmr.msra.gmra.mxu1 %vm1761_vm0, %v2768_v53 }
 0x63c   : > { %9853 = vmatprep.mubr.msk.f32.mxu1 %vm1761_vm0, %v2770_v28 }
 0x63f   : > { %9854 = vmatmul.mubr.msk.f32.gmra.mxu1 %vm1761_vm0, %v2772_v5 }
 0x640   : > { %9856 = vmatprep.mubr.msk.f32.mxu1 %vm1761_vm0, %v2774_v12 }
 0x643   : > { %9857 = vmatmul.mubr.msk.f32.gmra.mxu1 %vm1761_vm0, %v2776_v26 }
 0x65a   : > { %v12582_v14 = vpop.f32.mrf.mxu1 }
 0x65c   : > { %v12584_v43 = vpop.f32.mrf.mxu1 }
 0x65e   : > { %v12586_v49 = vpop.f32.mrf.mxu1 }
 0x660   : > { %v12588_v17 = vpop.f32.mrf.mxu1 }
 0x662   : > { %v12590_v9 = vpop.f32.mrf.mxu1 }
 0x664   : > { %v12592_v3 = vpop.f32.mrf.mxu1 }
 0x6a1   : > { %v12594_v38 = vpop.f32.mrf.mxu1 }
 0x6a3   : > { %v12596_v21 = vpop.f32.mrf.mxu1 }
 0x6a5   : > { %v12598_v2 = vpop.f32.mrf.mxu1 }
 0x6a7   : > { %v12600_v39 = vpop.f32.mrf.mxu1 }
 0x6a8   : > { %v10123_v27 = vpack.i.bf16 %v12598_v2, %v12600_v39 }
 0x6a9   : > { %v12604_v42 = vpop.f32.mrf.mxu1 }
 0x6ab   : > { %v12606_v30 = vpop.f32.mrf.mxu1 }
 0x6b9   : > { %v12608_v58 = vpop.f32.mrf.mxu1 }
 0x6bb   : > { %v12610_v25 = vpop.f32.mrf.mxu1 }
 0x6f3   : > { %v12612_v61 = vpop.f32.mrf.mxu1 }
 0x6f5   : > { %v12614_v13 = vpop.f32.mrf.mxu1 }
 0x6f7   : > { %v12616_v22 = vpop.f32.mrf.mxu1 }
 0x6f9   : > { %v12618_v55 = vpop.f32.mrf.mxu1 }
 0x6fb   : > { %v9852_v33 = vpop.f32.mrf.mxu1 }
 0x6fc   : > { %v2909_v6 = vmul.f32 0.125, %v9852_v33 }
 0x6fd   : > { %v2879_v59 = vpop.f32.mrf.mxu1 }
 0x6fe   : > { %v2908_v60 = vmul.f32 0.125, %v2879_v59  ;;  %v2915_v54 = vadd.f32 %v2909_v6, %v12280_v0 }
 0x6ff   : > { %v9855_v45 = vpop.f32.mrf.mxu1 }
 0x700   : > { %v2923_v24 = vsel %vm1905_vm5, %v2915_v54, -inf  ;;  %v2914_v8 = vadd.f32 %v2908_v60, %v12280_v0  ;;  %v2911_v41 = vmul.f32 0.125, %v9855_v45 }
 0x701   : > { %2924 = vmax.xlane.f32.xlu1 %v2923_v24  ;;  %v2889_v32 = vpop.f32.mrf.mxu1 }
 0x702   : > { %v2910_v46 = vmul.f32 0.125, %v2889_v32  ;;  %v2920_v63 = vsel %vm1905_vm5, %v2914_v8, -inf  ;;  %v2917_v4 = vadd.f32 %v2911_v41, %v12286_v56 }
 0x703   : > { %2921 = vmax.xlane.f32.xlu0 %v2920_v63  ;;  %v9858_v10 = vpop.f32.mrf.mxu1 }
 0x704   : > { %v2913_v40 = vmul.f32 0.125, %v9858_v10  ;;  %v2916_v47 = vadd.f32 %v2910_v46, %v12280_v0  ;;  %v2929_v15 = vsel %vm1905_vm5, %v2917_v4, -inf }
 0x705   : > { %v2899_v48 = vpop.f32.mrf.mxu1 }
 0x706   : > { %v2912_v36 = vmul.f32 0.125, %v2899_v48  ;;  %v2926_v7 = vsel %vm1905_vm5, %v2916_v47, -inf  ;;  %v2919_v51 = vadd.f32 %v2913_v40, %v12286_v56 }
 0x707   : > { %2927 = vmax.xlane.f32.xlu0 %v2926_v7 }
 0x708   : > { %v2935_v1 = vsel %vm1905_vm5, %v2919_v51, -inf  ;;  %v2918_v23 = vadd.f32 %v2912_v36, %v12286_v56 }
 0x709   : > { %2936 = vmax.xlane.f32.xlu1 %v2935_v1  ;;  %v10113_v1 = vpack.i.bf16 %v12594_v38, %v12596_v21 }
 0x70a   : > { %v2932_v37 = vsel %vm1905_vm5, %v2918_v23, -inf }
 0x70b   : > { %2930 = vmax.xlane.f32.xlu0 %v2929_v15  ;;  %v10133_v15 = vpack.i.bf16 %v12604_v42, %v12606_v30 }
 0x70f   : > { %2933 = vmax.xlane.f32.xlu0 %v2932_v37 }
 0x71a   : > { %3000 = vrot.lane.b32.xlu1 %v12207_v18, %s11401_s21 }
 0x71e   : > { %2998 = vrot.lane.b32.xlu1 %v12204_v16, %s11401_s21 }
 0x722   : > { %2996 = vrot.lane.b32.xlu1 %v12201_v34, %s11401_s21 }
 0x725   : > { %3002 = vrot.lane.b32.xlu0 %v12315_v35, %s11401_s21 }
 0x78a   : > { %v2925_v0 = vpop.xlane.xlu1 %2924 }
 0x78b   : > { %v2939_v62 = vsub.f32 %v2915_v54, %v2925_v0 }
 0x78c   : > { %v2922_v44 = vpop.xlane.xlu0 %2921 }
 0x78d   : > { %v2946_v56 = vmul.f32 1.442695, %v2939_v62  ;;  %v2938_v57 = vsub.f32 %v2914_v8, %v2922_v44 }
 0x78f   : > { %10828 = vpow2.f32 %v2946_v56  ;;  %v2944_v53 = vmul.f32 1.442695, %v2938_v57 }
 0x790   : > { %v2928_v28 = vpop.xlane.xlu0 %2927 }
 0x791   : > { %10830 = vpow2.f32 %v2944_v53  ;;  %v2940_v5 = vsub.f32 %v2916_v47, %v2928_v28 }
 0x792   : > { %v2937_v18 = vpop.xlane.xlu1 %2936 }
 0x793   : > { %v2948_v12 = vmul.f32 1.442695, %v2940_v5  ;;  %v2943_v26 = vsub.f32 %v2919_v51, %v2937_v18 }
 0x794   : > { %v2931_v16 = vpop.xlane.xlu0 %2930 }
 0x795   : > { %10832 = vpow2.f32 %v2948_v12  ;;  %v2941_v33 = vsub.f32 %v2917_v4, %v2931_v16  ;;  %v2954_v6 = vmul.f32 1.442695, %v2943_v26  ;;  %v10312_v12 = vld [vmem:[%s11840_s16 + $0x70] ss:$8 sps:$4 sm:$0xff]   ;;  %v10314_v26 = vld [vmem:[%s11840_s16 + $0x74] ss:$8 sps:$4 sm:$0xff]  }
 0x796   : > { %v3001_v34 = vpop.permute.xlu1 %3000  ;;  %v10317_v16 = vld [vmem:[%s11840_s16 + $0x64] ss:$8 sps:$4 sm:$0xff]  }
 0x797   : > { %v2950_v59 = vmul.f32 1.442695, %v2941_v33  ;;  %v10315_v33 = vld [vmem:[%s11840_s16 + $0x60] ss:$8 sps:$4 sm:$0xff]  }
 0x798   : > { %v2934_v35 = vpop.xlane.xlu0 %2933 }
 0x799   : > { %10834 = vpow2.f32 %v2950_v59  ;;  %v2942_v60 = vsub.f32 %v2918_v23, %v2934_v35  ;;  %v10323_v59 = vld [vmem:[%s11840_s16 + $0x44] ss:$8 sps:$4 sm:$0xff]   ;;  %v10321_v35 = vld [vmem:[%s11840_s16 + $0x40] ss:$8 sps:$4 sm:$0xff]  }
 0x79a   : > { %10836 = vpow2.f32 %v2954_v6  ;;  %v2999_v24 = vpop.permute.xlu1 %2998  ;;  %v10318_v6 = vld [vmem:[%s11840_s16 + $0x50] ss:$8 sps:$4 sm:$0xff]  }
 0x79b   : > { %v2952_v54 = vmul.f32 1.442695, %v2942_v60  ;;  %v10326_v60 = vld [vmem:[%s11840_s16 + $0x34] ss:$8 sps:$4 sm:$0xff]  }
 0x79c   : > { %v10829_v45 = vpop.eup %10828  ;;  %v3003_v8 = vpop.permute.xlu0 %3002 }
 0x79d   : > { %10838 = vpow2.f32 %v2952_v54  ;;  %9859 = vmatprep.subr.mxu0 %v3003_v8  ;;  %v2959_v32 = vsel %vm1905_vm5, %v10829_v45, 0.0  ;;  %v10324_v54 = vld [vmem:[%s11840_s16 + $0x30] ss:$8 sps:$4 sm:$0xff]  }
 0x79e   : > { %v10831_v41 = vpop.eup %10830  ;;  %2960 = vadd.xlane.f32.xlu1 %v2959_v32  ;;  %9860 = vmatpush3.msra.mxu0 %v3003_v8  ;;  %v2997_v10 = vpop.permute.xlu1 %2996  ;;  %v10332_v8 = vld [vmem:[%s11840_s16 + $0x14] ss:$8 sps:$4 sm:$0xff]   ;;  %v10330_v32 = vld [vmem:[%s11840_s16 + $0x10] ss:$8 sps:$4 sm:$0xff]  }
 0x79f   : > { %9861 = vmatprep.subr.mxu0 %v3001_v34  ;;  %v2956_v46 = vsel %vm1905_vm5, %v10831_v41, 0.0 }
 0x7a0   : > { %2957 = vadd.xlane.f32.xlu0 %v2956_v46  ;;  %9862 = vmatpush3.msra.mxu0 %v3001_v34  ;;  %v10320_v34 = vld [vmem:[%s11840_s16 + $0x54] ss:$8 sps:$4 sm:$0xff]   ;;  %v10333_v46 = vld [vmem:[%s11840_s16] ss:$8 sps:$4 sm:$0xff]  }
 0x7a1   : > { %9863 = vmatprep.subr.mxu0 %v2999_v24 }
 0x7a2   : > { %v10833_v63 = vpop.eup %10832  ;;  %9864 = vmatpush3.msra.mxu0 %v2999_v24  ;;  %v10327_v24 = vld [vmem:[%s11840_s16 + $0x20] ss:$8 sps:$4 sm:$0xff]  }
 0x7a3   : > { %9865 = vmatprep.subr.mxu0 %v2997_v10  ;;  %v2962_v40 = vsel %vm1905_vm5, %v10833_v63, 0.0 }
 0x7a4   : > { %2963 = vadd.xlane.f32.xlu0 %v2962_v40  ;;  %9866 = vmatpush3.msra.mxu0 %v2997_v10  ;;  %v10336_v10 = vld [vmem:[%s11840_s16 + $0xf0] ss:$8 sps:$4 sm:$0xff]   ;;  %v10341_v40 = vld [vmem:[%s11840_s16 + $0xe4] ss:$8 sps:$4 sm:$0xff]  }
 0x7a6   : > { %v10835_v47 = vpop.eup %10834 }
 0x7a7   : > { %v2965_v48 = vsel %vm1905_vm5, %v10835_v47, 0.0  ;;  %v10837_v36 = vpop.eup %10836 }
 0x7a8   : > { %2966 = vadd.xlane.f32.xlu1 %v2965_v48  ;;  %v2971_v51 = vsel %vm1905_vm5, %v10837_v36, 0.0  ;;  %v10344_v48 = vld [vmem:[%s11840_s16 + $0xd4] ss:$8 sps:$4 sm:$0xff]  }
 0x7aa   : > { %v10839_v7 = vpop.eup %10838 }
 0x7ab   : > { %v2968_v4 = vsel %vm1905_vm5, %v10839_v7, 0.0 }
 0x7ac   : > { %2972 = vadd.xlane.f32.xlu1 %v2971_v51  ;;  %2969 = vadd.xlane.f32.xlu0 %v2968_v4  ;;  %v10345_v51 = vld [vmem:[%s11840_s16 + $0xc0] ss:$8 sps:$4 sm:$0xff]   ;;  %v10350_v4 = vld [vmem:[%s11840_s16 + $0xb4] ss:$8 sps:$4 sm:$0xff]  }
 0x7bd   : > { %2992 = vrot.lane.b32.xlu1 %v12194_v11, %s11401_s21 }
 0x7c1   : > { %10114 = vrot.lane.b32.xlu1 %v10113_v1, %s11401_s21  ;;  %v10348_v1 = vld [vmem:[%s11840_s16 + $0xb0] ss:$8 sps:$4 sm:$0xff]  }
 0x7c2   : > { %2994 = vrot.lane.b32.xlu0 %v12198_v29, %s11401_s21 }
 0x7c5   : > { %10124 = vrot.lane.b32.xlu1 %v10123_v27, %s11401_s21 }
 0x7c9   : > { %10134 = vrot.lane.b32.xlu1 %v10133_v15, %s11401_s21  ;;  %v10353_v15 = vld [vmem:[%s11840_s16 + $0xa4] ss:$8 sps:$4 sm:$0xff]  }
 0x827   : > { %v2961_v23 = vpop.xlane.xlu1 %2960 }
 0x829   : > { %v2958_v11 = vpop.xlane.xlu0 %2957 }
 0x82a   : > { %10840 = vrcp.f32 %v2958_v11  ;;  %v10356_v11 = vld [vmem:[%s11840_s16 + $0x94] ss:$8 sps:$4 sm:$0xff]  }
 0x82b   : > { %10842 = vrcp.f32 %v2961_v23  ;;  %v10351_v23 = vld [vmem:[%s11840_s16 + $0xa0] ss:$8 sps:$4 sm:$0xff]  }
 0x82d   : > { %v2964_v38 = vpop.xlane.xlu0 %2963 }
 0x82e   : > { %10844 = vrcp.f32 %v2964_v38  ;;  %v10354_v38 = vld [vmem:[%s11840_s16 + $0x90] ss:$8 sps:$4 sm:$0xff]  }
 0x831   : > { %v2967_v21 = vpop.xlane.xlu1 %2966 }
 0x832   : > { %10846 = vrcp.f32 %v2967_v21  ;;  %v10357_v21 = vld [vmem:[%s11840_s16 + $0x80] ss:$8 sps:$4 sm:$0xff]  }
 0x835   : > { %v2973_v37 = vpop.xlane.xlu1 %2972  ;;  %v2970_v29 = vpop.xlane.xlu0 %2969 }
 0x836   : > { %10848 = vrcp.f32 %v2973_v37  ;;  %v10359_v37 = vld [vmem:[%s11840_s16 + $0x84] ss:$8 sps:$4 sm:$0xff]  }
 0x837   : > { %v10841_v0 = vpop.eup %10840  ;;  %10850 = vrcp.f32 %v2970_v29 }
 0x838   : > { %v2980_v2 = vmul.f32 %v10841_v0, %v10831_v41  ;;  %v10843_v39 = vpop.eup %10842  ;;  %v10335_v41 = vld [vmem:[%s11840_s16 + $0x4] ss:$8 sps:$4 sm:$0xff]  }
 0x839   : > { %v2995_v27 = vpop.permute.xlu0 %2994  ;;  %v2993_v30 = vpop.permute.xlu1 %2992  ;;  %v2981_v62 = vmul.f32 %v10843_v39, %v10829_v45  ;;  %v10329_v45 = vld [vmem:[%s11840_s16 + $0x24] ss:$8 sps:$4 sm:$0xff]  }
 0x83a   : > { %9867 = vmatprep.subr.mxu0 %v2995_v27  ;;  %9871 = vmatprep.mubr.msk.f32.mxu0 %vm1905_vm5, %v2980_v2 }
 0x83b   : > { %v10845_v42 = vpop.eup %10844  ;;  %9868 = vmatpush3.msra.mxu0 %v2995_v27 }
 0x83c   : > { %9869 = vmatprep.subr.mxu0 %v2993_v30  ;;  %v2982_v44 = vmul.f32 %v10845_v42, %v10833_v63  ;;  %v10338_v63 = vld [vmem:[%s11840_s16 + $0xf4] ss:$8 sps:$4 sm:$0xff]  }
 0x83d   : > { %9870 = vmatpush3.msra.mxu0 %v2993_v30 }
 0x83e   : > { %9872 = vmatmul.mubr.msk.f32.vlgmr.msra.gmra.mxu0 %vm1905_vm5, %v2981_v62  ;;  %3381 = vmatprep.subr.bf16.mxu0 %v10314_v26 }
 0x83f   : > { %v10847_v56 = vpop.eup %10846  ;;  %9874 = vmatprep.mubr.msk.f32.mxu0 %vm1905_vm5, %v2982_v44  ;;  %3382 = vmatpush1.bf16.msra.mxu0 %v10312_v12 }
 0x840   : > { %v2983_v57 = vmul.f32 %v10847_v56, %v10835_v47  ;;  %3383 = vmatprep.subr.bf16.mxu0 %v10317_v16  ;;  %v10339_v47 = vld [vmem:[%s11840_s16 + $0xe0] ss:$8 sps:$4 sm:$0xff]   ;;  %v10115_v56 = vpop.permute.xlu1 %10114 }
 0x842   : > { %9875 = vmatmul.mubr.msk.f32.gmra.mxu0 %vm1905_vm5, %v2983_v57  ;;  %v10117_v57 = vunpack.i.h.bf16 %v10115_v56 }
 0x843   : > { %v10849_v53 = vpop.eup %10848  ;;  %3384 = vmatpush1.bf16.msra.mxu0 %v10315_v33 }
 0x844   : > { %v10851_v28 = vpop.eup %10850  ;;  %v2985_v5 = vmul.f32 %v10849_v53, %v10837_v36  ;;  %3385 = vmatprep.subr.bf16.mxu0 %v10320_v34  ;;  %v10342_v36 = vld [vmem:[%s11840_s16 + $0xd0] ss:$8 sps:$4 sm:$0xff]   ;;  %v10116_v53 = vunpack.i.l.bf16 %v10115_v56  ;;  %v3172_v12 = vsel %vm1761_vm0, %v12582_v14, %v10117_v57  ;;  %v10125_v16 = vpop.permute.xlu1 %10124 }
 0x845   : > { %v2984_v18 = vmul.f32 %v10851_v28, %v10839_v7  ;;  %v10347_v7 = vld [vmem:[%s11840_s16 + $0xc4] ss:$8 sps:$4 sm:$0xff]  }
 0x846   : > { %v3171_v26 = vsel %vm1761_vm0, %v12584_v43, %v10116_v53 }
 0x847   : > { %9877 = vmatprep.mubr.msk.f32.mxu0 %vm1905_vm5, %v2984_v18  ;;  %3386 = vmatpush1.bf16.msra.mxu0 %v10318_v6 }
 0x848   : > { %9878 = vmatmul.mubr.msk.f32.gmra.mxu0 %vm1905_vm5, %v2985_v5  ;;  %3387 = vmatprep.subr.bf16.mxu0 %v10323_v59 }
 0x84b   : > { %3388 = vmatpush1.bf16.msra.mxu0 %v10321_v35  ;;  %v3215_v35 = vpack.c.bf16 %v3172_v12, %v3171_v26  ;;  %v11073_v26 = vld [vmem:[#allocation2 + $0x20] sm:$0xff] }
 0x84c   : > { %3389 = vmatprep.subr.bf16.mxu0 %v10326_v60 }
 0x84f   : > { %3390 = vmatpush1.bf16.msra.mxu0 %v10324_v54 }
 0x850   : > { %3391 = vmatprep.subr.bf16.mxu0 %v10329_v45  ;;  %v10127_v45 = vunpack.i.h.bf16 %v10125_v16 }
 0x853   : > { %3392 = vmatpush1.bf16.msra.mxu0 %v10327_v24  ;;  %v10126_v24 = vunpack.i.l.bf16 %v10125_v16 }
 0x854   : > { %3393 = vmatprep.subr.bf16.mxu0 %v10332_v8 }
 0x857   : > { %3394 = vmatpush1.bf16.msra.mxu0 %v10330_v32  ;;  %v3174_v32 = vsel %vm1761_vm0, %v12586_v49, %v10127_v45  ;;  %v11075_v45 = vld [vmem:[#allocation2 + $0x38] sm:$0xff] }
 0x858   : > { %3395 = vmatprep.subr.bf16.mxu0 %v10335_v41  ;;  %v10135_v41 = vpop.permute.xlu1 %10134 }
 0x85b   : > { %3396 = vmatpush1.bf16.msra.mxu0 %v10333_v46 }
 0x85c   : > { %3397 = vmatprep.subr.bf16.mxu0 %v10338_v63 }
 0x85f   : > { %3398 = vmatpush2.bf16.msra.mxu0 %v10336_v10 }
 0x860   : > { %3399 = vmatprep.subr.bf16.mxu0 %v10341_v40  ;;  %v10137_v40 = vunpack.i.h.bf16 %v10135_v41 }
 0x863   : > { %3400 = vmatpush2.bf16.msra.mxu0 %v10339_v47 }
 0x864   : > { %3401 = vmatprep.subr.bf16.mxu0 %v10344_v48  ;;  %v3176_v48 = vsel %vm1761_vm0, %v12590_v9, %v10137_v40 }
 0x867   : > { %3402 = vmatpush2.bf16.msra.mxu0 %v10342_v36 }
 0x868   : > { %3403 = vmatprep.subr.bf16.mxu0 %v10347_v7  ;;  %v10362_v7 = vld [vmem:[%s11849_s19 + $0xe4] ss:$16 sps:$4 sm:$0xff]  }
 0x86b   : > { %3404 = vmatpush2.bf16.msra.mxu0 %v10345_v51  ;;  %v10365_v51 = vld [vmem:[%s11849_s19 + $0xc4] ss:$16 sps:$4 sm:$0xff]  }
 0x86c   : > { %3405 = vmatprep.subr.bf16.mxu0 %v10350_v4  ;;  %v10368_v4 = vld [vmem:[%s11849_s19 + $0xa4] ss:$16 sps:$4 sm:$0xff]  }
 0x86f   : > { %3406 = vmatpush2.bf16.msra.mxu0 %v10348_v1  ;;  %v10366_v1 = vld [vmem:[%s11849_s19 + $0xa0] ss:$16 sps:$4 sm:$0xff]  }
 0x870   : > { %3407 = vmatprep.subr.bf16.mxu0 %v10353_v15  ;;  %v9070_v15 = vld [vmem:[%s11822_s28 + $0x6] ss:$8 sm:$0x3] }
 0x871   : > { %v3462_v9 = vrot.slane %v9070_v15, %v12053_v20 }
 0x873   : > { %3408 = vmatpush2.bf16.msra.mxu0 %v10351_v23  ;;  %v11068_v23 = vld [vmem:[#allocation2 + $0x30] sm:$0xff] }
 0x874   : > { %3409 = vmatprep.subr.bf16.mxu0 %v10356_v11 }
 0x877   : > { %3410 = vmatpush2.bf16.msra.mxu0 %v10354_v38  ;;  %v3466_v38 = vrot.slane %v9070_v15, %v12050_v19  ;;  %v10372_v15 = vld [vmem:[%s11849_s19 + $0x60] ss:$16 sps:$4 sm:$0xff]  }
 0x878   : > { %3411 = vmatprep.subr.bf16.mxu0 %v10359_v37  ;;  %v11069_v37 = vld [vmem:[#allocation2] sm:$0xff] }
 0x87b   : > { %3412 = vmatpush2.bf16.msra.mxu0 %v10357_v21 }
 0x87c   : > { %4276 = vmatprep.subr.bf16.mxu0 %v10362_v7 }
 0x8fe   : > { %v9873_v29 = vpop.f32.mrf.mxu0 }
 0x900   : > { %v3094_v0 = vpop.f32.mrf.mxu0 }
 0x901   : > { %v10108_v2 = vpack.i.bf16 %v9873_v29, %v3094_v0 }
 0x902   : > { %v9876_v39 = vpop.f32.mrf.mxu0 }
 0x903   : > { %10109 = vrot.lane.b32.xlu0 %v10108_v2, %s11401_s21 }
 0x904   : > { %v3104_v27 = vpop.f32.mrf.mxu0 }
 0x905   : > { %v10118_v42 = vpack.i.bf16 %v9876_v39, %v3104_v27  ;;  %v11070_v27 = vld [vmem:[#allocation2 + $0x58] sm:$0xff] }
 0x907   : > { %10119 = vrot.lane.b32.xlu0 %v10118_v42, %s11401_s21 }
 0x908   : > { %v9879_v30 = vpop.f32.mrf.mxu0 }
 0x90a   : > { %v3114_v62 = vpop.f32.mrf.mxu0 }
 0x90b   : > { %v10128_v44 = vpack.i.bf16 %v9879_v30, %v3114_v62  ;;  %v11071_v62 = vld [vmem:[#allocation2 + $0x18] sm:$0xff] }
 0x90d   : > { %10129 = vrot.lane.b32.xlu0 %v10128_v44, %s11401_s21 }
 0x975   : > { %v10110_v28 = vpop.permute.xlu0 %10109 }
 0x976   : > { %v10112_v5 = vunpack.i.h.bf16 %v10110_v28  ;;  %v10111_v18 = vunpack.i.l.bf16 %v10110_v28 }
 0x978   : > { %v3177_v33 = vsel %vm1761_vm0, %v12610_v25, %v10111_v18  ;;  %v3178_v34 = vsel %vm1761_vm0, %v12608_v58, %v10112_v5  ;;  %v3173_v58 = vsel %vm1761_vm0, %v12588_v17, %v10126_v24  ;;  %v10136_v17 = vunpack.i.l.bf16 %v10135_v41  ;;  %v11072_v5 = vld [vmem:[#allocation2 + $0x50] sm:$0xff] }
 0x979   : > { %v10120_v6 = vpop.permute.xlu0 %10119  ;;  %v3216_v59 = vpack.c.bf16 %v3178_v34, %v3177_v33  ;;  %v3217_v10 = vpack.c.bf16 %v3174_v32, %v3173_v58  ;;  %v11076_v58 = vld [vmem:[#allocation2 + $0x28] sm:$0xff] }
 0x97a   : > { %v10122_v60 = vunpack.i.h.bf16 %v10120_v6  ;;  %v10121_v54 = vunpack.i.l.bf16 %v10120_v6  ;;  %v3175_v49 = vsel %vm1761_vm0, %v12592_v3, %v10136_v17 }
 0x97b   : > { %3413 = vmatprep.mubr.bf16.mxu0 %v3216_v59  ;;  %v3219_v36 = vpack.c.bf16 %v3176_v48, %v3175_v49  ;;  %v10369_v48 = vld [vmem:[%s11849_s19 + $0x80] ss:$16 sps:$4 sm:$0xff]  }
 0x97c   : > { %3414 = vmatmul.mubr.bf16.vlgmr.msra.gmra.mxu0 %v3215_v35  ;;  %v3179_v14 = vsel %vm1761_vm0, %v12614_v13, %v10121_v54  ;;  %v3180_v43 = vsel %vm1761_vm0, %v12612_v61, %v10122_v60  ;;  %v11074_v35 = vld [vmem:[#allocation2 + $0x8] sm:$0xff] }
 0x97d   : > { %v3218_v8 = vpack.c.bf16 %v3180_v43, %v3179_v14 }
 0x97f   : > { %v10130_v25 = vpop.permute.xlu0 %10129  ;;  %3423 = vmatprep.mubr.bf16.mxu0 %v3218_v8 }
 0x980   : > { %v10132_v46 = vunpack.i.h.bf16 %v10130_v25  ;;  %v10131_v63 = vunpack.i.l.bf16 %v10130_v25 }
 0x982   : > { %v3181_v13 = vsel %vm1761_vm0, %v12618_v55, %v10131_v63  ;;  %v3182_v61 = vsel %vm1761_vm0, %v12616_v22, %v10132_v46  ;;  %v10360_v55 = vld [vmem:[%s11849_s19 + $0xe0] ss:$16 sps:$4 sm:$0xff]   ;;  %v11077_v46 = vld [vmem:[#allocation2 + $0x48] sm:$0xff] }
 0x983   : > { %v3220_v47 = vpack.c.bf16 %v3182_v61, %v3181_v13  ;;  %4277 = vmatpush1.bf16.msra.mxu0 %v10360_v55  ;;  %v10363_v22 = vld [vmem:[%s11849_s19 + $0xc0] ss:$16 sps:$4 sm:$0xff]   ;;  %v10371_v61 = vld [vmem:[%s11849_s19 + $0x84] ss:$16 sps:$4 sm:$0xff]  }
 0x984   : > { %3424 = vmatmul.mubr.bf16.gmra.mxu0 %v3217_v10  ;;  %4278 = vmatprep.subr.bf16.mxu0 %v10365_v51  ;;  %v11079_v55 = vld [vmem:[#allocation2 + $0x40] sm:$0xff] }
 0x985   : > { %3433 = vmatprep.mubr.bf16.mxu0 %v3220_v47  ;;  %v11078_v47 = vld [vmem:[#allocation2 + $0x10] sm:$0xff] }
 0x987   : > { %4279 = vmatpush1.bf16.msra.mxu0 %v10363_v22  ;;  %v10374_v22 = vld [vmem:[%s11849_s19 + $0x64] ss:$16 sps:$4 sm:$0xff]  }
 0x988   : > { %4280 = vmatprep.subr.bf16.mxu0 %v10368_v4 }
 0x98b   : > { %4281 = vmatpush1.bf16.msra.mxu0 %v10366_v1 }
 0x98c   : > { %3434 = vmatmul.mubr.bf16.gmra.mxu0 %v3219_v36  ;;  %4282 = vmatprep.subr.bf16.mxu0 %v10371_v61  ;;  %v737_v61 = vld [vmem:[%s14521_s15 + $0x28] sm:$0xff] }
 0x98f   : > { %4283 = vmatpush1.bf16.msra.mxu0 %v10369_v48 }
 0x990   : > { %4284 = vmatprep.subr.bf16.mxu0 %v10374_v22  ;;  %v736_v22 = vld [vmem:[%s14521_s15 + $0x20] sm:$0xff] }
 0x993   : > { %4285 = vmatpush1.bf16.msra.mxu0 %v10372_v15  ;;  %v738_v15 = vld [vmem:[%s14521_s15 + $0x30] sm:$0xff] }
 0xa3c   : > { %v3415_v3 = vpop.f32.mrf.mxu0 }
 0xa3d   : > { %v3444_v11 = vadd.f32 %v11068_v23, %v3415_v3  ;;  %v10377_v23 = vld [vmem:[%s11849_s19 + $0x44] ss:$16 sps:$4 sm:$0xff]  }
 0xa3e   : > { %v3417_v21 = vpop.f32.mrf.mxu0  ;;  %4286 = vmatprep.subr.bf16.mxu0 %v10377_v23  ;;  %v12843_v23 = vpack.c.bf16 %v738_v15, %v736_v22  ;;  %v10437_v22 = vld [vmem:[%s11847_s30 + $0xe4] ss:$8 sps:$4 sm:$0xff]  }
 0xa3f   : > { %v3445_v29 = vadd.f32 %v11069_v37, %v3417_v21  ;;  %v12734_v2 = vadd.f32 %v3462_v9, %v3444_v11  ;;  %v10375_v11 = vld [vmem:[%s11849_s19 + $0x40] ss:$16 sps:$4 sm:$0xff]   ;;  %v10383_v21 = vld [vmem:[%s11849_s19 + $0x4] ss:$16 sps:$4 sm:$0xff]  }
 0xa40   : > { %v3419_v0 = vpop.f32.mrf.mxu0  ;;  %4287 = vmatpush1.bf16.msra.mxu0 %v10375_v11  ;;  %v10381_v37 = vld [vmem:[%s11849_s19] ss:$16 sps:$4 sm:$0xff]   ;;  %v10431_v11 = vld [vmem:[%s11847_s30 + $0x4] ss:$8 sps:$4 sm:$0xff]  }
 0xa41   : > { %v12736_v39 = vadd.f32 %v3466_v38, %v3445_v29  ;;  %v3446_v42 = vadd.f32 %v11070_v27, %v3419_v0  ;;  %v10386_v29 = vld [vmem:[%s11849_s19 + $0x1e4] ss:$16 sps:$4 sm:$0xff]   ;;  %v10384_v0 = vld [vmem:[%s11849_s19 + $0x1e0] ss:$16 sps:$4 sm:$0xff]  }
 0xa42   : > { %v3421_v30 = vpop.f32.mrf.mxu0  ;;  %v10387_v27 = vld [vmem:[%s11849_s19 + $0x1c0] ss:$16 sps:$4 sm:$0xff]  }
 0xa43   : > { %v3447_v44 = vadd.f32 %v11071_v62, %v3421_v30  ;;  %v3485_v56 = vadd.f32 %v12736_v39, %v12734_v2  ;;  %v12740_v53 = vadd.f32 %v3462_v9, %v3446_v42  ;;  %v10389_v42 = vld [vmem:[%s11849_s19 + $0x1c4] ss:$16 sps:$4 sm:$0xff]   ;;  %v10390_v30 = vld [vmem:[%s11849_s19 + $0x1a0] ss:$16 sps:$4 sm:$0xff]  }
 0xa44   : > { %v3425_v57 = vpop.f32.mrf.mxu0  ;;  %v10392_v62 = vld [vmem:[%s11849_s19 + $0x1a4] ss:$16 sps:$4 sm:$0xff]  }
 0xa45   : > { %v12742_v28 = vadd.f32 %v3466_v38, %v3447_v44  ;;  %v3448_v18 = vadd.f32 %v11072_v5, %v3425_v57  ;;  %3486 = vadd.xlane.f32.xlu0 %v3485_v56  ;;  %v10395_v44 = vld [vmem:[%s11849_s19 + $0x184] ss:$16 sps:$4 sm:$0xff]   ;;  %v10393_v56 = vld [vmem:[%s11849_s19 + $0x180] ss:$16 sps:$4 sm:$0xff]   ;;  %v733_v57 = vld [vmem:[%s14521_s15 + $0x8] sm:$0xff] }
 0xa46   : > { %v3427_v12 = vpop.f32.mrf.mxu0  ;;  %v735_v5 = vld [vmem:[%s14521_s15 + $0x18] sm:$0xff] }
 0xa47   : > { %v3449_v16 = vadd.f32 %v11073_v26, %v3427_v12  ;;  %v3488_v33 = vadd.f32 %v12742_v28, %v12740_v53  ;;  %v12746_v6 = vadd.f32 %v3462_v9, %v3448_v18  ;;  %v10398_v18 = vld [vmem:[%s11849_s19 + $0x164] ss:$16 sps:$4 sm:$0xff]   ;;  %v12795_v12 = vpack.c.bf16 %v735_v5, %v733_v57  ;;  %v10408_v26 = vld [vmem:[%s11847_s30 + $0x70] ss:$8 sps:$4 sm:$0xff]  }
 0xa48   : > { %v3429_v34 = vpop.f32.mrf.mxu0 }
 0xa49   : > { %v12748_v59 = vadd.f32 %v3466_v38, %v3449_v16  ;;  %v3450_v60 = vadd.f32 %v11074_v35, %v3429_v34  ;;  %3489 = vadd.xlane.f32.xlu1 %v3488_v33  ;;  %4308 = vmatprep.mubr.bf16.mxu0 %v12795_v12  ;;  %v10410_v16 = vld [vmem:[%s11847_s30 + $0x74] ss:$8 sps:$4 sm:$0xff]   ;;  %v10413_v33 = vld [vmem:[%s11847_s30 + $0x64] ss:$8 sps:$4 sm:$0xff]   ;;  %v10396_v34 = vld [vmem:[%s11849_s19 + $0x160] ss:$16 sps:$4 sm:$0xff]  }
 0xa4a   : > { %v3431_v54 = vpop.f32.mrf.mxu0  ;;  %v10401_v35 = vld [vmem:[%s11849_s19 + $0x144] ss:$16 sps:$4 sm:$0xff]   ;;  %3825 = vmatprep.subr.bf16.mxu1 %v10410_v16 }
 0xa4b   : > { %v3451_v24 = vadd.f32 %v11075_v45, %v3431_v54  ;;  %v3491_v14 = vadd.f32 %v12748_v59, %v12746_v6  ;;  %v12752_v8 = vadd.f32 %v3462_v9, %v3450_v60  ;;  %3826 = vmatpush1.bf16.msra.mxu1 %v10408_v26  ;;  %v10411_v60 = vld [vmem:[%s11847_s30 + $0x60] ss:$8 sps:$4 sm:$0xff]   ;;  %v10416_v54 = vld [vmem:[%s11847_s30 + $0x54] ss:$8 sps:$4 sm:$0xff]  }
 0xa4c   : > { %v3435_v43 = vpop.f32.mrf.mxu0  ;;  %3827 = vmatprep.subr.bf16.mxu1 %v10413_v33  ;;  %v10399_v45 = vld [vmem:[%s11849_s19 + $0x140] ss:$16 sps:$4 sm:$0xff]  }
 0xa4d   : > { %v12754_v25 = vadd.f32 %v3466_v38, %v3451_v24  ;;  %v3452_v32 = vadd.f32 %v11076_v58, %v3435_v43  ;;  %3492 = vadd.xlane.f32.xlu0 %v3491_v14  ;;  %v10404_v24 = vld [vmem:[%s11849_s19 + $0x124] ss:$16 sps:$4 sm:$0xff]   ;;  %v10414_v14 = vld [vmem:[%s11847_s30 + $0x50] ss:$8 sps:$4 sm:$0xff]  }
 0xa4e   : > { %v3437_v41 = vpop.f32.mrf.mxu0  ;;  %v10419_v43 = vld [vmem:[%s11847_s30 + $0x44] ss:$8 sps:$4 sm:$0xff]   ;;  %v10402_v58 = vld [vmem:[%s11849_s19 + $0x120] ss:$16 sps:$4 sm:$0xff]  }
 0xa4f   : > { %v3453_v63 = vadd.f32 %v11077_v46, %v3437_v41  ;;  %v3494_v10 = vadd.f32 %v12754_v25, %v12752_v8  ;;  %v12759_v40 = vadd.f32 %v3462_v9, %v3452_v32  ;;  %3828 = vmatpush1.bf16.msra.mxu1 %v10411_v60  ;;  %v10407_v32 = vld [vmem:[%s11849_s19 + $0x104] ss:$16 sps:$4 sm:$0xff]   ;;  %v10417_v41 = vld [vmem:[%s11847_s30 + $0x40] ss:$8 sps:$4 sm:$0xff]  }
 0xa50   : > { %v3439_v13 = vpop.f32.mrf.mxu0  ;;  %3829 = vmatprep.subr.bf16.mxu1 %v10416_v54  ;;  %v10422_v46 = vld [vmem:[%s11847_s30 + $0x34] ss:$8 sps:$4 sm:$0xff]  }
 0xa51   : > { %v12761_v17 = vadd.f32 %v3466_v38, %v3453_v63  ;;  %v3454_v49 = vadd.f32 %v11078_v47, %v3439_v13  ;;  %3495 = vadd.xlane.f32.xlu0 %v3494_v10  ;;  %v10405_v63 = vld [vmem:[%s11849_s19 + $0x100] ss:$16 sps:$4 sm:$0xff]   ;;  %v739_v47 = vld [vmem:[%s14521_s15 + $0x38] sm:$0xff] }
 0xa52   : > { %v3441_v36 = vpop.f32.mrf.mxu0  ;;  %v732_v10 = vld [vmem:[%s14521_s15] sm:$0xff]  ;;  %v734_v13 = vld [vmem:[%s14521_s15 + $0x10] sm:$0xff] }
 0xa53   : > { %v3455_v7 = vadd.f32 %v11079_v55, %v3441_v36  ;;  %v3497_v51 = vadd.f32 %v12761_v17, %v12759_v40  ;;  %v12767_v4 = vadd.f32 %v3462_v9, %v3454_v49  ;;  %v10380_v9 = vld [vmem:[%s11849_s19 + $0x24] ss:$16 sps:$4 sm:$0xff]   ;;  %3830 = vmatpush1.bf16.msra.mxu1 %v10414_v14  ;;  %v10420_v49 = vld [vmem:[%s11847_s30 + $0x30] ss:$8 sps:$4 sm:$0xff]   ;;  %v12827_v48 = vpack.c.bf16 %v734_v13, %v732_v10 }
 0xa54   : > { %4288 = vmatprep.subr.bf16.mxu0 %v10380_v9  ;;  %3831 = vmatprep.subr.bf16.mxu1 %v10419_v43  ;;  %v10425_v36 = vld [vmem:[%s11847_s30 + $0x24] ss:$8 sps:$4 sm:$0xff]   ;;  %v12830_v55 = vpack.c.bf16 %v739_v47, %v737_v61  ;;  %v10429_v9 = vld [vmem:[%s11847_s30] ss:$8 sps:$4 sm:$0xff]  }
 0xa55   : > { %v12769_v1 = vadd.f32 %v3466_v38, %v3455_v7  ;;  %3498 = vadd.xlane.f32.xlu0 %v3497_v51  ;;  %v10378_v38 = vld [vmem:[%s11849_s19 + $0x20] ss:$16 sps:$4 sm:$0xff]   ;;  %v10428_v51 = vld [vmem:[%s11847_s30 + $0x14] ss:$8 sps:$4 sm:$0xff]  }
 0xa56   : > { %4289 = vmatpush1.bf16.msra.mxu0 %v10378_v38  ;;  %v10423_v7 = vld [vmem:[%s11847_s30 + $0x20] ss:$8 sps:$4 sm:$0xff]   ;;  %v10434_v38 = vld [vmem:[%s11847_s30 + $0xf4] ss:$8 sps:$4 sm:$0xff]  }
 0xa57   : > { %v3500_v3 = vadd.f32 %v12769_v1, %v12767_v4  ;;  %4290 = vmatprep.subr.bf16.mxu0 %v10383_v21  ;;  %3832 = vmatpush1.bf16.msra.mxu1 %v10417_v41  ;;  %v10432_v21 = vld [vmem:[%s11847_s30 + $0xf0] ss:$8 sps:$4 sm:$0xff]  }
 0xa58   : > { %3833 = vmatprep.subr.bf16.mxu1 %v10422_v46 }
 0xa59   : > { %3501 = vadd.xlane.f32.xlu1 %v3500_v3  ;;  %v10426_v3 = vld [vmem:[%s11847_s30 + $0x10] ss:$8 sps:$4 sm:$0xff]  }
 0xa5a   : > { %4291 = vmatpush1.bf16.msra.mxu0 %v10381_v37 }
 0xa5b   : > { %4292 = vmatprep.subr.bf16.mxu0 %v10386_v29  ;;  %3834 = vmatpush1.bf16.msra.mxu1 %v10420_v49 }
 0xa5c   : > { %3835 = vmatprep.subr.bf16.mxu1 %v10425_v36 }
 0xa5e   : > { %4293 = vmatpush2.bf16.msra.mxu0 %v10384_v0 }
 0xa5f   : > { %4294 = vmatprep.subr.bf16.mxu0 %v10389_v42  ;;  %3836 = vmatpush1.bf16.msra.mxu1 %v10423_v7 }
 0xa60   : > { %3837 = vmatprep.subr.bf16.mxu1 %v10428_v51 }
 0xa62   : > { %4295 = vmatpush2.bf16.msra.mxu0 %v10387_v27 }
 0xa63   : > { %4296 = vmatprep.subr.bf16.mxu0 %v10392_v62  ;;  %3838 = vmatpush1.bf16.msra.mxu1 %v10426_v3 }
 0xa64   : > { %3839 = vmatprep.subr.bf16.mxu1 %v10431_v11 }
 0xa66   : > { %4297 = vmatpush2.bf16.msra.mxu0 %v10390_v30 }
 0xa67   : > { %4298 = vmatprep.subr.bf16.mxu0 %v10395_v44  ;;  %3840 = vmatpush1.bf16.msra.mxu1 %v10429_v9  ;;  %v10435_v9 = vld [vmem:[%s11847_s30 + $0xe0] ss:$8 sps:$4 sm:$0xff]  }
 0xa68   : > { %3841 = vmatprep.subr.bf16.mxu1 %v10434_v38 }
 0xa6a   : > { %4299 = vmatpush2.bf16.msra.mxu0 %v10393_v56 }
 0xa6b   : > { %4300 = vmatprep.subr.bf16.mxu0 %v10398_v18  ;;  %3842 = vmatpush2.bf16.msra.mxu1 %v10432_v21 }
 0xa6c   : > { %3843 = vmatprep.subr.bf16.mxu1 %v10437_v22 }
 0xa6e   : > { %4301 = vmatpush2.bf16.msra.mxu0 %v10396_v34 }
 0xa6f   : > { %4302 = vmatprep.subr.bf16.mxu0 %v10401_v35  ;;  %3844 = vmatpush2.bf16.msra.mxu1 %v10435_v9 }
 0xa72   : > { %4303 = vmatpush2.bf16.msra.mxu0 %v10399_v45 }
 0xa73   : > { %4304 = vmatprep.subr.bf16.mxu0 %v10404_v24 }
 0xa76   : > { %4305 = vmatpush2.bf16.msra.mxu0 %v10402_v58 }
 0xa77   : > { %4306 = vmatprep.subr.bf16.mxu0 %v10407_v32 }
 0xa7a   : > { %4307 = vmatpush2.bf16.msra.mxu0 %v10405_v63 }
 0xa7d   : > { %4309 = vmatmul.mubr.bf16.vlgmr.msra.gmra.mxu0 %v12827_v48 }
 0xa7e   : > { %4318 = vmatprep.mubr.bf16.mxu0 %v12830_v55 }
 0xa85   : > { %4319 = vmatmul.mubr.bf16.gmra.mxu0 %v12843_v23 }
 0xace   : > { %v3487_v37 = vpop.xlane.xlu0 %3486 }
 0xacf   : > { %v3503_v29 = vmul.f32 0.00390625, %v3487_v37  ;;  %v10440_v37 = vld [vmem:[%s11847_s30 + $0xd4] ss:$8 sps:$4 sm:$0xff]  }
 0xad0   : > { %3845 = vmatprep.subr.bf16.mxu1 %v10440_v37 }
 0xad1   : > { %v12851_v0 = vsub.f32 %v12734_v2, %v3503_v29  ;;  %v12854_v27 = vsub.f32 %v12736_v39, %v3503_v29 }
 0xad2   : > { %v3490_v42 = vpop.xlane.xlu1 %3489 }
 0xad3   : > { %v3521_v30 = vmul.f32 %v12851_v0, %v12851_v0  ;;  %v3522_v62 = vmul.f32 %v12854_v27, %v12854_v27  ;;  %v3504_v44 = vmul.f32 0.00390625, %v3490_v42  ;;  %v10438_v42 = vld [vmem:[%s11847_s30 + $0xd0] ss:$8 sps:$4 sm:$0xff]  }
 0xad4   : > { %3846 = vmatpush2.bf16.msra.mxu1 %v10438_v42  ;;  %v9071_v42 = vld [vmem:[%s11822_s28 + $0x2] ss:$8 sm:$0x3] }
 0xad5   : > { %v12861_v56 = vsub.f32 %v12740_v53, %v3504_v44  ;;  %v12864_v57 = vsub.f32 %v12742_v28, %v3504_v44  ;;  %v3533_v5 = vadd.f32 %v3522_v62, %v3521_v30  ;;  %v10443_v30 = vld [vmem:[%s11847_s30 + $0xc4] ss:$8 sps:$4 sm:$0xff]   ;;  %v10441_v62 = vld [vmem:[%s11847_s30 + $0xc0] ss:$8 sps:$4 sm:$0xff]   ;;  %v10446_v44 = vld [vmem:[%s11847_s30 + $0xb4] ss:$8 sps:$4 sm:$0xff]  }
 0xad6   : > { %v3493_v18 = vpop.xlane.xlu0 %3492  ;;  %3847 = vmatprep.subr.bf16.mxu1 %v10443_v30 }
 0xad7   : > { %v3523_v26 = vmul.f32 %v12861_v56, %v12861_v56  ;;  %v3524_v16 = vmul.f32 %v12864_v57, %v12864_v57  ;;  %v3505_v33 = vmul.f32 0.00390625, %v3493_v18  ;;  %3534 = vadd.xlane.f32.xlu0 %v3533_v5  ;;  %v10444_v5 = vld [vmem:[%s11847_s30 + $0xb0] ss:$8 sps:$4 sm:$0xff]   ;;  %v10449_v18 = vld [vmem:[%s11847_s30 + $0xa4] ss:$8 sps:$4 sm:$0xff]  }
 0xad8   : > { %3848 = vmatpush2.bf16.msra.mxu1 %v10441_v62 }
 0xad9   : > { %v12871_v34 = vsub.f32 %v12746_v6, %v3505_v33  ;;  %v12874_v35 = vsub.f32 %v12748_v59, %v3505_v33  ;;  %v3536_v60 = vadd.f32 %v3524_v16, %v3523_v26  ;;  %3849 = vmatprep.subr.bf16.mxu1 %v10446_v44  ;;  %v10447_v26 = vld [vmem:[%s11847_s30 + $0xa0] ss:$8 sps:$4 sm:$0xff]   ;;  %v10452_v16 = vld [vmem:[%s11847_s30 + $0x94] ss:$8 sps:$4 sm:$0xff]   ;;  %v10450_v33 = vld [vmem:[%s11847_s30 + $0x90] ss:$8 sps:$4 sm:$0xff]  }
 0xada   : > { %v3496_v54 = vpop.xlane.xlu0 %3495 }
 0xadb   : > { %v3525_v45 = vmul.f32 %v12871_v34, %v12871_v34  ;;  %v3526_v24 = vmul.f32 %v12874_v35, %v12874_v35  ;;  %v3506_v14 = vmul.f32 0.00390625, %v3496_v54  ;;  %3537 = vadd.xlane.f32.xlu1 %v3536_v60  ;;  %v10455_v60 = vld [vmem:[%s11847_s30 + $0x84] ss:$8 sps:$4 sm:$0xff]   ;;  %v10453_v54 = vld [vmem:[%s11847_s30 + $0x80] ss:$8 sps:$4 sm:$0xff]  }
 0xadc   : > { %3850 = vmatpush2.bf16.msra.mxu1 %v10444_v5  ;;  %v12945_v5 = vrot.slane %v9071_v42, %v12053_v20 }
 0xadd   : > { %v12881_v43 = vsub.f32 %v12752_v8, %v3506_v14  ;;  %v12884_v58 = vsub.f32 %v12754_v25, %v3506_v14  ;;  %v3539_v32 = vadd.f32 %v3526_v24, %v3525_v45  ;;  %3851 = vmatprep.subr.bf16.mxu1 %v10449_v18  ;;  %v10458_v45 = vld [vmem:[%s11849_s19 + $0xec] ss:$16 sps:$4 sm:$0xff]   ;;  %v12948_v18 = vrot.slane %v9071_v42, %v12050_v19  ;;  %v10456_v42 = vld [vmem:[%s11849_s19 + $0xe8] ss:$16 sps:$4 sm:$0xff]  }
 0xade   : > { %v3499_v41 = vpop.xlane.xlu0 %3498 }
 0xadf   : > { %v3527_v46 = vmul.f32 %v12881_v43, %v12881_v43  ;;  %v3528_v63 = vmul.f32 %v12884_v58, %v12884_v58  ;;  %v3507_v10 = vmul.f32 0.00390625, %v3499_v41  ;;  %3540 = vadd.xlane.f32.xlu0 %v3539_v32 }
 0xae0   : > { %3852 = vmatpush2.bf16.msra.mxu1 %v10447_v26 }
 0xae1   : > { %v12891_v13 = vsub.f32 %v12759_v40, %v3507_v10  ;;  %v12894_v61 = vsub.f32 %v12761_v17, %v3507_v10  ;;  %v3542_v47 = vadd.f32 %v3528_v63, %v3527_v46  ;;  %3853 = vmatprep.subr.bf16.mxu1 %v10452_v16 }
 0xae2   : > { %v3502_v49 = vpop.xlane.xlu1 %3501 }
 0xae3   : > { %v3529_v36 = vmul.f32 %v12891_v13, %v12891_v13  ;;  %v3530_v7 = vmul.f32 %v12894_v61, %v12894_v61  ;;  %v3508_v51 = vmul.f32 0.00390625, %v3502_v49  ;;  %3543 = vadd.xlane.f32.xlu1 %v3542_v47 }
 0xae4   : > { %3854 = vmatpush2.bf16.msra.mxu1 %v10450_v33  ;;  %v9072_v33 = vld [vmem:[%s11822_s28 + $0x3] ss:$8 sm:$0x3] }
 0xae5   : > { %v12902_v15 = vsub.f32 %v12767_v4, %v3508_v51  ;;  %v12905_v3 = vsub.f32 %v12769_v1, %v3508_v51  ;;  %v3545_v11 = vadd.f32 %v3530_v7, %v3529_v36  ;;  %3855 = vmatprep.subr.bf16.mxu1 %v10455_v60 }
 0xae7   : > { %v3531_v38 = vmul.f32 %v12902_v15, %v12902_v15  ;;  %v3532_v21 = vmul.f32 %v12905_v3, %v12905_v3  ;;  %3546 = vadd.xlane.f32.xlu0 %v3545_v11 }
 0xae8   : > { %3856 = vmatpush2.bf16.msra.mxu1 %v10453_v54 }
 0xae9   : > { %v3548_v29 = vadd.f32 %v3532_v21, %v3531_v38  ;;  %4329 = vmatprep.subr.bf16.mxu1 %v10458_v45 }
 0xaeb   : > { %3549 = vadd.xlane.f32.xlu1 %v3548_v29 }
 0xb3d   : > { %v4310_v24 = vpop.f32.mrf.mxu0 }
 0xb3f   : > { %v12925_v14 = vpop.f32.mrf.mxu0 }
 0xb41   : > { %v4314_v32 = vpop.f32.mrf.mxu0 }
 0xb43   : > { %v12927_v41 = vpop.f32.mrf.mxu0 }
 0xb45   : > { %v4320_v46 = vpop.f32.mrf.mxu0 }
 0xb46   : > { %4715 = vrot.lane.b32.xlu1 %v4320_v46, %s11401_s21 }
 0xb47   : > { %v12930_v63 = vpop.f32.mrf.mxu0 }
 0xb49   : > { %v4324_v10 = vpop.f32.mrf.mxu0 }
 0xb4a   : > { %4717 = vrot.lane.b32.xlu0 %v4324_v10, %s11401_s21  ;;  %4713 = vrot.lane.b32.xlu1 %v4314_v32, %s11401_s21 }
 0xb4b   : > { %9880 = vmatprep.subr.msk.mxu0 %vm1761_vm0, %v4324_v10 }
 0xb4c   : > { %9881 = vmatpush3.xpose.msk.msra.mxu0 %vm1761_vm0, %v4324_v10  ;;  %v3612_v10 = vrot.slane %v9072_v33, %v12050_v19 }
 0xb4d   : > { %9882 = vmatprep.subr.msk.mxu0 %vm1761_vm0, %v4320_v46 }
 0xb4e   : > { %4711 = vrot.lane.b32.xlu1 %v4310_v24, %s11401_s21 }
 0xb50   : > { %9883 = vmatpush3.xpose.msk.msra.mxu0 %vm1761_vm0, %v4320_v46  ;;  %v3608_v46 = vrot.slane %v9072_v33, %v12053_v20  ;;  %v10459_v33 = vld [vmem:[%s11849_s19 + $0xc8] ss:$16 sps:$4 sm:$0xff]  }
 0xb51   : > { %9884 = vmatprep.subr.msk.mxu0 %vm1761_vm0, %v4314_v32 }
 0xb54   : > { %9885 = vmatpush3.xpose.msk.msra.mxu0 %vm1761_vm0, %v4314_v32 }
 0xb55   : > { %9886 = vmatprep.subr.msk.mxu0 %vm1761_vm0, %v4310_v24 }
 0xb58   : > { %9887 = vmatpush3.xpose.msk.msra.mxu0 %vm1761_vm0, %v4310_v24 }
 0xb60   : > { %v3535_v47 = vpop.xlane.xlu0 %3534 }
 0xb61   : > { %v3551_v49 = vmul.f32 0.00390625, %v3535_v47 }
 0xb63   : > { %v3557_v36 = vadd.f32 1e-05, %v3551_v49 }
 0xb64   : > { %v3538_v7 = vpop.xlane.xlu1 %3537 }
 0xb65   : > { %10852 = vrsqrt.f32 %v3557_v36  ;;  %v3552_v51 = vmul.f32 0.00390625, %v3538_v7 }
 0xb67   : > { %v3558_v22 = vadd.f32 1e-05, %v3552_v51 }
 0xb68   : > { %v3541_v11 = vpop.xlane.xlu0 %3540 }
 0xb69   : > { %10854 = vrsqrt.f32 %v3558_v22  ;;  %v3553_v9 = vmul.f32 0.00390625, %v3541_v11 }
 0xb6b   : > { %v3559_v38 = vadd.f32 1e-05, %v3553_v9 }
 0xb6c   : > { %v3544_v21 = vpop.xlane.xlu1 %3543 }
 0xb6d   : > { %10856 = vrsqrt.f32 %v3559_v38  ;;  %v3554_v37 = vmul.f32 0.00390625, %v3544_v21 }
 0xb6f   : > { %v3560_v29 = vadd.f32 1e-05, %v3554_v37 }
 0xb70   : > { %v3547_v30 = vpop.xlane.xlu0 %3546 }
 0xb71   : > { %10858 = vrsqrt.f32 %v3560_v29  ;;  %v3555_v62 = vmul.f32 0.00390625, %v3547_v30 }
 0xb72   : > { %v10853_v44 = vpop.eup %10852 }
 0xb73   : > { %v3569_v26 = vmul.f32 %v10853_v44, %v12851_v0  ;;  %v3561_v16 = vadd.f32 1e-05, %v3555_v62  ;;  %v3570_v60 = vmul.f32 %v10853_v44, %v12854_v27  ;;  %v10461_v44 = vld [vmem:[%s11849_s19 + $0xcc] ss:$16 sps:$4 sm:$0xff]  }
 0xb74   : > { %v3550_v54 = vpop.xlane.xlu1 %3549 }
 0xb75   : > { %10860 = vrsqrt.f32 %v3561_v16  ;;  %v3556_v45 = vmul.f32 0.00390625, %v3550_v54  ;;  %v3593_v32 = vmul.f32 %v12948_v18, %v3570_v60  ;;  %v3592_v47 = vmul.f32 %v12945_v5, %v3569_v26 }
 0xb76   : > { %v10855_v24 = vpop.eup %10854 }
 0xb77   : > { %v3571_v49 = vmul.f32 %v10855_v24, %v12861_v56  ;;  %v3562_v0 = vadd.f32 1e-05, %v3556_v45  ;;  %v3572_v36 = vmul.f32 %v10855_v24, %v12864_v57  ;;  %v3616_v22 = vadd.f32 %v3612_v10, %v3593_v32  ;;  %v10464_v24 = vld [vmem:[%s11849_s19 + $0xac] ss:$16 sps:$4 sm:$0xff]  }
 0xb78   : > { %v3615_v11 = vadd.f32 %v3608_v46, %v3592_v47 }
 0xb79   : > { %10862 = vrsqrt.f32 %v3562_v0  ;;  %v3595_v27 = vmul.f32 %v12948_v18, %v3572_v36  ;;  %v3594_v7 = vmul.f32 %v12945_v5, %v3571_v49  ;;  %v10462_v36 = vld [vmem:[%s11849_s19 + $0xa8] ss:$16 sps:$4 sm:$0xff]  }
 0xb7a   : > { %v10857_v51 = vpop.eup %10856 }
 0xb7b   : > { %v3618_v9 = vadd.f32 %v3612_v10, %v3595_v27  ;;  %v3617_v38 = vadd.f32 %v3608_v46, %v3594_v7  ;;  %v3574_v21 = vmul.f32 %v10857_v51, %v12874_v35  ;;  %v3573_v37 = vmul.f32 %v10857_v51, %v12871_v34  ;;  %v10467_v7 = vld [vmem:[%s11849_s19 + $0x8c] ss:$16 sps:$4 sm:$0xff]  }
 0xb7d   : > { %v3660_v56 = vpack.c.bf16 %v3618_v9, %v3616_v22  ;;  %v3659_v29 = vpack.c.bf16 %v3617_v38, %v3615_v11  ;;  %v3597_v30 = vmul.f32 %v12948_v18, %v3574_v21  ;;  %v3596_v62 = vmul.f32 %v12945_v5, %v3573_v37  ;;  %v10465_v38 = vld [vmem:[%s11849_s19 + $0x88] ss:$16 sps:$4 sm:$0xff]   ;;  %v10470_v21 = vld [vmem:[%s11849_s19 + $0x6c] ss:$16 sps:$4 sm:$0xff]  }
 0xb7e   : > { %v10859_v57 = vpop.eup %10858 }
 0xb7f   : > { %3857 = vmatprep.mubr.bf16.mxu1 %v3660_v56  ;;  %v3576_v26 = vmul.f32 %v10859_v57, %v12884_v58  ;;  %v3575_v16 = vmul.f32 %v10859_v57, %v12881_v43  ;;  %v3620_v54 = vadd.f32 %v3612_v10, %v3597_v30  ;;  %v3619_v45 = vadd.f32 %v3608_v46, %v3596_v62  ;;  %v10468_v57 = vld [vmem:[%s11849_s19 + $0x68] ss:$16 sps:$4 sm:$0xff]   ;;  %v10479_v30 = vld [vmem:[%s11849_s19 + $0xc] ss:$16 sps:$4 sm:$0xff]  }
 0xb80   : > { %3858 = vmatmul.mubr.bf16.vlgmr.msra.gmra.mxu1 %v3659_v29  ;;  %v10477_v62 = vld [vmem:[%s11849_s19 + $0x8] ss:$16 sps:$4 sm:$0xff]  }
 0xb81   : > { %v3599_v35 = vmul.f32 %v12948_v18, %v3576_v26  ;;  %v3598_v34 = vmul.f32 %v12945_v5, %v3575_v16  ;;  %4330 = vmatpush1.bf16.msra.mxu1 %v10456_v42  ;;  %v10480_v26 = vld [vmem:[%s11849_s19 + $0x1e8] ss:$16 sps:$4 sm:$0xff]  }
 0xb82   : > { %v10861_v60 = vpop.eup %10860  ;;  %4331 = vmatprep.subr.bf16.mxu1 %v10461_v44  ;;  %v10482_v44 = vld [vmem:[%s11849_s19 + $0x1ec] ss:$16 sps:$4 sm:$0xff]   ;;  %v10483_v16 = vld [vmem:[%s11849_s19 + $0x1c8] ss:$16 sps:$4 sm:$0xff]  }
 0xb83   : > { %v3622_v32 = vadd.f32 %v3612_v10, %v3599_v35  ;;  %v3621_v47 = vadd.f32 %v3608_v46, %v3598_v34  ;;  %v3578_v58 = vmul.f32 %v10861_v60, %v12894_v61  ;;  %v3577_v43 = vmul.f32 %v10861_v60, %v12891_v13  ;;  %v10488_v35 = vld [vmem:[%s11849_s19 + $0x1ac] ss:$16 sps:$4 sm:$0xff]   ;;  %v10486_v34 = vld [vmem:[%s11849_s19 + $0x1a8] ss:$16 sps:$4 sm:$0xff]  }
 0xb84   : > { %v10489_v60 = vld [vmem:[%s11849_s19 + $0x188] ss:$16 sps:$4 sm:$0xff]  }
 0xb85   : > { %v3662_v49 = vpack.c.bf16 %v3622_v32, %v3620_v54  ;;  %v3661_v0 = vpack.c.bf16 %v3621_v47, %v3619_v45  ;;  %4332 = vmatpush1.bf16.msra.mxu1 %v10459_v33  ;;  %v3601_v22 = vmul.f32 %v12948_v18, %v3578_v58  ;;  %v3600_v61 = vmul.f32 %v12945_v5, %v3577_v43  ;;  %v10491_v33 = vld [vmem:[%s11849_s19 + $0x18c] ss:$16 sps:$4 sm:$0xff]   ;;  %v10492_v45 = vld [vmem:[%s11849_s19 + $0x168] ss:$16 sps:$4 sm:$0xff]  }
 0xb86   : > { %v10863_v27 = vpop.eup %10862  ;;  %4333 = vmatprep.subr.bf16.mxu1 %v10464_v24  ;;  %v10494_v54 = vld [vmem:[%s11849_s19 + $0x16c] ss:$16 sps:$4 sm:$0xff]   ;;  %v10495_v32 = vld [vmem:[%s11849_s19 + $0x148] ss:$16 sps:$4 sm:$0xff]  }
 0xb87   : > { %3867 = vmatprep.mubr.bf16.mxu1 %v3662_v49  ;;  %v3580_v51 = vmul.f32 %v10863_v27, %v12905_v3  ;;  %v3579_v11 = vmul.f32 %v10863_v27, %v12902_v15  ;;  %v3624_v37 = vadd.f32 %v3612_v10, %v3601_v22  ;;  %v3623_v56 = vadd.f32 %v3608_v46, %v3600_v61  ;;  %v10497_v24 = vld [vmem:[%s11849_s19 + $0x14c] ss:$16 sps:$4 sm:$0xff]   ;;  %v10498_v58 = vld [vmem:[%s11849_s19 + $0x128] ss:$16 sps:$4 sm:$0xff]  }
 0xb88   : > { %3868 = vmatmul.mubr.bf16.gmra.mxu1 %v3661_v0  ;;  %v10500_v47 = vld [vmem:[%s11849_s19 + $0x12c] ss:$16 sps:$4 sm:$0xff]   ;;  %v10501_v49 = vld [vmem:[%s11849_s19 + $0x108] ss:$16 sps:$4 sm:$0xff]  }
 0xb89   : > { %v3603_v13 = vmul.f32 %v12948_v18, %v3580_v51  ;;  %v3602_v9 = vmul.f32 %v12945_v5, %v3579_v11  ;;  %4334 = vmatpush1.bf16.msra.mxu1 %v10462_v36  ;;  %v10473_v5 = vld [vmem:[%s11849_s19 + $0x4c] ss:$16 sps:$4 sm:$0xff]   ;;  %v10471_v18 = vld [vmem:[%s11849_s19 + $0x48] ss:$16 sps:$4 sm:$0xff]  }
 0xb8a   : > { %4335 = vmatprep.subr.bf16.mxu1 %v10467_v7  ;;  %v10503_v43 = vld [vmem:[%s11849_s19 + $0x10c] ss:$16 sps:$4 sm:$0xff]  }
 0xb8b   : > { %v3626_v3 = vadd.f32 %v3612_v10, %v3603_v13  ;;  %v3625_v15 = vadd.f32 %v3608_v46, %v3602_v9  ;;  %v10476_v46 = vld [vmem:[%s11849_s19 + $0x2c] ss:$16 sps:$4 sm:$0xff]   ;;  %v10474_v10 = vld [vmem:[%s11849_s19 + $0x28] ss:$16 sps:$4 sm:$0xff]  }
 0xb8d   : > { %v3664_v29 = vpack.c.bf16 %v3626_v3, %v3624_v37  ;;  %v3663_v42 = vpack.c.bf16 %v3625_v15, %v3623_v56  ;;  %4336 = vmatpush1.bf16.msra.mxu1 %v10465_v38  ;;  %v4326_v38 = vpop.f32.mrf.mxu0 }
 0xb8e   : > { %4337 = vmatprep.subr.bf16.mxu1 %v10470_v21 }
 0xb8f   : > { %3877 = vmatprep.mubr.bf16.mxu1 %v3664_v29 }
 0xb90   : > { %3878 = vmatmul.mubr.bf16.gmra.mxu1 %v3663_v42 }
 0xb91   : > { %4338 = vmatpush1.bf16.msra.mxu1 %v10468_v57  ;;  %4361 = vmatprep.mubr.bf16.mxu1 %v12795_v12  ;;  %v10485_v12 = vld [vmem:[%s11849_s19 + $0x1cc] ss:$16 sps:$4 sm:$0xff]  }
 0xb92   : > { %4339 = vmatprep.subr.bf16.mxu1 %v10473_v5 }
 0xb95   : > { %4340 = vmatpush1.bf16.msra.mxu1 %v10471_v18 }
 0xb96   : > { %4341 = vmatprep.subr.bf16.mxu1 %v10476_v46 }
 0xb99   : > { %4342 = vmatpush1.bf16.msra.mxu1 %v10474_v10 }
 0xb9a   : > { %4343 = vmatprep.subr.bf16.mxu1 %v10479_v30 }
 0xb9d   : > { %4344 = vmatpush1.bf16.msra.mxu1 %v10477_v62 }
 0xb9e   : > { %4345 = vmatprep.subr.bf16.mxu1 %v10482_v44 }
 0xba1   : > { %4346 = vmatpush2.bf16.msra.mxu1 %v10480_v26 }
 0xba2   : > { %4347 = vmatprep.subr.bf16.mxu1 %v10485_v12 }
 0xba5   : > { %4348 = vmatpush2.bf16.msra.mxu1 %v10483_v16 }
 0xba6   : > { %4349 = vmatprep.subr.bf16.mxu1 %v10488_v35 }
 0xba9   : > { %4350 = vmatpush2.bf16.msra.mxu1 %v10486_v34 }
 0xbaa   : > { %4351 = vmatprep.subr.bf16.mxu1 %v10491_v33 }
 0xbad   : > { %4352 = vmatpush2.bf16.msra.mxu1 %v10489_v60 }
 0xbae   : > { %4353 = vmatprep.subr.bf16.mxu1 %v10494_v54 }
 0xbb1   : > { %4354 = vmatpush2.bf16.msra.mxu1 %v10492_v45  ;;  %v13123_v45 = vsel %vm815_vm6, 0.0, %v11402_v52 }
 0xbb2   : > { %4355 = vmatprep.subr.bf16.mxu1 %v10497_v24 }
 0xbb5   : > { %4356 = vmatpush2.bf16.msra.mxu1 %v10495_v32 }
 0xbb6   : > { %4357 = vmatprep.subr.bf16.mxu1 %v10500_v47 }
 0xbb8   : > { %v4716_v27 = vpop.permute.xlu1 %4715 }
 0xbb9   : > { %4358 = vmatpush2.bf16.msra.mxu1 %v10498_v58 }
 0xbba   : > { %4359 = vmatprep.subr.bf16.mxu1 %v10503_v43 }
 0xbbc   : > { %v4718_v0 = vpop.permute.xlu0 %4717 }
 0xbbd   : > { %4360 = vmatpush2.bf16.msra.mxu1 %v10501_v49  ;;  %9914 = vmatprep.subr.msk.mxu0 %vm1761_vm0, %v4718_v0 }
 0xbc0   : > { %4362 = vmatmul.mubr.bf16.vlgmr.msra.gmra.mxu1 %v12827_v48 }
 0xbc1   : > { %4371 = vmatprep.mubr.bf16.mxu1 %v12830_v55  ;;  %v4714_v55 = vpop.permute.xlu1 %4713 }
 0xbc5   : > { %v4712_v61 = vpop.permute.xlu1 %4711 }
 0xbc8   : > { %4372 = vmatmul.mubr.bf16.gmra.mxu1 %v12843_v23 }
 0xc40   : > { %v3859_v36 = vpop.f32.mrf.mxu1 }
 0xc41   : > { %4699 = vrot.lane.b32.xlu0 %v3859_v36, %s11401_s21  ;;  %9888 = vmatprep.mubr.msk.f32.mxu0 %vm1761_vm0, %v3859_v36 }
 0xc42   : > { %v13015_v7 = vpop.f32.mrf.mxu1 }
 0xc44   : > { %v3863_v51 = vpop.f32.mrf.mxu1 }
 0xc45   : > { %4701 = vrot.lane.b32.xlu1 %v3863_v51, %s11401_s21  ;;  %9889 = vmatmul.mubr.msk.f32.vlgmr.msra.gmra.mxu0 %vm1761_vm0, %v3863_v51 }
 0xc46   : > { %9915 = vmatpush3.xpose.msk.msra.mxu0 %vm1761_vm0, %v4718_v0  ;;  %v13020_v48 = vpop.f32.mrf.mxu1 }
 0xc47   : > { %9916 = vmatprep.subr.msk.mxu0 %vm1761_vm0, %v4716_v27 }
 0xc48   : > { %v3869_v23 = vpop.f32.mrf.mxu1 }
 0xc49   : > { %4703 = vrot.lane.b32.xlu0 %v3869_v23, %s11401_s21  ;;  %9891 = vmatprep.mubr.msk.f32.mxu0 %vm1761_vm0, %v3869_v23 }
 0xc4a   : > { %9917 = vmatpush3.xpose.msk.msra.mxu0 %vm1761_vm0, %v4716_v27  ;;  %v13026_v22 = vpop.f32.mrf.mxu1  ;;  %v13138_v27 = vsel %vm825_vm10, 0.0, %v11402_v52 }
 0xc4b   : > { %9918 = vmatprep.subr.msk.mxu0 %vm1761_vm0, %v4714_v55 }
 0xc4c   : > { %v3873_v11 = vpop.f32.mrf.mxu1 }
 0xc4d   : > { %4705 = vrot.lane.b32.xlu1 %v3873_v11, %s11401_s21  ;;  %9892 = vmatmul.mubr.msk.f32.gmra.mxu0 %vm1761_vm0, %v3873_v11 }
 0xc4e   : > { %9919 = vmatpush3.xpose.msk.msra.mxu0 %vm1761_vm0, %v4714_v55  ;;  %v13032_v13 = vpop.f32.mrf.mxu1 }
 0xc4f   : > { %9920 = vmatprep.subr.msk.mxu0 %vm1761_vm0, %v4712_v61 }
 0xc50   : > { %v3879_v9 = vpop.f32.mrf.mxu1 }
 0xc51   : > { %4707 = vrot.lane.b32.xlu0 %v3879_v9, %s11401_s21  ;;  %9894 = vmatprep.mubr.msk.f32.mxu0 %vm1761_vm0, %v3879_v9 }
 0xc52   : > { %9921 = vmatpush3.xpose.msk.msra.mxu0 %vm1761_vm0, %v4712_v61  ;;  %v13038_v21 = vpop.f32.mrf.mxu1 }
 0xc53   : > { %9948 = vmatprep.subr.msk.mxu0 %vm1761_vm0, %v4326_v38 }
 0xc54   : > { %v3883_v37 = vpop.f32.mrf.mxu1 }
 0xc55   : > { %5375 = vrot.lane.b32.xlu0 %v4326_v38, %s11401_s21  ;;  %4709 = vrot.lane.b32.xlu1 %v3883_v37, %s11401_s21 }
 0xc56   : > { %9895 = vmatmul.mubr.msk.f32.gmra.mxu0 %vm1761_vm0, %v3883_v37  ;;  %v3885_v3 = vpop.f32.mrf.mxu1 }
 0xc59   : > { %5371 = vrot.lane.b32.xlu0 %v12927_v41, %s11401_s21  ;;  %5373 = vrot.lane.b32.xlu1 %v12930_v63, %s11401_s21 }
 0xc5d   : > { %5357 = vrot.lane.b32.xlu0 %v13015_v7, %s11401_s21  ;;  %5369 = vrot.lane.b32.xlu1 %v12925_v14, %s11401_s21 }
 0xc61   : > { %5361 = vrot.lane.b32.xlu0 %v13026_v22, %s11401_s21  ;;  %5359 = vrot.lane.b32.xlu1 %v13020_v48, %s11401_s21 }
 0xc65   : > { %5365 = vrot.lane.b32.xlu0 %v13038_v21, %s11401_s21  ;;  %5363 = vrot.lane.b32.xlu1 %v13032_v13, %s11401_s21 }
 0xc69   : > { %5367 = vrot.lane.b32.xlu1 %v3885_v3, %s11401_s21 }
 0xc80   : > { %v13061_v56 = vpop.f32.mrf.mxu1 }
 0xc82   : > { %v13063_v15 = vpop.f32.mrf.mxu1 }
 0xc84   : > { %v13065_v29 = vpop.f32.mrf.mxu1 }
 0xc86   : > { %v13067_v42 = vpop.f32.mrf.mxu1 }
 0xc88   : > { %v4373_v57 = vpop.f32.mrf.mxu1 }
 0xc89   : > { %4920 = vrot.lane.b32.xlu0 %v4373_v57, %s11401_s21 }
 0xc8a   : > { %v13070_v5 = vpop.f32.mrf.mxu1 }
 0xc8c   : > { %v4377_v18 = vpop.f32.mrf.mxu1 }
 0xc8d   : > { %4922 = vrot.lane.b32.xlu1 %v4377_v18, %s11401_s21  ;;  %9897 = vmatprep.subr.mxu1 %v4377_v18 }
 0xc8e   : > { %9898 = vmatpush3.msra.mxu1 %v4377_v18 }
 0xc8f   : > { %9899 = vmatprep.subr.mxu1 %v4373_v57 }
 0xc90   : > { %9900 = vmatpush3.msra.mxu1 %v4373_v57 }
 0xc91   : > { %9901 = vmatprep.subr.mxu1 %v13065_v29 }
 0xc92   : > { %9902 = vmatpush3.msra.mxu1 %v13065_v29 }
 0xc93   : > { %9903 = vmatprep.subr.mxu1 %v13061_v56 }
 0xc94   : > { %9904 = vmatpush3.msra.mxu1 %v13061_v56 }
 0xcb3   : > { %v4700_v46 = vpop.permute.xlu0 %4699 }
 0xcb4   : > { %9922 = vmatprep.mubr.msk.f32.mxu0 %vm1761_vm0, %v4700_v46 }
 0xcb7   : > { %v4702_v10 = vpop.permute.xlu1 %4701 }
 0xcb8   : > { %9923 = vmatmul.mubr.msk.f32.vlgmr.msra.gmra.mxu0 %vm1761_vm0, %v4702_v10 }
 0xcb9   : > { %9949 = vmatpush3.xpose.msk.msra.mxu0 %vm1761_vm0, %v4326_v38 }
 0xcba   : > { %9950 = vmatprep.subr.msk.mxu0 %vm1761_vm0, %v12930_v63 }
 0xcbb   : > { %v4704_v30 = vpop.permute.xlu0 %4703 }
 0xcbc   : > { %9925 = vmatprep.mubr.msk.f32.mxu0 %vm1761_vm0, %v4704_v30 }
 0xcbd   : > { %9951 = vmatpush3.xpose.msk.msra.mxu0 %vm1761_vm0, %v12930_v63 }
 0xcbe   : > { %9952 = vmatprep.subr.msk.mxu0 %vm1761_vm0, %v12927_v41 }
 0xcbf   : > { %v4706_v62 = vpop.permute.xlu1 %4705 }
 0xcc0   : > { %9926 = vmatmul.mubr.msk.f32.gmra.mxu0 %vm1761_vm0, %v4706_v62 }
 0xcc1   : > { %9953 = vmatpush3.xpose.msk.msra.mxu0 %vm1761_vm0, %v12927_v41 }
 0xcc2   : > { %9954 = vmatprep.subr.msk.mxu0 %vm1761_vm0, %v12925_v14 }
 0xcc3   : > { %v4708_v44 = vpop.permute.xlu0 %4707 }
 0xcc4   : > { %9928 = vmatprep.mubr.msk.f32.mxu0 %vm1761_vm0, %v4708_v44 }
 0xcc5   : > { %9955 = vmatpush3.xpose.msk.msra.mxu0 %vm1761_vm0, %v12925_v14 }
 0xcc7   : > { %v5376_v26 = vpop.permute.xlu0 %5375  ;;  %v4710_v63 = vpop.permute.xlu1 %4709 }
 0xcc8   : > { %9929 = vmatmul.mubr.msk.f32.gmra.mxu0 %vm1761_vm0, %v4710_v63  ;;  %9982 = vmatprep.subr.msk.mxu0 %vm1761_vm0, %v5376_v26 }
 0xcc9   : > { %9956 = vmatprep.mubr.msk.f32.mxu0 %vm1761_vm0, %v13015_v7 }
 0xccb   : > { %v5374_v12 = vpop.permute.xlu1 %5373  ;;  %v5372_v41 = vpop.permute.xlu0 %5371 }
 0xccc   : > { %9957 = vmatmul.mubr.msk.f32.vlgmr.msra.gmra.mxu0 %vm1761_vm0, %v13020_v48 }
 0xccd   : > { %9983 = vmatpush3.xpose.msk.msra.mxu0 %vm1761_vm0, %v5376_v26  ;;  %9959 = vmatprep.mubr.msk.f32.mxu0 %vm1761_vm0, %v13026_v22 }
 0xcce   : > { %9984 = vmatprep.subr.msk.mxu0 %vm1761_vm0, %v5374_v12 }
 0xccf   : > { %v5370_v14 = vpop.permute.xlu1 %5369  ;;  %v5358_v16 = vpop.permute.xlu0 %5357 }
 0xcd0   : > { %9960 = vmatmul.mubr.msk.f32.gmra.mxu0 %vm1761_vm0, %v13032_v13 }
 0xcd1   : > { %9985 = vmatpush3.xpose.msk.msra.mxu0 %vm1761_vm0, %v5374_v12  ;;  %9962 = vmatprep.mubr.msk.f32.mxu0 %vm1761_vm0, %v13038_v21 }
 0xcd2   : > { %9986 = vmatprep.subr.msk.mxu0 %vm1761_vm0, %v5372_v41 }
 0xcd3   : > { %v5360_v35 = vpop.permute.xlu1 %5359  ;;  %v5362_v34 = vpop.permute.xlu0 %5361 }
 0xcd4   : > { %9963 = vmatmul.mubr.msk.f32.gmra.mxu0 %vm1761_vm0, %v3885_v3 }
 0xcd5   : > { %9987 = vmatpush3.xpose.msk.msra.mxu0 %vm1761_vm0, %v5372_v41  ;;  %9990 = vmatprep.mubr.msk.f32.mxu0 %vm1761_vm0, %v5358_v16 }
 0xcd6   : > { %9988 = vmatprep.subr.msk.mxu0 %vm1761_vm0, %v5370_v14 }
 0xcd7   : > { %v5364_v33 = vpop.permute.xlu1 %5363  ;;  %v5366_v60 = vpop.permute.xlu0 %5365 }
 0xcd9   : > { %9989 = vmatpush3.xpose.msk.msra.mxu0 %vm1761_vm0, %v5370_v14 }
 0xcdb   : > { %v5368_v54 = vpop.permute.xlu1 %5367 }
 0xcdc   : > { %9991 = vmatmul.mubr.msk.f32.vlgmr.msra.gmra.mxu0 %vm1761_vm0, %v5360_v35 }
 0xcdd   : > { %9993 = vmatprep.mubr.msk.f32.mxu0 %vm1761_vm0, %v5362_v34 }
 0xce0   : > { %9994 = vmatmul.mubr.msk.f32.gmra.mxu0 %vm1761_vm0, %v5364_v33 }
 0xce1   : > { %9996 = vmatprep.mubr.msk.f32.mxu0 %vm1761_vm0, %v5366_v60 }
 0xce4   : > { %9997 = vmatmul.mubr.msk.f32.gmra.mxu0 %vm1761_vm0, %v5368_v54 }
 0xcff   : > { %v13148_v11 = vpop.permute.xlu1 %4922 }
 0xd00   : > { %9931 = vmatprep.subr.mxu1 %v13148_v11 }
 0xd05   : > { %v9890_v24 = vpop.f32.mrf.mxu0 }
 0xd06   : > { %v4508_v32 = vmul.f32 0.125, %v9890_v24 }
 0xd07   : > { %v4478_v47 = vpop.f32.mrf.mxu0 }
 0xd08   : > { %v13128_v58 = vadd.f32 %v4508_v32, %v13123_v45  ;;  %v4507_v43 = vmul.f32 0.125, %v4478_v47 }
 0xd0a   : > { %v13131_v49 = vadd.f32 %v4507_v43, %v13123_v45  ;;  %v4523_v0 = vsel %vm4519_vm7, %v13128_v58, -inf }
 0xd0b   : > { %4524 = vmax.xlane.f32.xlu1 %v4523_v0 }
 0xd0c   : > { %v4520_v36 = vsel %vm4519_vm7, %v13131_v49, -inf }
 0xd0d   : > { %v9893_v7 = vpop.f32.mrf.mxu0  ;;  %4521 = vmax.xlane.f32.xlu0 %v4520_v36 }
 0xd0e   : > { %v4510_v50 = vmul.f32 0.125, %v9893_v7 }
 0xd0f   : > { %v4488_v51 = vpop.f32.mrf.mxu0 }
 0xd10   : > { %v13141_v48 = vadd.f32 %v4510_v50, %v13138_v27  ;;  %v4509_v55 = vmul.f32 0.125, %v4488_v51 }
 0xd12   : > { %v13144_v23 = vadd.f32 %v4509_v55, %v13123_v45  ;;  %v4529_v22 = vsel %vm4519_vm7, %v13141_v48, -inf }
 0xd13   : > { %4530 = vmax.xlane.f32.xlu0 %v4529_v22 }
 0xd14   : > { %v4526_v61 = vsel %vm4519_vm7, %v13144_v23, -inf }
 0xd16   : > { %v9896_v52 = vpop.f32.mrf.mxu0 }
 0xd17   : > { %v4512_v13 = vmul.f32 0.125, %v9896_v52  ;;  %4527 = vmax.xlane.f32.xlu0 %v4526_v61 }
 0xd18   : > { %v4498_v9 = vpop.f32.mrf.mxu0 }
 0xd19   : > { %v13154_v38 = vadd.f32 %v4512_v13, %v13138_v27  ;;  %v4511_v21 = vmul.f32 0.125, %v4498_v9 }
 0xd1b   : > { %v13157_v37 = vadd.f32 %v4511_v21, %v13138_v27  ;;  %v4535_v3 = vsel %vm4519_vm7, %v13154_v38, -inf }
 0xd1c   : > { %4536 = vmax.xlane.f32.xlu1 %v4535_v3 }
 0xd1d   : > { %v4532_v57 = vsel %vm4519_vm7, %v13157_v37, -inf }
 0xd1e   : > { %4533 = vmax.xlane.f32.xlu0 %v4532_v57 }
 0xd78   : > { %v9924_v18 = vpop.f32.mrf.mxu0 }
 0xd79   : > { %v4835_v46 = vmul.f32 0.125, %v9924_v18 }
 0xd7a   : > { %v4805_v10 = vpop.f32.mrf.mxu0 }
 0xd7b   : > { %v13164_v30 = vadd.f32 %v4835_v46, %v13123_v45  ;;  %v4834_v62 = vmul.f32 0.125, %v4805_v10 }
 0xd7d   : > { %v13167_v44 = vadd.f32 %v4834_v62, %v13123_v45  ;;  %v4849_v26 = vsel %vm4519_vm7, %v13164_v30, -inf }
 0xd7e   : > { %4850 = vmax.xlane.f32.xlu1 %v4849_v26 }
 0xd7f   : > { %v4846_v63 = vsel %vm4519_vm7, %v13167_v44, -inf }
 0xd80   : > { %4847 = vmax.xlane.f32.xlu0 %v4846_v63  ;;  %v9927_v12 = vpop.f32.mrf.mxu0 }
 0xd81   : > { %v4837_v41 = vmul.f32 0.125, %v9927_v12 }
 0xd82   : > { %v4815_v14 = vpop.f32.mrf.mxu0 }
 0xd83   : > { %v13174_v16 = vadd.f32 %v4837_v41, %v13138_v27  ;;  %v4836_v35 = vmul.f32 0.125, %v4815_v14 }
 0xd85   : > { %v13177_v34 = vadd.f32 %v4836_v35, %v13123_v45  ;;  %v4855_v33 = vsel %vm4519_vm7, %v13174_v16, -inf }
 0xd86   : > { %4856 = vmax.xlane.f32.xlu1 %v4855_v33 }
 0xd87   : > { %v4852_v60 = vsel %vm4519_vm7, %v13177_v34, -inf }
 0xd88   : > { %4853 = vmax.xlane.f32.xlu0 %v4852_v60  ;;  %v9930_v54 = vpop.f32.mrf.mxu0 }
 0xd89   : > { %v4839_v24 = vmul.f32 0.125, %v9930_v54 }
 0xd8a   : > { %v4825_v32 = vpop.f32.mrf.mxu0 }
 0xd8b   : > { %v13184_v47 = vadd.f32 %v4839_v24, %v13138_v27  ;;  %v4838_v43 = vmul.f32 0.125, %v4825_v32 }
 0xd8c   : > { %v9958_v0 = vpop.f32.mrf.mxu0 }
 0xd8d   : > { %v13187_v36 = vadd.f32 %v4838_v43, %v13138_v27  ;;  %v5167_v7 = vmul.f32 0.125, %v9958_v0  ;;  %v4861_v50 = vsel %vm4519_vm7, %v13184_v47, -inf }
 0xd8e   : > { %4862 = vmax.xlane.f32.xlu1 %v4861_v50  ;;  %v5137_v51 = vpop.f32.mrf.mxu0 }
 0xd8f   : > { %v13192_v55 = vadd.f32 %v5167_v7, %v13123_v45  ;;  %v5166_v22 = vmul.f32 0.125, %v5137_v51  ;;  %v4858_v52 = vsel %vm4519_vm7, %v13187_v36, -inf }
 0xd90   : > { %v9961_v61 = vpop.f32.mrf.mxu0  ;;  %4859 = vmax.xlane.f32.xlu0 %v4858_v52  ;;  %v13235_v52 = vpop.permute.xlu0 %4920 }
 0xd91   : > { %v13197_v13 = vadd.f32 %v5166_v22, %v13123_v45  ;;  %v5169_v9 = vmul.f32 0.125, %v9961_v61  ;;  %v5181_v21 = vsel %vm4519_vm7, %v13192_v55, -inf }
 0xd92   : > { %5182 = vmax.xlane.f32.xlu1 %v5181_v21  ;;  %v5147_v3 = vpop.f32.mrf.mxu0 }
 0xd93   : > { %v13202_v57 = vadd.f32 %v5169_v9, %v13138_v27  ;;  %v5168_v18 = vmul.f32 0.125, %v5147_v3  ;;  %v5178_v46 = vsel %vm4519_vm7, %v13197_v13, -inf }
 0xd94   : > { %v9964_v10 = vpop.f32.mrf.mxu0  ;;  %5179 = vmax.xlane.f32.xlu0 %v5178_v46  ;;  %v4525_v9 = vpop.xlane.xlu1 %4524 }
 0xd95   : > { %v13207_v62 = vadd.f32 %v5168_v18, %v13123_v45  ;;  %v5171_v26 = vmul.f32 0.125, %v9964_v10  ;;  %v5187_v63 = vsel %vm4519_vm7, %v13202_v57, -inf  ;;  %v4539_v21 = vsub.f32 %v13128_v58, %v4525_v9 }
 0xd96   : > { %5188 = vmax.xlane.f32.xlu1 %v5187_v63  ;;  %v5157_v12 = vpop.f32.mrf.mxu0  ;;  %v4522_v61 = vpop.xlane.xlu0 %4521 }
 0xd97   : > { %v13212_v41 = vadd.f32 %v5171_v26, %v13138_v27  ;;  %v5170_v14 = vmul.f32 0.125, %v5157_v12  ;;  %v5184_v35 = vsel %vm4519_vm7, %v13207_v62, -inf  ;;  %v4538_v18 = vsub.f32 %v13131_v49, %v4522_v61 }
 0xd98   : > { %5185 = vmax.xlane.f32.xlu0 %v5184_v35  ;;  %v4546_v46 = vmul.f32 1.442695, %v4539_v21 }
 0xd99   : > { %v13217_v33 = vadd.f32 %v5170_v14, %v13138_v27  ;;  %v5193_v60 = vsel %vm4519_vm7, %v13212_v41, -inf  ;;  %v4544_v10 = vmul.f32 1.442695, %v4538_v18 }
 0xd9a   : > { %5194 = vmax.xlane.f32.xlu1 %v5193_v60  ;;  %10864 = vpow2.f32 %v4546_v46 }
 0xd9b   : > { %v5190_v54 = vsel %vm4519_vm7, %v13217_v33, -inf  ;;  %10866 = vpow2.f32 %v4544_v10 }
 0xd9c   : > { %v9992_v24 = vpop.f32.mrf.mxu0  ;;  %5191 = vmax.xlane.f32.xlu0 %v5190_v54  ;;  %v4531_v3 = vpop.xlane.xlu0 %4530 }
 0xd9d   : > { %v5493_v32 = vmul.f32 0.125, %v9992_v24  ;;  %v4541_v12 = vsub.f32 %v13141_v48, %v4531_v3 }
 0xd9e   : > { %v5463_v43 = vpop.f32.mrf.mxu0 }
 0xd9f   : > { %v13224_v0 = vadd.f32 %v5493_v32, %v13123_v45  ;;  %v5492_v7 = vmul.f32 0.125, %v5463_v43  ;;  %v4550_v60 = vmul.f32 1.442695, %v4541_v12 }
 0xda0   : > { %v9995_v26 = vpop.f32.mrf.mxu0  ;;  %v4528_v63 = vpop.xlane.xlu0 %4527 }
 0xda1   : > { %v13227_v50 = vadd.f32 %v5492_v7, %v13123_v45  ;;  %v5507_v51 = vsel %vm4519_vm7, %v13224_v0, -inf  ;;  %v5495_v54 = vmul.f32 0.125, %v9995_v26  ;;  %10868 = vpow2.f32 %v4550_v60 }
 0xda2   : > { %5508 = vmax.xlane.f32.xlu1 %v5507_v51  ;;  %v5473_v35 = vpop.f32.mrf.mxu0 }
 0xda3   : > { %v5504_v22 = vsel %vm4519_vm7, %v13227_v50, -inf  ;;  %v5494_v32 = vmul.f32 0.125, %v5473_v35  ;;  %v13246_v7 = vadd.f32 %v5495_v54, %v13138_v27 }
 0xda4   : > { %5505 = vmax.xlane.f32.xlu0 %v5504_v22  ;;  %v9998_v43 = vpop.f32.mrf.mxu0 }
 0xda5   : > { %v4537_v14 = vpop.xlane.xlu1 %4536  ;;  %v5497_v61 = vmul.f32 0.125, %v9998_v43 }
 0xda6   : > { %v4543_v58 = vsub.f32 %v13154_v38, %v4537_v14  ;;  %v5483_v22 = vpop.f32.mrf.mxu0  ;;  %v5513_v38 = vsel %vm4519_vm7, %v13246_v7, -inf }
 0xda7   : > { %v13253_v9 = vpop.eup %10864 }
 0xda8   : > { %v4554_v48 = vmul.f32 1.442695, %v4543_v58  ;;  %v13257_v3 = vpop.eup %10866  ;;  %v4559_v18 = vsel %vm4519_vm7, %v13253_v9, 0.0 }
 0xda9   : > { %v4556_v10 = vsel %vm4519_vm7, %v13257_v3, 0.0 }
 0xdb3   : > { %4916 = vrot.lane.b32.xlu1 %v13061_v56, %s11401_s21  ;;  %v4540_v56 = vsub.f32 %v13144_v23, %v4528_v63  ;;  %v13249_v23 = vadd.f32 %v5494_v32, %v13123_v45  ;;  %v13260_v45 = vadd.f32 %v5497_v61, %v13138_v27  ;;  %v13271_v63 = vpop.eup %10868 }
 0xdb5   : > { %v4548_v24 = vmul.f32 1.442695, %v4540_v56  ;;  %v5510_v21 = vsel %vm4519_vm7, %v13249_v23, -inf  ;;  %v5519_v26 = vsel %vm4519_vm7, %v13260_v45, -inf }
 0xdb7   : > { %10870 = vpow2.f32 %v4548_v24 }
 0xdb8   : > { %10872 = vpow2.f32 %v4554_v48 }
 0xdba   : > { %4918 = vrot.lane.b32.xlu0 %v13065_v29, %s11401_s21  ;;  %v4534_v29 = vpop.xlane.xlu0 %4533 }
 0xdbb   : > { %v4542_v49 = vsub.f32 %v13157_v37, %v4534_v29  ;;  %v5496_v37 = vmul.f32 0.125, %v5483_v22 }
 0xdbd   : > { %v4552_v51 = vmul.f32 1.442695, %v4542_v49  ;;  %v13265_v46 = vadd.f32 %v5496_v37, %v13138_v27  ;;  %v4565_v27 = vsel %vm4519_vm7, %v13271_v63, 0.0 }
 0xdbf   : > { %10874 = vpow2.f32 %v4552_v51  ;;  %v5516_v12 = vsel %vm4519_vm7, %v13265_v46, -inf }
 0xdc4   : > { %v13275_v56 = vpop.eup %10870 }
 0xdc5   : > { %v13279_v14 = vpop.eup %10872  ;;  %v4562_v35 = vsel %vm4519_vm7, %v13275_v56, 0.0 }
 0xdc6   : > { %v4571_v60 = vsel %vm4519_vm7, %v13279_v14, 0.0 }
 0xdcc   : > { %v13283_v29 = vpop.eup %10874 }
 0xdcd   : > { %v4568_v54 = vsel %vm4519_vm7, %v13283_v29, 0.0 }
 0xdd7   : > { %5514 = vmax.xlane.f32.xlu1 %v5513_v38 }
 0xdd9   : > { %5511 = vmax.xlane.f32.xlu0 %v5510_v21 }
 0xddb   : > { %4560 = vadd.xlane.f32.xlu1 %v4559_v18 }
 0xddd   : > { %4557 = vadd.xlane.f32.xlu0 %v4556_v10 }
 0xddf   : > { %5520 = vmax.xlane.f32.xlu1 %v5519_v26 }
 0xde1   : > { %5517 = vmax.xlane.f32.xlu0 %v5516_v12 }
 0xde3   : > { %4566 = vadd.xlane.f32.xlu1 %v4565_v27 }
 0xde5   : > { %4563 = vadd.xlane.f32.xlu0 %v4562_v35 }
 0xde7   : > { %4572 = vadd.xlane.f32.xlu1 %v4571_v60 }
 0xde9   : > { %4569 = vadd.xlane.f32.xlu0 %v4568_v54 }
 0xe07   : > { %v4851_v58 = vpop.xlane.xlu1 %4850 }
 0xe08   : > { %v4865_v24 = vsub.f32 %v13164_v30, %v4851_v58 }
 0xe09   : > { %v4848_v32 = vpop.xlane.xlu0 %4847 }
 0xe0a   : > { %v4872_v49 = vmul.f32 1.442695, %v4865_v24  ;;  %v4864_v43 = vsub.f32 %v13167_v44, %v4848_v32 }
 0xe0c   : > { %10876 = vpow2.f32 %v4872_v49  ;;  %v4870_v48 = vmul.f32 1.442695, %v4864_v43 }
 0xe0e   : > { %10878 = vpow2.f32 %v4870_v48 }
 0xe0f   : > { %v4857_v51 = vpop.xlane.xlu1 %4856 }
 0xe10   : > { %v4867_v22 = vsub.f32 %v13174_v16, %v4857_v51 }
 0xe11   : > { %v4854_v61 = vpop.xlane.xlu0 %4853 }
 0xe12   : > { %v4876_v38 = vmul.f32 1.442695, %v4867_v22  ;;  %v4866_v37 = vsub.f32 %v13177_v34, %v4854_v61 }
 0xe14   : > { %10880 = vpow2.f32 %v4876_v38  ;;  %v4874_v21 = vmul.f32 1.442695, %v4866_v37 }
 0xe16   : > { %10882 = vpow2.f32 %v4874_v21 }
 0xe17   : > { %v4863_v18 = vpop.xlane.xlu1 %4862 }
 0xe18   : > { %v4869_v30 = vsub.f32 %v13184_v47, %v4863_v18 }
 0xe19   : > { %v13294_v10 = vpop.eup %10876  ;;  %v4860_v26 = vpop.xlane.xlu0 %4859 }
 0xe1a   : > { %v4880_v44 = vmul.f32 1.442695, %v4869_v30  ;;  %v4868_v12 = vsub.f32 %v13187_v36, %v4860_v26  ;;  %v4885_v27 = vsel %vm4519_vm7, %v13294_v10, 0.0 }
 0xe1b   : > { %v13299_v16 = vpop.eup %10878  ;;  %4886 = vadd.xlane.f32.xlu1 %v4885_v27  ;;  %v5183_v35 = vpop.xlane.xlu1 %5182 }
 0xe1c   : > { %10884 = vpow2.f32 %v4880_v44  ;;  %v4878_v34 = vmul.f32 1.442695, %v4868_v12  ;;  %v5197_v60 = vsub.f32 %v13192_v55, %v5183_v35  ;;  %v4882_v47 = vsel %vm4519_vm7, %v13299_v16, 0.0 }
 0xe1d   : > { %v5180_v54 = vpop.xlane.xlu0 %5179  ;;  %4883 = vadd.xlane.f32.xlu0 %v4882_v47 }
 0xe1e   : > { %10886 = vpow2.f32 %v4878_v34  ;;  %v5204_v58 = vmul.f32 1.442695, %v5197_v60  ;;  %v5196_v36 = vsub.f32 %v13197_v13, %v5180_v54 }
 0xe1f   : > { %v5189_v24 = vpop.xlane.xlu1 %5188 }
 0xe20   : > { %10888 = vpow2.f32 %v5204_v58  ;;  %v5202_v32 = vmul.f32 1.442695, %v5196_v36  ;;  %v5199_v49 = vsub.f32 %v13202_v57, %v5189_v24 }
 0xe21   : > { %v13306_v43 = vpop.eup %10880  ;;  %v5186_v51 = vpop.xlane.xlu0 %5185 }
 0xe22   : > { %10890 = vpow2.f32 %v5202_v32  ;;  %v5208_v48 = vmul.f32 1.442695, %v5199_v49  ;;  %v4891_v55 = vsel %vm4519_vm7, %v13306_v43, 0.0  ;;  %v5198_v61 = vsub.f32 %v13207_v62, %v5186_v51 }
 0xe23   : > { %v13310_v22 = vpop.eup %10882  ;;  %4892 = vadd.xlane.f32.xlu1 %v4891_v55  ;;  %v5195_v38 = vpop.xlane.xlu1 %5194 }
 0xe24   : > { %10892 = vpow2.f32 %v5208_v48  ;;  %v5201_v13 = vsub.f32 %v13212_v41, %v5195_v38  ;;  %v4888_v57 = vsel %vm4519_vm7, %v13310_v22, 0.0  ;;  %v5206_v37 = vmul.f32 1.442695, %v5198_v61 }
 0xe25   : > { %4889 = vadd.xlane.f32.xlu0 %v4888_v57  ;;  %v5192_v18 = vpop.xlane.xlu0 %5191  ;;  %v13359_v57 = vpop.f32.mrf.mxu1 }
 0xe26   : > { %v5212_v21 = vmul.f32 1.442695, %v5201_v13  ;;  %10894 = vpow2.f32 %v5206_v37  ;;  %v5200_v30 = vsub.f32 %v13217_v33, %v5192_v18 }
 0xe28   : > { %10896 = vpow2.f32 %v5212_v21  ;;  %v5210_v44 = vmul.f32 1.442695, %v5200_v30 }
 0xe29   : > { %v13317_v26 = vpop.eup %10884 }
 0xe2a   : > { %v4897_v62 = vsel %vm4519_vm7, %v13317_v26, 0.0  ;;  %10898 = vpow2.f32 %v5210_v44 }
 0xe2b   : > { %v13321_v12 = vpop.eup %10886  ;;  %4898 = vadd.xlane.f32.xlu1 %v4897_v62  ;;  %v5509_v41 = vpop.xlane.xlu1 %5508 }
 0xe2c   : > { %v4894_v27 = vsel %vm4519_vm7, %v13321_v12, 0.0  ;;  %v5523_v34 = vsub.f32 %v13224_v0, %v5509_v41 }
 0xe2d   : > { %v13325_v35 = vpop.eup %10888  ;;  %4895 = vadd.xlane.f32.xlu0 %v4894_v27  ;;  %v5506_v38 = vpop.xlane.xlu0 %5505 }
 0xe2e   : > { %v5217_v33 = vsel %vm4519_vm7, %v13325_v35, 0.0  ;;  %v5530_v47 = vmul.f32 1.442695, %v5523_v34  ;;  %v5522_v13 = vsub.f32 %v13227_v50, %v5506_v38 }
 0xe2f   : > { %v13330_v60 = vpop.eup %10890  ;;  %5218 = vadd.xlane.f32.xlu1 %v5217_v33  ;;  %v4917_v21 = vpop.permute.xlu1 %4916 }
 0xe30   : > { %v5214_v54 = vsel %vm4519_vm7, %v13330_v60, 0.0  ;;  %10900 = vpow2.f32 %v5530_v47  ;;  %v5528_v37 = vmul.f32 1.442695, %v5522_v13 }
 0xe31   : > { %v13334_v58 = vpop.eup %10892  ;;  %5215 = vadd.xlane.f32.xlu0 %v5214_v54  ;;  %v4919_v18 = vpop.permute.xlu0 %4918 }
 0xe32   : > { %v5223_v36 = vsel %vm4519_vm7, %v13334_v58, 0.0  ;;  %10902 = vpow2.f32 %v5528_v37 }
 0xe33   : > { %5224 = vadd.xlane.f32.xlu1 %v5223_v36  ;;  %v13338_v0 = vpop.eup %10894 }
 0xe34   : > { %v5220_v24 = vsel %vm4519_vm7, %v13338_v0, 0.0 }
 0xe35   : > { %v13342_v32 = vpop.eup %10896  ;;  %5221 = vadd.xlane.f32.xlu0 %v5220_v24 }
 0xe36   : > { %v5229_v49 = vsel %vm4519_vm7, %v13342_v32, 0.0 }
 0xe37   : > { %v13346_v48 = vpop.eup %10898 }
 0xe38   : > { %v5226_v51 = vsel %vm4519_vm7, %v13346_v48, 0.0 }
 0xe39   : > { %5230 = vadd.xlane.f32.xlu0 %v5229_v49 }
 0xe3d   : > { %v13350_v55 = vpop.eup %10900  ;;  %5227 = vadd.xlane.f32.xlu0 %v5226_v51 }
 0xe3e   : > { %v5543_v61 = vsel %vm4519_vm7, %v13350_v55, 0.0 }
 0xe3f   : > { %v13364_v33 = vpop.eup %10902 }
 0xe40   : > { %v5540_v36 = vsel %vm4519_vm7, %v13364_v33, 0.0 }
 0xe41   : > { %5544 = vadd.xlane.f32.xlu0 %v5543_v61 }
 0xe44   : > { %5578 = vrot.lane.b32.xlu1 %v13070_v5, %s11401_s21 }
 0xe48   : > { %5576 = vrot.lane.b32.xlu1 %v13067_v42, %s11401_s21 }
 0xe57   : > { %5580 = vrot.lane.b32.xlu0 %v13359_v57, %s11401_s21 }
 0xe60   : > { %v5515_v30 = vpop.xlane.xlu1 %5514 }
 0xe61   : > { %v5525_v44 = vsub.f32 %v13246_v7, %v5515_v30 }
 0xe62   : > { %v5512_v62 = vpop.xlane.xlu0 %5511 }
 0xe63   : > { %v5534_v41 = vmul.f32 1.442695, %v5525_v44 }
 0xe64   : > { %v4561_v27 = vpop.xlane.xlu1 %4560 }
 0xe65   : > { %10904 = vpow2.f32 %v5534_v41 }
 0xe66   : > { %v4558_v34 = vpop.xlane.xlu0 %4557  ;;  %10906 = vrcp.f32 %v4561_v27 }
 0xe67   : > { %10908 = vrcp.f32 %v4558_v34 }
 0xe68   : > { %v5521_v50 = vpop.xlane.xlu1 %5520 }
 0xe6a   : > { %v5518_v47 = vpop.xlane.xlu0 %5517 }
 0xe6b   : > { %v5526_v54 = vsub.f32 %v13265_v46, %v5518_v47 }
 0xe6c   : > { %5541 = vadd.xlane.f32.xlu1 %v5540_v36  ;;  %v4567_v49 = vpop.xlane.xlu1 %4566 }
 0xe6d   : > { %v5536_v24 = vmul.f32 1.442695, %v5526_v54 }
 0xe6e   : > { %v4564_v7 = vpop.xlane.xlu0 %4563 }
 0xe6f   : > { %10910 = vpow2.f32 %v5536_v24 }
 0xe70   : > { %10912 = vrcp.f32 %v4567_v49  ;;  %v4573_v51 = vpop.xlane.xlu1 %4572 }
 0xe71   : > { %10914 = vrcp.f32 %v4564_v7 }
 0xe72   : > { %v4570_v61 = vpop.xlane.xlu0 %4569  ;;  %v13369_v38 = vpop.eup %10904 }
 0xe73   : > { %10916 = vrcp.f32 %v4570_v61  ;;  %v10907_v13 = vpop.eup %10906  ;;  %v5549_v46 = vsel %vm4519_vm7, %v13369_v38, 0.0 }
 0xe74   : > { %10918 = vrcp.f32 %v4573_v51  ;;  %v10909_v37 = vpop.eup %10908  ;;  %v4581_v44 = vmul.f32 %v10907_v13, %v13253_v9 }
 0xe75   : > { %v4580_v30 = vmul.f32 %v10909_v37, %v13257_v3 }
 0xe76   : > { %5550 = vadd.xlane.f32.xlu0 %v5549_v46 }
 0xe77   : > { %9905 = vmatprep.mubr.msk.f32.mxu1 %vm4519_vm7, %v4580_v30 }
 0xe78   : > { %9906 = vmatmul.mubr.msk.f32.vlgmr.msra.gmra.mxu1 %vm4519_vm7, %v4581_v44 }
 0xe79   : > { %9932 = vmatpush3.msra.mxu1 %v13148_v11 }
 0xe7a   : > { %9933 = vmatprep.subr.mxu1 %v13235_v52 }
 0xe7b   : > { %9934 = vmatpush3.msra.mxu1 %v13235_v52 }
 0xe7c   : > { %v13378_v41 = vpop.eup %10910  ;;  %9935 = vmatprep.subr.mxu1 %v4919_v18 }
 0xe7d   : > { %v10913_v27 = vpop.eup %10912  ;;  %5574 = vrot.lane.b32.xlu1 %v13063_v15, %s11401_s21  ;;  %v5552_v3 = vsel %vm4519_vm7, %v13378_v41, 0.0  ;;  %9936 = vmatpush3.msra.mxu1 %v4919_v18 }
 0xe7e   : > { %v10915_v9 = vpop.eup %10914  ;;  %5553 = vadd.xlane.f32.xlu0 %v5552_v3  ;;  %9937 = vmatprep.subr.mxu1 %v4917_v21  ;;  %v4583_v47 = vmul.f32 %v10913_v27, %v13271_v63  ;;  %v5527_v63 = vsub.f32 %v13260_v45, %v5521_v50 }
 0xe7f   : > { %v4582_v34 = vmul.f32 %v10915_v9, %v13275_v56  ;;  %9938 = vmatpush3.msra.mxu1 %v4917_v21  ;;  %v5524_v56 = vsub.f32 %v13249_v23, %v5512_v62 }
 0xe80   : > { %v10917_v11 = vpop.eup %10916  ;;  %9965 = vmatprep.subr.mxu1 %v13359_v57  ;;  %v5538_v21 = vmul.f32 1.442695, %v5527_v63 }
 0xe81   : > { %v10919_v54 = vpop.eup %10918  ;;  %9908 = vmatprep.mubr.msk.f32.mxu1 %vm4519_vm7, %v4582_v34  ;;  %v4584_v52 = vmul.f32 %v10917_v11, %v13283_v29  ;;  %v5532_v36 = vmul.f32 1.442695, %v5524_v56 }
 0xe82   : > { %9909 = vmatmul.mubr.msk.f32.gmra.mxu1 %vm4519_vm7, %v4583_v47  ;;  %v4585_v18 = vmul.f32 %v10919_v54, %v13279_v14 }
 0xe83   : > { %9911 = vmatprep.mubr.msk.f32.mxu1 %vm4519_vm7, %v4584_v52  ;;  %10920 = vpow2.f32 %v5532_v36 }
 0xe84   : > { %10922 = vpow2.f32 %v5538_v21 }
 0xe86   : > { %9912 = vmatmul.mubr.msk.f32.gmra.mxu1 %vm4519_vm7, %v4585_v18 }
 0xe90   : > { %v13397_v24 = vpop.eup %10920 }
 0xe91   : > { %v5546_v29 = vsel %vm4519_vm7, %v13397_v24, 0.0  ;;  %v13401_v49 = vpop.eup %10922 }
 0xe92   : > { %v5555_v14 = vsel %vm4519_vm7, %v13401_v49, 0.0 }
 0xea1   : > { %5547 = vadd.xlane.f32.xlu1 %v5546_v29 }
 0xea4   : > { %v4887_v7 = vpop.xlane.xlu1 %4886 }
 0xea5   : > { %5556 = vadd.xlane.f32.xlu1 %v5555_v14  ;;  %10924 = vrcp.f32 %v4887_v7 }
 0xea6   : > { %v4884_v23 = vpop.xlane.xlu0 %4883 }
 0xea7   : > { %10926 = vrcp.f32 %v4884_v23 }
 0xeac   : > { %v4893_v45 = vpop.xlane.xlu1 %4892 }
 0xead   : > { %10928 = vrcp.f32 %v4893_v45 }
 0xeae   : > { %v4890_v62 = vpop.xlane.xlu0 %4889 }
 0xeaf   : > { %10930 = vrcp.f32 %v4890_v62 }
 0xeb2   : > { %v10925_v50 = vpop.eup %10924 }
 0xeb3   : > { %v4907_v37 = vmul.f32 %v10925_v50, %v13294_v10 }
 0xeb4   : > { %v10927_v51 = vpop.eup %10926  ;;  %v4899_v61 = vpop.xlane.xlu1 %4898 }
 0xeb5   : > { %v4906_v13 = vmul.f32 %v10927_v51, %v13299_v16  ;;  %10932 = vrcp.f32 %v4899_v61 }
 0xeb6   : > { %v4896_v46 = vpop.xlane.xlu0 %4895 }
 0xeb7   : > { %10934 = vrcp.f32 %v4896_v46  ;;  %9939 = vmatprep.mubr.msk.f32.mxu1 %vm4519_vm7, %v4906_v13 }
 0xeb8   : > { %9940 = vmatmul.mubr.msk.f32.vlgmr.msra.gmra.mxu1 %vm4519_vm7, %v4907_v37  ;;  %v5219_v30 = vpop.xlane.xlu1 %5218 }
 0xeb9   : > { %9966 = vmatpush3.msra.mxu1 %v13359_v57  ;;  %10936 = vrcp.f32 %v5219_v30 }
 0xeba   : > { %9967 = vmatprep.subr.mxu1 %v13070_v5  ;;  %v5216_v44 = vpop.xlane.xlu0 %5215  ;;  %v10929_v27 = vpop.eup %10928 }
 0xebb   : > { %10938 = vrcp.f32 %v5216_v44  ;;  %9968 = vmatpush3.msra.mxu1 %v13070_v5  ;;  %v4909_v57 = vmul.f32 %v10929_v27, %v13306_v43 }
 0xebc   : > { %v10931_v16 = vpop.eup %10930  ;;  %9969 = vmatprep.subr.mxu1 %v13067_v42  ;;  %v5225_v10 = vpop.xlane.xlu1 %5224 }
 0xebd   : > { %9970 = vmatpush3.msra.mxu1 %v13067_v42  ;;  %v4908_v3 = vmul.f32 %v10931_v16, %v13310_v22  ;;  %10940 = vrcp.f32 %v5225_v10 }
 0xebe   : > { %9971 = vmatprep.subr.mxu1 %v13063_v15  ;;  %v5222_v9 = vpop.xlane.xlu0 %5221 }
 0xebf   : > { %9972 = vmatpush3.msra.mxu1 %v13063_v15  ;;  %9942 = vmatprep.mubr.msk.f32.mxu1 %vm4519_vm7, %v4908_v3  ;;  %10942 = vrcp.f32 %v5222_v9 }
 0xec0   : > { %9943 = vmatmul.mubr.msk.f32.gmra.mxu1 %vm4519_vm7, %v4909_v57 }
 0xec2   : > { %v10933_v5 = vpop.eup %10932  ;;  %v5231_v34 = vpop.xlane.xlu0 %5230 }
 0xec3   : > { %v4911_v22 = vmul.f32 %v10933_v5, %v13317_v26  ;;  %10944 = vrcp.f32 %v5231_v34 }
 0xec4   : > { %v10935_v11 = vpop.eup %10934 }
 0xec5   : > { %v4910_v42 = vmul.f32 %v10935_v11, %v13321_v12  ;;  %v5579_v12 = vpop.permute.xlu1 %5578 }
 0xec6   : > { %v10937_v47 = vpop.eup %10936  ;;  %v5228_v54 = vpop.xlane.xlu0 %5227 }
 0xec7   : > { %9945 = vmatprep.mubr.msk.f32.mxu1 %vm4519_vm7, %v4910_v42  ;;  %10946 = vrcp.f32 %v5228_v54  ;;  %v5239_v52 = vmul.f32 %v10937_v47, %v13325_v35  ;;  %v10504_v42 = vld [vmem:[%s11856_s12 + $0x70] ss:$8 sps:$4 sm:$0xff]   ;;  %v10509_v47 = vld [vmem:[%s11856_s12 + $0x64] ss:$8 sps:$4 sm:$0xff]   ;;  %v10507_v54 = vld [vmem:[%s11856_s12 + $0x60] ss:$8 sps:$4 sm:$0xff]  }
 0xec8   : > { %v10939_v43 = vpop.eup %10938  ;;  %9946 = vmatmul.mubr.msk.f32.gmra.mxu1 %vm4519_vm7, %v4911_v22  ;;  %v10506_v22 = vld [vmem:[%s11856_s12 + $0x74] ss:$8 sps:$4 sm:$0xff]  }
 0xec9   : > { %v5238_v15 = vmul.f32 %v10939_v43, %v13330_v60  ;;  %v5577_v60 = vpop.permute.xlu1 %5576 }
 0xeca   : > { %v5545_v18 = vpop.xlane.xlu0 %5544  ;;  %v10941_v56 = vpop.eup %10940 }
 0xecb   : > { %9973 = vmatprep.mubr.msk.f32.mxu1 %vm4519_vm7, %v5238_v15  ;;  %v5241_v21 = vmul.f32 %v10941_v56, %v13334_v58  ;;  %10948 = vrcp.f32 %v5545_v18  ;;  %v10512_v15 = vld [vmem:[%s11856_s12 + $0x54] ss:$8 sps:$4 sm:$0xff]   ;;  %v10510_v18 = vld [vmem:[%s11856_s12 + $0x50] ss:$8 sps:$4 sm:$0xff]  }
 0xecc   : > { %9974 = vmatmul.mubr.msk.f32.vlgmr.msra.gmra.mxu1 %vm4519_vm7, %v5239_v52  ;;  %v10943_v26 = vpop.eup %10942 }
 0xecd   : > { %v5240_v36 = vmul.f32 %v10943_v26, %v13338_v0  ;;  %v10515_v26 = vld [vmem:[%s11856_s12 + $0x44] ss:$8 sps:$4 sm:$0xff]  }
 0xece   : > { %v5581_v63 = vpop.permute.xlu0 %5580 }
 0xecf   : > { %9976 = vmatprep.mubr.msk.f32.mxu1 %vm4519_vm7, %v5240_v36  ;;  %9999 = vmatprep.subr.mxu1 %v5581_v63  ;;  %v10518_v36 = vld [vmem:[%s11856_s12 + $0x34] ss:$8 sps:$4 sm:$0xff]  }
 0xed0   : > { %9977 = vmatmul.mubr.msk.f32.gmra.mxu1 %vm4519_vm7, %v5241_v21  ;;  %v10945_v35 = vpop.eup %10944  ;;  %v10521_v21 = vld [vmem:[%s11856_s12 + $0x24] ss:$8 sps:$4 sm:$0xff]  }
 0xed1   : > { %10000 = vmatpush3.msra.mxu1 %v5581_v63  ;;  %v5243_v0 = vmul.f32 %v10945_v35, %v13342_v32  ;;  %v10516_v63 = vld [vmem:[%s11856_s12 + $0x30] ss:$8 sps:$4 sm:$0xff]   ;;  %v10519_v35 = vld [vmem:[%s11856_s12 + $0x20] ss:$8 sps:$4 sm:$0xff]  }
 0xed2   : > { %10001 = vmatprep.subr.mxu1 %v5579_v12 }
 0xed3   : > { %10002 = vmatpush3.msra.mxu1 %v5579_v12  ;;  %v10513_v12 = vld [vmem:[%s11856_s12 + $0x40] ss:$8 sps:$4 sm:$0xff]  }
 0xed4   : > { %v10947_v29 = vpop.eup %10946  ;;  %10003 = vmatprep.subr.mxu1 %v5577_v60 }
 0xed5   : > { %10004 = vmatpush3.msra.mxu1 %v5577_v60  ;;  %v5242_v7 = vmul.f32 %v10947_v29, %v13346_v48  ;;  %v10524_v60 = vld [vmem:[%s11856_s12 + $0x14] ss:$8 sps:$4 sm:$0xff]   ;;  %v10522_v29 = vld [vmem:[%s11856_s12 + $0x10] ss:$8 sps:$4 sm:$0xff]  }
 0xed7   : > { %9979 = vmatprep.mubr.msk.f32.mxu1 %vm4519_vm7, %v5242_v7  ;;  %v10527_v7 = vld [vmem:[%s11856_s12 + $0x4] ss:$8 sps:$4 sm:$0xff]  }
 0xed8   : > { %9980 = vmatmul.mubr.msk.f32.gmra.mxu1 %vm4519_vm7, %v5243_v0  ;;  %v10949_v23 = vpop.eup %10948  ;;  %v10525_v0 = vld [vmem:[%s11856_s12] ss:$8 sps:$4 sm:$0xff]  }
 0xed9   : > { %v5565_v50 = vmul.f32 %v10949_v23, %v13350_v55  ;;  %v10533_v23 = vld [vmem:[%s11856_s12 + $0xe4] ss:$8 sps:$4 sm:$0xff]  }
 0xef5   : > { %v5542_v58 = vpop.xlane.xlu1 %5541 }
 0xef6   : > { %10950 = vrcp.f32 %v5542_v58  ;;  %v10530_v58 = vld [vmem:[%s11856_s12 + $0xf4] ss:$8 sps:$4 sm:$0xff]  }
 0xef9   : > { %v5575_v14 = vpop.permute.xlu1 %5574 }
 0xefa   : > { %10005 = vmatprep.subr.mxu1 %v5575_v14 }
 0xefb   : > { %10006 = vmatpush3.msra.mxu1 %v5575_v14  ;;  %v10528_v14 = vld [vmem:[%s11856_s12 + $0xf0] ss:$8 sps:$4 sm:$0xff]  }
 0xefc   : > { %5957 = vmatprep.subr.bf16.mxu1 %v10506_v22 }
 0xeff   : > { %v5551_v32 = vpop.xlane.xlu0 %5550 }
 0xf00   : > { %10952 = vrcp.f32 %v5551_v32  ;;  %v10539_v32 = vld [vmem:[%s11856_s12 + $0xc4] ss:$8 sps:$4 sm:$0xff]  }
 0xf03   : > { %v10951_v45 = vpop.eup %10950 }
 0xf04   : > { %v5564_v62 = vmul.f32 %v10951_v45, %v13364_v33  ;;  %v10531_v45 = vld [vmem:[%s11856_s12 + $0xe0] ss:$8 sps:$4 sm:$0xff]  }
 0xf06   : > { %10007 = vmatprep.mubr.msk.f32.mxu1 %vm4519_vm7, %v5564_v62  ;;  %v10536_v62 = vld [vmem:[%s11856_s12 + $0xd4] ss:$8 sps:$4 sm:$0xff]  }
 0xf07   : > { %10008 = vmatmul.mubr.msk.f32.vlgmr.msra.gmra.mxu1 %vm4519_vm7, %v5565_v50  ;;  %v5554_v48 = vpop.xlane.xlu0 %5553  ;;  %v10534_v50 = vld [vmem:[%s11856_s12 + $0xd0] ss:$8 sps:$4 sm:$0xff]  }
 0xf08   : > { %10954 = vrcp.f32 %v5554_v48  ;;  %5958 = vmatpush1.bf16.msra.mxu1 %v10504_v42  ;;  %v10537_v48 = vld [vmem:[%s11856_s12 + $0xc0] ss:$8 sps:$4 sm:$0xff]  }
 0xf09   : > { %5959 = vmatprep.subr.bf16.mxu1 %v10509_v47 }
 0xf0c   : > { %5960 = vmatpush1.bf16.msra.mxu1 %v10507_v54 }
 0xf0d   : > { %v10953_v13 = vpop.eup %10952  ;;  %5961 = vmatprep.subr.bf16.mxu1 %v10512_v15 }
 0xf0e   : > { %v5567_v33 = vmul.f32 %v10953_v13, %v13369_v38 }
 0xf10   : > { %5962 = vmatpush1.bf16.msra.mxu1 %v10510_v18 }
 0xf11   : > { %5963 = vmatprep.subr.bf16.mxu1 %v10515_v26 }
 0xf14   : > { %5964 = vmatpush1.bf16.msra.mxu1 %v10513_v12 }
 0xf15   : > { %v10955_v37 = vpop.eup %10954  ;;  %5965 = vmatprep.subr.bf16.mxu1 %v10518_v36 }
 0xf16   : > { %v5568_v55 = vmul.f32 %v10955_v37, %v13378_v41  ;;  %v10545_v37 = vld [vmem:[%s11856_s12 + $0xa4] ss:$8 sps:$4 sm:$0xff]  }
 0xf18   : > { %5966 = vmatpush1.bf16.msra.mxu1 %v10516_v63 }
 0xf19   : > { %5967 = vmatprep.subr.bf16.mxu1 %v10521_v21 }
 0xf1c   : > { %5968 = vmatpush1.bf16.msra.mxu1 %v10519_v35 }
 0xf1d   : > { %5969 = vmatprep.subr.bf16.mxu1 %v10524_v60 }
 0xf20   : > { %5970 = vmatpush1.bf16.msra.mxu1 %v10522_v29 }
 0xf21   : > { %5971 = vmatprep.subr.bf16.mxu1 %v10527_v7 }
 0xf24   : > { %5972 = vmatpush1.bf16.msra.mxu1 %v10525_v0 }
 0xf25   : > { %5973 = vmatprep.subr.bf16.mxu1 %v10530_v58 }
 0xf28   : > { %5974 = vmatpush2.bf16.msra.mxu1 %v10528_v14 }
 0xf29   : > { %5975 = vmatprep.subr.bf16.mxu1 %v10533_v23 }
 0xf2a   : > { %v5548_v51 = vpop.xlane.xlu1 %5547 }
 0xf2b   : > { %10956 = vrcp.f32 %v5548_v51  ;;  %v10542_v51 = vld [vmem:[%s11856_s12 + $0xb4] ss:$8 sps:$4 sm:$0xff]  }
 0xf2c   : > { %5976 = vmatpush2.bf16.msra.mxu1 %v10531_v45 }
 0xf2d   : > { %5977 = vmatprep.subr.bf16.mxu1 %v10536_v62 }
 0xf2e   : > { %v5557_v61 = vpop.xlane.xlu1 %5556 }
 0xf2f   : > { %10958 = vrcp.f32 %v5557_v61  ;;  %v10540_v61 = vld [vmem:[%s11856_s12 + $0xb0] ss:$8 sps:$4 sm:$0xff]  }
 0xf30   : > { %5978 = vmatpush2.bf16.msra.mxu1 %v10534_v50 }
 0xf31   : > { %5979 = vmatprep.subr.bf16.mxu1 %v10539_v32 }
 0xf34   : > { %5980 = vmatpush2.bf16.msra.mxu1 %v10537_v48 }
 0xf35   : > { %5981 = vmatprep.subr.bf16.mxu1 %v10542_v51 }
 0xf38   : > { %v10957_v46 = vpop.eup %10956  ;;  %v13448_v16 = vpop.f32.mrf.mxu1  ;;  %5982 = vmatpush2.bf16.msra.mxu1 %v10540_v61 }
 0xf39   : > { %v5566_v30 = vmul.f32 %v10957_v46, %v13397_v24  ;;  %v10543_v46 = vld [vmem:[%s11856_s12 + $0xa0] ss:$8 sps:$4 sm:$0xff]   ;;  %5983 = vmatprep.subr.bf16.mxu1 %v10545_v37 }
 0xf3a   : > { %v13450_v24 = vpop.f32.mrf.mxu1 }
 0xf3b   : > { %10010 = vmatprep.mubr.msk.f32.mxu1 %vm4519_vm7, %v5566_v30 }
 0xf3c   : > { %v10959_v44 = vpop.eup %10958  ;;  %10011 = vmatmul.mubr.msk.f32.gmra.mxu1 %vm4519_vm7, %v5567_v33  ;;  %v10548_v33 = vld [vmem:[%s11856_s12 + $0x94] ss:$8 sps:$4 sm:$0xff]  }
 0xf3d   : > { %10013 = vmatprep.mubr.msk.f32.mxu1 %vm4519_vm7, %v5568_v55  ;;  %v5569_v27 = vmul.f32 %v10959_v44, %v13401_v49  ;;  %5984 = vmatpush2.bf16.msra.mxu1 %v10543_v46  ;;  %v10546_v55 = vld [vmem:[%s11856_s12 + $0x90] ss:$8 sps:$4 sm:$0xff]  }
 0xf3e   : > { %5985 = vmatprep.subr.bf16.mxu1 %v10548_v33 }
 0xf40   : > { %10014 = vmatmul.mubr.msk.f32.gmra.mxu1 %vm4519_vm7, %v5569_v27 }
 0xf41   : > { %5986 = vmatpush2.bf16.msra.mxu1 %v10546_v55 }
 0xf42   : > { %v13452_v38 = vpop.f32.mrf.mxu1 }
 0xf44   : > { %v13454_v41 = vpop.f32.mrf.mxu1 }
 0xf46   : > { %v13456_v10 = vpop.f32.mrf.mxu1 }
 0xf48   : > { %v13458_v3 = vpop.f32.mrf.mxu1 }
 0xf78   : > { %v9941_v57 = vpop.f32.mrf.mxu1 }
 0xf7a   : > { %v5012_v49 = vpop.f32.mrf.mxu1 }
 0xf7b   : > { %v10143_v9 = vpack.i.bf16 %v9941_v57, %v5012_v49  ;;  %v10549_v57 = vld [vmem:[%s11856_s12 + $0x80] ss:$8 sps:$4 sm:$0xff]   ;;  %v10551_v49 = vld [vmem:[%s11856_s12 + $0x84] ss:$8 sps:$4 sm:$0xff]  }
 0xf7c   : > { %5987 = vmatprep.subr.bf16.mxu1 %v10551_v49 }
 0xf7d   : > { %10144 = vrot.lane.b32.xlu1 %v10143_v9, %s11401_s21  ;;  %5988 = vmatpush2.bf16.msra.mxu1 %v10549_v57 }
 0xf80   : > { %v13461_v5 = vpop.f32.mrf.mxu1 }
 0xf82   : > { %v13463_v34 = vpop.f32.mrf.mxu1 }
 0xf83   : > { %v10153_v11 = vpack.i.bf16 %v13461_v5, %v13463_v34 }
 0xf88   : > { %v13471_v43 = vpop.f32.mrf.mxu1 }
 0xf8a   : > { %v13474_v52 = vpop.f32.mrf.mxu1 }
 0xf8b   : > { %v10163_v56 = vpack.i.bf16 %v13471_v43, %v13474_v52 }
 0xf8c   : > { %v9975_v13 = vpop.f32.mrf.mxu1 }
 0xf8e   : > { %v5328_v30 = vpop.f32.mrf.mxu1 }
 0xf90   : > { %v9978_v44 = vpop.f32.mrf.mxu1 }
 0xf92   : > { %v5338_v27 = vpop.f32.mrf.mxu1 }
 0xf98   : > { %v9981_v9 = vpop.f32.mrf.mxu1 }
 0xf9a   : > { %v5348_v42 = vpop.f32.mrf.mxu1 }
 0xfc7   : > { %v10009_v22 = vpop.f32.mrf.mxu1 }
 0xfc9   : > { %v5670_v47 = vpop.f32.mrf.mxu1 }
 0xfca   : > { %v10138_v54 = vpack.i.bf16 %v10009_v22, %v5670_v47 }
 0xfcc   : > { %10139 = vrot.lane.b32.xlu0 %v10138_v54, %s11401_s21 }
 0xfef   : > { %v10145_v21 = vpop.permute.xlu1 %10144 }
 0xff0   : > { %v10147_v35 = vunpack.i.h.bf16 %v10145_v21  ;;  %v10146_v60 = vunpack.i.l.bf16 %v10145_v21 }
 0xff2   : > { %v5748_v58 = vsel %vm1761_vm0, %v13448_v16, %v10147_v35  ;;  %v5747_v5 = vsel %vm1761_vm0, %v13450_v24, %v10146_v60 }
 0xff3   : > { %v5791_v23 = vpack.c.bf16 %v5748_v58, %v5747_v5 }
 0xffc   : > { %v10012_v15 = vpop.f32.mrf.mxu1 }
 0xffe   : > { %v5680_v18 = vpop.f32.mrf.mxu1 }
 0xfff   : > { %v10148_v26 = vpack.i.bf16 %v10012_v15, %v5680_v18 }
0x1000   : > { %v10015_v12 = vpop.f32.mrf.mxu1 }
0x1001   : > { %10149 = vrot.lane.b32.xlu1 %v10148_v26, %s11401_s21 }
0x1002   : > { %v5690_v36 = vpop.f32.mrf.mxu1 }
0x1003   : > { %v10158_v63 = vpack.i.bf16 %v10015_v12, %v5690_v36 }
0x1005   : > { %10154 = vrot.lane.b32.xlu1 %v10153_v11, %s11401_s21  ;;  %10159 = vrot.lane.b32.xlu0 %v10158_v63, %s11401_s21 }
0x1009   : > { %10164 = vrot.lane.b32.xlu1 %v10163_v56, %s11401_s21 }
0x103e   : > { %v10140_v29 = vpop.permute.xlu0 %10139 }
0x103f   : > { %v10142_v7 = vunpack.i.h.bf16 %v10140_v29  ;;  %v10141_v0 = vunpack.i.l.bf16 %v10140_v29 }
0x1041   : > { %v5753_v34 = vsel %vm1761_vm0, %v5328_v30, %v10141_v0  ;;  %v5754_v11 = vsel %vm1761_vm0, %v9975_v13, %v10142_v7 }
0x1042   : > { %v5792_v14 = vpack.c.bf16 %v5754_v11, %v5753_v34 }
0x1044   : > { %5989 = vmatprep.mubr.bf16.mxu1 %v5792_v14 }
0x1045   : > { %5990 = vmatmul.mubr.bf16.vlgmr.msra.gmra.mxu1 %v5791_v23 }
0x1073   : > { %v10150_v43 = vpop.permute.xlu1 %10149 }
0x1074   : > { %v10152_v52 = vunpack.i.h.bf16 %v10150_v43  ;;  %v10151_v56 = vunpack.i.l.bf16 %v10150_v43 }
0x1076   : > { %v5755_v45 = vsel %vm1761_vm0, %v5338_v27, %v10151_v56  ;;  %v5756_v62 = vsel %vm1761_vm0, %v9978_v44, %v10152_v52 }
0x1077   : > { %v10160_v50 = vpop.permute.xlu0 %10159  ;;  %v10155_v16 = vpop.permute.xlu1 %10154  ;;  %v5794_v32 = vpack.c.bf16 %v5756_v62, %v5755_v45 }
0x1078   : > { %v10162_v48 = vunpack.i.h.bf16 %v10160_v50  ;;  %v10161_v24 = vunpack.i.l.bf16 %v10160_v50  ;;  %v10157_v51 = vunpack.i.h.bf16 %v10155_v16  ;;  %v10156_v61 = vunpack.i.l.bf16 %v10155_v16 }
0x1079   : > { %5999 = vmatprep.mubr.bf16.mxu1 %v5794_v32 }
0x107a   : > { %v5749_v13 = vsel %vm1761_vm0, %v13454_v41, %v10156_v61  ;;  %v5750_v37 = vsel %vm1761_vm0, %v13452_v38, %v10157_v51  ;;  %v5757_v46 = vsel %vm1761_vm0, %v5348_v42, %v10161_v24  ;;  %v5758_v30 = vsel %vm1761_vm0, %v9981_v9, %v10162_v48  ;;  %v9265_v38 = vld [vmem:[%s11822_s28 + $0x7] ss:$8 sm:$0x3]  ;;  %v6259_v24 = vld [vmem:[%s11858_s9 + $0x1c0] sm:$0xff] }
0x107b   : > { %v10165_v33 = vpop.permute.xlu1 %10164  ;;  %v5793_v55 = vpack.c.bf16 %v5750_v37, %v5749_v13  ;;  %v5796_v44 = vpack.c.bf16 %v5758_v30, %v5757_v46  ;;  %v6038_v9 = vrot.slane %v9265_v38, %v12053_v20  ;;  %v6042_v54 = vrot.slane %v9265_v38, %v12050_v19  ;;  %v6263_v51 = vld [vmem:[%s11858_s9 + $0x1e0] sm:$0xff]  ;;  %v6264_v37 = vld [vmem:[%s11858_s9 + $0x1e8] sm:$0xff] }
0x107c   : > { %v10167_v27 = vunpack.i.h.bf16 %v10165_v33  ;;  %v10166_v57 = vunpack.i.l.bf16 %v10165_v33  ;;  %v9324_v61 = vcombine.low %v6259_v24, %v6263_v51  ;;  %v9325_v13 = vcombine.high %v6259_v24, %v6263_v51  ;;  %v6251_v46 = vld [vmem:[%s11858_s9 + $0x180] sm:$0xff]  ;;  %v6244_v38 = vld [vmem:[%s11858_s9 + $0x148] sm:$0xff] }
0x107d   : > { %6000 = vmatmul.mubr.bf16.gmra.mxu1 %v5793_v55  ;;  %v6255_v30 = vld [vmem:[%s11858_s9 + $0x1a0] sm:$0xff]  ;;  %v6216_v24 = vld [vmem:[%s11858_s9 + $0x68] sm:$0xff] }
0x107e   : > { %6009 = vmatprep.mubr.bf16.mxu1 %v5796_v44  ;;  %v5751_v49 = vsel %vm1761_vm0, %v13458_v3, %v10166_v57  ;;  %v5752_v41 = vsel %vm1761_vm0, %v13456_v10, %v10167_v27  ;;  %v9317_v44 = vcombine.high %v6251_v46, %v6255_v30  ;;  %v6252_v27 = vld [vmem:[%s11858_s9 + $0x188] sm:$0xff]  ;;  %7019 = vmatprep.subr.bf16.mxu0 %v9325_v13 }
0x107f   : > { %v5795_v22 = vpack.c.bf16 %v5752_v41, %v5751_v49  ;;  %v6256_v57 = vld [vmem:[%s11858_s9 + $0x1a8] sm:$0xff]  ;;  %v6243_v49 = vld [vmem:[%s11858_s9 + $0x140] sm:$0xff]  ;;  %7020 = vmatpush1.bf16.msra.mxu0 %v9324_v61 }
0x1080   : > { %v9319_v41 = vcombine.high %v6252_v27, %v6256_v57  ;;  %7021 = vmatprep.subr.bf16.mxu0 %v9317_v44 }
0x1085   : > { %6010 = vmatmul.mubr.bf16.gmra.mxu1 %v5795_v22  ;;  %v6247_v22 = vld [vmem:[%s11858_s9 + $0x160] sm:$0xff] }
0x1105   : > { %v5991_v47 = vpop.f32.mrf.mxu1 }
0x1106   : > { %v6020_v42 = vadd.f32 %v5991_v47, %v12734_v2  ;;  %v6248_v47 = vld [vmem:[%s11858_s9 + $0x168] sm:$0xff] }
0x1107   : > { %v5993_v15 = vpop.f32.mrf.mxu1 }
0x1108   : > { %v6021_v18 = vadd.f32 %v5993_v15, %v12736_v39  ;;  %v13539_v12 = vadd.f32 %v6038_v9, %v6020_v42  ;;  %v9316_v42 = vcombine.low %v6251_v46, %v6255_v30  ;;  %v9311_v15 = vcombine.high %v6244_v38, %v6248_v47  ;;  %v6207_v46 = vld [vmem:[%s11858_s9 + $0x20] sm:$0xff]  ;;  %v6204_v30 = vld [vmem:[%s11858_s9 + $0x8] sm:$0xff] }
0x1109   : > { %v5995_v26 = vpop.f32.mrf.mxu1 }
0x110a   : > { %v13541_v3 = vadd.f32 %v6042_v54, %v6021_v18  ;;  %v6022_v10 = vadd.f32 %v5995_v26, %v12740_v53  ;;  %v6235_v18 = vld [vmem:[%s11858_s9 + $0x100] sm:$0xff]  ;;  %7022 = vmatpush1.bf16.msra.mxu0 %v9316_v42 }
0x110b   : > { %v5997_v36 = vpop.f32.mrf.mxu1  ;;  %v6239_v26 = vld [vmem:[%s11858_s9 + $0x120] sm:$0xff] }
0x110c   : > { %v6023_v63 = vadd.f32 %v5997_v36, %v12742_v28  ;;  %v6061_v2 = vadd.f32 %v13541_v3, %v13539_v12  ;;  %v13547_v21 = vadd.f32 %v6038_v9, %v6022_v10  ;;  %v6236_v10 = vld [vmem:[%s11858_s9 + $0x108] sm:$0xff] }
0x110d   : > { %v6240_v36 = vld [vmem:[%s11858_s9 + $0x128] sm:$0xff] }
0x110e   : > { %v13549_v35 = vadd.f32 %v6042_v54, %v6023_v63  ;;  %6062 = vadd.xlane.f32.xlu0 %v6061_v2  ;;  %v9308_v63 = vcombine.low %v6243_v49, %v6247_v22  ;;  %v9310_v2 = vcombine.low %v6244_v38, %v6248_v47  ;;  %v6328_v38 = vld [vmem:[%s11858_s9 + $0x3e8] sm:$0xff] }
0x1110   : > { %v6064_v39 = vadd.f32 %v13549_v35, %v13547_v21 }
0x1112   : > { %6065 = vadd.xlane.f32.xlu1 %v6064_v39  ;;  %v9301_v39 = vcombine.high %v6235_v18, %v6239_v26 }
0x113d   : > { %v6001_v60 = vpop.f32.mrf.mxu1 }
0x113e   : > { %v6024_v29 = vadd.f32 %v6001_v60, %v12746_v6  ;;  %v9303_v60 = vcombine.high %v6236_v10, %v6240_v36 }
0x113f   : > { %v6003_v7 = vpop.f32.mrf.mxu1 }
0x1140   : > { %v6025_v53 = vadd.f32 %v6003_v7, %v12748_v59  ;;  %v13555_v28 = vadd.f32 %v6038_v9, %v6024_v29  ;;  %v6227_v29 = vld [vmem:[%s11858_s9 + $0xc0] sm:$0xff] }
0x1141   : > { %v6005_v0 = vpop.f32.mrf.mxu1  ;;  %v6231_v7 = vld [vmem:[%s11858_s9 + $0xe0] sm:$0xff] }
0x1142   : > { %14522 = vst [vmem:[#allocation27_spill] sm:$0xff] %v13555_v28  ;;  %v13557_v58 = vadd.f32 %v6042_v54, %v6025_v53  ;;  %v6026_v5 = vadd.f32 %v6005_v0, %v12752_v8  ;;  %v6228_v53 = vld [vmem:[%s11858_s9 + $0xc8] sm:$0xff] }
0x1143   : > { %v6007_v34 = vpop.f32.mrf.mxu1  ;;  %v6232_v0 = vld [vmem:[%s11858_s9 + $0xe8] sm:$0xff] }
0x1144   : > { %14523 = vst [vmem:[#allocation28_spill] sm:$0xff] %v13557_v58  ;;  %v6027_v11 = vadd.f32 %v6007_v34, %v12754_v25  ;;  %v6067_v14 = vadd.f32 %v13557_v58, %v13555_v28  ;;  %v13563_v43 = vadd.f32 %v6038_v9, %v6026_v5  ;;  %v9300_v5 = vcombine.low %v6235_v18, %v6239_v26 }
0x1145   : > { %v6011_v23 = vpop.f32.mrf.mxu1  ;;  %v9302_v34 = vcombine.low %v6236_v10, %v6240_v36 }
0x1146   : > { %14524 = vst [vmem:[#allocation29_spill] sm:$0xff] %v13563_v43  ;;  %v13565_v6 = vadd.f32 %v6042_v54, %v6027_v11  ;;  %v6028_v59 = vadd.f32 %v6011_v23, %v12759_v40  ;;  %6068 = vadd.xlane.f32.xlu0 %v6067_v14  ;;  %v9293_v11 = vcombine.high %v6227_v29, %v6231_v7  ;;  %v6219_v23 = vld [vmem:[%s11858_s9 + $0x80] sm:$0xff] }
0x1147   : > { %v6013_v52 = vpop.f32.mrf.mxu1  ;;  %v9295_v14 = vcombine.high %v6228_v53, %v6232_v0 }
0x1148   : > { %14525 = vst [vmem:[#allocation30_spill] sm:$0xff] %v13565_v6  ;;  %v6029_v56 = vadd.f32 %v6013_v52, %v12761_v17  ;;  %v6070_v8 = vadd.f32 %v13565_v6, %v13563_v43  ;;  %v13571_v45 = vadd.f32 %v6038_v9, %v6028_v59  ;;  %v6223_v59 = vld [vmem:[%s11858_s9 + $0xa0] sm:$0xff]  ;;  %v6220_v52 = vld [vmem:[%s11858_s9 + $0x88] sm:$0xff] }
0x1149   : > { %v6015_v25 = vpop.f32.mrf.mxu1  ;;  %v9284_v51 = vcombine.low %v6219_v23, %v6223_v59 }
0x114a   : > { %14526 = vst [vmem:[#allocation31_spill] sm:$0xff] %v13571_v45  ;;  %v13573_v62 = vadd.f32 %v6042_v54, %v6029_v56  ;;  %v6030_v50 = vadd.f32 %v6015_v25, %v12767_v4  ;;  %6071 = vadd.xlane.f32.xlu0 %v6070_v8  ;;  %v6224_v56 = vld [vmem:[%s11858_s9 + $0xa8] sm:$0xff]  ;;  %v9292_v8 = vcombine.low %v6227_v29, %v6231_v7 }
0x114b   : > { %v6017_v40 = vpop.f32.mrf.mxu1  ;;  %v9294_v25 = vcombine.low %v6228_v53, %v6232_v0 }
0x114c   : > { %14527 = vst [vmem:[#allocation32_spill] sm:$0xff] %v13573_v62  ;;  %v6031_v16 = vadd.f32 %v6017_v40, %v12769_v1  ;;  %v6073_v17 = vadd.f32 %v13573_v62, %v13571_v45  ;;  %v13579_v32 = vadd.f32 %v6038_v9, %v6030_v50  ;;  %v6260_v1 = vld [vmem:[%s11858_s9 + $0x1c8] sm:$0xff]  ;;  %v9318_v9 = vcombine.low %v6252_v27, %v6256_v57 }
0x114d   : > { %v9326_v33 = vcombine.low %v6260_v1, %v6264_v37  ;;  %v9327_v55 = vcombine.high %v6260_v1, %v6264_v37  ;;  %v9285_v50 = vcombine.high %v6219_v23, %v6223_v59  ;;  %v9287_v40 = vcombine.high %v6220_v52, %v6224_v56  ;;  %v6203_v37 = vld [vmem:[%s11858_s9] sm:$0xff]  ;;  %v6316_v59 = vld [vmem:[%s11858_s9 + $0x388] sm:$0xff] }
0x114e   : > { %14528 = vst [vmem:[#allocation33_spill] sm:$0xff] %v13579_v32  ;;  %v13581_v48 = vadd.f32 %v6042_v54, %v6031_v16  ;;  %6074 = vadd.xlane.f32.xlu0 %v6073_v17  ;;  %v9309_v54 = vcombine.high %v6243_v49, %v6247_v22  ;;  %v6211_v16 = vld [vmem:[%s11858_s9 + $0x40] sm:$0xff]  ;;  %v9286_v1 = vcombine.low %v6220_v52, %v6224_v56  ;;  %v6324_v22 = vld [vmem:[%s11858_s9 + $0x3c8] sm:$0xff] }
0x114f   : > { %7082 = vmatprep.subr.bf16.mxu1 %v9327_v55  ;;  %v6215_v17 = vld [vmem:[%s11858_s9 + $0x60] sm:$0xff]  ;;  %v9269_v27 = vcombine.high %v6203_v37, %v6207_v46  ;;  %v9268_v47 = vcombine.low %v6203_v37, %v6207_v46  ;;  %v9390_v18 = vcombine.low %v6324_v22, %v6328_v38  ;;  %v6320_v56 = vld [vmem:[%s11858_s9 + $0x3a8] sm:$0xff] }
0x1150   : > { %14529 = vst [vmem:[#allocation34_spill] sm:$0xff] %v13581_v48  ;;  %v6076_v4 = vadd.f32 %v13581_v48, %v13579_v32  ;;  %7083 = vmatpush1.bf16.msra.mxu1 %v9326_v33  ;;  %7023 = vmatprep.subr.bf16.mxu0 %v9309_v54  ;;  %v9277_v61 = vcombine.high %v6211_v16, %v6215_v17  ;;  %v6208_v33 = vld [vmem:[%s11858_s9 + $0x28] sm:$0xff]  ;;  %v6323_v49 = vld [vmem:[%s11858_s9 + $0x3c0] sm:$0xff] }
0x1151   : > { %7084 = vmatprep.subr.bf16.mxu1 %v9319_v41  ;;  %7024 = vmatpush1.bf16.msra.mxu0 %v9308_v63  ;;  %v9276_v55 = vcombine.low %v6211_v16, %v6215_v17  ;;  %v9271_v57 = vcombine.high %v6204_v30, %v6208_v33  ;;  %v6327_v41 = vld [vmem:[%s11858_s9 + $0x3e0] sm:$0xff]  ;;  %v9270_v42 = vcombine.low %v6204_v30, %v6208_v33  ;;  %v6308_v17 = vld [vmem:[%s11858_s9 + $0x348] sm:$0xff] }
0x1152   : > { %6077 = vadd.xlane.f32.xlu1 %v6076_v4  ;;  %7025 = vmatprep.subr.bf16.mxu0 %v9301_v39  ;;  %v6212_v4 = vld [vmem:[%s11858_s9 + $0x48] sm:$0xff]  ;;  %v9391_v54 = vcombine.high %v6324_v22, %v6328_v38  ;;  %v6319_v23 = vld [vmem:[%s11858_s9 + $0x3a0] sm:$0xff] }
0x1153   : > { %v9279_v13 = vcombine.high %v6212_v4, %v6216_v24  ;;  %v9278_v44 = vcombine.low %v6212_v4, %v6216_v24  ;;  %v6311_v16 = vld [vmem:[%s11858_s9 + $0x360] sm:$0xff]  ;;  %v6312_v24 = vld [vmem:[%s11858_s9 + $0x368] sm:$0xff] }
0x1154   : > { %7085 = vmatpush1.bf16.msra.mxu1 %v9318_v9  ;;  %v9389_v9 = vcombine.high %v6323_v49, %v6327_v41  ;;  %v6303_v37 = vld [vmem:[%s11858_s9 + $0x320] sm:$0xff]  ;;  %v6300_v46 = vld [vmem:[%s11858_s9 + $0x308] sm:$0xff] }
0x1155   : > { %7086 = vmatprep.subr.bf16.mxu1 %v9311_v15  ;;  %7026 = vmatpush1.bf16.msra.mxu0 %v9300_v5  ;;  %v9388_v15 = vcombine.low %v6323_v49, %v6327_v41  ;;  %v6304_v33 = vld [vmem:[%s11858_s9 + $0x328] sm:$0xff]  ;;  %v6295_v49 = vld [vmem:[%s11858_s9 + $0x2e0] sm:$0xff] }
0x1156   : > { %7027 = vmatprep.subr.bf16.mxu0 %v9293_v11  ;;  %v6292_v41 = vld [vmem:[%s11858_s9 + $0x2c8] sm:$0xff] }
0x1157   : > { %v6296_v38 = vld [vmem:[%s11858_s9 + $0x2e8] sm:$0xff] }
0x1158   : > { %7087 = vmatpush1.bf16.msra.mxu1 %v9310_v2 }
0x1159   : > { %7088 = vmatprep.subr.bf16.mxu1 %v9303_v60  ;;  %7028 = vmatpush1.bf16.msra.mxu0 %v9292_v8 }
0x115a   : > { %7029 = vmatprep.subr.bf16.mxu0 %v9285_v50  ;;  %v9383_v50 = vcombine.high %v6316_v59, %v6320_v56 }
0x115c   : > { %7089 = vmatpush1.bf16.msra.mxu1 %v9302_v34 }
0x115d   : > { %7090 = vmatprep.subr.bf16.mxu1 %v9295_v14  ;;  %7030 = vmatpush1.bf16.msra.mxu0 %v9284_v51  ;;  %v6315_v14 = vld [vmem:[%s11858_s9 + $0x380] sm:$0xff] }
0x115e   : > { %7031 = vmatprep.subr.bf16.mxu0 %v9277_v61  ;;  %v9381_v52 = vcombine.high %v6315_v14, %v6319_v23  ;;  %v9380_v8 = vcombine.low %v6315_v14, %v6319_v23  ;;  %v9375_v61 = vcombine.high %v6308_v17, %v6312_v24  ;;  %v6267_v14 = vld [vmem:[%s11858_s9 + $0x200] sm:$0xff] }
0x115f   : > { %v6271_v23 = vld [vmem:[%s11858_s9 + $0x220] sm:$0xff] }
0x1160   : > { %7091 = vmatpush1.bf16.msra.mxu1 %v9294_v25  ;;  %v9382_v25 = vcombine.low %v6316_v59, %v6320_v56  ;;  %v6268_v56 = vld [vmem:[%s11858_s9 + $0x208] sm:$0xff] }
0x1161   : > { %7092 = vmatprep.subr.bf16.mxu1 %v9287_v40  ;;  %7032 = vmatpush1.bf16.msra.mxu0 %v9276_v55  ;;  %v6307_v40 = vld [vmem:[%s11858_s9 + $0x340] sm:$0xff] }
0x1162   : > { %7033 = vmatprep.subr.bf16.mxu0 %v9269_v27  ;;  %v9373_v4 = vcombine.high %v6307_v40, %v6311_v16  ;;  %v9372_v51 = vcombine.low %v6307_v40, %v6311_v16  ;;  %v9367_v27 = vcombine.high %v6300_v46, %v6304_v33  ;;  %v9332_v16 = vcombine.low %v6267_v14, %v6271_v23 }
0x1164   : > { %7093 = vmatpush1.bf16.msra.mxu1 %v9286_v1  ;;  %v9374_v1 = vcombine.low %v6308_v17, %v6312_v24  ;;  %v13673_v24 = vld [vmem:[%s11858_s9 + $0x1f0] sm:$0xff] }
0x1165   : > { %7094 = vmatprep.subr.bf16.mxu1 %v9279_v13  ;;  %7034 = vmatpush1.bf16.msra.mxu0 %v9268_v47  ;;  %v6299_v13 = vld [vmem:[%s11858_s9 + $0x300] sm:$0xff] }
0x1166   : > { %7035 = vmatprep.subr.bf16.mxu0 %v9389_v9  ;;  %v9365_v30 = vcombine.high %v6299_v13, %v6303_v37  ;;  %v9364_v55 = vcombine.low %v6299_v13, %v6303_v37  ;;  %v9359_v9 = vcombine.high %v6292_v41, %v6296_v38  ;;  %v13683_v13 = vld [vmem:[%s11858_s9 + $0x1f8] sm:$0xff] }
0x1168   : > { %7095 = vmatpush1.bf16.msra.mxu1 %v9278_v44  ;;  %v9366_v44 = vcombine.low %v6300_v46, %v6304_v33 }
0x1169   : > { %7096 = vmatprep.subr.bf16.mxu1 %v9271_v57  ;;  %7036 = vmatpush2.bf16.msra.mxu0 %v9388_v15  ;;  %v6291_v57 = vld [vmem:[%s11858_s9 + $0x2c0] sm:$0xff] }
0x116a   : > { %7037 = vmatprep.subr.bf16.mxu0 %v9381_v52  ;;  %v9357_v22 = vcombine.high %v6291_v57, %v6295_v49  ;;  %v9356_v47 = vcombine.low %v6291_v57, %v6295_v49  ;;  %v6287_v15 = vld [vmem:[%s11858_s9 + $0x2a0] sm:$0xff] }
0x116c   : > { %7097 = vmatpush1.bf16.msra.mxu1 %v9270_v42  ;;  %v9358_v42 = vcombine.low %v6292_v41, %v6296_v38 }
0x116d   : > { %7098 = vmatprep.subr.bf16.mxu1 %v9391_v54  ;;  %7038 = vmatpush2.bf16.msra.mxu0 %v9380_v8  ;;  %v6283_v54 = vld [vmem:[%s11858_s9 + $0x280] sm:$0xff]  ;;  %v6272_v8 = vld [vmem:[%s11858_s9 + $0x228] sm:$0xff] }
0x116e   : > { %7039 = vmatprep.subr.bf16.mxu0 %v9373_v4  ;;  %v9335_v40 = vcombine.high %v6268_v56, %v6272_v8  ;;  %v9334_v17 = vcombine.low %v6268_v56, %v6272_v8  ;;  %v13670_v4 = vld [vmem:[%s11858_s9 + $0x1d0] sm:$0xff] }
0x1170   : > { %7099 = vmatpush2.bf16.msra.mxu1 %v9390_v18  ;;  %v6284_v18 = vld [vmem:[%s11858_s9 + $0x288] sm:$0xff] }
0x1171   : > { %7100 = vmatprep.subr.bf16.mxu1 %v9383_v50  ;;  %7040 = vmatpush2.bf16.msra.mxu0 %v9372_v51  ;;  %v9333_v50 = vcombine.high %v6267_v14, %v6271_v23  ;;  %v13676_v51 = vld [vmem:[%s11858_s9 + $0x1d8] sm:$0xff] }
0x1172   : > { %7041 = vmatprep.subr.bf16.mxu0 %v9365_v30  ;;  %v9330_v37 = vcombine.low %v13676_v51, %v13683_v13  ;;  %v9331_v46 = vcombine.high %v13676_v51, %v13683_v13  ;;  %v6229_v13 = vld [vmem:[%s11858_s9 + $0xd0] sm:$0xff] }
0x1174   : > { %7101 = vmatpush2.bf16.msra.mxu1 %v9382_v25 }
0x1175   : > { %7102 = vmatprep.subr.bf16.mxu1 %v9375_v61  ;;  %7042 = vmatpush2.bf16.msra.mxu0 %v9364_v55  ;;  %v9329_v61 = vcombine.high %v13670_v4, %v13673_v24 }
0x1176   : > { %7043 = vmatprep.subr.bf16.mxu0 %v9357_v22 }
0x1178   : > { %7103 = vmatpush2.bf16.msra.mxu1 %v9374_v1  ;;  %v9328_v1 = vcombine.low %v13670_v4, %v13673_v24 }
0x1179   : > { %7104 = vmatprep.subr.bf16.mxu1 %v9367_v27  ;;  %7044 = vmatpush2.bf16.msra.mxu0 %v9356_v47 }
0x117c   : > { %7105 = vmatpush2.bf16.msra.mxu1 %v9366_v44 }
0x117d   : > { %7106 = vmatprep.subr.bf16.mxu1 %v9359_v9 }
0x1180   : > { %7107 = vmatpush2.bf16.msra.mxu1 %v9358_v42 }
0x1197   : > { %v6063_v26 = vpop.xlane.xlu0 %6062 }
0x1198   : > { %v6079_v10 = vmul.f32 0.00390625, %v6063_v26  ;;  %v9349_v26 = vcombine.high %v6283_v54, %v6287_v15 }
0x119a   : > { %v13622_v36 = vsub.f32 %v13539_v12, %v6079_v10  ;;  %v13625_v63 = vsub.f32 %v13541_v3, %v6079_v10  ;;  %v6288_v10 = vld [vmem:[%s11858_s9 + $0x2a8] sm:$0xff]  ;;  %7045 = vmatprep.subr.bf16.mxu0 %v9349_v26 }
0x119b   : > { %v6066_v2 = vpop.xlane.xlu1 %6065 }
0x119c   : > { %v6097_v39 = vmul.f32 %v13622_v36, %v13622_v36  ;;  %v6098_v60 = vmul.f32 %v13625_v63, %v13625_v63  ;;  %v6080_v29 = vmul.f32 0.00390625, %v6066_v2  ;;  %v9348_v2 = vcombine.low %v6283_v54, %v6287_v15 }
0x119e   : > { %v13632_v7 = vsub.f32 %v13547_v21, %v6080_v29  ;;  %v13635_v53 = vsub.f32 %v13549_v35, %v6080_v29  ;;  %v6109_v0 = vadd.f32 %v6098_v60, %v6097_v39  ;;  %v9350_v39 = vcombine.low %v6284_v18, %v6288_v10  ;;  %v6275_v29 = vld [vmem:[%s11858_s9 + $0x240] sm:$0xff]  ;;  %7046 = vmatpush2.bf16.msra.mxu0 %v9348_v2 }
0x119f   : > { %v9351_v60 = vcombine.high %v6284_v18, %v6288_v10 }
0x11a0   : > { %v6099_v5 = vmul.f32 %v13632_v7, %v13632_v7  ;;  %v6100_v34 = vmul.f32 %v13635_v53, %v13635_v53  ;;  %6110 = vadd.xlane.f32.xlu0 %v6109_v0  ;;  %v6279_v0 = vld [vmem:[%s11858_s9 + $0x260] sm:$0xff] }
0x11a1   : > { %7108 = vmatprep.subr.bf16.mxu1 %v9351_v60  ;;  %v9340_v59 = vcombine.low %v6275_v29, %v6279_v0 }
0x11a2   : > { %v6112_v11 = vadd.f32 %v6100_v34, %v6099_v5  ;;  %v6276_v5 = vld [vmem:[%s11858_s9 + $0x248] sm:$0xff]  ;;  %v9341_v34 = vcombine.high %v6275_v29, %v6279_v0  ;;  %7109 = vmatpush2.bf16.msra.mxu1 %v9350_v39 }
0x11a4   : > { %6113 = vadd.xlane.f32.xlu1 %v6112_v11  ;;  %v6280_v11 = vld [vmem:[%s11858_s9 + $0x268] sm:$0xff]  ;;  %7047 = vmatprep.subr.bf16.mxu0 %v9341_v34 }
0x11a5   : > { %v9343_v52 = vcombine.high %v6276_v5, %v6280_v11  ;;  %v9342_v25 = vcombine.low %v6276_v5, %v6280_v11  ;;  %7048 = vmatpush2.bf16.msra.mxu0 %v9340_v59 }
0x11a6   : > { %7049 = vmatprep.subr.bf16.mxu0 %v9333_v50 }
0x11a7   : > { %7110 = vmatprep.subr.bf16.mxu1 %v9343_v52 }
0x11a8   : > { %7111 = vmatpush2.bf16.msra.mxu1 %v9342_v25 }
0x11a9   : > { %7112 = vmatprep.subr.bf16.mxu1 %v9335_v40  ;;  %7050 = vmatpush2.bf16.msra.mxu0 %v9332_v16  ;;  %v9266_v40 = vld [vmem:[%s11822_s28 + $0x4] ss:$8 sm:$0x3] }
0x11aa   : > { %7145 = vmatprep.subr.bf16.mxu0 %v9329_v61  ;;  %v9267_v61 = vld [vmem:[%s11822_s28 + $0x5] ss:$8 sm:$0x3] }
0x11ac   : > { %7113 = vmatpush2.bf16.msra.mxu1 %v9334_v17 }
0x11ad   : > { %7208 = vmatprep.subr.bf16.mxu1 %v9331_v46 }
0x11cf   : > { %v6069_v30 = vpop.xlane.xlu0 %6068 }
0x11d0   : > { %v6081_v33 = vmul.f32 0.00390625, %v6069_v30  ;;  %v13734_v30 = vrot.slane %v9266_v40, %v12053_v20 }
0x11d2   : > { %v13690_v55 = vsub.f32 %v13555_v28, %v6081_v33  ;;  %v13693_v44 = vsub.f32 %v13557_v58, %v6081_v33  ;;  %v13737_v33 = vrot.slane %v9266_v40, %v12050_v19 }
0x11d3   : > { %v6072_v27 = vpop.xlane.xlu0 %6071 }
0x11d4   : > { %v6101_v57 = vmul.f32 %v13690_v55, %v13690_v55  ;;  %v6102_v49 = vmul.f32 %v13693_v44, %v13693_v44  ;;  %v6082_v41 = vmul.f32 0.00390625, %v6072_v27 }
0x11d6   : > { %v13700_v22 = vsub.f32 %v13563_v43, %v6082_v41  ;;  %v13703_v38 = vsub.f32 %v13565_v6, %v6082_v41  ;;  %v6115_v47 = vadd.f32 %v6102_v49, %v6101_v57  ;;  %v13740_v57 = vrot.slane %v9267_v61, %v12053_v20 }
0x11d7   : > { %v6075_v42 = vpop.xlane.xlu0 %6074  ;;  %v13743_v49 = vrot.slane %v9267_v61, %v12050_v19  ;;  %v6238_v61 = vld [vmem:[%s11858_s9 + $0x118] sm:$0xff] }
0x11d8   : > { %v6103_v9 = vmul.f32 %v13700_v22, %v13700_v22  ;;  %v6104_v54 = vmul.f32 %v13703_v38, %v13703_v38  ;;  %v6083_v15 = vmul.f32 0.00390625, %v6075_v42  ;;  %6116 = vadd.xlane.f32.xlu0 %v6115_v47 }
0x11da   : > { %v13710_v18 = vsub.f32 %v13571_v45, %v6083_v15  ;;  %v13713_v26 = vsub.f32 %v13573_v62, %v6083_v15  ;;  %v6118_v10 = vadd.f32 %v6104_v54, %v6103_v9  ;;  %v6253_v54 = vld [vmem:[%s11858_s9 + $0x190] sm:$0xff] }
0x11db   : > { %v6078_v2 = vpop.xlane.xlu1 %6077 }
0x11dc   : > { %v6105_v39 = vmul.f32 %v13710_v18, %v13710_v18  ;;  %v6106_v60 = vmul.f32 %v13713_v26, %v13713_v26  ;;  %v6084_v29 = vmul.f32 0.00390625, %v6078_v2  ;;  %6119 = vadd.xlane.f32.xlu1 %v6118_v10  ;;  %v6257_v2 = vld [vmem:[%s11858_s9 + $0x1b0] sm:$0xff] }
0x11de   : > { %v13720_v0 = vsub.f32 %v13579_v32, %v6084_v29  ;;  %v13723_v5 = vsub.f32 %v13581_v48, %v6084_v29  ;;  %v6121_v34 = vadd.f32 %v6106_v60, %v6105_v39  ;;  %v6254_v39 = vld [vmem:[%s11858_s9 + $0x198] sm:$0xff] }
0x11df   : > { %v6258_v60 = vld [vmem:[%s11858_s9 + $0x1b8] sm:$0xff] }
0x11e0   : > { %v6107_v11 = vmul.f32 %v13720_v0, %v13720_v0  ;;  %v6108_v14 = vmul.f32 %v13723_v5, %v13723_v5  ;;  %6122 = vadd.xlane.f32.xlu0 %v6121_v34  ;;  %v10732_v32 = vld [vmem:[%s11864_s26 + $0x290] ss:$8 sps:$4 sm:$0xff]  }
0x11e2   : > { %v6124_v23 = vadd.f32 %v6108_v14, %v6107_v11  ;;  %v9321_v11 = vcombine.high %v6253_v54, %v6257_v2  ;;  %v9323_v14 = vcombine.high %v6254_v39, %v6258_v60 }
0x11e4   : > { %6125 = vadd.xlane.f32.xlu1 %v6124_v23  ;;  %v6245_v23 = vld [vmem:[%s11858_s9 + $0x150] sm:$0xff] }
0x1229   : > { %v6111_v59 = vpop.xlane.xlu0 %6110 }
0x122a   : > { %v6127_v52 = vmul.f32 0.00390625, %v6111_v59  ;;  %v6249_v59 = vld [vmem:[%s11858_s9 + $0x170] sm:$0xff] }
0x122b   : > { %v9312_v4 = vcombine.low %v6245_v23, %v6249_v59 }
0x122c   : > { %v6133_v56 = vadd.f32 1e-05, %v6127_v52  ;;  %v6246_v52 = vld [vmem:[%s11858_s9 + $0x158] sm:$0xff] }
0x122d   : > { %v6114_v8 = vpop.xlane.xlu1 %6113 }
0x122e   : > { %10960 = vrsqrt.f32 %v6133_v56  ;;  %v6128_v25 = vmul.f32 0.00390625, %v6114_v8  ;;  %v6250_v56 = vld [vmem:[%s11858_s9 + $0x178] sm:$0xff]  ;;  %v9320_v8 = vcombine.low %v6253_v54, %v6257_v2  ;;  %v6225_v54 = vld [vmem:[%s11858_s9 + $0xb0] sm:$0xff] }
0x122f   : > { %v9315_v40 = vcombine.high %v6246_v52, %v6250_v56  ;;  %v9314_v24 = vcombine.low %v6246_v52, %v6250_v56 }
0x1230   : > { %v6134_v50 = vadd.f32 1e-05, %v6128_v25  ;;  %v9322_v25 = vcombine.low %v6254_v39, %v6258_v60  ;;  %v6213_v60 = vld [vmem:[%s11858_s9 + $0x50] sm:$0xff] }
0x1232   : > { %10962 = vrsqrt.f32 %v6134_v50  ;;  %v9313_v50 = vcombine.high %v6245_v23, %v6249_v59  ;;  %v6218_v23 = vld [vmem:[%s11858_s9 + $0x78] sm:$0xff] }
0x123b   : > { %v10961_v16 = vpop.eup %10960 }
0x123c   : > { %v6145_v17 = vmul.f32 %v10961_v16, %v13622_v36  ;;  %v6146_v46 = vmul.f32 %v10961_v16, %v13625_v63  ;;  %v6237_v16 = vld [vmem:[%s11858_s9 + $0x110] sm:$0xff] }
0x123e   : > { %v6169_v41 = vmul.f32 %v13737_v33, %v6146_v46  ;;  %v6168_v47 = vmul.f32 %v13734_v30, %v6145_v17  ;;  %v6241_v17 = vld [vmem:[%s11858_s9 + $0x130] sm:$0xff]  ;;  %v6242_v46 = vld [vmem:[%s11858_s9 + $0x138] sm:$0xff] }
0x123f   : > { %v10963_v27 = vpop.eup %10962  ;;  %v9305_v51 = vcombine.high %v6237_v16, %v6241_v17 }
0x1240   : > { %v6147_v36 = vmul.f32 %v10963_v27, %v13632_v7  ;;  %v6148_v63 = vmul.f32 %v10963_v27, %v13635_v53  ;;  %v6192_v15 = vadd.f32 %v13743_v49, %v6169_v41  ;;  %v6191_v7 = vadd.f32 %v13740_v57, %v6168_v47  ;;  %v6230_v27 = vld [vmem:[%s11858_s9 + $0xd8] sm:$0xff] }
0x1241   : > { %v9306_v41 = vcombine.low %v6238_v61, %v6242_v46 }
0x1242   : > { %v6171_v42 = vmul.f32 %v13737_v33, %v6148_v63  ;;  %v6170_v9 = vmul.f32 %v13734_v30, %v6147_v36  ;;  %v6234_v36 = vld [vmem:[%s11858_s9 + $0xf8] sm:$0xff]  ;;  %v9304_v63 = vcombine.low %v6237_v16, %v6241_v17 }
0x1243   : > { %v6210_v16 = vld [vmem:[%s11858_s9 + $0x38] sm:$0xff] }
0x1244   : > { %v6194_v10 = vadd.f32 %v13743_v49, %v6171_v42  ;;  %v6193_v53 = vadd.f32 %v13740_v57, %v6170_v9  ;;  %v9299_v42 = vcombine.high %v6230_v27, %v6234_v36  ;;  %v6221_v9 = vld [vmem:[%s11858_s9 + $0x90] sm:$0xff] }
0x1245   : > { %v9289_v2 = vcombine.high %v6221_v9, %v6225_v54  ;;  %v9288_v59 = vcombine.low %v6221_v9, %v6225_v54  ;;  %v6321_v54 = vld [vmem:[%s11858_s9 + $0x3b0] sm:$0xff] }
0x1246   : > { %v13759_v29 = vpack.c.bf16 %v6194_v10, %v6192_v15  ;;  %v13761_v34 = vpack.c.bf16 %v6193_v53, %v6191_v7  ;;  %v6222_v15 = vld [vmem:[%s11858_s9 + $0x98] sm:$0xff]  ;;  %v9298_v53 = vcombine.low %v6230_v27, %v6234_v36 }
0x1247   : > { %v6226_v10 = vld [vmem:[%s11858_s9 + $0xb8] sm:$0xff] }
0x1248   : > { %7051 = vmatprep.mubr.bf16.mxu0 %v13759_v29  ;;  %7114 = vmatprep.mubr.bf16.mxu1 %v13759_v29  ;;  %v9291_v39 = vcombine.high %v6222_v15, %v6226_v10  ;;  %v9290_v52 = vcombine.low %v6222_v15, %v6226_v10  ;;  %v6318_v15 = vld [vmem:[%s11858_s9 + $0x398] sm:$0xff] }
0x1249   : > { %7052 = vmatmul.mubr.bf16.vlgmr.msra.gmra.mxu0 %v13761_v34  ;;  %7115 = vmatmul.mubr.bf16.vlgmr.msra.gmra.mxu1 %v13761_v34  ;;  %v6322_v10 = vld [vmem:[%s11858_s9 + $0x3b8] sm:$0xff] }
0x124a   : > { %7146 = vmatpush1.bf16.msra.mxu0 %v9328_v1  ;;  %7209 = vmatpush1.bf16.msra.mxu1 %v9330_v37  ;;  %v9307_v1 = vcombine.high %v6238_v61, %v6242_v46  ;;  %v6233_v37 = vld [vmem:[%s11858_s9 + $0xf0] sm:$0xff] }
0x124b   : > { %7147 = vmatprep.subr.bf16.mxu0 %v9321_v11  ;;  %7210 = vmatprep.subr.bf16.mxu1 %v9323_v14  ;;  %v9297_v47 = vcombine.high %v6229_v13, %v6233_v37  ;;  %v9296_v7 = vcombine.low %v6229_v13, %v6233_v37  ;;  %v6217_v11 = vld [vmem:[%s11858_s9 + $0x70] sm:$0xff]  ;;  %v6214_v14 = vld [vmem:[%s11858_s9 + $0x58] sm:$0xff] }
0x124c   : > { %v9281_v56 = vcombine.high %v6213_v60, %v6217_v11  ;;  %v9280_v17 = vcombine.low %v6213_v60, %v6217_v11  ;;  %v9282_v61 = vcombine.low %v6214_v14, %v6218_v23  ;;  %v6330_v13 = vld [vmem:[%s11858_s9 + $0x3f8] sm:$0xff]  ;;  %v9387_v11 = vcombine.high %v6318_v15, %v6322_v10 }
0x124e   : > { %7148 = vmatpush1.bf16.msra.mxu0 %v9320_v8  ;;  %7211 = vmatpush1.bf16.msra.mxu1 %v9322_v25  ;;  %v9283_v8 = vcombine.high %v6214_v14, %v6218_v23  ;;  %v6205_v25 = vld [vmem:[%s11858_s9 + $0x10] sm:$0xff] }
0x124f   : > { %7149 = vmatprep.subr.bf16.mxu0 %v9313_v50  ;;  %7212 = vmatprep.subr.bf16.mxu1 %v9315_v40  ;;  %v6209_v50 = vld [vmem:[%s11858_s9 + $0x30] sm:$0xff]  ;;  %v6206_v40 = vld [vmem:[%s11858_s9 + $0x18] sm:$0xff] }
0x1250   : > { %v9273_v46 = vcombine.high %v6205_v25, %v6209_v50  ;;  %v9272_v36 = vcombine.low %v6205_v25, %v6209_v50  ;;  %v6309_v14 = vld [vmem:[%s11858_s9 + $0x350] sm:$0xff] }
0x1252   : > { %7150 = vmatpush1.bf16.msra.mxu0 %v9312_v4  ;;  %7213 = vmatpush1.bf16.msra.mxu1 %v9314_v24  ;;  %v9275_v4 = vcombine.high %v6206_v40, %v6210_v16  ;;  %v6325_v24 = vld [vmem:[%s11858_s9 + $0x3d0] sm:$0xff] }
0x1253   : > { %7151 = vmatprep.subr.bf16.mxu0 %v9305_v51  ;;  %7214 = vmatprep.subr.bf16.mxu1 %v9307_v1  ;;  %v6329_v51 = vld [vmem:[%s11858_s9 + $0x3f0] sm:$0xff]  ;;  %v6326_v1 = vld [vmem:[%s11858_s9 + $0x3d8] sm:$0xff] }
0x1256   : > { %7152 = vmatpush1.bf16.msra.mxu0 %v9304_v63  ;;  %7215 = vmatpush1.bf16.msra.mxu1 %v9306_v41  ;;  %v9274_v63 = vcombine.low %v6206_v40, %v6210_v16  ;;  %v9393_v41 = vcombine.high %v6325_v24, %v6329_v51  ;;  %v9386_v40 = vcombine.low %v6318_v15, %v6322_v10 }
0x1257   : > { %7153 = vmatprep.subr.bf16.mxu0 %v9297_v47  ;;  %7216 = vmatprep.subr.bf16.mxu1 %v9299_v42  ;;  %v9395_v47 = vcombine.high %v6326_v1, %v6330_v13  ;;  %v6317_v42 = vld [vmem:[%s11858_s9 + $0x390] sm:$0xff] }
0x1258   : > { %v9385_v60 = vcombine.high %v6317_v42, %v6321_v54  ;;  %v9384_v50 = vcombine.low %v6317_v42, %v6321_v54  ;;  %v6297_v42 = vld [vmem:[%s11858_s9 + $0x2f0] sm:$0xff]  ;;  %v6298_v54 = vld [vmem:[%s11858_s9 + $0x2f8] sm:$0xff] }
0x125a   : > { %7154 = vmatpush1.bf16.msra.mxu0 %v9296_v7  ;;  %7217 = vmatpush1.bf16.msra.mxu1 %v9298_v53 }
0x125b   : > { %7155 = vmatprep.subr.bf16.mxu0 %v9289_v2  ;;  %7218 = vmatprep.subr.bf16.mxu1 %v9291_v39  ;;  %v9392_v2 = vcombine.low %v6325_v24, %v6329_v51  ;;  %v9394_v39 = vcombine.low %v6326_v1, %v6330_v13  ;;  %v6302_v24 = vld [vmem:[%s11858_s9 + $0x318] sm:$0xff] }
0x125c   : > { %v6306_v51 = vld [vmem:[%s11858_s9 + $0x338] sm:$0xff] }
0x125d   : > { %v9370_v10 = vcombine.low %v6302_v24, %v6306_v51 }
0x125e   : > { %7156 = vmatpush1.bf16.msra.mxu0 %v9288_v59  ;;  %7219 = vmatpush1.bf16.msra.mxu1 %v9290_v52  ;;  %v6313_v59 = vld [vmem:[%s11858_s9 + $0x370] sm:$0xff]  ;;  %v6310_v52 = vld [vmem:[%s11858_s9 + $0x358] sm:$0xff] }
0x125f   : > { %7157 = vmatprep.subr.bf16.mxu0 %v9281_v56  ;;  %7220 = vmatprep.subr.bf16.mxu1 %v9283_v8  ;;  %v6314_v56 = vld [vmem:[%s11858_s9 + $0x378] sm:$0xff]  ;;  %v9377_v16 = vcombine.high %v6309_v14, %v6313_v59 }
0x1261   : > { %v6117_v37 = vpop.xlane.xlu0 %6116 }
0x1262   : > { %v6129_v27 = vmul.f32 0.00390625, %v6117_v37  ;;  %7158 = vmatpush1.bf16.msra.mxu0 %v9280_v17  ;;  %7221 = vmatpush1.bf16.msra.mxu1 %v9282_v61  ;;  %v9379_v17 = vcombine.high %v6310_v52, %v6314_v56  ;;  %v6301_v61 = vld [vmem:[%s11858_s9 + $0x310] sm:$0xff]  ;;  %v9376_v37 = vcombine.low %v6309_v14, %v6313_v59  ;;  %v6290_v59 = vld [vmem:[%s11858_s9 + $0x2b8] sm:$0xff] }
0x1263   : > { %7159 = vmatprep.subr.bf16.mxu0 %v9273_v46  ;;  %7222 = vmatprep.subr.bf16.mxu1 %v9275_v4  ;;  %v6305_v4 = vld [vmem:[%s11858_s9 + $0x330] sm:$0xff] }
0x1264   : > { %v6135_v9 = vadd.f32 1e-05, %v6129_v27  ;;  %v9378_v27 = vcombine.low %v6310_v52, %v6314_v56  ;;  %v9368_v15 = vcombine.low %v6301_v61, %v6305_v4 }
0x1265   : > { %v6120_v7 = vpop.xlane.xlu1 %6119 }
0x1266   : > { %10964 = vrsqrt.f32 %v6135_v9  ;;  %v6130_v53 = vmul.f32 0.00390625, %v6120_v7  ;;  %7160 = vmatpush1.bf16.msra.mxu0 %v9272_v36  ;;  %7223 = vmatpush1.bf16.msra.mxu1 %v9274_v63  ;;  %v9369_v36 = vcombine.high %v6301_v61, %v6305_v4  ;;  %v9371_v63 = vcombine.high %v6302_v24, %v6306_v51  ;;  %v6294_v9 = vld [vmem:[%s11858_s9 + $0x2d8] sm:$0xff] }
0x1267   : > { %7161 = vmatprep.subr.bf16.mxu0 %v9393_v41  ;;  %7224 = vmatprep.subr.bf16.mxu1 %v9395_v47  ;;  %v6293_v41 = vld [vmem:[%s11858_s9 + $0x2d0] sm:$0xff]  ;;  %v9362_v56 = vcombine.low %v6294_v9, %v6298_v54  ;;  %v6282_v4 = vld [vmem:[%s11858_s9 + $0x278] sm:$0xff] }
0x1268   : > { %v6136_v23 = vadd.f32 1e-05, %v6130_v53  ;;  %v9361_v53 = vcombine.high %v6293_v41, %v6297_v42  ;;  %v9360_v52 = vcombine.low %v6293_v41, %v6297_v42 }
0x1269   : > { %v6123_v8 = vpop.xlane.xlu0 %6122 }
0x126a   : > { %10966 = vrsqrt.f32 %v6136_v23  ;;  %v6131_v25 = vmul.f32 0.00390625, %v6123_v8  ;;  %7162 = vmatpush2.bf16.msra.mxu0 %v9392_v2  ;;  %7225 = vmatpush2.bf16.msra.mxu1 %v9394_v39  ;;  %v9363_v2 = vcombine.high %v6294_v9, %v6298_v54  ;;  %v6285_v39 = vld [vmem:[%s11858_s9 + $0x290] sm:$0xff]  ;;  %v6286_v23 = vld [vmem:[%s11858_s9 + $0x298] sm:$0xff] }
0x126b   : > { %7163 = vmatprep.subr.bf16.mxu0 %v9385_v60  ;;  %7226 = vmatprep.subr.bf16.mxu1 %v9387_v11  ;;  %v6289_v60 = vld [vmem:[%s11858_s9 + $0x2b0] sm:$0xff]  ;;  %v9354_v51 = vcombine.low %v6286_v23, %v6290_v59 }
0x126c   : > { %v6137_v46 = vadd.f32 1e-05, %v6131_v25  ;;  %v9353_v8 = vcombine.high %v6285_v39, %v6289_v60  ;;  %v9352_v24 = vcombine.low %v6285_v39, %v6289_v60  ;;  %v6273_v54 = vld [vmem:[%s11858_s9 + $0x230] sm:$0xff] }
0x126d   : > { %v6126_v1 = vpop.xlane.xlu1 %6125 }
0x126e   : > { %10968 = vrsqrt.f32 %v6137_v46  ;;  %v6132_v13 = vmul.f32 0.00390625, %v6126_v1  ;;  %7164 = vmatpush2.bf16.msra.mxu0 %v9384_v50  ;;  %7227 = vmatpush2.bf16.msra.mxu1 %v9386_v40  ;;  %v6278_v46 = vld [vmem:[%s11858_s9 + $0x258] sm:$0xff] }
0x126f   : > { %7165 = vmatprep.subr.bf16.mxu0 %v9377_v16  ;;  %7228 = vmatprep.subr.bf16.mxu1 %v9379_v17  ;;  %v6277_v16 = vld [vmem:[%s11858_s9 + $0x250] sm:$0xff] }
0x1270   : > { %v6138_v47 = vadd.f32 1e-05, %v6132_v13  ;;  %v6281_v17 = vld [vmem:[%s11858_s9 + $0x270] sm:$0xff] }
0x1272   : > { %10970 = vrsqrt.f32 %v6138_v47  ;;  %7166 = vmatpush2.bf16.msra.mxu0 %v9376_v37  ;;  %7229 = vmatpush2.bf16.msra.mxu1 %v9378_v27  ;;  %v9345_v37 = vcombine.high %v6277_v16, %v6281_v17 }
0x1273   : > { %v10965_v7 = vpop.eup %10964  ;;  %7167 = vmatprep.subr.bf16.mxu0 %v9369_v36  ;;  %7230 = vmatprep.subr.bf16.mxu1 %v9371_v63  ;;  %v9347_v36 = vcombine.high %v6278_v46, %v6282_v4  ;;  %v6269_v63 = vld [vmem:[%s11858_s9 + $0x210] sm:$0xff] }
0x1274   : > { %v6150_v11 = vmul.f32 %v10965_v7, %v13693_v44  ;;  %v6149_v14 = vmul.f32 %v10965_v7, %v13690_v55  ;;  %v9355_v44 = vcombine.high %v6286_v23, %v6290_v59  ;;  %v9344_v7 = vcombine.low %v6277_v16, %v6281_v17 }
0x1276   : > { %7168 = vmatpush2.bf16.msra.mxu0 %v9368_v15  ;;  %7231 = vmatpush2.bf16.msra.mxu1 %v9370_v10  ;;  %v6173_v50 = vmul.f32 %v13737_v33, %v6150_v11  ;;  %v6172_v40 = vmul.f32 %v13734_v30, %v6149_v14  ;;  %v6270_v15 = vld [vmem:[%s11858_s9 + $0x218] sm:$0xff] }
0x1277   : > { %v10967_v25 = vpop.eup %10966  ;;  %7169 = vmatprep.subr.bf16.mxu0 %v9361_v53  ;;  %7232 = vmatprep.subr.bf16.mxu1 %v9363_v2  ;;  %v6274_v10 = vld [vmem:[%s11858_s9 + $0x238] sm:$0xff]  ;;  %v9346_v53 = vcombine.low %v6278_v46, %v6282_v4  ;;  %v10561_v46 = vld [vmem:[%s11864_s26 + $0x160] ss:$8 sps:$4 sm:$0xff]  }
0x1278   : > { %v6152_v55 = vmul.f32 %v10967_v25, %v13703_v38  ;;  %v6151_v61 = vmul.f32 %v10967_v25, %v13700_v22  ;;  %v6196_v38 = vadd.f32 %v13743_v49, %v6173_v50  ;;  %v6195_v22 = vadd.f32 %v13740_v57, %v6172_v40  ;;  %v10569_v4 = vld [vmem:[%s11864_s26 + $0x154] ss:$8 sps:$4 sm:$0xff]  }
0x1279   : > { %v9339_v23 = vcombine.high %v6270_v15, %v6274_v10  ;;  %v9338_v40 = vcombine.low %v6270_v15, %v6274_v10  ;;  %v10588_v15 = vld [vmem:[%s11864_s26 + $0x10] ss:$8 sps:$4 sm:$0xff]  }
0x127a   : > { %v6175_v1 = vmul.f32 %v13737_v33, %v6152_v55  ;;  %v6174_v13 = vmul.f32 %v13734_v30, %v6151_v61  ;;  %7170 = vmatpush2.bf16.msra.mxu0 %v9360_v52  ;;  %7233 = vmatpush2.bf16.msra.mxu1 %v9362_v56  ;;  %v10558_v61 = vld [vmem:[%s11864_s26 + $0x60] ss:$8 sps:$4 sm:$0xff]   ;;  %v10591_v10 = vld [vmem:[%s11864_s26 + $0x110] ss:$8 sps:$4 sm:$0xff]  }
0x127b   : > { %v10969_v27 = vpop.eup %10968  ;;  %7171 = vmatprep.subr.bf16.mxu0 %v9353_v8  ;;  %7234 = vmatprep.subr.bf16.mxu1 %v9355_v44  ;;  %v9336_v8 = vcombine.low %v6269_v63, %v6273_v54  ;;  %v10557_v44 = vld [vmem:[%s11864_s26 + $0x174] ss:$8 sps:$4 sm:$0xff]  }
0x127c   : > { %v6198_v41 = vadd.f32 %v13743_v49, %v6175_v1  ;;  %v6197_v47 = vadd.f32 %v13740_v57, %v6174_v13  ;;  %v6154_v42 = vmul.f32 %v10969_v27, %v13713_v26  ;;  %v6153_v9 = vmul.f32 %v10969_v27, %v13710_v18  ;;  %v10575_v1 = vld [vmem:[%s11864_s26 + $0x144] ss:$8 sps:$4 sm:$0xff]   ;;  %v10570_v13 = vld [vmem:[%s11864_s26 + $0x40] ss:$8 sps:$4 sm:$0xff]   ;;  %v10578_v27 = vld [vmem:[%s11864_s26 + $0x34] ss:$8 sps:$4 sm:$0xff]  }
0x127d   : > { %v9337_v26 = vcombine.high %v6269_v63, %v6273_v54  ;;  %v10584_v63 = vld [vmem:[%s11864_s26 + $0x24] ss:$8 sps:$4 sm:$0xff]   ;;  %v10593_v54 = vld [vmem:[%s11864_s26 + $0x114] ss:$8 sps:$4 sm:$0xff]  }
0x127e   : > { %v6334_v2 = vpack.c.bf16 %v6198_v41, %v6196_v38  ;;  %v13843_v39 = vpack.c.bf16 %v6197_v47, %v6195_v22  ;;  %7172 = vmatpush2.bf16.msra.mxu0 %v9352_v24  ;;  %7235 = vmatpush2.bf16.msra.mxu1 %v9354_v51  ;;  %v6177_v60 = vmul.f32 %v13737_v33, %v6154_v42  ;;  %v10564_v24 = vld [vmem:[%s11864_s26 + $0x50] ss:$8 sps:$4 sm:$0xff]   ;;  %v10581_v38 = vld [vmem:[%s11864_s26 + $0x134] ss:$8 sps:$4 sm:$0xff]   ;;  %v10587_v41 = vld [vmem:[%s11864_s26 + $0x124] ss:$8 sps:$4 sm:$0xff]  }
0x127f   : > { %v10971_v11 = vpop.eup %10970  ;;  %v6176_v14 = vmul.f32 %v13734_v30, %v6153_v9  ;;  %7173 = vmatprep.subr.bf16.mxu0 %v9345_v37  ;;  %7236 = vmatprep.subr.bf16.mxu1 %v9347_v36  ;;  %v10567_v51 = vld [vmem:[%s11864_s26 + $0x150] ss:$8 sps:$4 sm:$0xff]   ;;  %v10573_v37 = vld [vmem:[%s11864_s26 + $0x140] ss:$8 sps:$4 sm:$0xff]   ;;  %v10590_v9 = vld [vmem:[%s11864_s26 + $0x14] ss:$8 sps:$4 sm:$0xff]  }
0x1280   : > { %7061 = vmatprep.mubr.bf16.mxu0 %v6334_v2  ;;  %7124 = vmatprep.mubr.bf16.mxu1 %v6334_v2  ;;  %v6156_v18 = vmul.f32 %v10971_v11, %v13723_v5  ;;  %v6200_v59 = vadd.f32 %v13743_v49, %v6177_v60  ;;  %v6155_v52 = vmul.f32 %v10971_v11, %v13720_v0  ;;  %v10554_v5 = vld [vmem:[%s11864_s26 + $0x74] ss:$8 sps:$4 sm:$0xff]   ;;  %v10576_v22 = vld [vmem:[%s11864_s26 + $0x30] ss:$8 sps:$4 sm:$0xff]   ;;  %v10582_v47 = vld [vmem:[%s11864_s26 + $0x20] ss:$8 sps:$4 sm:$0xff]  }
0x1281   : > { %7062 = vmatmul.mubr.bf16.gmra.mxu0 %v13843_v39  ;;  %7125 = vmatmul.mubr.bf16.gmra.mxu1 %v13843_v39  ;;  %v6199_v56 = vadd.f32 %v13740_v57, %v6176_v14  ;;  %v10579_v36 = vld [vmem:[%s11864_s26 + $0x130] ss:$8 sps:$4 sm:$0xff]   ;;  %v10585_v42 = vld [vmem:[%s11864_s26 + $0x120] ss:$8 sps:$4 sm:$0xff]   ;;  %v10602_v60 = vld [vmem:[%s11864_s26 + $0xf4] ss:$8 sps:$4 sm:$0xff]  }
0x1282   : > { %v6179_v25 = vmul.f32 %v13737_v33, %v6156_v18  ;;  %v6178_v50 = vmul.f32 %v13734_v30, %v6155_v52  ;;  %7174 = vmatpush2.bf16.msra.mxu0 %v9344_v7  ;;  %7237 = vmatpush2.bf16.msra.mxu1 %v9346_v53  ;;  %v10552_v30 = vld [vmem:[%s11864_s26 + $0x70] ss:$8 sps:$4 sm:$0xff]   ;;  %v10596_v7 = vld [vmem:[%s11864_s26 + $0x4] ss:$8 sps:$4 sm:$0xff]   ;;  %v10605_v11 = vld [vmem:[%s11864_s26 + $0x1f4] ss:$8 sps:$4 sm:$0xff]  }
0x1283   : > { %7175 = vmatprep.subr.bf16.mxu0 %v9337_v26  ;;  %7238 = vmatprep.subr.bf16.mxu1 %v9339_v23  ;;  %v10555_v33 = vld [vmem:[%s11864_s26 + $0x170] ss:$8 sps:$4 sm:$0xff]   ;;  %v10599_v53 = vld [vmem:[%s11864_s26 + $0x104] ss:$8 sps:$4 sm:$0xff]   ;;  %v10609_v52 = vld [vmem:[%s11864_s26 + $0x1e0] ss:$8 sps:$4 sm:$0xff]  }
0x1284   : > { %v6202_v0 = vadd.f32 %v13743_v49, %v6179_v25  ;;  %v6201_v16 = vadd.f32 %v13740_v57, %v6178_v50  ;;  %v10560_v57 = vld [vmem:[%s11864_s26 + $0x64] ss:$8 sps:$4 sm:$0xff]   ;;  %v10600_v14 = vld [vmem:[%s11864_s26 + $0xf0] ss:$8 sps:$4 sm:$0xff]  }
0x1285   : > { %v10563_v49 = vld [vmem:[%s11864_s26 + $0x164] ss:$8 sps:$4 sm:$0xff]   ;;  %v10603_v26 = vld [vmem:[%s11864_s26 + $0x1f0] ss:$8 sps:$4 sm:$0xff]  }
0x1286   : > { %v6336_v17 = vpack.c.bf16 %v6202_v0, %v6200_v59  ;;  %v6335_v55 = vpack.c.bf16 %v6201_v16, %v6199_v56  ;;  %7176 = vmatpush2.bf16.msra.mxu0 %v9336_v8  ;;  %7239 = vmatpush2.bf16.msra.mxu1 %v9338_v40  ;;  %v10608_v23 = vld [vmem:[%s11864_s26 + $0xe4] ss:$8 sps:$4 sm:$0xff]   ;;  %v10606_v59 = vld [vmem:[%s11864_s26 + $0xe0] ss:$8 sps:$4 sm:$0xff]   ;;  %v10614_v56 = vld [vmem:[%s11864_s26 + $0xd4] ss:$8 sps:$4 sm:$0xff]  }
0x1287   : > { %8303 = vmatprep.subr.bf16.mxu0 %v10554_v5  ;;  %8366 = vmatprep.subr.bf16.mxu1 %v10557_v44  ;;  %v10611_v18 = vld [vmem:[%s11864_s26 + $0x1e4] ss:$8 sps:$4 sm:$0xff]   ;;  %v10617_v8 = vld [vmem:[%s11864_s26 + $0x1d4] ss:$8 sps:$4 sm:$0xff]   ;;  %v10612_v25 = vld [vmem:[%s11864_s26 + $0xd0] ss:$8 sps:$4 sm:$0xff]  }
0x1288   : > { %7071 = vmatprep.mubr.bf16.mxu0 %v6336_v17  ;;  %7134 = vmatprep.mubr.bf16.mxu1 %v6336_v17  ;;  %v10615_v50 = vld [vmem:[%s11864_s26 + $0x1d0] ss:$8 sps:$4 sm:$0xff]   ;;  %v10620_v40 = vld [vmem:[%s11864_s26 + $0xc4] ss:$8 sps:$4 sm:$0xff]   ;;  %v10618_v44 = vld [vmem:[%s11864_s26 + $0xc0] ss:$8 sps:$4 sm:$0xff]  }
0x1289   : > { %7072 = vmatmul.mubr.bf16.gmra.mxu0 %v6335_v55  ;;  %7135 = vmatmul.mubr.bf16.gmra.mxu1 %v6335_v55  ;;  %v10623_v5 = vld [vmem:[%s11864_s26 + $0x1c4] ss:$8 sps:$4 sm:$0xff]   ;;  %v10621_v0 = vld [vmem:[%s11864_s26 + $0x1c0] ss:$8 sps:$4 sm:$0xff]   ;;  %v10626_v16 = vld [vmem:[%s11864_s26 + $0xb4] ss:$8 sps:$4 sm:$0xff]  }
0x128a   : > { %7177 = vmatprep.mubr.bf16.mxu0 %v13759_v29  ;;  %7240 = vmatprep.mubr.bf16.mxu1 %v13759_v29  ;;  %v10566_v29 = vld [vmem:[%s11864_s26 + $0x54] ss:$8 sps:$4 sm:$0xff]  }
0x1291   : > { %7178 = vmatmul.mubr.bf16.vlgmr.msra.gmra.mxu0 %v13761_v34  ;;  %7241 = vmatmul.mubr.bf16.vlgmr.msra.gmra.mxu1 %v13761_v34  ;;  %v10572_v34 = vld [vmem:[%s11864_s26 + $0x44] ss:$8 sps:$4 sm:$0xff]  }
0x1292   : > { %7187 = vmatprep.mubr.bf16.mxu0 %v6334_v2  ;;  %7250 = vmatprep.mubr.bf16.mxu1 %v6334_v2  ;;  %v10594_v2 = vld [vmem:[%s11864_s26] ss:$8 sps:$4 sm:$0xff]  }
0x1293   : > { %8304 = vmatpush1.bf16.msra.mxu0 %v10552_v30  ;;  %8367 = vmatpush1.bf16.msra.mxu1 %v10555_v33  ;;  %v10627_v30 = vld [vmem:[%s11864_s26 + $0x1b0] ss:$8 sps:$4 sm:$0xff]   ;;  %v10632_v33 = vld [vmem:[%s11864_s26 + $0xa4] ss:$8 sps:$4 sm:$0xff]  }
0x1294   : > { %8305 = vmatprep.subr.bf16.mxu0 %v10560_v57  ;;  %8368 = vmatprep.subr.bf16.mxu1 %v10563_v49  ;;  %v10635_v57 = vld [vmem:[%s11864_s26 + $0x1a4] ss:$8 sps:$4 sm:$0xff]   ;;  %v10630_v49 = vld [vmem:[%s11864_s26 + $0xa0] ss:$8 sps:$4 sm:$0xff]  }
0x1297   : > { %8306 = vmatpush1.bf16.msra.mxu0 %v10558_v61  ;;  %8369 = vmatpush1.bf16.msra.mxu1 %v10561_v46  ;;  %v10633_v61 = vld [vmem:[%s11864_s26 + $0x1a0] ss:$8 sps:$4 sm:$0xff]   ;;  %v10638_v46 = vld [vmem:[%s11864_s26 + $0x94] ss:$8 sps:$4 sm:$0xff]  }
0x1298   : > { %8307 = vmatprep.subr.bf16.mxu0 %v10566_v29  ;;  %8370 = vmatprep.subr.bf16.mxu1 %v10569_v4  ;;  %v10641_v29 = vld [vmem:[%s11864_s26 + $0x194] ss:$8 sps:$4 sm:$0xff]   ;;  %v10636_v4 = vld [vmem:[%s11864_s26 + $0x90] ss:$8 sps:$4 sm:$0xff]  }
0x1299   : > { %7188 = vmatmul.mubr.bf16.gmra.mxu0 %v13843_v39  ;;  %7251 = vmatmul.mubr.bf16.gmra.mxu1 %v13843_v39  ;;  %v10597_v39 = vld [vmem:[%s11864_s26 + $0x100] ss:$8 sps:$4 sm:$0xff]  }
0x129a   : > { %7197 = vmatprep.mubr.bf16.mxu0 %v6336_v17  ;;  %7260 = vmatprep.mubr.bf16.mxu1 %v6336_v17  ;;  %v10629_v17 = vld [vmem:[%s11864_s26 + $0x1b4] ss:$8 sps:$4 sm:$0xff]  }
0x129b   : > { %8308 = vmatpush1.bf16.msra.mxu0 %v10564_v24  ;;  %8371 = vmatpush1.bf16.msra.mxu1 %v10567_v51  ;;  %v10639_v24 = vld [vmem:[%s11864_s26 + $0x190] ss:$8 sps:$4 sm:$0xff]   ;;  %v10644_v51 = vld [vmem:[%s11864_s26 + $0x84] ss:$8 sps:$4 sm:$0xff]  }
0x129c   : > { %8309 = vmatprep.subr.bf16.mxu0 %v10572_v34  ;;  %8372 = vmatprep.subr.bf16.mxu1 %v10575_v1  ;;  %v10647_v34 = vld [vmem:[%s11864_s26 + $0x184] ss:$8 sps:$4 sm:$0xff]   ;;  %v10642_v1 = vld [vmem:[%s11864_s26 + $0x80] ss:$8 sps:$4 sm:$0xff]  }
0x129f   : > { %8310 = vmatpush1.bf16.msra.mxu0 %v10570_v13  ;;  %8373 = vmatpush1.bf16.msra.mxu1 %v10573_v37  ;;  %v10645_v13 = vld [vmem:[%s11864_s26 + $0x180] ss:$8 sps:$4 sm:$0xff]   ;;  %v10650_v37 = vld [vmem:[%s11864_s26 + $0x274] ss:$8 sps:$4 sm:$0xff]  }
0x12a0   : > { %8311 = vmatprep.subr.bf16.mxu0 %v10578_v27  ;;  %8374 = vmatprep.subr.bf16.mxu1 %v10581_v38  ;;  %v10653_v27 = vld [vmem:[%s11864_s26 + $0x374] ss:$8 sps:$4 sm:$0xff]   ;;  %v6349_v38 = vsub.s32 2, %v12047_v31 }
0x12a1   : > { %7198 = vmatmul.mubr.bf16.gmra.mxu0 %v6335_v55  ;;  %7261 = vmatmul.mubr.bf16.gmra.mxu1 %v6335_v55  ;;  %v10624_v55 = vld [vmem:[%s11864_s26 + $0xb0] ss:$8 sps:$4 sm:$0xff]  }
0x12a3   : > { %8312 = vmatpush1.bf16.msra.mxu0 %v10576_v22  ;;  %8375 = vmatpush1.bf16.msra.mxu1 %v10579_v36  ;;  %v13931_v22 = vld [vmem:[%s11830_s5] sm:$0xff]  ;;  %v6353_v36 = vsub.s32 3, %v12047_v31 }
0x12a4   : > { %8313 = vmatprep.subr.bf16.mxu0 %v10584_v63  ;;  %8376 = vmatprep.subr.bf16.mxu1 %v10587_v41  ;;  %v13936_v63 = vrot.slane %v13931_v22, %v12053_v20  ;;  %v13939_v41 = vrot.slane %v13931_v22, %v6349_v38 }
0x12a7   : > { %8314 = vmatpush1.bf16.msra.mxu0 %v10582_v47  ;;  %8377 = vmatpush1.bf16.msra.mxu1 %v10585_v42 }
0x12a8   : > { %8315 = vmatprep.subr.bf16.mxu0 %v10590_v9  ;;  %8378 = vmatprep.subr.bf16.mxu1 %v10593_v54  ;;  %v13943_v9 = vrot.slane %v13931_v22, %v12050_v19  ;;  %v13946_v54 = vrot.slane %v13931_v22, %v6353_v36 }
0x12ab   : > { %8316 = vmatpush1.bf16.msra.mxu0 %v10588_v15  ;;  %8379 = vmatpush1.bf16.msra.mxu1 %v10591_v10 }
0x12ac   : > { %8317 = vmatprep.subr.bf16.mxu0 %v10596_v7  ;;  %8380 = vmatprep.subr.bf16.mxu1 %v10599_v53 }
0x12af   : > { %8318 = vmatpush1.bf16.msra.mxu0 %v10594_v2  ;;  %8381 = vmatpush1.bf16.msra.mxu1 %v10597_v39 }
0x12b0   : > { %8319 = vmatprep.subr.bf16.mxu0 %v10602_v60  ;;  %8382 = vmatprep.subr.bf16.mxu1 %v10605_v11 }
0x12b3   : > { %8320 = vmatpush2.bf16.msra.mxu0 %v10600_v14  ;;  %8383 = vmatpush2.bf16.msra.mxu1 %v10603_v26 }
0x12b4   : > { %8321 = vmatprep.subr.bf16.mxu0 %v10608_v23  ;;  %8384 = vmatprep.subr.bf16.mxu1 %v10611_v18 }
0x12b7   : > { %8322 = vmatpush2.bf16.msra.mxu0 %v10606_v59  ;;  %8385 = vmatpush2.bf16.msra.mxu1 %v10609_v52 }
0x12b8   : > { %8323 = vmatprep.subr.bf16.mxu0 %v10614_v56  ;;  %8386 = vmatprep.subr.bf16.mxu1 %v10617_v8 }
0x12bb   : > { %8324 = vmatpush2.bf16.msra.mxu0 %v10612_v25  ;;  %8387 = vmatpush2.bf16.msra.mxu1 %v10615_v50 }
0x12bc   : > { %8325 = vmatprep.subr.bf16.mxu0 %v10620_v40  ;;  %8388 = vmatprep.subr.bf16.mxu1 %v10623_v5 }
0x12bf   : > { %8326 = vmatpush2.bf16.msra.mxu0 %v10618_v44  ;;  %8389 = vmatpush2.bf16.msra.mxu1 %v10621_v0 }
0x12c0   : > { %8327 = vmatprep.subr.bf16.mxu0 %v10626_v16  ;;  %8390 = vmatprep.subr.bf16.mxu1 %v10629_v17 }
0x12c3   : > { %8328 = vmatpush2.bf16.msra.mxu0 %v10624_v55  ;;  %8391 = vmatpush2.bf16.msra.mxu1 %v10627_v30 }
0x12c4   : > { %8329 = vmatprep.subr.bf16.mxu0 %v10632_v33  ;;  %8392 = vmatprep.subr.bf16.mxu1 %v10635_v57 }
0x12c7   : > { %8330 = vmatpush2.bf16.msra.mxu0 %v10630_v49  ;;  %8393 = vmatpush2.bf16.msra.mxu1 %v10633_v61 }
0x12c8   : > { %8331 = vmatprep.subr.bf16.mxu0 %v10638_v46  ;;  %8394 = vmatprep.subr.bf16.mxu1 %v10641_v29 }
0x12cb   : > { %8332 = vmatpush2.bf16.msra.mxu0 %v10636_v4  ;;  %8395 = vmatpush2.bf16.msra.mxu1 %v10639_v24 }
0x12cc   : > { %8333 = vmatprep.subr.bf16.mxu0 %v10644_v51  ;;  %8396 = vmatprep.subr.bf16.mxu1 %v10647_v34 }
0x12cf   : > { %8334 = vmatpush2.bf16.msra.mxu0 %v10642_v1  ;;  %8397 = vmatpush2.bf16.msra.mxu1 %v10645_v13 }
0x12d0   : > { %8429 = vmatprep.subr.bf16.mxu0 %v10650_v37  ;;  %8492 = vmatprep.subr.bf16.mxu1 %v10653_v27 }
0x1309   : > { %v7053_v47 = vpop.f32.mrf.mxu0  ;;  %v7116_v42 = vpop.f32.mrf.mxu1 }
0x130a   : > { %v7054_v15 = vadd.f32 %v7053_v47, %v13936_v63  ;;  %v7117_v10 = vadd.f32 %v7116_v42, %v13939_v41 }
0x130b   : > { %v7055_v7 = vpop.f32.mrf.mxu0  ;;  %v7118_v53 = vpop.f32.mrf.mxu1 }
0x130c   : > { %v7319_v2 = vmul.f32 0.70710677, %v7054_v15  ;;  %v7321_v39 = vmul.f32 0.70710677, %v7117_v10  ;;  %v7056_v60 = vadd.f32 %v7055_v7, %v13943_v9  ;;  %v7119_v11 = vadd.f32 %v7118_v53, %v13946_v54 }
0x130d   : > { %v7057_v14 = vpop.f32.mrf.mxu0  ;;  %v7120_v26 = vpop.f32.mrf.mxu1  ;;  %v7271_v49 = vmul.f32 0.5, %v7054_v15  ;;  %v7273_v53 = vmul.f32 0.5, %v7117_v10 }
0x130e   : > { %v7058_v23 = vadd.f32 %v7057_v14, %v13936_v63  ;;  %v7121_v18 = vadd.f32 %v7120_v26, %v13939_v41  ;;  %10972 = verf.f32 %v7319_v2  ;;  %v7320_v59 = vmul.f32 0.70710677, %v7056_v60 }
0x130f   : > { %v7059_v52 = vpop.f32.mrf.mxu0  ;;  %v7122_v56 = vpop.f32.mrf.mxu1  ;;  %10974 = verf.f32 %v7321_v39  ;;  %v7322_v8 = vmul.f32 0.70710677, %v7119_v11  ;;  %v7272_v61 = vmul.f32 0.5, %v7056_v60  ;;  %v7274_v47 = vmul.f32 0.5, %v7119_v11 }
0x1310   : > { %v7327_v25 = vmul.f32 0.70710677, %v7058_v23  ;;  %10976 = verf.f32 %v7320_v59  ;;  %v7329_v50 = vmul.f32 0.70710677, %v7121_v18  ;;  %v7060_v40 = vadd.f32 %v7059_v52, %v13943_v9  ;;  %v10648_v52 = vld [vmem:[%s11864_s26 + $0x270] ss:$8 sps:$4 sm:$0xff]  }
0x1311   : > { %v7123_v5 = vadd.f32 %v7122_v56, %v13946_v54  ;;  %10978 = verf.f32 %v7322_v8  ;;  %v7279_v34 = vmul.f32 0.5, %v7058_v23  ;;  %v7281_v27 = vmul.f32 0.5, %v7121_v18  ;;  %v10651_v8 = vld [vmem:[%s11864_s26 + $0x370] ss:$8 sps:$4 sm:$0xff]  }
0x1312   : > { %10980 = verf.f32 %v7327_v25  ;;  %v7328_v44 = vmul.f32 0.70710677, %v7060_v40  ;;  %v7280_v38 = vmul.f32 0.5, %v7060_v40  ;;  %v10656_v25 = vld [vmem:[%s11864_s26 + $0x264] ss:$8 sps:$4 sm:$0xff]  }
0x1313   : > { %10982 = verf.f32 %v7329_v50  ;;  %v7330_v0 = vmul.f32 0.70710677, %v7123_v5  ;;  %v7282_v7 = vmul.f32 0.5, %v7123_v5  ;;  %v10659_v50 = vld [vmem:[%s11864_s26 + $0x364] ss:$8 sps:$4 sm:$0xff]  }
0x1314   : > { %10984 = verf.f32 %v7328_v44  ;;  %v10654_v40 = vld [vmem:[%s11864_s26 + $0x260] ss:$8 sps:$4 sm:$0xff]   ;;  %v10662_v44 = vld [vmem:[%s11864_s26 + $0x254] ss:$8 sps:$4 sm:$0xff]  }
0x1315   : > { %10986 = verf.f32 %v7330_v0  ;;  %v10657_v5 = vld [vmem:[%s11864_s26 + $0x360] ss:$8 sps:$4 sm:$0xff]   ;;  %v10665_v0 = vld [vmem:[%s11864_s26 + $0x354] ss:$8 sps:$4 sm:$0xff]  }
0x131b   : > { %v10973_v16 = vpop.eup %10972 }
0x131c   : > { %v10975_v17 = vpop.eup %10974  ;;  %v7415_v24 = vadd.f32 1.0, %v10973_v16  ;;  %v10660_v16 = vld [vmem:[%s11864_s26 + $0x250] ss:$8 sps:$4 sm:$0xff]  }
0x131d   : > { %v10977_v55 = vpop.eup %10976  ;;  %v7417_v37 = vadd.f32 1.0, %v10975_v17  ;;  %v10663_v17 = vld [vmem:[%s11864_s26 + $0x350] ss:$8 sps:$4 sm:$0xff]  }
0x131e   : > { %v10979_v30 = vpop.eup %10978  ;;  %v7416_v46 = vadd.f32 1.0, %v10977_v55  ;;  %v7463_v14 = vmul.f32 %v7415_v24, %v7271_v49  ;;  %v10668_v55 = vld [vmem:[%s11864_s26 + $0x244] ss:$8 sps:$4 sm:$0xff]   ;;  %v10674_v49 = vld [vmem:[%s11864_s26 + $0x234] ss:$8 sps:$4 sm:$0xff]  }
0x131f   : > { %v10981_v33 = vpop.eup %10980  ;;  %v7418_v51 = vadd.f32 1.0, %v10979_v30  ;;  %v7465_v59 = vmul.f32 %v7417_v37, %v7273_v53  ;;  %v10671_v30 = vld [vmem:[%s11864_s26 + $0x344] ss:$8 sps:$4 sm:$0xff]   ;;  %v10684_v37 = vld [vmem:[%s11864_s26 + $0x210] ss:$8 sps:$4 sm:$0xff]  }
0x1320   : > { %v10983_v57 = vpop.eup %10982  ;;  %v7423_v29 = vadd.f32 1.0, %v10981_v33  ;;  %v7464_v2 = vmul.f32 %v7416_v46, %v7272_v61  ;;  %v10666_v33 = vld [vmem:[%s11864_s26 + $0x240] ss:$8 sps:$4 sm:$0xff]   ;;  %v10677_v61 = vld [vmem:[%s11864_s26 + $0x334] ss:$8 sps:$4 sm:$0xff]  }
0x1321   : > { %v10985_v4 = vpop.eup %10984  ;;  %v7425_v1 = vadd.f32 1.0, %v10983_v57  ;;  %v7466_v26 = vmul.f32 %v7418_v51, %v7274_v47  ;;  %v10669_v57 = vld [vmem:[%s11864_s26 + $0x340] ss:$8 sps:$4 sm:$0xff]   ;;  %v10672_v46 = vld [vmem:[%s11864_s26 + $0x230] ss:$8 sps:$4 sm:$0xff]  }
0x1322   : > { %v10987_v13 = vpop.eup %10986  ;;  %v7424_v36 = vadd.f32 1.0, %v10985_v4  ;;  %v7471_v42 = vmul.f32 %v7423_v29, %v7279_v34  ;;  %v10675_v29 = vld [vmem:[%s11864_s26 + $0x330] ss:$8 sps:$4 sm:$0xff]   ;;  %v10680_v4 = vld [vmem:[%s11864_s26 + $0x224] ss:$8 sps:$4 sm:$0xff]  }
0x1323   : > { %v7426_v15 = vadd.f32 1.0, %v10987_v13  ;;  %v7473_v39 = vmul.f32 %v7425_v1, %v7281_v27  ;;  %v10683_v24 = vld [vmem:[%s11864_s26 + $0x324] ss:$8 sps:$4 sm:$0xff]   ;;  %v10678_v51 = vld [vmem:[%s11864_s26 + $0x220] ss:$8 sps:$4 sm:$0xff]  }
0x1324   : > { %v7472_v60 = vmul.f32 %v7424_v36, %v7280_v38  ;;  %v7639_v11 = vpack.c.bf16 %v7471_v42, %v7463_v14  ;;  %v10681_v34 = vld [vmem:[%s11864_s26 + $0x320] ss:$8 sps:$4 sm:$0xff]   ;;  %v10686_v1 = vld [vmem:[%s11864_s26 + $0x214] ss:$8 sps:$4 sm:$0xff]   ;;  %v10687_v27 = vld [vmem:[%s11864_s26 + $0x310] ss:$8 sps:$4 sm:$0xff]  }
0x1325   : > { %v7474_v23 = vmul.f32 %v7426_v15, %v7282_v7  ;;  %v7641_v10 = vpack.c.bf16 %v7473_v39, %v7465_v59  ;;  %v10689_v13 = vld [vmem:[%s11864_s26 + $0x314] ss:$8 sps:$4 sm:$0xff]   ;;  %v10692_v38 = vld [vmem:[%s11864_s26 + $0x204] ss:$8 sps:$4 sm:$0xff]   ;;  %v10690_v53 = vld [vmem:[%s11864_s26 + $0x200] ss:$8 sps:$4 sm:$0xff]  }
0x1326   : > { %v7640_v18 = vpack.c.bf16 %v7472_v60, %v7464_v2  ;;  %v10695_v42 = vld [vmem:[%s11864_s26 + $0x304] ss:$8 sps:$4 sm:$0xff]   ;;  %v10693_v39 = vld [vmem:[%s11864_s26 + $0x300] ss:$8 sps:$4 sm:$0xff]   ;;  %v10698_v60 = vld [vmem:[%s11864_s26 + $0x2f4] ss:$8 sps:$4 sm:$0xff]  }
0x1327   : > { %v7642_v56 = vpack.c.bf16 %v7474_v23, %v7466_v26  ;;  %v10701_v59 = vld [vmem:[%s11864_s26 + $0x3f4] ss:$8 sps:$4 sm:$0xff]  }
0x1328   : > { %8335 = vmatprep.mubr.bf16.mxu0 %v7640_v18 }
0x1329   : > { %8398 = vmatprep.mubr.bf16.mxu1 %v7642_v56  ;;  %8336 = vmatmul.mubr.bf16.vlgmr.msra.gmra.mxu0 %v7639_v11 }
0x132a   : > { %8399 = vmatmul.mubr.bf16.vlgmr.msra.gmra.mxu1 %v7641_v10  ;;  %8430 = vmatpush1.bf16.msra.mxu0 %v10648_v52 }
0x132b   : > { %8493 = vmatpush1.bf16.msra.mxu1 %v10651_v8  ;;  %8431 = vmatprep.subr.bf16.mxu0 %v10656_v25  ;;  %v10696_v8 = vld [vmem:[%s11864_s26 + $0x2f0] ss:$8 sps:$4 sm:$0xff]  }
0x132c   : > { %8494 = vmatprep.subr.bf16.mxu1 %v10659_v50  ;;  %v10699_v50 = vld [vmem:[%s11864_s26 + $0x3f0] ss:$8 sps:$4 sm:$0xff]  }
0x132e   : > { %8432 = vmatpush1.bf16.msra.mxu0 %v10654_v40  ;;  %v10704_v40 = vld [vmem:[%s11864_s26 + $0x2e4] ss:$8 sps:$4 sm:$0xff]  }
0x132f   : > { %8495 = vmatpush1.bf16.msra.mxu1 %v10657_v5  ;;  %8433 = vmatprep.subr.bf16.mxu0 %v10662_v44 }
0x1330   : > { %8496 = vmatprep.subr.bf16.mxu1 %v10665_v0 }
0x1332   : > { %8434 = vmatpush1.bf16.msra.mxu0 %v10660_v16 }
0x1333   : > { %8497 = vmatpush1.bf16.msra.mxu1 %v10663_v17  ;;  %8435 = vmatprep.subr.bf16.mxu0 %v10668_v55  ;;  %v10707_v17 = vld [vmem:[%s11864_s26 + $0x3e4] ss:$8 sps:$4 sm:$0xff]  }
0x1334   : > { %8498 = vmatprep.subr.bf16.mxu1 %v10671_v30 }
0x1336   : > { %8436 = vmatpush1.bf16.msra.mxu0 %v10666_v33 }
0x1337   : > { %8499 = vmatpush1.bf16.msra.mxu1 %v10669_v57  ;;  %8437 = vmatprep.subr.bf16.mxu0 %v10674_v49  ;;  %v10702_v49 = vld [vmem:[%s11864_s26 + $0x2e0] ss:$8 sps:$4 sm:$0xff]  }
0x1338   : > { %8500 = vmatprep.subr.bf16.mxu1 %v10677_v61 }
0x133a   : > { %8438 = vmatpush1.bf16.msra.mxu0 %v10672_v46 }
0x133b   : > { %8501 = vmatpush1.bf16.msra.mxu1 %v10675_v29  ;;  %8439 = vmatprep.subr.bf16.mxu0 %v10680_v4  ;;  %v10705_v29 = vld [vmem:[%s11864_s26 + $0x3e0] ss:$8 sps:$4 sm:$0xff]   ;;  %v10710_v4 = vld [vmem:[%s11864_s26 + $0x2d4] ss:$8 sps:$4 sm:$0xff]  }
0x133c   : > { %8502 = vmatprep.subr.bf16.mxu1 %v10683_v24 }
0x133e   : > { %8440 = vmatpush1.bf16.msra.mxu0 %v10678_v51 }
0x133f   : > { %8503 = vmatpush1.bf16.msra.mxu1 %v10681_v34  ;;  %8441 = vmatprep.subr.bf16.mxu0 %v10686_v1 }
0x1340   : > { %8504 = vmatprep.subr.bf16.mxu1 %v10689_v13  ;;  %v10713_v13 = vld [vmem:[%s11864_s26 + $0x3d4] ss:$8 sps:$4 sm:$0xff]  }
0x1341   : > { %v7063_v36 = vpop.f32.mrf.mxu0  ;;  %v7126_v47 = vpop.f32.mrf.mxu1 }
0x1342   : > { %8442 = vmatpush1.bf16.msra.mxu0 %v10684_v37  ;;  %v13986_v2 = vadd.f32 %v7063_v36, %v13936_v63  ;;  %v13991_v14 = vadd.f32 %v7126_v47, %v13939_v41 }
0x1343   : > { %v7065_v7 = vpop.f32.mrf.mxu0  ;;  %v7128_v15 = vpop.f32.mrf.mxu1  ;;  %8505 = vmatpush1.bf16.msra.mxu1 %v10687_v27  ;;  %8443 = vmatprep.subr.bf16.mxu0 %v10692_v38  ;;  %v6357_v27 = vsub.s32 4, %v12047_v31 }
0x1344   : > { %8506 = vmatprep.subr.bf16.mxu1 %v10695_v42  ;;  %v13995_v18 = vadd.f32 %v7065_v7, %v13943_v9  ;;  %v7335_v25 = vmul.f32 0.70710677, %v13986_v2  ;;  %v14003_v10 = vadd.f32 %v7128_v15, %v13946_v54  ;;  %v7337_v5 = vmul.f32 0.70710677, %v13991_v14  ;;  %v10708_v15 = vld [vmem:[%s11864_s26 + $0x2d0] ss:$8 sps:$4 sm:$0xff]  }
0x1345   : > { %v7067_v26 = vpop.f32.mrf.mxu0  ;;  %v7130_v23 = vpop.f32.mrf.mxu1  ;;  %v6365_v42 = vsub.s32 6, %v12047_v31  ;;  %v6361_v7 = vsub.s32 5, %v12047_v31 }
0x1346   : > { %v13998_v52 = vadd.f32 %v7067_v26, %v13936_v63  ;;  %8444 = vmatpush1.bf16.msra.mxu0 %v10690_v53  ;;  %v14009_v44 = vadd.f32 %v7130_v23, %v13939_v41  ;;  %v7336_v55 = vmul.f32 0.70710677, %v13995_v18  ;;  %10988 = verf.f32 %v7335_v25  ;;  %v10716_v26 = vld [vmem:[%s11864_s26 + $0x2c4] ss:$8 sps:$4 sm:$0xff]  }
0x1347   : > { %v7069_v11 = vpop.f32.mrf.mxu0  ;;  %v7132_v56 = vpop.f32.mrf.mxu1  ;;  %8507 = vmatpush1.bf16.msra.mxu1 %v10693_v39  ;;  %8445 = vmatprep.subr.bf16.mxu0 %v10698_v60  ;;  %v7338_v61 = vmul.f32 0.70710677, %v14003_v10  ;;  %10990 = verf.f32 %v7337_v5  ;;  %v10711_v60 = vld [vmem:[%s11864_s26 + $0x3d0] ss:$8 sps:$4 sm:$0xff]   ;;  %v10719_v25 = vld [vmem:[%s11864_s26 + $0x3c4] ss:$8 sps:$4 sm:$0xff]  }
0x1348   : > { %8508 = vmatprep.subr.bf16.mxu1 %v10701_v59  ;;  %v7343_v30 = vmul.f32 0.70710677, %v13998_v52  ;;  %v14017_v46 = vadd.f32 %v7069_v11, %v13943_v9  ;;  %v7345_v24 = vmul.f32 0.70710677, %v14009_v44  ;;  %v14023_v51 = vadd.f32 %v7132_v56, %v13946_v54 }
0x1349   : > { %v7073_v0 = vpop.f32.mrf.mxu0  ;;  %v7136_v16 = vpop.f32.mrf.mxu1  ;;  %10992 = verf.f32 %v7336_v55 }
0x134a   : > { %8446 = vmatpush2.bf16.msra.mxu0 %v10696_v8  ;;  %v14027_v37 = vadd.f32 %v7073_v0, %v13936_v63  ;;  %10994 = verf.f32 %v7343_v30  ;;  %v14031_v38 = vadd.f32 %v7136_v16, %v13939_v41  ;;  %v7344_v53 = vmul.f32 0.70710677, %v14017_v46  ;;  %v10717_v30 = vld [vmem:[%s11864_s26 + $0x3c0] ss:$8 sps:$4 sm:$0xff]  }
0x134b   : > { %v7075_v33 = vpop.f32.mrf.mxu0  ;;  %v7138_v57 = vpop.f32.mrf.mxu1  ;;  %8509 = vmatpush2.bf16.msra.mxu1 %v10699_v50  ;;  %8447 = vmatprep.subr.bf16.mxu0 %v10704_v40  ;;  %10996 = verf.f32 %v7338_v61  ;;  %v7346_v23 = vmul.f32 0.70710677, %v14023_v51  ;;  %v6369_v8 = vsub.s32 7, %v12047_v31  ;;  %v14058_v0 = vrot.slane %v13931_v22, %v6357_v27  ;;  %v10714_v31 = vld [vmem:[%s11864_s26 + $0x2c0] ss:$8 sps:$4 sm:$0xff]  }
0x134c   : > { %8510 = vmatprep.subr.bf16.mxu1 %v10707_v17  ;;  %v14040_v39 = vadd.f32 %v7075_v33, %v13943_v9  ;;  %10998 = verf.f32 %v7345_v24  ;;  %v7351_v50 = vmul.f32 0.70710677, %v14027_v37  ;;  %v7353_v5 = vmul.f32 0.70710677, %v14031_v38  ;;  %v10722_v33 = vld [vmem:[%s11864_s26 + $0x2b4] ss:$8 sps:$4 sm:$0xff]  }
0x134d   : > { %v7077_v34 = vpop.f32.mrf.mxu0  ;;  %v7140_v1 = vpop.f32.mrf.mxu1  ;;  %11000 = verf.f32 %v7344_v53  ;;  %v7139_v55 = vadd.f32 %v7138_v57, %v13946_v54  ;;  %v14074_v61 = vrot.slane %v13931_v22, %v6361_v7  ;;  %v10725_v24 = vld [vmem:[%s11864_s26 + $0x3b4] ss:$8 sps:$4 sm:$0xff]   ;;  %v10720_v27 = vld [vmem:[%s11864_s26 + $0x2b0] ss:$8 sps:$4 sm:$0xff]   ;;  %v14099_v7 = vmul.f32 0.5, %v13998_v52 }
0x134e   : > { %8448 = vmatpush2.bf16.msra.mxu0 %v10702_v49  ;;  %v14046_v59 = vadd.f32 %v7077_v34, %v13936_v63  ;;  %v14054_v40 = vadd.f32 %v7140_v1, %v13939_v41  ;;  %v7352_v17 = vmul.f32 0.70710677, %v14040_v39  ;;  %v14068_v41 = vrot.slane %v13931_v22, %v6365_v42  ;;  %v10728_v52 = vld [vmem:[%s11864_s26 + $0x2a4] ss:$8 sps:$4 sm:$0xff]  }
0x134f   : > { %v7079_v36 = vpop.f32.mrf.mxu0  ;;  %v14033_v47 = vpop.f32.mrf.mxu1  ;;  %8511 = vmatpush2.bf16.msra.mxu1 %v10705_v29  ;;  %8449 = vmatprep.subr.bf16.mxu0 %v10710_v4  ;;  %11002 = verf.f32 %v7346_v23  ;;  %v14077_v29 = vrot.slane %v13931_v22, %v6369_v8  ;;  %v14085_v34 = vmul.f32 0.5, %v13986_v2  ;;  %v14088_v1 = vmul.f32 0.5, %v13991_v14  ;;  %v10723_v14 = vld [vmem:[%s11864_s26 + $0x3b0] ss:$8 sps:$4 sm:$0xff]  }
0x1350   : > { %8512 = vmatprep.subr.bf16.mxu1 %v10713_v13  ;;  %v7359_v49 = vmul.f32 0.70710677, %v14046_v59  ;;  %11004 = verf.f32 %v7351_v50  ;;  %v7361_v13 = vmul.f32 0.70710677, %v14054_v40  ;;  %v14093_v22 = vmul.f32 0.5, %v13995_v18 }
0x1351   : > { %v7179_v11 = vpop.f32.mrf.mxu0  ;;  %v14048_v56 = vpop.f32.mrf.mxu1  ;;  %v14096_v42 = vmul.f32 0.5, %v14003_v10  ;;  %11006 = verf.f32 %v7353_v5  ;;  %v14105_v53 = vmul.f32 0.5, %v14009_v44  ;;  %v7080_v18 = vadd.f32 %v7079_v36, %v13943_v9  ;;  %v10731_v9 = vld [vmem:[%s11864_s26 + $0x3a4] ss:$8 sps:$4 sm:$0xff]   ;;  %v10729_v5 = vld [vmem:[%s11864_s26 + $0x3a0] ss:$8 sps:$4 sm:$0xff]  }
0x1352   : > { %8450 = vmatpush2.bf16.msra.mxu0 %v10708_v15  ;;  %11008 = verf.f32 %v7352_v17  ;;  %v14113_v23 = vmul.f32 0.5, %v14023_v51  ;;  %v7143_v44 = vadd.f32 %v14033_v47, %v13946_v54  ;;  %v14124_v50 = vmul.f32 0.5, %v14031_v38  ;;  %v10726_v51 = vld [vmem:[%s11864_s26 + $0x2a0] ss:$8 sps:$4 sm:$0xff]  }
0x1353   : > { %v14060_v63 = vpop.f32.mrf.mxu0  ;;  %v14062_v16 = vpop.f32.mrf.mxu1  ;;  %8513 = vmatpush2.bf16.msra.mxu1 %v10711_v60  ;;  %8451 = vmatprep.subr.bf16.mxu0 %v10716_v26  ;;  %v7354_v60 = vmul.f32 0.70710677, %v7139_v55  ;;  %v14110_v26 = vmul.f32 0.5, %v14017_v46  ;;  %11010 = verf.f32 %v7359_v49  ;;  %v7180_v46 = vadd.f32 %v7179_v11, %v14058_v0  ;;  %v10734_v11 = vld [vmem:[%s11864_s26 + $0x294] ss:$8 sps:$4 sm:$0xff]  }
0x1354   : > { %8514 = vmatprep.subr.bf16.mxu1 %v10719_v25  ;;  %v10989_v10 = vpop.eup %10988  ;;  %v14121_v25 = vmul.f32 0.5, %v14027_v37  ;;  %11012 = verf.f32 %v7361_v13  ;;  %v14130_v54 = vmul.f32 0.5, %v14040_v39  ;;  %v14132_v47 = vmul.f32 0.5, %v7139_v55 }
0x1355   : > { %v14079_v4 = vpop.f32.mrf.mxu0  ;;  %v14081_v57 = vpop.f32.mrf.mxu1  ;;  %v14135_v17 = vmul.f32 0.5, %v14046_v59  ;;  %v14139_v37 = vadd.f32 %v14048_v56, %v14068_v41  ;;  %11014 = verf.f32 %v7354_v60  ;;  %v14147_v39 = vmul.f32 0.5, %v14054_v40  ;;  %v10737_v56 = vld [vmem:[%s11864_s26 + $0x394] ss:$8 sps:$4 sm:$0xff]  }
0x1356   : > { %8452 = vmatpush2.bf16.msra.mxu0 %v10714_v31  ;;  %v10991_v36 = vpop.eup %10990  ;;  %v7360_v55 = vmul.f32 0.70710677, %v7080_v18  ;;  %v7182_v59 = vadd.f32 %v14060_v63, %v14074_v61  ;;  %v14152_v48 = vmul.f32 0.5, %v7080_v18  ;;  %v14155_v40 = vmul.f32 0.5, %v7143_v44 }
0x1357   : > { %v7185_v2 = vpop.f32.mrf.mxu0  ;;  %v14101_v15 = vpop.f32.mrf.mxu1  ;;  %8515 = vmatpush2.bf16.msra.mxu1 %v10717_v30  ;;  %8453 = vmatprep.subr.bf16.mxu0 %v10722_v33  ;;  %v7433_v13 = vadd.f32 1.0, %v10991_v36  ;;  %v14157_v45 = vmul.f32 0.5, %v7180_v46  ;;  %v7323_v63 = vmul.f32 0.70710677, %v7180_v46 }
0x1358   : > { %8516 = vmatprep.subr.bf16.mxu1 %v10725_v24  ;;  %v10993_v31 = vpop.eup %10992  ;;  %v7431_v24 = vadd.f32 1.0, %v10989_v10  ;;  %v7245_v10 = vadd.f32 %v14062_v16, %v14077_v29  ;;  %v14163_v18 = vadd.f32 %v7185_v2, %v14074_v61  ;;  %11016 = verf.f32 %v7360_v55 }
0x1359   : > { %v14117_v8 = vpop.f32.mrf.mxu0  ;;  %v14141_v38 = vpop.f32.mrf.mxu1  ;;  %v7432_v62 = vadd.f32 1.0, %v10993_v31  ;;  %v7324_v6 = vmul.f32 0.70710677, %v7182_v59  ;;  %v14170_v46 = vadd.f32 %v14101_v15, %v14077_v29  ;;  %v14177_v43 = vmul.f32 %v7433_v13, %v14088_v1 }
0x135a   : > { %8454 = vmatpush2.bf16.msra.mxu0 %v10720_v27  ;;  %v10995_v33 = vpop.eup %10994  ;;  %v7362_v27 = vmul.f32 0.70710677, %v7143_v44  ;;  %v10735_v44 = vld [vmem:[%s11864_s26 + $0x390] ss:$8 sps:$4 sm:$0xff]   ;;  %v14174_v2 = vmul.f32 %v7431_v24, %v14085_v34  ;;  %v7184_v15 = vadd.f32 %v14079_v4, %v14058_v0  ;;  %v14194_v4 = vmul.f32 0.5, %v7182_v59 }
0x135b   : > { %v14143_v30 = vpop.f32.mrf.mxu0  ;;  %8517 = vmatpush2.bf16.msra.mxu1 %v10723_v14  ;;  %8455 = vmatprep.subr.bf16.mxu0 %v10728_v52  ;;  %v10997_v49 = vpop.eup %10996  ;;  %v7439_v14 = vadd.f32 1.0, %v10995_v33  ;;  %v7325_v52 = vmul.f32 0.70710677, %v14139_v37  ;;  %v10740_v33 = vld [vmem:[%s11864_s26 + $0x284] ss:$8 sps:$4 sm:$0xff]  }
0x135c   : > { %8518 = vmatprep.subr.bf16.mxu1 %v10731_v9  ;;  %v10999_v60 = vpop.eup %10998  ;;  %v7254_v36 = vpop.f32.mrf.mxu1  ;;  %v7434_v31 = vadd.f32 1.0, %v10997_v49  ;;  %11018 = verf.f32 %v7362_v27  ;;  %v14181_v49 = vmul.f32 %v7432_v62, %v14093_v22  ;;  %v10738_v62 = vld [vmem:[%s11864_s26 + $0x280] ss:$8 sps:$4 sm:$0xff]   ;;  %v7331_v28 = vmul.f32 0.70710677, %v7184_v15 }
0x135d   : > { %v14165_v9 = vpop.f32.mrf.mxu0  ;;  %v11001_v16 = vpop.eup %11000  ;;  %v7441_v58 = vadd.f32 1.0, %v10999_v60  ;;  %11020 = verf.f32 %v7323_v63  ;;  %v14187_v1 = vmul.f32 %v7439_v14, %v14099_v7  ;;  %v14198_v60 = vadd.f32 %v14081_v57, %v14068_v41  ;;  %v10741_v7 = vld [vmem:[%s11864_s26 + $0x380] ss:$8 sps:$4 sm:$0xff]  }
0x135e   : > { %8456 = vmatpush2.bf16.msra.mxu0 %v10726_v51  ;;  %v10743_v51 = vld [vmem:[%s11864_s26 + $0x384] ss:$8 sps:$4 sm:$0xff]   ;;  %v11003_v55 = vpop.eup %11002  ;;  %11022 = verf.f32 %v7325_v52  ;;  %v7256_v24 = vpop.f32.mrf.mxu1  ;;  %v14192_v27 = vmul.f32 %v7434_v31, %v14096_v42  ;;  %v14204_v52 = vmul.f32 0.5, %v7245_v10 }
0x135f   : > { %8519 = vmatpush2.bf16.msra.mxu1 %v10729_v5  ;;  %8457 = vmatprep.subr.bf16.mxu0 %v10734_v11  ;;  %v7332_v5 = vmul.f32 0.70710677, %v14163_v18  ;;  %v11005_v34 = vpop.eup %11004  ;;  %v7326_v11 = vmul.f32 0.70710677, %v7245_v10  ;;  %v7195_v13 = vpop.f32.mrf.mxu0  ;;  %11024 = verf.f32 %v7324_v6  ;;  %v14202_v14 = vmul.f32 %v7441_v58, %v14105_v53 }
0x1360   : > { %8520 = vmatprep.subr.bf16.mxu1 %v10737_v56  ;;  %v7334_v56 = vmul.f32 0.70710677, %v14170_v46  ;;  %v11007_v22 = vpop.eup %11006  ;;  %v7442_v59 = vadd.f32 1.0, %v11003_v55  ;;  %v7447_v31 = vadd.f32 1.0, %v11005_v34  ;;  %v14206_v6 = vmul.f32 0.5, %v7184_v15  ;;  %v7258_v58 = vpop.f32.mrf.mxu1 }
0x1361   : > { %v11009_v63 = vpop.eup %11008  ;;  %11026 = verf.f32 %v7332_v5  ;;  %v7199_v53 = vpop.f32.mrf.mxu0  ;;  %v7333_v10 = vmul.f32 0.70710677, %v14198_v60  ;;  %v14220_v55 = vadd.f32 %v7254_v36, %v14077_v29  ;;  %v7649_v15 = vpack.c.bf16 %v14202_v14, %v14177_v43 }
0x1362   : > { %8458 = vmatpush2.bf16.msra.mxu0 %v10732_v32  ;;  %v7440_v32 = vadd.f32 1.0, %v11001_v16  ;;  %v11011_v42 = vpop.eup %11010  ;;  %11028 = verf.f32 %v7334_v56  ;;  %v14213_v16 = vadd.f32 %v14117_v8, %v14058_v0  ;;  %v7448_v34 = vadd.f32 1.0, %v11009_v63 }
0x1363   : > { %8521 = vmatpush2.bf16.msra.mxu1 %v10735_v44  ;;  %8459 = vmatprep.subr.bf16.mxu0 %v10740_v33  ;;  %v11013_v57 = vpop.eup %11012  ;;  %v7647_v44 = vpack.c.bf16 %v14187_v1, %v14174_v2  ;;  %v7449_v33 = vadd.f32 1.0, %v11007_v22  ;;  %11030 = verf.f32 %v7326_v11  ;;  %v7455_v1 = vadd.f32 1.0, %v11011_v42  ;;  %v7201_v22 = vpop.f32.mrf.mxu0 }
0x1364   : > { %8522 = vmatprep.subr.bf16.mxu1 %v10743_v51  ;;  %v14217_v51 = vadd.f32 %v14143_v30, %v14074_v61  ;;  %v11015_v2 = vpop.eup %11014  ;;  %v7488_v5 = vmul.f32 %v7440_v32, %v14110_v26  ;;  %v7490_v11 = vmul.f32 %v7442_v59, %v14113_v23  ;;  %v14227_v8 = vmul.f32 %v7447_v31, %v14121_v25  ;;  %v7262_v26 = vpop.f32.mrf.mxu1 }
0x1365   : > { %v7457_v56 = vadd.f32 1.0, %v11013_v57  ;;  %v14231_v36 = vmul.f32 %v7449_v33, %v14124_v50  ;;  %11032 = verf.f32 %v7331_v28  ;;  %v14236_v43 = vadd.f32 %v14165_v9, %v14058_v0  ;;  %v11017_v63 = vpop.eup %11016 }
0x1366   : > { %8460 = vmatpush2.bf16.msra.mxu0 %v10738_v62  ;;  %v7340_v30 = vmul.f32 0.70710677, %v14217_v51  ;;  %v7342_v62 = vmul.f32 0.70710677, %v14220_v55  ;;  %11034 = verf.f32 %v7333_v10  ;;  %v7339_v23 = vmul.f32 0.70710677, %v14213_v16  ;;  %v7264_v57 = vpop.f32.mrf.mxu1 }
0x1367   : > { %8523 = vmatpush2.bf16.msra.mxu1 %v10741_v7  ;;  %v7450_v7 = vadd.f32 1.0, %v11015_v2  ;;  %v14240_v25 = vadd.f32 %v7256_v24, %v14068_v41  ;;  %v14243_v50 = vmul.f32 %v7448_v34, %v14130_v54  ;;  %v14246_v28 = vmul.f32 %v7455_v1, %v14135_v17 }
0x1368   : > { %11036 = verf.f32 %v7340_v30  ;;  %v14249_v9 = vadd.f32 %v7195_v13, %v14074_v61  ;;  %v14252_v32 = vmul.f32 %v7457_v56, %v14147_v39  ;;  %v14255_v42 = vadd.f32 %v7258_v58, %v14077_v29  ;;  %v7203_v39 = vpop.f32.mrf.mxu0 }
0x1369   : > { %v11019_v14 = vpop.eup %11018  ;;  %11038 = verf.f32 %v7342_v62  ;;  %v7648_v24 = vpack.c.bf16 %v7488_v5, %v14181_v49  ;;  %v14260_v54 = vadd.f32 %v14141_v38, %v14068_v41  ;;  %v7347_v17 = vmul.f32 0.70710677, %v14236_v43  ;;  %v7266_v62 = vpop.f32.mrf.mxu1 }
0x136a   : > { %v11021_v59 = vpop.eup %11020  ;;  %v7348_v13 = vmul.f32 0.70710677, %v14249_v9  ;;  %v7650_v31 = vpack.c.bf16 %v7490_v11, %v14192_v27  ;;  %v7456_v10 = vadd.f32 1.0, %v11017_v63  ;;  %11040 = verf.f32 %v7339_v23 }
0x136b   : > { %v11023_v33 = vpop.eup %11022  ;;  %v7349_v58 = vmul.f32 0.70710677, %v14240_v25  ;;  %v7350_v49 = vmul.f32 0.70710677, %v14255_v42  ;;  %8345 = vmatprep.mubr.bf16.mxu0 %v7648_v24  ;;  %v14268_v38 = vmul.f32 0.5, %v14198_v60  ;;  %v14271_v5 = vadd.f32 %v7199_v53, %v14058_v0 }
0x136c   : > { %v11025_v2 = vpop.eup %11024  ;;  %11042 = verf.f32 %v7348_v13  ;;  %8408 = vmatprep.mubr.bf16.mxu1 %v7650_v31  ;;  %8346 = vmatmul.mubr.bf16.gmra.mxu0 %v7647_v44  ;;  %v14274_v27 = vadd.f32 %v7201_v22, %v14074_v61  ;;  %v14277_v1 = vmul.f32 %v7450_v7, %v14132_v47  ;;  %v7284_v11 = vmul.f32 0.5, %v14163_v18  ;;  %v7205_v22 = vpop.f32.mrf.mxu0 }
0x136d   : > { %v7286_v56 = vmul.f32 0.5, %v14170_v46  ;;  %11044 = verf.f32 %v7350_v49  ;;  %8409 = vmatmul.mubr.bf16.gmra.mxu1 %v7649_v15  ;;  %v7655_v30 = vpack.c.bf16 %v14246_v28, %v14227_v8  ;;  %v7458_v53 = vadd.f32 1.0, %v11019_v14 }
0x136e   : > { %v11027_v34 = vpop.eup %11026  ;;  %v7341_v44 = vmul.f32 0.70710677, %v14260_v54  ;;  %11046 = verf.f32 %v7347_v17  ;;  %v7657_v47 = vpack.c.bf16 %v14252_v32, %v14231_v36  ;;  %v7504_v18 = vmul.f32 %v7456_v10, %v14152_v48 }
0x136f   : > { %v11029_v60 = vpop.eup %11028  ;;  %11048 = verf.f32 %v7349_v58  ;;  %v7356_v46 = vmul.f32 0.70710677, %v14274_v27  ;;  %v7428_v15 = vadd.f32 1.0, %v11027_v34  ;;  %v7355_v7 = vmul.f32 0.70710677, %v14271_v5 }
0x1370   : > { %v11031_v23 = vpop.eup %11030  ;;  %v14290_v8 = vadd.f32 %v7262_v26, %v14068_v41  ;;  %v14293_v63 = vadd.f32 %v7264_v57, %v14077_v29  ;;  %v7430_v28 = vadd.f32 1.0, %v11029_v60  ;;  %v14296_v14 = vadd.f32 %v7203_v39, %v14058_v0  ;;  %v7268_v0 = vpop.f32.mrf.mxu1 }
0x1371   : > { %v14299_v36 = vadd.f32 %v7266_v62, %v14068_v41  ;;  %v14302_v48 = vadd.f32 %v7205_v22, %v14074_v61  ;;  %v7419_v32 = vadd.f32 1.0, %v11021_v59  ;;  %v7420_v24 = vadd.f32 1.0, %v11025_v2 }
0x1372   : > { %11050 = verf.f32 %v7341_v44  ;;  %v7358_v17 = vmul.f32 0.70710677, %v14293_v63  ;;  %v11033_v26 = vpop.eup %11032  ;;  %v7506_v13 = vmul.f32 %v7458_v53, %v14155_v40  ;;  %v7422_v31 = vadd.f32 1.0, %v11031_v23 }
0x1373   : > { %11052 = verf.f32 %v7356_v46  ;;  %v7363_v57 = vmul.f32 0.70710677, %v14296_v14  ;;  %v11035_v39 = vpop.eup %11034  ;;  %v7421_v10 = vadd.f32 1.0, %v11023_v33  ;;  %v7476_v41 = vmul.f32 %v7428_v15, %v7284_v11 }
0x1374   : > { %11054 = verf.f32 %v7355_v7  ;;  %v7365_v61 = vmul.f32 0.70710677, %v14299_v36  ;;  %v7478_v59 = vmul.f32 %v7430_v28, %v7286_v56  ;;  %v7357_v49 = vmul.f32 0.70710677, %v14290_v8 }
0x1375   : > { %v11037_v58 = vpop.eup %11036  ;;  %11056 = verf.f32 %v7358_v17  ;;  %v7364_v2 = vmul.f32 0.70710677, %v14302_v48  ;;  %v7468_v40 = vmul.f32 %v7420_v24, %v14194_v4  ;;  %v14312_v60 = vadd.f32 %v7268_v0, %v14077_v29 }
0x1376   : > { %v11039_v34 = vpop.eup %11038  ;;  %11058 = verf.f32 %v7363_v57  ;;  %v7656_v33 = vpack.c.bf16 %v7504_v18, %v14243_v50  ;;  %v7470_v11 = vmul.f32 %v7422_v31, %v14204_v52  ;;  %v7427_v53 = vadd.f32 1.0, %v11033_v26 }
0x1377   : > { %11060 = verf.f32 %v7364_v2  ;;  %v7658_v56 = vpack.c.bf16 %v7506_v13, %v14277_v1  ;;  %v11041_v44 = vpop.eup %11040  ;;  %v7429_v62 = vadd.f32 1.0, %v11035_v39  ;;  %v7436_v22 = vadd.f32 1.0, %v11037_v58 }
0x1378   : > { %11062 = verf.f32 %v7365_v61  ;;  %v7366_v23 = vmul.f32 0.70710677, %v14312_v60  ;;  %8355 = vmatprep.mubr.bf16.mxu0 %v7656_v33  ;;  %v7438_v46 = vadd.f32 1.0, %v11039_v34  ;;  %v7644_v29 = vpack.c.bf16 %v7476_v41, %v7468_v40 }
0x1379   : > { %v11043_v4 = vpop.eup %11042  ;;  %11064 = verf.f32 %v7357_v49  ;;  %8418 = vmatprep.mubr.bf16.mxu1 %v7658_v56  ;;  %8356 = vmatmul.mubr.bf16.gmra.mxu0 %v7655_v30  ;;  %v7646_v50 = vpack.c.bf16 %v7478_v59, %v7470_v11  ;;  %v7292_v52 = vmul.f32 0.5, %v14217_v51  ;;  %v7300_v15 = vmul.f32 0.5, %v14249_v9 }
0x137a   : > { %v11045_v18 = vpop.eup %11044  ;;  %v7444_v1 = vadd.f32 1.0, %v11043_v4  ;;  %11066 = verf.f32 %v7366_v23  ;;  %8419 = vmatmul.mubr.bf16.gmra.mxu1 %v7657_v47  ;;  %v7475_v28 = vmul.f32 %v7427_v53, %v14206_v6  ;;  %v7294_v24 = vmul.f32 0.5, %v14220_v55  ;;  %8461 = vmatprep.mubr.bf16.mxu0 %v7644_v29 }
0x137b   : > { %v11047_v7 = vpop.eup %11046  ;;  %v7302_v17 = vmul.f32 0.5, %v14255_v42  ;;  %v7446_v26 = vadd.f32 1.0, %v11045_v18  ;;  %8524 = vmatprep.mubr.bf16.mxu1 %v7646_v50  ;;  %v7277_v13 = vmul.f32 0.5, %v14139_v37  ;;  %v7477_v51 = vmul.f32 %v7429_v62, %v14268_v38 }
0x137c   : > { %v11049_v30 = vpop.eup %11048  ;;  %v7484_v31 = vmul.f32 %v7436_v22, %v7292_v52  ;;  %v7492_v9 = vmul.f32 %v7444_v1, %v7300_v15  ;;  %v7467_v57 = vmul.f32 %v7419_v32, %v14157_v45  ;;  %v7486_v47 = vmul.f32 %v7438_v46, %v7294_v24 }
0x137d   : > { %v7494_v0 = vmul.f32 %v7446_v26, %v7302_v17  ;;  %v7469_v39 = vmul.f32 %v7421_v10, %v7277_v13  ;;  %v7443_v61 = vadd.f32 1.0, %v11047_v7  ;;  %v7445_v49 = vadd.f32 1.0, %v11049_v30 }
0x137e   : > { %v7652_v6 = vpack.c.bf16 %v7492_v9, %v7484_v31  ;;  %v7643_v55 = vpack.c.bf16 %v7475_v28, %v7467_v57  ;;  %v7435_v34 = vadd.f32 1.0, %v11041_v44  ;;  %v7299_v37 = vmul.f32 0.5, %v14236_v43 }
0x137f   : > { %v11051_v41 = vpop.eup %11050  ;;  %v7654_v42 = vpack.c.bf16 %v7494_v0, %v7486_v47  ;;  %v7645_v59 = vpack.c.bf16 %v7477_v51, %v7469_v39  ;;  %v7301_v45 = vmul.f32 0.5, %v14240_v25  ;;  %v7291_v10 = vmul.f32 0.5, %v14213_v16 }
0x1380   : > { %v11053_v58 = vpop.eup %11052  ;;  %v7437_v40 = vadd.f32 1.0, %v11051_v41  ;;  %v7491_v33 = vmul.f32 %v7443_v61, %v7299_v37  ;;  %v7293_v56 = vmul.f32 0.5, %v14260_v54  ;;  %v7308_v43 = vmul.f32 0.5, %v14274_v27 }
0x1381   : > { %v11055_v2 = vpop.eup %11054  ;;  %8462 = vmatmul.mubr.bf16.vlgmr.msra.gmra.mxu0 %v7643_v55  ;;  %v7452_v11 = vadd.f32 1.0, %v11053_v58  ;;  %v7493_v62 = vmul.f32 %v7445_v49, %v7301_v45  ;;  %v7483_v22 = vmul.f32 %v7435_v34, %v7291_v10  ;;  %v7316_v23 = vmul.f32 0.5, %v14302_v48 }
0x1382   : > { %v11057_v38 = vpop.eup %11056  ;;  %8525 = vmatmul.mubr.bf16.vlgmr.msra.gmra.mxu1 %v7645_v59  ;;  %8471 = vmatprep.mubr.bf16.mxu0 %v7652_v6  ;;  %v7485_v46 = vmul.f32 %v7437_v40, %v7293_v56  ;;  %v7310_v29 = vmul.f32 0.5, %v14293_v63  ;;  %v7318_v28 = vmul.f32 0.5, %v14312_v60  ;;  %v7451_v17 = vadd.f32 1.0, %v11055_v2 }
0x1383   : > { %v11059_v32 = vpop.eup %11058  ;;  %8534 = vmatprep.mubr.bf16.mxu1 %v7654_v42  ;;  %v7454_v50 = vadd.f32 1.0, %v11057_v38  ;;  %v7651_v18 = vpack.c.bf16 %v7491_v33, %v7483_v22  ;;  %v7500_v52 = vmul.f32 %v7452_v11, %v7308_v43  ;;  %v7315_v27 = vmul.f32 0.5, %v14296_v14  ;;  %v9524_v43 = vld [vmem:[%s11822_s28 + $0x10] ss:$8 sm:$0x3]  ;;  %s14538_s28 = sld [smem:[#allocation23_spill]] }
0x1384   : > { %v11061_v53 = vpop.eup %11060  ;;  %v7459_v15 = vadd.f32 1.0, %v11059_v32  ;;  %v7653_v7 = vpack.c.bf16 %v7493_v62, %v7485_v46  ;;  %v7317_v63 = vmul.f32 0.5, %v14299_v36  ;;  %v7307_v51 = vmul.f32 0.5, %v14271_v5 }
0x1385   : > { %v11063_v44 = vpop.eup %11062  ;;  %v7460_v4 = vadd.f32 1.0, %v11061_v53  ;;  %v7502_v30 = vmul.f32 %v7454_v50, %v7310_v29  ;;  %v7309_v9 = vmul.f32 0.5, %v14290_v8 }
0x1386   : > { %v11065_v25 = vpop.eup %11064  ;;  %v7461_v54 = vadd.f32 1.0, %v11063_v44  ;;  %v7507_v31 = vmul.f32 %v7459_v15, %v7315_v27  ;;  %v7499_v47 = vmul.f32 %v7451_v17, %v7307_v51  ;;  %v14355_v15 = vrot.slane %v9524_v43, %v12050_v19 }
0x1387   : > { %v11067_v16 = vpop.eup %11066  ;;  %v7508_v1 = vmul.f32 %v7460_v4, %v7316_v23  ;;  %v7453_v26 = vadd.f32 1.0, %v11065_v25 }
0x1388   : > { %v7462_v24 = vadd.f32 1.0, %v11067_v16  ;;  %v7509_v57 = vmul.f32 %v7461_v54, %v7317_v63  ;;  %v7659_v14 = vpack.c.bf16 %v7507_v31, %v7499_v47  ;;  %v14352_v16 = vrot.slane %v9524_v43, %v12053_v20 }
0x1389   : > { %8472 = vmatmul.mubr.bf16.gmra.mxu0 %v7651_v18  ;;  %v7660_v48 = vpack.c.bf16 %v7508_v1, %v7500_v52  ;;  %v7501_v0 = vmul.f32 %v7453_v26, %v7309_v9  ;;  %p9525_p4 = scmp.ne.s32.totalorder %s14538_s28, 8 }
0x138a   : > { %v7510_v13 = vmul.f32 %v7462_v24, %v7318_v28  ;;  %8535 = vmatmul.mubr.bf16.gmra.mxu1 %v7653_v7  ;;  %s14539_s19 = sld [smem:[#allocation41_spill]] (!%p9525_p4) }
0x138b   : > { %8481 = vmatprep.mubr.bf16.mxu0 %v7660_v48  ;;  %v7661_v39 = vpack.c.bf16 %v7509_v57, %v7501_v0 }
0x138c   : > { %v7662_v60 = vpack.c.bf16 %v7510_v13, %v7502_v30 }
0x138e   : > { %8544 = vmatprep.mubr.bf16.mxu1 %v7662_v60 }
0x1390   : > { %s14540_s12 = smov (!%p9525_p4), %s14539_s19 }
0x1391   : > { %8482 = vmatmul.mubr.bf16.gmra.mxu0 %v7659_v14 }
0x1392   : > { %8545 = vmatmul.mubr.bf16.gmra.mxu1 %v7661_v39 }
0x13e9   : > { %v8337_v6 = vpop.f32.mrf.mxu0 }
0x13ea   : > { %v8400_v41 = vpop.f32.mrf.mxu1 }
0x13eb   : > { %v8339_v36 = vpop.f32.mrf.mxu0  ;;  %v8401_v62 = vadd.f32 %v8400_v41, %v8337_v6 }
0x13ec   : > { %v8402_v55 = vpop.f32.mrf.mxu1 }
0x13ed   : > { %v8341_v61 = vpop.f32.mrf.mxu0  ;;  %v8403_v23 = vadd.f32 %v8402_v55, %v8339_v36 }
0x13ee   : > { %v8404_v42 = vpop.f32.mrf.mxu1 }
0x13ef   : > { %v8343_v5 = vpop.f32.mrf.mxu0  ;;  %v8405_v29 = vadd.f32 %v8404_v42, %v8341_v61  ;;  %v14530_v61 = vld [vmem:[#allocation27_spill] sm:$0xff] }
0x13f0   : > { %v8406_v58 = vpop.f32.mrf.mxu1 }
0x13f1   : > { %v8407_v7 = vadd.f32 %v8406_v58, %v8343_v5 }
0x142c   : > { %v8347_v59 = vpop.f32.mrf.mxu0 }
0x142d   : > { %v8410_v49 = vpop.f32.mrf.mxu1 }
0x142e   : > { %v8349_v8 = vpop.f32.mrf.mxu0  ;;  %v8411_v27 = vadd.f32 %v8410_v49, %v8347_v59 }
0x142f   : > { %v8412_v2 = vpop.f32.mrf.mxu1 }
0x1430   : > { %v8351_v34 = vpop.f32.mrf.mxu0  ;;  %v8413_v51 = vadd.f32 %v8412_v2, %v8349_v8 }
0x1431   : > { %v8414_v37 = vpop.f32.mrf.mxu1 }
0x1432   : > { %v8353_v38 = vpop.f32.mrf.mxu0  ;;  %v8415_v47 = vadd.f32 %v8414_v37, %v8351_v34 }
0x1433   : > { %v8416_v40 = vpop.f32.mrf.mxu1 }
0x1434   : > { %v8417_v36 = vadd.f32 %v8416_v40, %v8353_v38 }
0x1439   : > { %v8357_v45 = vpop.f32.mrf.mxu0 }
0x143a   : > { %v8420_v32 = vpop.f32.mrf.mxu1 }
0x143b   : > { %v14338_v10 = vpop.f32.mrf.mxu0  ;;  %v8421_v49 = vadd.f32 %v8420_v32, %v8357_v45 }
0x143c   : > { %v14340_v33 = vpop.f32.mrf.mxu1 }
0x143d   : > { %v14342_v11 = vpop.f32.mrf.mxu0  ;;  %v8423_v40 = vadd.f32 %v14340_v33, %v14338_v10 }
0x143e   : > { %v14344_v53 = vpop.f32.mrf.mxu1 }
0x143f   : > { %v14346_v56 = vpop.f32.mrf.mxu0 }
0x1440   : > { %v14348_v44 = vpop.f32.mrf.mxu1 }
0x1441   : > { %v8463_v22 = vpop.f32.mrf.mxu0 }
0x1442   : > { %v8464_v4 = vadd.f32 %v8463_v22, %v8401_v62  ;;  %v8526_v25 = vpop.f32.mrf.mxu1 }
0x1443   : > { %v8465_v46 = vpop.f32.mrf.mxu0 }
0x1444   : > { %v8527_v50 = vadd.f32 %v8526_v25, %v8464_v4  ;;  %v8466_v18 = vadd.f32 %v8465_v46, %v8403_v23  ;;  %v8528_v52 = vpop.f32.mrf.mxu1  ;;  %v14532_v23 = vld [vmem:[#allocation29_spill] sm:$0xff]  ;;  %v8425_v46 = vadd.f32 %v14344_v53, %v14342_v11 }
0x1445   : > { %v8467_v1 = vpop.f32.mrf.mxu0 }
0x1446   : > { %v8555_v54 = vadd.f32 %v8527_v50, %v13539_v12  ;;  %v8529_v28 = vadd.f32 %v8528_v52, %v8466_v18  ;;  %v8468_v24 = vadd.f32 %v8467_v1, %v8405_v29  ;;  %v8530_v17 = vpop.f32.mrf.mxu1  ;;  %v14533_v18 = vld [vmem:[#allocation30_spill] sm:$0xff] }
0x1447   : > { %v8469_v48 = vpop.f32.mrf.mxu0 }
0x1448   : > { %v14359_v26 = vadd.f32 %v14352_v16, %v8555_v54  ;;  %v8556_v20 = vadd.f32 %v8529_v28, %v13541_v3  ;;  %v8531_v30 = vadd.f32 %v8530_v17, %v8468_v24  ;;  %v8470_v63 = vadd.f32 %v8469_v48, %v8407_v7  ;;  %v8532_v13 = vpop.f32.mrf.mxu1  ;;  %v14534_v24 = vld [vmem:[#allocation31_spill] sm:$0xff] }
0x1449   : > { %v8473_v19 = vpop.f32.mrf.mxu0  ;;  %v8427_v7 = vadd.f32 %v14348_v44, %v14346_v56  ;;  %v14536_v44 = vld [vmem:[#allocation33_spill] sm:$0xff] }
0x144a   : > { %8592 = vst [vmem:[#allocation2 + $0x30] sm:$0xff] %v14359_v26  ;;  %v14364_v31 = vadd.f32 %v14355_v15, %v8556_v20  ;;  %v8557_v12 = vadd.f32 %v8531_v30, %v13547_v21  ;;  %v8533_v9 = vadd.f32 %v8532_v13, %v8470_v63  ;;  %v8474_v57 = vadd.f32 %v8473_v19, %v8411_v27  ;;  %v8536_v60 = vpop.f32.mrf.mxu1  ;;  %v14535_v30 = vld [vmem:[#allocation32_spill] sm:$0xff] }
0x144b   : > { %v8475_v0 = vpop.f32.mrf.mxu0 }
0x144c   : > { %8593 = vst [vmem:[#allocation2] sm:$0xff] %v14364_v31  ;;  %v14369_v3 = vadd.f32 %v14352_v16, %v8557_v12  ;;  %v8558_v14 = vadd.f32 %v8533_v9, %v13549_v35  ;;  %v8537_v39 = vadd.f32 %v8536_v60, %v8474_v57  ;;  %v8476_v6 = vadd.f32 %v8475_v0, %v8413_v51  ;;  %v8538_v41 = vpop.f32.mrf.mxu1  ;;  %v14531_v35 = vld [vmem:[#allocation28_spill] sm:$0xff]  ;;  %v14537_v60 = vld [vmem:[#allocation34_spill] sm:$0xff] }
0x144d   : > { %v8477_v55 = vpop.f32.mrf.mxu0 }
0x144e   : > { %8594 = vst [vmem:[#allocation2 + $0x58] sm:$0xff] %v14369_v3  ;;  %v8583_v21 = vadd.f32 %v14355_v15, %v8558_v14  ;;  %v8559_v42 = vadd.f32 %v8537_v39, %v14530_v61  ;;  %v8539_v5 = vadd.f32 %v8538_v41, %v8476_v6  ;;  %v8478_v58 = vadd.f32 %v8477_v55, %v8415_v47  ;;  %v8540_v59 = vpop.f32.mrf.mxu1 }
0x144f   : > { %v8479_v8 = vpop.f32.mrf.mxu0 }
0x1450   : > { %8595 = vst [vmem:[#allocation2 + $0x18] sm:$0xff] %v8583_v21  ;;  %v8584_v2 = vadd.f32 %v14352_v16, %v8559_v42  ;;  %v8560_v34 = vadd.f32 %v8539_v5, %v14531_v35  ;;  %v8541_v37 = vadd.f32 %v8540_v59, %v8478_v58  ;;  %v8480_v62 = vadd.f32 %v8479_v8, %v8417_v36  ;;  %v8542_v38 = vpop.f32.mrf.mxu1 }
0x1451   : > { %v8483_v22 = vpop.f32.mrf.mxu0 }
0x1452   : > { %8596 = vst [vmem:[#allocation2 + $0x50] sm:$0xff] %v8584_v2  ;;  %v8585_v43 = vadd.f32 %v14355_v15, %v8560_v34  ;;  %v8561_v4 = vadd.f32 %v8541_v37, %v14532_v23  ;;  %v8543_v25 = vadd.f32 %v8542_v38, %v8480_v62  ;;  %v8484_v45 = vadd.f32 %v8483_v22, %v8421_v49  ;;  %v8546_v32 = vpop.f32.mrf.mxu1 }
0x1453   : > { %v8485_v29 = vpop.f32.mrf.mxu0 }
0x1454   : > { %8597 = vst [vmem:[#allocation2 + $0x20] sm:$0xff] %v8585_v43  ;;  %v8586_v50 = vadd.f32 %v14352_v16, %v8561_v4  ;;  %v8562_v52 = vadd.f32 %v8543_v25, %v14533_v18  ;;  %v8547_v1 = vadd.f32 %v8546_v32, %v8484_v45  ;;  %v8486_v10 = vadd.f32 %v8485_v29, %v8423_v40  ;;  %v8548_v33 = vpop.f32.mrf.mxu1 }
0x1455   : > { %v8487_v54 = vpop.f32.mrf.mxu0 }
0x1456   : > { %8598 = vst [vmem:[#allocation2 + $0x8] sm:$0xff] %v8586_v50  ;;  %v8587_v28 = vadd.f32 %v14355_v15, %v8562_v52  ;;  %v8563_v17 = vadd.f32 %v8547_v1, %v14534_v24  ;;  %v8549_v27 = vadd.f32 %v8548_v33, %v8486_v10  ;;  %v8488_v11 = vadd.f32 %v8487_v54, %v8425_v46  ;;  %v8550_v53 = vpop.f32.mrf.mxu1 }
0x1457   : > { %v8489_v48 = vpop.f32.mrf.mxu0 }
0x1458   : > { %8599 = vst [vmem:[#allocation2 + $0x38] sm:$0xff] %v8587_v28  ;;  %v8588_v20 = vadd.f32 %v14352_v16, %v8563_v17  ;;  %v8564_v63 = vadd.f32 %v8549_v27, %v14535_v30  ;;  %v8551_v13 = vadd.f32 %v8550_v53, %v8488_v11  ;;  %v8490_v51 = vadd.f32 %v8489_v48, %v8427_v7  ;;  %v8552_v19 = vpop.f32.mrf.mxu1 }
0x145a   : > { %8600 = vst [vmem:[#allocation2 + $0x28] sm:$0xff] %v8588_v20  ;;  %v8589_v56 = vadd.f32 %v14355_v15, %v8564_v63  ;;  %v8565_v12 = vadd.f32 %v8551_v13, %v14536_v44  ;;  %v8553_v9 = vadd.f32 %v8552_v19, %v8490_v51 }
0x145c   : > { %8601 = vst [vmem:[#allocation2 + $0x48] sm:$0xff] %v8589_v56  ;;  %v8590_v57 = vadd.f32 %v14352_v16, %v8565_v12  ;;  %v8566_v47 = vadd.f32 %v8553_v9, %v14537_v60  ;;  %8607 = sbr.rel (%p9525_p4) target bundleno = 5224 (0x1468), region = 108 }
0x145e   : > { %8602 = vst [vmem:[#allocation2 + $0x10] sm:$0xff] %v8590_v57  ;;  %v8591_v0 = vadd.f32 %v14355_v15, %v8566_v47 }
0x1460   : > { %8603 = vst [vmem:[#allocation2 + $0x40] sm:$0xff] %v8591_v0 }
0x1461   : > { %8608 = vst [vmem:[%s14539_s19] sm:$0xff] %v14359_v26 }
0x1462   : > { %8609 = vst [vmem:[%s14540_s12 + $0x8] sm:$0xff] %v14364_v31  ;;  %8610 = vst [vmem:[%s14540_s12 + $0x10] sm:$0xff] %v14369_v3 }
0x1463   : > { %8611 = vst [vmem:[%s14540_s12 + $0x18] sm:$0xff] %v8583_v21  ;;  %8612 = vst [vmem:[%s14540_s12 + $0x20] sm:$0xff] %v8584_v2 }
0x1464   : > { %8613 = vst [vmem:[%s14540_s12 + $0x28] sm:$0xff] %v8585_v43  ;;  %8614 = vst [vmem:[%s14540_s12 + $0x30] sm:$0xff] %v8586_v50 }
0x1465   : > { %8615 = vst [vmem:[%s14540_s12 + $0x38] sm:$0xff] %v8587_v28  ;;  %8616 = vst [vmem:[%s14540_s12 + $0x40] sm:$0xff] %v8588_v20 }
0x1466   : > { %8617 = vst [vmem:[%s14540_s12 + $0x48] sm:$0xff] %v8589_v56  ;;  %8618 = vst [vmem:[%s14540_s12 + $0x50] sm:$0xff] %v8590_v57 }
0x1467   : > { %8619 = vst [vmem:[%s14540_s12 + $0x58] sm:$0xff] %v8591_v0 }
0x1468 PF: > { %s14541_s20 = sld [smem:[#allocation24_spill]]  ;;  %s14544_s17 = smov %s11374_s18 }
0x1469   : > { %s14542_s9 = sld [smem:[#allocation22_spill]] }
0x146a   : > { %s14543_s19 = sld [smem:[#allocation25_spill]] }
0x146e   : > { %p33_p5 = scmp.ge.s32.totalorder %s14541_s20, 11  }
0x146f   : > { %s14545_s18 = smov %s14542_s9 }
0x1470   :  { %35 = sbr.rel (!%p33_p5) target bundleno = 19 (0x13), region = 212 }
0x1475   :  { %8631 = vsyncpa [#allocation4], 1 }
0x1476   :  { %8633 = vsyncpa [#allocation4 + $0x1], 1 }
0x1477   :  { %8634 = vsyncpa [#allocation6], 1 }
0x1478   :  { %8636 = vsyncpa [#allocation6 + $0x1], 1 }
0x1479   :  { %8637 = vsyncpa [#allocation9], 1 }
0x147a   :  { %8639 = vsyncpa [#allocation9 + $0x1], 1 }
0x147b   :  { %8640 = vsyncpa [#allocation12], 1 }
0x147c   :  { %8642 = vsyncpa [#allocation12 + $0x1], 1 }
0x147d   :  { %8643 = vsyncpa [#allocation15], 1 }
0x147e   :  { %8645 = vsyncpa [#allocation15 + $0x1], 1 }

</bundles_post_ra>
